<compile_context>
chip_gen: v6e
topology: v6e:2x2x1
jax: 0.10.0
libtpu: 0.0.40
codegen_flags: <defaults>
</compile_context>

<pallas_src>
import functools

import jax
import jax.numpy as jnp
from jax.experimental import pallas as pl
from jax.experimental.pallas import tpu as pltpu

nc = 3
ngf = 64
nz = 100
BN_EPS = 1e-5


# ----------------------------------------------------------------------------
# small helpers
# ----------------------------------------------------------------------------
def _round_up(x, m):
    return ((x + m - 1) // m) * m


def _pick_tile(dim, max_tile, unit):
    """Largest multiple of `unit` <= max_tile dividing round_up(dim, unit)."""
    p = _round_up(max(dim, unit), unit)
    if p <= max_tile:
        return p, p
    t = (max_tile // unit) * unit
    while p % t:
        t -= unit
    return t, p


def _pad2(x, rows, cols):
    r, c = x.shape[-2], x.shape[-1]
    if r == rows and c == cols:
        return x
    pad = [(0, 0)] * (x.ndim - 2) + [(0, rows - r), (0, cols - c)]
    return jnp.pad(x, pad)


# ----------------------------------------------------------------------------
# Pallas kernels
# ----------------------------------------------------------------------------
def _mm_stats_kernel(a_ref, b_ref, y_ref, stat_ref):
    """Single-K-block matmul with fused per-column [sum; sum_sq] partials.

    Each (phase, row-tile) grid step writes its own partial-stats block, so
    both grid axes can be "parallel" (no cross-step accumulation / races).
    """
    acc = jnp.dot(a_ref[...], b_ref[...], preferred_element_type=jnp.float32)
    y_ref[...] = acc.astype(y_ref.dtype)
    s = jnp.sum(acc, axis=0, keepdims=True)
    sq = jnp.sum(acc * acc, axis=0, keepdims=True)
    stat_ref[...] = jnp.concatenate([s, sq], axis=0)


def _mm_act_kernel(a_ref, b_ref, y_ref, *, act):
    """Single-K-block matmul with fused activation epilogue (no BN)."""
    y = jnp.dot(a_ref[...], b_ref[...], preferred_element_type=jnp.float32)
    if act == "tanh":
        y = jnp.tanh(y)
    elif act == "relu":
        y = jnp.maximum(y, 0.0)
    y_ref[...] = y.astype(y_ref.dtype)


# ----------------------------------------------------------------------------
# Pallas wrapper
# ----------------------------------------------------------------------------
def pallas_bmm(a, b, *, with_stats, act="none", out_dtype=jnp.bfloat16,
               max_tm=256):
    """Phase-batched matmul on the MXU: bf16 feeds, f32 accumulation, K and
    the channel axis each as a single lane-/VMEM-resident block.

    a: (PA, M, K) with PA in {1, P} (PA==1 -> broadcast along phases)
    b: (P,  K, C)
    Returns y of shape (P, Mp, Cp) (rows/channels zero padded) and, when
    `with_stats`, a (2, Cp) f32 tensor of per-column [sum; sum of squares]
    over all phases and rows (padded rows/cols contribute exactly zero).
    """
    PA, M, K = a.shape
    P, Kb, C = b.shape
    assert Kb == K and PA in (1, P)

    tm, Mp = _pick_tile(M, max_tm, 16)        # bf16-native 16-row granularity
    Kp = _round_up(K, 128)                    # single K block (no k grid axis)
    Cp = _round_up(C, 128)

    a = _pad2(a, Mp, Kp).astype(jnp.bfloat16)
    b = _pad2(b, Kp, Cp).astype(jnp.bfloat16)

    ni = Mp // tm
    grid = (P, ni)
    a_idx = (lambda p, i: (p, i, 0)) if PA == P else (lambda p, i: (0, i, 0))
    in_specs = [
        pl.BlockSpec((None, tm, Kp), a_idx),
        pl.BlockSpec((None, Kp, Cp), lambda p, i: (p, 0, 0)),
    ]
    y_spec = pl.BlockSpec((None, tm, Cp), lambda p, i: (p, i, 0))

    if with_stats:
        out_shape = (jax.ShapeDtypeStruct((P, Mp, Cp), out_dtype),
                     jax.ShapeDtypeStruct((P, ni, 2, Cp), jnp.float32))
        out_specs = (y_spec,
                     pl.BlockSpec((None, None, 2, Cp),
                                  lambda p, i: (p, i, 0, 0)))
        kernel = _mm_stats_kernel
    else:
        out_shape = jax.ShapeDtypeStruct((P, Mp, Cp), out_dtype)
        out_specs = y_spec
        kernel = functools.partial(_mm_act_kernel, act=act)

    out = pl.pallas_call(
        kernel,
        out_shape=out_shape,
        grid_spec=pltpu.PrefetchScalarGridSpec(
            num_scalar_prefetch=0,
            grid=grid,
            in_specs=in_specs,
            out_specs=out_specs,
        ),
        compiler_params=pltpu.CompilerParams(
            dimension_semantics=("parallel", "parallel")),
    )(a, b)

    if with_stats:
        y, stats = out
        return y, stats.sum(axis=(0, 1))      # tiny XLA reduce -> (2, Cp)
    return out


# ----------------------------------------------------------------------------
# BatchNorm (training mode, fresh gamma=1 / beta=0 like nn.BatchNorm2d init)
# ----------------------------------------------------------------------------
def _bn_scale_shift(stats, count):
    # E[x^2]-E[x]^2 in f32, clamped; fine at DCGAN activation scales.
    mean = stats[0] / count
    var = jnp.maximum(stats[1] / count - mean * mean, 0.0)
    scale = jax.lax.rsqrt(var + BN_EPS)                      # gamma = 1
    shift = -mean * scale                                    # beta  = 0
    return scale, shift


def _affine_relu(y, scale, shift):
    """Per-channel affine + ReLU; fused by XLA with adjacent slice/transpose."""
    y = y.astype(jnp.float32) * scale + shift
    return jnp.maximum(y, 0.0).astype(jnp.bfloat16)


# ----------------------------------------------------------------------------
# ConvTranspose2d lowering (im2col / phase interleave is XLA glue)
# ----------------------------------------------------------------------------
def _subpixel_patches(x_nhwc):
    """im2col for the 4 sub-pixel phases of ConvTranspose2d(k=4, s=2, p=1)."""
    N, H, W, C = x_nhwc.shape
    xp = jnp.pad(x_nhwc, ((0, 0), (1, 1), (1, 1), (0, 0)))
    phases = []
    for py in range(2):
        for px in range(2):
            taps = [xp[:, py + dy:py + dy + H, px + dx:px + dx + W, :]
                    for dy in range(2) for dx in range(2)]
            a = jnp.stack(taps, axis=3)                      # (N, H, W, 4, C)
            phases.append(a.reshape(N * H * W, 4 * C))
    return jnp.stack(phases, axis=0)                         # (4, NHW, 4C)


def _subpixel_weights(w):
    """Per-phase weight matrices matching the `_subpixel_patches` K ordering."""
    Cin, Cout = w.shape[0], w.shape[1]
    phases = []
    for py in range(2):
        for px in range(2):
            taps = [w[:, :, 3 - py - 2 * dy, 3 - px - 2 * dx]
                    for dy in range(2) for dx in range(2)]   # each (Cin, Cout)
            phases.append(jnp.stack(taps, axis=0).reshape(4 * Cin, Cout))
    return jnp.stack(phases, axis=0)                         # (4, 4*Cin, Cout)


def _interleave_phases(y, N, H, W, C):
    """(4 = py*2+px, N*H*W, C) -> NHWC (N, 2H, 2W, C)."""
    y = y.reshape(2, 2, N, H, W, C).transpose(2, 3, 0, 4, 1, 5)
    return y.reshape(N, 2 * H, 2 * W, C)


def _deconv1_bn_relu(x_nchw, w):
    """ConvTranspose2d(nz, C, 4, 1, 0) on a 1x1 input + BN + ReLU.

    All 16 output pixels are folded onto the lane axis: one
    (N, nz) @ (nz, 16*C) matmul with fused per-column stats; the result
    reshapes straight to NHWC (columns are ordered (oh, ow, co)).
    """
    N = x_nchw.shape[0]
    Cin, Cout, kH, kW = w.shape
    a = x_nchw.reshape(1, N, Cin)                                # (1, N, Cin)
    b = w.transpose(0, 2, 3, 1).reshape(1, Cin, kH * kW * Cout)  # (1, Cin, 16C)

    y, stats = pallas_bmm(a, b, with_stats=True)                 # (1, Mp, 16C)
    stats_c = stats[:, :kH * kW * Cout].reshape(2, kH * kW, Cout).sum(axis=1)
    scale, shift = _bn_scale_shift(stats_c, float(N * kH * kW))
    y = y[0, :N, :kH * kW * Cout].reshape(N, kH, kW, Cout)       # NHWC
    return _affine_relu(y, scale, shift)


def _deconv2_bn_relu(x_nhwc, w):
    """ConvTranspose2d(Cin, Cout, 4, 2, 1) + BN + ReLU via 4 sub-pixel phases."""
    N, H, W, Cin = x_nhwc.shape
    Cout = w.shape[1]
    a = _subpixel_patches(x_nhwc)                                # (4, NHW, 4Cin)
    b = _subpixel_weights(w)                                     # (4, 4Cin, Cout)
    y, stats = pallas_bmm(a, b, with_stats=True)                 # (4, Mp, Cp)
    M = N * H * W
    scale, shift = _bn_scale_shift(stats[:, :Cout], float(4 * M))
    y = _affine_relu(y[:, :M, :Cout], scale, shift)              # fused w/ glue
    return _interleave_phases(y, N, H, W, Cout)                  # NHWC (2H, 2W)


def _deconv_final_tanh(x_nhwc, w):
    """Final ConvTranspose2d(Cin, 3, 4, 2, 1) + Tanh.

    Single shared-A 9-tap im2col; the 4 sub-pixel phases live on the lane
    axis (12 real output columns), so one matmul with a bf16 tanh epilogue
    replaces 4 padding-dominated phase matmuls.
    """
    N, H, W, Cin = x_nhwc.shape
    Cout = w.shape[1]
    xp = jnp.pad(x_nhwc, ((0, 0), (1, 1), (1, 1), (0, 0)))
    taps = [xp[:, ty:ty + H, tx:tx + W, :]
            for ty in range(3) for tx in range(3)]
    a = jnp.stack(taps, axis=3).reshape(1, N * H * W, 9 * Cin)   # (1, M, 9Cin)

    # B[(ty,tx,ci), (py,px,co)]; zero where a tap lies outside that phase's
    # 2x2 window (the 4 phases share one 3x3 neighborhood).
    b = jnp.zeros((3, 3, Cin, 2, 2, Cout), jnp.float32)
    for py in range(2):
        for px in range(2):
            for dy in range(2):
                for dx in range(2):
                    ty, tx = py + dy, px + dx
                    b = b.at[ty, tx, :, py, px, :].set(
                        w[:, :, 3 - py - 2 * dy, 3 - px - 2 * dx])
    b = b.reshape(1, 9 * Cin, 4 * Cout)

    y = pallas_bmm(a, b, with_stats=False, act="tanh")           # (1, Mp, 128)
    M = N * H * W
    y = y[0, :M, :4 * Cout].reshape(N, H, W, 2, 2, Cout)
    y = y.transpose(0, 1, 3, 2, 4, 5).reshape(N, 2 * H, 2 * W, Cout)
    return y.astype(jnp.float32)


# ----------------------------------------------------------------------------
# Generator forward
# ----------------------------------------------------------------------------
def init_params(key):
    shapes = [
        (nz, ngf * 8, 4, 4),
        (ngf * 8, ngf * 4, 4, 4),
        (ngf * 4, ngf * 2, 4, 4),
        (ngf * 2, ngf, 4, 4),
        (ngf, nc, 4, 4),
    ]
    keys = jax.random.split(key, len(shapes))
    # DCGAN init: weights ~ N(0, 0.02); BatchNorm gamma=1 / beta=0 implicit.
    return [0.02 * jax.random.normal(k, s, jnp.float32)
            for k, s in zip(keys, shapes)]


def generator_forward(x, weights):
    # Matches the nn.Sequential: ConvT(nz,512,4,1,0)+BN+ReLU,
    # 3x [ConvT(.,.,4,2,1)+BN+ReLU], ConvT(64,3,4,2,1)+Tanh.
    # BatchNorm uses batch statistics (training mode, biased variance) with
    # gamma=1 / beta=0 (fresh nn.BatchNorm2d).
    h = _deconv1_bn_relu(x, weights[0])          # (N,  4,  4, 512)  NHWC
    h = _deconv2_bn_relu(h, weights[1])          # (N,  8,  8, 256)
    h = _deconv2_bn_relu(h, weights[2])          # (N, 16, 16, 128)
    h = _deconv2_bn_relu(h, weights[3])          # (N, 32, 32,  64)
    h = _deconv_final_tanh(h, weights[4])        # (N, 64, 64,   3)
    return h.transpose(0, 3, 1, 2)               # single NHWC -> NCHW at end


if __name__ == "__main__":
    key = jax.random.PRNGKey(0)
    kp, kx = jax.random.split(key)
    weights = init_params(kp)

    batch = 2
    x = jax.random.normal(kx, (batch, nz, 1, 1), jnp.float32)

    fwd = jax.jit(generator_forward)
    out = jax.block_until_ready(fwd(x, weights))

    assert out.shape == (batch, nc, 64, 64), out.shape
    assert bool(jnp.all(jnp.isfinite(out)))
    print("KERNEL_OK")
</pallas_src>

<mosaic_0001>
module attributes {stable_mosaic.version = 11 : i64} {
  func.func @_mm_stats_kernel(%arg0: i32, %arg1: i32, %arg2: memref<1x16x128xbf16, #tpu.memory_space<vmem>>, %arg3: memref<1x128x8192xbf16, #tpu.memory_space<vmem>>, %arg4: memref<1x16x8192xbf16, #tpu.memory_space<vmem>>, %arg5: memref<1x1x2x8192xf32, #tpu.memory_space<vmem>>) attributes {dimension_semantics = [#tpu.dimension_semantics<parallel>, #tpu.dimension_semantics<parallel>], iteration_bounds = array<i64: 1, 1>, scalar_prefetch = 0 : i64, scratch_operands = 0 : i64, tpu.core_type = #tpu.core_type<tc>, window_params = [{transform_indices = @transform_0, window_bounds = array<i64: 1, 16, 128>}, {transform_indices = @transform_1, window_bounds = array<i64: 1, 128, 8192>}, {transform_indices = @transform_2, window_bounds = array<i64: 1, 16, 8192>}, {transform_indices = @transform_3, window_bounds = array<i64: 1, 1, 2, 8192>}]} {
    %c0 = arith.constant 0 : index
    %c0_0 = arith.constant 0 : index
    %c0_1 = arith.constant 0 : index
    %0 = vector.load %arg2[%c0, %c0_0, %c0_1] : memref<1x16x128xbf16, #tpu.memory_space<vmem>>, vector<1x16x128xbf16>
    %1 = vector.shape_cast %0 : vector<1x16x128xbf16> to vector<16x128xbf16>
    %c0_2 = arith.constant 0 : index
    %c0_3 = arith.constant 0 : index
    %c0_4 = arith.constant 0 : index
    %2 = vector.load %arg3[%c0_2, %c0_3, %c0_4] : memref<1x128x8192xbf16, #tpu.memory_space<vmem>>, vector<1x128x8192xbf16>
    %3 = vector.shape_cast %2 : vector<1x128x8192xbf16> to vector<128x8192xbf16>
    %cst = arith.constant dense<0.000000e+00> : vector<16x8192xf32>
    %4 = tpu.matmul %1, %3, %cst {dimension_numbers = #tpu.dot_dimension_numbers<[1], [0], [0], [1], [0, 0, 1, 1], [], []>} : vector<16x128xbf16>, vector<128x8192xbf16>, vector<16x8192xf32> -> vector<16x8192xf32>
    %5 = arith.truncf %4 : vector<16x8192xf32> to vector<16x8192xbf16>
    %c0_5 = arith.constant 0 : index
    %c0_6 = arith.constant 0 : index
    %c0_7 = arith.constant 0 : index
    %6 = vector.load %arg4[%c0_5, %c0_6, %c0_7] : memref<1x16x8192xbf16, #tpu.memory_space<vmem>>, vector<1x16x8192xbf16>
    %7 = vector.shape_cast %6 : vector<1x16x8192xbf16> to vector<16x8192xbf16>
    %8 = vector.shape_cast %5 : vector<16x8192xbf16> to vector<1x16x8192xbf16>
    tpu.vector_store %arg4[%c0_5, %c0_6, %c0_7], %8 {strides = array<i32>} : memref<1x16x8192xbf16, #tpu.memory_space<vmem>>, vector<1x16x8192xbf16>,
    %cst_8 = arith.constant dense<0.000000e+00> : vector<8192xf32>
    %9 = vector.multi_reduction <add>, %4, %cst_8 [0] : vector<16x8192xf32> to vector<8192xf32>
    %10 = vector.shape_cast %9 : vector<8192xf32> to vector<1x8192xf32>
    %11 = arith.mulf %4, %4 : vector<16x8192xf32>
    %cst_9 = arith.constant dense<0.000000e+00> : vector<8192xf32>
    %12 = vector.multi_reduction <add>, %11, %cst_9 [0] : vector<16x8192xf32> to vector<8192xf32>
    %13 = vector.shape_cast %12 : vector<8192xf32> to vector<1x8192xf32>
    %14 = tpu.concatenate %10, %13 in 0 : vector<1x8192xf32>, vector<1x8192xf32> -> vector<2x8192xf32>
    %c0_10 = arith.constant 0 : index
    %c0_11 = arith.constant 0 : index
    %c0_12 = arith.constant 0 : index
    %c0_13 = arith.constant 0 : index
    %15 = vector.load %arg5[%c0_10, %c0_11, %c0_12, %c0_13] : memref<1x1x2x8192xf32, #tpu.memory_space<vmem>>, vector<1x1x2x8192xf32>
    %16 = vector.shape_cast %15 : vector<1x1x2x8192xf32> to vector<2x8192xf32>
    %17 = vector.shape_cast %14 : vector<2x8192xf32> to vector<1x1x2x8192xf32>
    tpu.vector_store %arg5[%c0_10, %c0_11, %c0_12, %c0_13], %17 {strides = array<i32>} : memref<1x1x2x8192xf32, #tpu.memory_space<vmem>>, vector<1x1x2x8192xf32>,
    return
  }
  func.func @transform_0(%arg0: i32, %arg1: i32) -> (i32, i32, i32) {
    %c0_i32 = arith.constant 0 : i32
    %c0_i32_0 = arith.constant 0 : i32
    return %arg0, %arg1, %c0_i32 : i32, i32, i32
  }
  func.func @transform_1(%arg0: i32, %arg1: i32) -> (i32, i32, i32) {
    %c0_i32 = arith.constant 0 : i32
    %c0_i32_0 = arith.constant 0 : i32
    %c0_i32_1 = arith.constant 0 : i32
    return %arg0, %c0_i32, %c0_i32_0 : i32, i32, i32
  }
  func.func @transform_2(%arg0: i32, %arg1: i32) -> (i32, i32, i32) {
    %c0_i32 = arith.constant 0 : i32
    %c0_i32_0 = arith.constant 0 : i32
    return %arg0, %arg1, %c0_i32 : i32, i32, i32
  }
  func.func @transform_3(%arg0: i32, %arg1: i32) -> (i32, i32, i32, i32) {
    %c0_i32 = arith.constant 0 : i32
    %c0_i32_0 = arith.constant 0 : i32
    %c0_i32_1 = arith.constant 0 : i32
    return %arg0, %arg1, %c0_i32, %c0_i32_0 : i32, i32, i32, i32
  }
}

module attributes {stable_mosaic.version = 11 : i64} {
  func.func @_mm_stats_kernel(%arg0: i32, %arg1: i32, %arg2: memref<1x32x2048xbf16, #tpu.memory_space<vmem>>, %arg3: memref<1x2048x256xbf16, #tpu.memory_space<vmem>>, %arg4: memref<1x32x256xbf16, #tpu.memory_space<vmem>>, %arg5: memref<1x1x2x256xf32, #tpu.memory_space<vmem>>) attributes {dimension_semantics = [#tpu.dimension_semantics<parallel>, #tpu.dimension_semantics<parallel>], iteration_bounds = array<i64: 4, 1>, scalar_prefetch = 0 : i64, scratch_operands = 0 : i64, tpu.core_type = #tpu.core_type<tc>, window_params = [{transform_indices = @transform_0, window_bounds = array<i64: 1, 32, 2048>}, {transform_indices = @transform_1, window_bounds = array<i64: 1, 2048, 256>}, {transform_indices = @transform_2, window_bounds = array<i64: 1, 32, 256>}, {transform_indices = @transform_3, window_bounds = array<i64: 1, 1, 2, 256>}]} {
    %c0 = arith.constant 0 : index
    %c0_0 = arith.constant 0 : index
    %c0_1 = arith.constant 0 : index
    %0 = vector.load %arg2[%c0, %c0_0, %c0_1] : memref<1x32x2048xbf16, #tpu.memory_space<vmem>>, vector<1x32x2048xbf16>
    %1 = vector.shape_cast %0 : vector<1x32x2048xbf16> to vector<32x2048xbf16>
    %c0_2 = arith.constant 0 : index
    %c0_3 = arith.constant 0 : index
    %c0_4 = arith.constant 0 : index
    %2 = vector.load %arg3[%c0_2, %c0_3, %c0_4] : memref<1x2048x256xbf16, #tpu.memory_space<vmem>>, vector<1x2048x256xbf16>
    %3 = vector.shape_cast %2 : vector<1x2048x256xbf16> to vector<2048x256xbf16>
    %cst = arith.constant dense<0.000000e+00> : vector<32x256xf32>
    %4 = tpu.matmul %1, %3, %cst {dimension_numbers = #tpu.dot_dimension_numbers<[1], [0], [0], [1], [0, 0, 1, 1], [], []>} : vector<32x2048xbf16>, vector<2048x256xbf16>, vector<32x256xf32> -> vector<32x256xf32>
    %5 = arith.truncf %4 : vector<32x256xf32> to vector<32x256xbf16>
    %c0_5 = arith.constant 0 : index
    %c0_6 = arith.constant 0 : index
    %c0_7 = arith.constant 0 : index
    %6 = vector.load %arg4[%c0_5, %c0_6, %c0_7] : memref<1x32x256xbf16, #tpu.memory_space<vmem>>, vector<1x32x256xbf16>
    %7 = vector.shape_cast %6 : vector<1x32x256xbf16> to vector<32x256xbf16>
    %8 = vector.shape_cast %5 : vector<32x256xbf16> to vector<1x32x256xbf16>
    tpu.vector_store %arg4[%c0_5, %c0_6, %c0_7], %8 {strides = array<i32>} : memref<1x32x256xbf16, #tpu.memory_space<vmem>>, vector<1x32x256xbf16>,
    %cst_8 = arith.constant dense<0.000000e+00> : vector<256xf32>
    %9 = vector.multi_reduction <add>, %4, %cst_8 [0] : vector<32x256xf32> to vector<256xf32>
    %10 = vector.shape_cast %9 : vector<256xf32> to vector<1x256xf32>
    %11 = arith.mulf %4, %4 : vector<32x256xf32>
    %cst_9 = arith.constant dense<0.000000e+00> : vector<256xf32>
    %12 = vector.multi_reduction <add>, %11, %cst_9 [0] : vector<32x256xf32> to vector<256xf32>
    %13 = vector.shape_cast %12 : vector<256xf32> to vector<1x256xf32>
    %14 = tpu.concatenate %10, %13 in 0 : vector<1x256xf32>, vector<1x256xf32> -> vector<2x256xf32>
    %c0_10 = arith.constant 0 : index
    %c0_11 = arith.constant 0 : index
    %c0_12 = arith.constant 0 : index
    %c0_13 = arith.constant 0 : index
    %15 = vector.load %arg5[%c0_10, %c0_11, %c0_12, %c0_13] : memref<1x1x2x256xf32, #tpu.memory_space<vmem>>, vector<1x1x2x256xf32>
    %16 = vector.shape_cast %15 : vector<1x1x2x256xf32> to vector<2x256xf32>
    %17 = vector.shape_cast %14 : vector<2x256xf32> to vector<1x1x2x256xf32>
    tpu.vector_store %arg5[%c0_10, %c0_11, %c0_12, %c0_13], %17 {strides = array<i32>} : memref<1x1x2x256xf32, #tpu.memory_space<vmem>>, vector<1x1x2x256xf32>,
    return
  }
  func.func @transform_0(%arg0: i32, %arg1: i32) -> (i32, i32, i32) {
    %c0_i32 = arith.constant 0 : i32
    %c0_i32_0 = arith.constant 0 : i32
    return %arg0, %arg1, %c0_i32 : i32, i32, i32
  }
  func.func @transform_1(%arg0: i32, %arg1: i32) -> (i32, i32, i32) {
    %c0_i32 = arith.constant 0 : i32
    %c0_i32_0 = arith.constant 0 : i32
    %c0_i32_1 = arith.constant 0 : i32
    return %arg0, %c0_i32, %c0_i32_0 : i32, i32, i32
  }
  func.func @transform_2(%arg0: i32, %arg1: i32) -> (i32, i32, i32) {
    %c0_i32 = arith.constant 0 : i32
    %c0_i32_0 = arith.constant 0 : i32
    return %arg0, %arg1, %c0_i32 : i32, i32, i32
  }
  func.func @transform_3(%arg0: i32, %arg1: i32) -> (i32, i32, i32, i32) {
    %c0_i32 = arith.constant 0 : i32
    %c0_i32_0 = arith.constant 0 : i32
    %c0_i32_1 = arith.constant 0 : i32
    return %arg0, %arg1, %c0_i32, %c0_i32_0 : i32, i32, i32, i32
  }
}

module attributes {stable_mosaic.version = 11 : i64} {
  func.func @_mm_stats_kernel(%arg0: i32, %arg1: i32, %arg2: memref<1x128x1024xbf16, #tpu.memory_space<vmem>>, %arg3: memref<1x1024x128xbf16, #tpu.memory_space<vmem>>, %arg4: memref<1x128x128xbf16, #tpu.memory_space<vmem>>, %arg5: memref<1x1x2x128xf32, #tpu.memory_space<vmem>>) attributes {dimension_semantics = [#tpu.dimension_semantics<parallel>, #tpu.dimension_semantics<parallel>], iteration_bounds = array<i64: 4, 1>, scalar_prefetch = 0 : i64, scratch_operands = 0 : i64, tpu.core_type = #tpu.core_type<tc>, window_params = [{transform_indices = @transform_0, window_bounds = array<i64: 1, 128, 1024>}, {transform_indices = @transform_1, window_bounds = array<i64: 1, 1024, 128>}, {transform_indices = @transform_2, window_bounds = array<i64: 1, 128, 128>}, {transform_indices = @transform_3, window_bounds = array<i64: 1, 1, 2, 128>}]} {
    %c0 = arith.constant 0 : index
    %c0_0 = arith.constant 0 : index
    %c0_1 = arith.constant 0 : index
    %0 = vector.load %arg2[%c0, %c0_0, %c0_1] : memref<1x128x1024xbf16, #tpu.memory_space<vmem>>, vector<1x128x1024xbf16>
    %1 = vector.shape_cast %0 : vector<1x128x1024xbf16> to vector<128x1024xbf16>
    %c0_2 = arith.constant 0 : index
    %c0_3 = arith.constant 0 : index
    %c0_4 = arith.constant 0 : index
    %2 = vector.load %arg3[%c0_2, %c0_3, %c0_4] : memref<1x1024x128xbf16, #tpu.memory_space<vmem>>, vector<1x1024x128xbf16>
    %3 = vector.shape_cast %2 : vector<1x1024x128xbf16> to vector<1024x128xbf16>
    %cst = arith.constant dense<0.000000e+00> : vector<128x128xf32>
    %4 = tpu.matmul %1, %3, %cst {dimension_numbers = #tpu.dot_dimension_numbers<[1], [0], [0], [1], [0, 0, 1, 1], [], []>} : vector<128x1024xbf16>, vector<1024x128xbf16>, vector<128x128xf32> -> vector<128x128xf32>
    %5 = arith.truncf %4 : vector<128x128xf32> to vector<128x128xbf16>
    %c0_5 = arith.constant 0 : index
    %c0_6 = arith.constant 0 : index
    %c0_7 = arith.constant 0 : index
    %6 = vector.load %arg4[%c0_5, %c0_6, %c0_7] : memref<1x128x128xbf16, #tpu.memory_space<vmem>>, vector<1x128x128xbf16>
    %7 = vector.shape_cast %6 : vector<1x128x128xbf16> to vector<128x128xbf16>
    %8 = vector.shape_cast %5 : vector<128x128xbf16> to vector<1x128x128xbf16>
    tpu.vector_store %arg4[%c0_5, %c0_6, %c0_7], %8 {strides = array<i32>} : memref<1x128x128xbf16, #tpu.memory_space<vmem>>, vector<1x128x128xbf16>,
    %cst_8 = arith.constant dense<0.000000e+00> : vector<128xf32>
    %9 = vector.multi_reduction <add>, %4, %cst_8 [0] : vector<128x128xf32> to vector<128xf32>
    %10 = vector.shape_cast %9 : vector<128xf32> to vector<1x128xf32>
    %11 = arith.mulf %4, %4 : vector<128x128xf32>
    %cst_9 = arith.constant dense<0.000000e+00> : vector<128xf32>
    %12 = vector.multi_reduction <add>, %11, %cst_9 [0] : vector<128x128xf32> to vector<128xf32>
    %13 = vector.shape_cast %12 : vector<128xf32> to vector<1x128xf32>
    %14 = tpu.concatenate %10, %13 in 0 : vector<1x128xf32>, vector<1x128xf32> -> vector<2x128xf32>
    %c0_10 = arith.constant 0 : index
    %c0_11 = arith.constant 0 : index
    %c0_12 = arith.constant 0 : index
    %c0_13 = arith.constant 0 : index
    %15 = vector.load %arg5[%c0_10, %c0_11, %c0_12, %c0_13] : memref<1x1x2x128xf32, #tpu.memory_space<vmem>>, vector<1x1x2x128xf32>
    %16 = vector.shape_cast %15 : vector<1x1x2x128xf32> to vector<2x128xf32>
    %17 = vector.shape_cast %14 : vector<2x128xf32> to vector<1x1x2x128xf32>
    tpu.vector_store %arg5[%c0_10, %c0_11, %c0_12, %c0_13], %17 {strides = array<i32>} : memref<1x1x2x128xf32, #tpu.memory_space<vmem>>, vector<1x1x2x128xf32>,
    return
  }
  func.func @transform_0(%arg0: i32, %arg1: i32) -> (i32, i32, i32) {
    %c0_i32 = arith.constant 0 : i32
    %c0_i32_0 = arith.constant 0 : i32
    return %arg0, %arg1, %c0_i32 : i32, i32, i32
  }
  func.func @transform_1(%arg0: i32, %arg1: i32) -> (i32, i32, i32) {
    %c0_i32 = arith.constant 0 : i32
    %c0_i32_0 = arith.constant 0 : i32
    %c0_i32_1 = arith.constant 0 : i32
    return %arg0, %c0_i32, %c0_i32_0 : i32, i32, i32
  }
  func.func @transform_2(%arg0: i32, %arg1: i32) -> (i32, i32, i32) {
    %c0_i32 = arith.constant 0 : i32
    %c0_i32_0 = arith.constant 0 : i32
    return %arg0, %arg1, %c0_i32 : i32, i32, i32
  }
  func.func @transform_3(%arg0: i32, %arg1: i32) -> (i32, i32, i32, i32) {
    %c0_i32 = arith.constant 0 : i32
    %c0_i32_0 = arith.constant 0 : i32
    %c0_i32_1 = arith.constant 0 : i32
    return %arg0, %arg1, %c0_i32, %c0_i32_0 : i32, i32, i32, i32
  }
}

module attributes {stable_mosaic.version = 11 : i64} {
  func.func @_mm_stats_kernel(%arg0: i32, %arg1: i32, %arg2: memref<1x256x512xbf16, #tpu.memory_space<vmem>>, %arg3: memref<1x512x128xbf16, #tpu.memory_space<vmem>>, %arg4: memref<1x256x128xbf16, #tpu.memory_space<vmem>>, %arg5: memref<1x1x2x128xf32, #tpu.memory_space<vmem>>) attributes {dimension_semantics = [#tpu.dimension_semantics<parallel>, #tpu.dimension_semantics<parallel>], iteration_bounds = array<i64: 4, 2>, scalar_prefetch = 0 : i64, scratch_operands = 0 : i64, tpu.core_type = #tpu.core_type<tc>, window_params = [{transform_indices = @transform_0, window_bounds = array<i64: 1, 256, 512>}, {transform_indices = @transform_1, window_bounds = array<i64: 1, 512, 128>}, {transform_indices = @transform_2, window_bounds = array<i64: 1, 256, 128>}, {transform_indices = @transform_3, window_bounds = array<i64: 1, 1, 2, 128>}]} {
    %c0 = arith.constant 0 : index
    %c0_0 = arith.constant 0 : index
    %c0_1 = arith.constant 0 : index
    %0 = vector.load %arg2[%c0, %c0_0, %c0_1] : memref<1x256x512xbf16, #tpu.memory_space<vmem>>, vector<1x256x512xbf16>
    %1 = vector.shape_cast %0 : vector<1x256x512xbf16> to vector<256x512xbf16>
    %c0_2 = arith.constant 0 : index
    %c0_3 = arith.constant 0 : index
    %c0_4 = arith.constant 0 : index
    %2 = vector.load %arg3[%c0_2, %c0_3, %c0_4] : memref<1x512x128xbf16, #tpu.memory_space<vmem>>, vector<1x512x128xbf16>
    %3 = vector.shape_cast %2 : vector<1x512x128xbf16> to vector<512x128xbf16>
    %cst = arith.constant dense<0.000000e+00> : vector<256x128xf32>
    %4 = tpu.matmul %1, %3, %cst {dimension_numbers = #tpu.dot_dimension_numbers<[1], [0], [0], [1], [0, 0, 1, 1], [], []>} : vector<256x512xbf16>, vector<512x128xbf16>, vector<256x128xf32> -> vector<256x128xf32>
    %5 = arith.truncf %4 : vector<256x128xf32> to vector<256x128xbf16>
    %c0_5 = arith.constant 0 : index
    %c0_6 = arith.constant 0 : index
    %c0_7 = arith.constant 0 : index
    %6 = vector.load %arg4[%c0_5, %c0_6, %c0_7] : memref<1x256x128xbf16, #tpu.memory_space<vmem>>, vector<1x256x128xbf16>
    %7 = vector.shape_cast %6 : vector<1x256x128xbf16> to vector<256x128xbf16>
    %8 = vector.shape_cast %5 : vector<256x128xbf16> to vector<1x256x128xbf16>
    tpu.vector_store %arg4[%c0_5, %c0_6, %c0_7], %8 {strides = array<i32>} : memref<1x256x128xbf16, #tpu.memory_space<vmem>>, vector<1x256x128xbf16>,
    %cst_8 = arith.constant dense<0.000000e+00> : vector<128xf32>
    %9 = vector.multi_reduction <add>, %4, %cst_8 [0] : vector<256x128xf32> to vector<128xf32>
    %10 = vector.shape_cast %9 : vector<128xf32> to vector<1x128xf32>
    %11 = arith.mulf %4, %4 : vector<256x128xf32>
    %cst_9 = arith.constant dense<0.000000e+00> : vector<128xf32>
    %12 = vector.multi_reduction <add>, %11, %cst_9 [0] : vector<256x128xf32> to vector<128xf32>
    %13 = vector.shape_cast %12 : vector<128xf32> to vector<1x128xf32>
    %14 = tpu.concatenate %10, %13 in 0 : vector<1x128xf32>, vector<1x128xf32> -> vector<2x128xf32>
    %c0_10 = arith.constant 0 : index
    %c0_11 = arith.constant 0 : index
    %c0_12 = arith.constant 0 : index
    %c0_13 = arith.constant 0 : index
    %15 = vector.load %arg5[%c0_10, %c0_11, %c0_12, %c0_13] : memref<1x1x2x128xf32, #tpu.memory_space<vmem>>, vector<1x1x2x128xf32>
    %16 = vector.shape_cast %15 : vector<1x1x2x128xf32> to vector<2x128xf32>
    %17 = vector.shape_cast %14 : vector<2x128xf32> to vector<1x1x2x128xf32>
    tpu.vector_store %arg5[%c0_10, %c0_11, %c0_12, %c0_13], %17 {strides = array<i32>} : memref<1x1x2x128xf32, #tpu.memory_space<vmem>>, vector<1x1x2x128xf32>,
    return
  }
  func.func @transform_0(%arg0: i32, %arg1: i32) -> (i32, i32, i32) {
    %c0_i32 = arith.constant 0 : i32
    %c0_i32_0 = arith.constant 0 : i32
    return %arg0, %arg1, %c0_i32 : i32, i32, i32
  }
  func.func @transform_1(%arg0: i32, %arg1: i32) -> (i32, i32, i32) {
    %c0_i32 = arith.constant 0 : i32
    %c0_i32_0 = arith.constant 0 : i32
    %c0_i32_1 = arith.constant 0 : i32
    return %arg0, %c0_i32, %c0_i32_0 : i32, i32, i32
  }
  func.func @transform_2(%arg0: i32, %arg1: i32) -> (i32, i32, i32) {
    %c0_i32 = arith.constant 0 : i32
    %c0_i32_0 = arith.constant 0 : i32
    return %arg0, %arg1, %c0_i32 : i32, i32, i32
  }
  func.func @transform_3(%arg0: i32, %arg1: i32) -> (i32, i32, i32, i32) {
    %c0_i32 = arith.constant 0 : i32
    %c0_i32_0 = arith.constant 0 : i32
    %c0_i32_1 = arith.constant 0 : i32
    return %arg0, %arg1, %c0_i32, %c0_i32_0 : i32, i32, i32, i32
  }
}

module attributes {stable_mosaic.version = 11 : i64} {
  func.func @_mm_act_kernel(%arg0: i32, %arg1: i32, %arg2: memref<1x256x640xbf16, #tpu.memory_space<vmem>>, %arg3: memref<1x640x128xbf16, #tpu.memory_space<vmem>>, %arg4: memref<1x256x128xbf16, #tpu.memory_space<vmem>>) attributes {dimension_semantics = [#tpu.dimension_semantics<parallel>, #tpu.dimension_semantics<parallel>], iteration_bounds = array<i64: 1, 8>, scalar_prefetch = 0 : i64, scratch_operands = 0 : i64, tpu.core_type = #tpu.core_type<tc>, window_params = [{transform_indices = @transform_0, window_bounds = array<i64: 1, 256, 640>}, {transform_indices = @transform_1, window_bounds = array<i64: 1, 640, 128>}, {transform_indices = @transform_2, window_bounds = array<i64: 1, 256, 128>}]} {
    %c0 = arith.constant 0 : index
    %c0_0 = arith.constant 0 : index
    %c0_1 = arith.constant 0 : index
    %0 = vector.load %arg2[%c0, %c0_0, %c0_1] : memref<1x256x640xbf16, #tpu.memory_space<vmem>>, vector<1x256x640xbf16>
    %1 = vector.shape_cast %0 : vector<1x256x640xbf16> to vector<256x640xbf16>
    %c0_2 = arith.constant 0 : index
    %c0_3 = arith.constant 0 : index
    %c0_4 = arith.constant 0 : index
    %2 = vector.load %arg3[%c0_2, %c0_3, %c0_4] : memref<1x640x128xbf16, #tpu.memory_space<vmem>>, vector<1x640x128xbf16>
    %3 = vector.shape_cast %2 : vector<1x640x128xbf16> to vector<640x128xbf16>
    %cst = arith.constant dense<0.000000e+00> : vector<256x128xf32>
    %4 = tpu.matmul %1, %3, %cst {dimension_numbers = #tpu.dot_dimension_numbers<[1], [0], [0], [1], [0, 0, 1, 1], [], []>} : vector<256x640xbf16>, vector<640x128xbf16>, vector<256x128xf32> -> vector<256x128xf32>
    %5 = math.tanh %4 : vector<256x128xf32>
    %6 = arith.truncf %5 : vector<256x128xf32> to vector<256x128xbf16>
    %c0_5 = arith.constant 0 : index
    %c0_6 = arith.constant 0 : index
    %c0_7 = arith.constant 0 : index
    %7 = vector.load %arg4[%c0_5, %c0_6, %c0_7] : memref<1x256x128xbf16, #tpu.memory_space<vmem>>, vector<1x256x128xbf16>
    %8 = vector.shape_cast %7 : vector<1x256x128xbf16> to vector<256x128xbf16>
    %9 = vector.shape_cast %6 : vector<256x128xbf16> to vector<1x256x128xbf16>
    tpu.vector_store %arg4[%c0_5, %c0_6, %c0_7], %9 {strides = array<i32>} : memref<1x256x128xbf16, #tpu.memory_space<vmem>>, vector<1x256x128xbf16>,
    return
  }
  func.func @transform_0(%arg0: i32, %arg1: i32) -> (i32, i32, i32) {
    %c0_i32 = arith.constant 0 : i32
    %c0_i32_0 = arith.constant 0 : i32
    return %arg0, %arg1, %c0_i32 : i32, i32, i32
  }
  func.func @transform_1(%arg0: i32, %arg1: i32) -> (i32, i32, i32) {
    %c0_i32 = arith.constant 0 : i32
    %c0_i32_0 = arith.constant 0 : i32
    %c0_i32_1 = arith.constant 0 : i32
    return %arg0, %c0_i32, %c0_i32_0 : i32, i32, i32
  }
  func.func @transform_2(%arg0: i32, %arg1: i32) -> (i32, i32, i32) {
    %c0_i32 = arith.constant 0 : i32
    %c0_i32_0 = arith.constant 0 : i32
    return %arg0, %arg1, %c0_i32 : i32, i32, i32
  }
}

</mosaic_0001>

<bundles_post_ra>
// kernel: mul.51
= control target key start
LH: loop header
LB: loop body
LE: loop exit
PB: predicated region body
PF: predicated region fallthrough
CT: control target
= control target key end

     0   :  { %s34_s0 = inlined_call_operand.vmem [shape: f32[512], index: 0, kind: input, shape index: {}]   ;;  %s35_s1 = inlined_call_operand.vmem [shape: f32[512], index: 1, kind: input, shape index: {}]   ;;  %s36_s2 = inlined_call_operand.vmem [shape: f32[512], index: 2, kind: output, shape index: {}]  }
   0x1   :  { %v3_v0 = vld [vmem:[%s34_s0] sm:$0xf] }
   0x2   :  { %v4_v1 = vld [vmem:[%s35_s1] sm:$0xf] }
   0x3   :  { %v7_v2 = vmul.f32 %v4_v1, %v3_v0 }
   0x5   :  { %9 = vst [vmem:[%s36_s2] sm:$0xf] %v7_v2 }

// kernel: generator_forward.5
= control target key start
LH: loop header
LB: loop body
LE: loop exit
PB: predicated region body
PF: predicated region fallthrough
CT: control target
= control target key end

     0   :  { %v7031_v3 = vmov 0   ;;  %vm5942_vm0 = vcmask 1040384   ;;  %s9918_s1 = inlined_call_operand.vmem [shape: bf16[1,128,8192], index: 1, kind: input, shape index: {}]   ;;  %s9919_s0 = inlined_call_operand.vmem [shape: bf16[1,16,128], index: 0, kind: input, shape index: {}]   ;;  %s9920_s2 = inlined_call_operand.vmem [shape: bf16[1,16,8192], index: 2, kind: output, shape index: {0}]   ;;  %s9921_s3 = inlined_call_operand.vmem [shape: f32[1,1,2,8192], index: 3, kind: output, shape index: {1}]  }
   0x1   :  { %v464_v0 = vld [vmem:[%s9918_s1 + $0xe00] sm:$0xff]  ;;  %v465_v2 = vld [vmem:[%s9918_s1 + $0xe08] sm:$0xff]  ;;  %3126 = vmatprep.mubr.bf16.mxu0 %v7031_v3  ;;  %3169 = vmatprep.mubr.bf16.mxu1 %v7031_v3  ;;  %v466_v63 = vld [vmem:[%s9918_s1 + $0xe10] sm:$0xff] }
   0x2   :  { %v496_v1 = vld [vmem:[%s9918_s1 + $0xf00] sm:$0xff]  ;;  %v497_v5 = vld [vmem:[%s9918_s1 + $0xf08] sm:$0xff] }
   0x3   :  { %v6833_v4 = vcombine.high %v464_v0, %v496_v1  ;;  %v6832_v6 = vcombine.low %v464_v0, %v496_v1  ;;  %v400_v7 = vld [vmem:[%s9918_s1 + $0xc00] sm:$0xff]  ;;  %v6835_v9 = vcombine.high %v465_v2, %v497_v5  ;;  %v6834_v10 = vcombine.low %v465_v2, %v497_v5  ;;  %v401_v12 = vld [vmem:[%s9918_s1 + $0xc08] sm:$0xff]  ;;  %v498_v0 = vld [vmem:[%s9918_s1 + $0xf10] sm:$0xff] }
   0x4   :  { %v432_v8 = vld [vmem:[%s9918_s1 + $0xd00] sm:$0xff]  ;;  %v433_v13 = vld [vmem:[%s9918_s1 + $0xd08] sm:$0xff]  ;;  %v467_v1 = vld [vmem:[%s9918_s1 + $0xe18] sm:$0xff] }
   0x5   :  { %v6769_v11 = vcombine.high %v400_v7, %v432_v8  ;;  %v336_v14 = vld [vmem:[%s9918_s1 + $0xa00] sm:$0xff]  ;;  %3094 = vmatprep.subr.bf16.mxu0 %v6833_v4  ;;  %v6771_v15 = vcombine.high %v401_v12, %v433_v13  ;;  %v337_v17 = vld [vmem:[%s9918_s1 + $0xa08] sm:$0xff]  ;;  %3137 = vmatprep.subr.bf16.mxu1 %v6835_v9  ;;  %v6768_v19 = vcombine.low %v400_v7, %v432_v8  ;;  %v499_v2 = vld [vmem:[%s9918_s1 + $0xf18] sm:$0xff] }
   0x6   :  { %v368_v16 = vld [vmem:[%s9918_s1 + $0xb00] sm:$0xff]  ;;  %v369_v18 = vld [vmem:[%s9918_s1 + $0xb08] sm:$0xff]  ;;  %3095 = vmatpush1.bf16.msra.mxu0 %v6832_v6  ;;  %3138 = vmatpush1.bf16.msra.mxu1 %v6834_v10  ;;  %v6770_v20 = vcombine.low %v401_v12, %v433_v13  ;;  %v6837_v6 = vcombine.high %v466_v63, %v498_v0  ;;  %v6839_v7 = vcombine.high %v467_v1, %v499_v2  ;;  %v402_v8 = vld [vmem:[%s9918_s1 + $0xc10] sm:$0xff] }
   0x7   :  { %3096 = vmatprep.subr.bf16.mxu0 %v6769_v11  ;;  %v6705_v21 = vcombine.high %v336_v14, %v368_v16  ;;  %3139 = vmatprep.subr.bf16.mxu1 %v6771_v15  ;;  %v6707_v22 = vcombine.high %v337_v17, %v369_v18  ;;  %v272_v23 = vld [vmem:[%s9918_s1 + $0x800] sm:$0xff]  ;;  %v273_v25 = vld [vmem:[%s9918_s1 + $0x808] sm:$0xff]  ;;  %v6704_v27 = vcombine.low %v336_v14, %v368_v16  ;;  %v434_v9 = vld [vmem:[%s9918_s1 + $0xd10] sm:$0xff] }
   0x8   :  { %v304_v24 = vld [vmem:[%s9918_s1 + $0x900] sm:$0xff]  ;;  %v305_v26 = vld [vmem:[%s9918_s1 + $0x908] sm:$0xff]  ;;  %v6706_v28 = vcombine.low %v337_v17, %v369_v18  ;;  %v403_v11 = vld [vmem:[%s9918_s1 + $0xc18] sm:$0xff]  ;;  %v6836_v13 = vcombine.low %v466_v63, %v498_v0  ;;  %v6838_v14 = vcombine.low %v467_v1, %v499_v2  ;;  %v6773_v15 = vcombine.high %v402_v8, %v434_v9 }
   0x9   :  { %v6641_v29 = vcombine.high %v272_v23, %v304_v24  ;;  %v6643_v30 = vcombine.high %v273_v25, %v305_v26  ;;  %v208_v31 = vld [vmem:[%s9918_s1 + $0x600] sm:$0xff]  ;;  %v209_v33 = vld [vmem:[%s9918_s1 + $0x608] sm:$0xff]  ;;  %v6640_v35 = vcombine.low %v272_v23, %v304_v24  ;;  %v6642_v36 = vcombine.low %v273_v25, %v305_v26  ;;  %v435_v12 = vld [vmem:[%s9918_s1 + $0xd18] sm:$0xff] }
   0xa   :  { %3097 = vmatpush1.bf16.msra.mxu0 %v6768_v19  ;;  %3140 = vmatpush1.bf16.msra.mxu1 %v6770_v20  ;;  %v240_v32 = vld [vmem:[%s9918_s1 + $0x700] sm:$0xff]  ;;  %v241_v34 = vld [vmem:[%s9918_s1 + $0x708] sm:$0xff]  ;;  %v6775_v16 = vcombine.high %v403_v11, %v435_v12  ;;  %v338_v17 = vld [vmem:[%s9918_s1 + $0xa10] sm:$0xff] }
   0xb   :  { %3098 = vmatprep.subr.bf16.mxu0 %v6705_v21  ;;  %3141 = vmatprep.subr.bf16.mxu1 %v6707_v22  ;;  %v6577_v37 = vcombine.high %v208_v31, %v240_v32  ;;  %v6579_v38 = vcombine.high %v209_v33, %v241_v34  ;;  %v144_v39 = vld [vmem:[%s9918_s1 + $0x400] sm:$0xff]  ;;  %v145_v41 = vld [vmem:[%s9918_s1 + $0x408] sm:$0xff]  ;;  %v6576_v43 = vcombine.low %v208_v31, %v240_v32  ;;  %v370_v18 = vld [vmem:[%s9918_s1 + $0xb10] sm:$0xff] }
   0xc   :  { %v176_v40 = vld [vmem:[%s9918_s1 + $0x500] sm:$0xff]  ;;  %v177_v42 = vld [vmem:[%s9918_s1 + $0x508] sm:$0xff]  ;;  %v6578_v44 = vcombine.low %v209_v33, %v241_v34  ;;  %v339_v19 = vld [vmem:[%s9918_s1 + $0xa18] sm:$0xff]  ;;  %v6772_v21 = vcombine.low %v402_v8, %v434_v9  ;;  %v6774_v22 = vcombine.low %v403_v11, %v435_v12  ;;  %v6709_v23 = vcombine.high %v338_v17, %v370_v18 }
   0xd   :  { %v6513_v45 = vcombine.high %v144_v39, %v176_v40  ;;  %v6515_v46 = vcombine.high %v145_v41, %v177_v42  ;;  %v80_v47 = vld [vmem:[%s9918_s1 + $0x200] sm:$0xff]  ;;  %v81_v49 = vld [vmem:[%s9918_s1 + $0x208] sm:$0xff]  ;;  %v6512_v51 = vcombine.low %v144_v39, %v176_v40  ;;  %v6514_v52 = vcombine.low %v145_v41, %v177_v42  ;;  %v371_v20 = vld [vmem:[%s9918_s1 + $0xb18] sm:$0xff] }
   0xe   :  { %3099 = vmatpush1.bf16.msra.mxu0 %v6704_v27  ;;  %3142 = vmatpush1.bf16.msra.mxu1 %v6706_v28  ;;  %v112_v48 = vld [vmem:[%s9918_s1 + $0x300] sm:$0xff]  ;;  %v113_v50 = vld [vmem:[%s9918_s1 + $0x308] sm:$0xff]  ;;  %v6711_v24 = vcombine.high %v339_v19, %v371_v20  ;;  %v274_v25 = vld [vmem:[%s9918_s1 + $0x810] sm:$0xff] }
   0xf   :  { %3100 = vmatprep.subr.bf16.mxu0 %v6641_v29  ;;  %3143 = vmatprep.subr.bf16.mxu1 %v6643_v30  ;;  %v6449_v53 = vcombine.high %v80_v47, %v112_v48  ;;  %v6451_v54 = vcombine.high %v81_v49, %v113_v50  ;;  %v16_v55 = vld [vmem:[%s9918_s1] sm:$0xff]  ;;  %v17_v57 = vld [vmem:[%s9918_s1 + $0x8] sm:$0xff]  ;;  %v6448_v59 = vcombine.low %v80_v47, %v112_v48  ;;  %v306_v26 = vld [vmem:[%s9918_s1 + $0x910] sm:$0xff] }
  0x10   :  { %v48_v56 = vld [vmem:[%s9918_s1 + $0x100] sm:$0xff]  ;;  %v49_v58 = vld [vmem:[%s9918_s1 + $0x108] sm:$0xff]  ;;  %v6450_v60 = vcombine.low %v81_v49, %v113_v50  ;;  %v275_v27 = vld [vmem:[%s9918_s1 + $0x818] sm:$0xff]  ;;  %v6708_v29 = vcombine.low %v338_v17, %v370_v18  ;;  %v6710_v30 = vcombine.low %v339_v19, %v371_v20  ;;  %v6645_v31 = vcombine.high %v274_v25, %v306_v26 }
  0x11   :  { %v6385_v61 = vcombine.high %v16_v55, %v48_v56  ;;  %v6387_v62 = vcombine.high %v17_v57, %v49_v58  ;;  %v6384_v4 = vcombine.low %v16_v55, %v48_v56  ;;  %v6386_v5 = vcombine.low %v17_v57, %v49_v58  ;;  %v7172_v10 = vld [vmem:[%s9919_s0] sm:$0xff]   ;;  %v307_v28 = vld [vmem:[%s9918_s1 + $0x918] sm:$0xff]  ;;  %v210_v33 = vld [vmem:[%s9918_s1 + $0x610] sm:$0xff] }
  0x12   :  { %3101 = vmatpush1.bf16.msra.mxu0 %v6640_v35  ;;  %3144 = vmatpush1.bf16.msra.mxu1 %v6642_v36  ;;  %v6647_v32 = vcombine.high %v275_v27, %v307_v28  ;;  %v242_v34 = vld [vmem:[%s9918_s1 + $0x710] sm:$0xff]  ;;  %v211_v35 = vld [vmem:[%s9918_s1 + $0x618] sm:$0xff]  ;;  %v468_v1 = vld [vmem:[%s9918_s1 + $0xe20] sm:$0xff] }
  0x13   :  { %3102 = vmatprep.subr.bf16.mxu0 %v6577_v37  ;;  %3145 = vmatprep.subr.bf16.mxu1 %v6579_v38  ;;  %v243_v36 = vld [vmem:[%s9918_s1 + $0x718] sm:$0xff]  ;;  %v6644_v37 = vcombine.low %v274_v25, %v306_v26  ;;  %v6646_v38 = vcombine.low %v275_v27, %v307_v28  ;;  %v6581_v39 = vcombine.high %v210_v33, %v242_v34  ;;  %v146_v41 = vld [vmem:[%s9918_s1 + $0x410] sm:$0xff]  ;;  %v500_v2 = vld [vmem:[%s9918_s1 + $0xf20] sm:$0xff] }
  0x14   :  { %v6583_v40 = vcombine.high %v211_v35, %v243_v36  ;;  %v178_v42 = vld [vmem:[%s9918_s1 + $0x510] sm:$0xff]  ;;  %v6841_v8 = vcombine.high %v468_v1, %v500_v2  ;;  %v404_v11 = vld [vmem:[%s9918_s1 + $0xc20] sm:$0xff] }
  0x15   :  { %v6517_v47 = vcombine.high %v146_v41, %v178_v42  ;;  %v82_v49 = vld [vmem:[%s9918_s1 + $0x210] sm:$0xff]  ;;  %v436_v12 = vld [vmem:[%s9918_s1 + $0xd20] sm:$0xff] }
  0x16   :  { %3103 = vmatpush1.bf16.msra.mxu0 %v6576_v43  ;;  %3146 = vmatpush1.bf16.msra.mxu1 %v6578_v44  ;;  %v147_v43 = vld [vmem:[%s9918_s1 + $0x418] sm:$0xff]  ;;  %v114_v50 = vld [vmem:[%s9918_s1 + $0x310] sm:$0xff]  ;;  %v6777_v17 = vcombine.high %v404_v11, %v436_v12  ;;  %v340_v19 = vld [vmem:[%s9918_s1 + $0xa20] sm:$0xff] }
  0x17   :  { %3104 = vmatprep.subr.bf16.mxu0 %v6513_v45  ;;  %3147 = vmatprep.subr.bf16.mxu1 %v6515_v46  ;;  %v179_v44 = vld [vmem:[%s9918_s1 + $0x518] sm:$0xff]  ;;  %v6580_v45 = vcombine.low %v210_v33, %v242_v34  ;;  %v6582_v46 = vcombine.low %v211_v35, %v243_v36  ;;  %v6453_v55 = vcombine.high %v82_v49, %v114_v50  ;;  %v18_v57 = vld [vmem:[%s9918_s1 + $0x10] sm:$0xff]  ;;  %v372_v20 = vld [vmem:[%s9918_s1 + $0xb20] sm:$0xff] }
  0x18   :  { %v6519_v48 = vcombine.high %v147_v43, %v179_v44  ;;  %v50_v58 = vld [vmem:[%s9918_s1 + $0x110] sm:$0xff]  ;;  %v6713_v25 = vcombine.high %v340_v19, %v372_v20  ;;  %v276_v27 = vld [vmem:[%s9918_s1 + $0x820] sm:$0xff] }
  0x19   :  { %v6389_v63 = vcombine.high %v18_v57, %v50_v58  ;;  %v308_v28 = vld [vmem:[%s9918_s1 + $0x920] sm:$0xff] }
  0x1a   :  { %3105 = vmatpush1.bf16.msra.mxu0 %v6512_v51  ;;  %3148 = vmatpush1.bf16.msra.mxu1 %v6514_v52  ;;  %v83_v51 = vld [vmem:[%s9918_s1 + $0x218] sm:$0xff]  ;;  %v6649_v33 = vcombine.high %v276_v27, %v308_v28  ;;  %v212_v35 = vld [vmem:[%s9918_s1 + $0x620] sm:$0xff] }
  0x1b   :  { %3106 = vmatprep.subr.bf16.mxu0 %v6449_v53  ;;  %3149 = vmatprep.subr.bf16.mxu1 %v6451_v54  ;;  %v115_v52 = vld [vmem:[%s9918_s1 + $0x318] sm:$0xff]  ;;  %v6516_v53 = vcombine.low %v146_v41, %v178_v42  ;;  %v6518_v54 = vcombine.low %v147_v43, %v179_v44  ;;  %v244_v36 = vld [vmem:[%s9918_s1 + $0x720] sm:$0xff] }
  0x1c   :  { %v6455_v56 = vcombine.high %v83_v51, %v115_v52  ;;  %v6585_v41 = vcombine.high %v212_v35, %v244_v36  ;;  %v148_v43 = vld [vmem:[%s9918_s1 + $0x420] sm:$0xff] }
  0x1d   :  { %v180_v44 = vld [vmem:[%s9918_s1 + $0x520] sm:$0xff] }
  0x1e   :  { %3107 = vmatpush1.bf16.msra.mxu0 %v6448_v59  ;;  %3150 = vmatpush1.bf16.msra.mxu1 %v6450_v60  ;;  %v19_v59 = vld [vmem:[%s9918_s1 + $0x18] sm:$0xff] }
  0x1f   :  { %3108 = vmatprep.subr.bf16.mxu0 %v6385_v61  ;;  %3151 = vmatprep.subr.bf16.mxu1 %v6387_v62  ;;  %v51_v60 = vld [vmem:[%s9918_s1 + $0x118] sm:$0xff]  ;;  %v6452_v61 = vcombine.low %v82_v49, %v114_v50  ;;  %v6454_v62 = vcombine.low %v83_v51, %v115_v52  ;;  %v6521_v49 = vcombine.high %v148_v43, %v180_v44  ;;  %v84_v51 = vld [vmem:[%s9918_s1 + $0x220] sm:$0xff] }
  0x20   :  { %v6391_v0 = vcombine.high %v19_v59, %v51_v60  ;;  %v116_v52 = vld [vmem:[%s9918_s1 + $0x320] sm:$0xff] }
  0x22   :  { %3109 = vmatpush1.bf16.msra.mxu0 %v6384_v4  ;;  %3152 = vmatpush1.bf16.msra.mxu1 %v6386_v5  ;;  %v469_v4 = vld [vmem:[%s9918_s1 + $0xe28] sm:$0xff] }
  0x23   :  { %3180 = vmatprep.subr.bf16.mxu0 %v6837_v6  ;;  %3223 = vmatprep.subr.bf16.mxu1 %v6839_v7  ;;  %v501_v5 = vld [vmem:[%s9918_s1 + $0xf28] sm:$0xff]  ;;  %v6388_v6 = vcombine.low %v18_v57, %v50_v58  ;;  %v6390_v7 = vcombine.low %v19_v59, %v51_v60  ;;  %v6457_v57 = vcombine.high %v84_v51, %v116_v52  ;;  %v20_v59 = vld [vmem:[%s9918_s1 + $0x20] sm:$0xff] }
  0x24   :  { %v6843_v9 = vcombine.high %v469_v4, %v501_v5  ;;  %v52_v60 = vld [vmem:[%s9918_s1 + $0x120] sm:$0xff] }
  0x25   :  { %3127 = vmatmul.mubr.bf16.vlgmr.msra.gmra.mxu0 %v7172_v10  ;;  %3170 = vmatmul.mubr.bf16.vlgmr.msra.gmra.mxu1 %v7172_v10 }
  0x26   :  { %3181 = vmatpush1.bf16.msra.mxu0 %v6836_v13  ;;  %3224 = vmatpush1.bf16.msra.mxu1 %v6838_v14  ;;  %v405_v13 = vld [vmem:[%s9918_s1 + $0xc28] sm:$0xff] }
  0x27   :  { %3182 = vmatprep.subr.bf16.mxu0 %v6773_v15  ;;  %3225 = vmatprep.subr.bf16.mxu1 %v6775_v16  ;;  %v437_v14 = vld [vmem:[%s9918_s1 + $0xd28] sm:$0xff]  ;;  %v6840_v15 = vcombine.low %v468_v1, %v500_v2  ;;  %v6842_v16 = vcombine.low %v469_v4, %v501_v5  ;;  %v6393_v1 = vcombine.high %v20_v59, %v52_v60  ;;  %v470_v4 = vld [vmem:[%s9918_s1 + $0xe30] sm:$0xff] }
  0x28   :  { %3212 = vmatprep.mubr.bf16.mxu0 %v7031_v3  ;;  %3255 = vmatprep.mubr.bf16.mxu1 %v7031_v3  ;;  %v6779_v18 = vcombine.high %v405_v13, %v437_v14  ;;  %v502_v5 = vld [vmem:[%s9918_s1 + $0xf30] sm:$0xff] }
  0x2a   :  { %3183 = vmatpush1.bf16.msra.mxu0 %v6772_v21  ;;  %3226 = vmatpush1.bf16.msra.mxu1 %v6774_v22  ;;  %v341_v21 = vld [vmem:[%s9918_s1 + $0xa28] sm:$0xff] }
  0x2b   :  { %3184 = vmatprep.subr.bf16.mxu0 %v6709_v23  ;;  %3227 = vmatprep.subr.bf16.mxu1 %v6711_v24  ;;  %v373_v22 = vld [vmem:[%s9918_s1 + $0xb28] sm:$0xff]  ;;  %v6776_v23 = vcombine.low %v404_v11, %v436_v12  ;;  %v6778_v24 = vcombine.low %v405_v13, %v437_v14  ;;  %v6845_v11 = vcombine.high %v470_v4, %v502_v5  ;;  %v406_v13 = vld [vmem:[%s9918_s1 + $0xc30] sm:$0xff] }
  0x2c   :  { %v6715_v26 = vcombine.high %v341_v21, %v373_v22  ;;  %v438_v14 = vld [vmem:[%s9918_s1 + $0xd30] sm:$0xff] }
  0x2e   :  { %3185 = vmatpush1.bf16.msra.mxu0 %v6708_v29  ;;  %3228 = vmatpush1.bf16.msra.mxu1 %v6710_v30  ;;  %v277_v29 = vld [vmem:[%s9918_s1 + $0x828] sm:$0xff] }
  0x2f   :  { %3186 = vmatprep.subr.bf16.mxu0 %v6645_v31  ;;  %3229 = vmatprep.subr.bf16.mxu1 %v6647_v32  ;;  %v309_v30 = vld [vmem:[%s9918_s1 + $0x928] sm:$0xff]  ;;  %v6712_v31 = vcombine.low %v340_v19, %v372_v20  ;;  %v6714_v32 = vcombine.low %v341_v21, %v373_v22  ;;  %v6781_v19 = vcombine.high %v406_v13, %v438_v14  ;;  %v342_v21 = vld [vmem:[%s9918_s1 + $0xa30] sm:$0xff] }
  0x30   :  { %v6651_v34 = vcombine.high %v277_v29, %v309_v30  ;;  %v374_v22 = vld [vmem:[%s9918_s1 + $0xb30] sm:$0xff] }
  0x32   :  { %3187 = vmatpush1.bf16.msra.mxu0 %v6644_v37  ;;  %3230 = vmatpush1.bf16.msra.mxu1 %v6646_v38  ;;  %v213_v37 = vld [vmem:[%s9918_s1 + $0x628] sm:$0xff] }
  0x33   :  { %3188 = vmatprep.subr.bf16.mxu0 %v6581_v39  ;;  %3231 = vmatprep.subr.bf16.mxu1 %v6583_v40  ;;  %v245_v38 = vld [vmem:[%s9918_s1 + $0x728] sm:$0xff]  ;;  %v6648_v39 = vcombine.low %v276_v27, %v308_v28  ;;  %v6650_v40 = vcombine.low %v277_v29, %v309_v30  ;;  %v6717_v27 = vcombine.high %v342_v21, %v374_v22  ;;  %v278_v29 = vld [vmem:[%s9918_s1 + $0x830] sm:$0xff] }
  0x34   :  { %v6587_v42 = vcombine.high %v213_v37, %v245_v38  ;;  %v310_v30 = vld [vmem:[%s9918_s1 + $0x930] sm:$0xff] }
  0x36   :  { %3189 = vmatpush1.bf16.msra.mxu0 %v6580_v45  ;;  %3232 = vmatpush1.bf16.msra.mxu1 %v6582_v46  ;;  %v149_v45 = vld [vmem:[%s9918_s1 + $0x428] sm:$0xff] }
  0x37   :  { %3190 = vmatprep.subr.bf16.mxu0 %v6517_v47  ;;  %3233 = vmatprep.subr.bf16.mxu1 %v6519_v48  ;;  %v181_v46 = vld [vmem:[%s9918_s1 + $0x528] sm:$0xff]  ;;  %v6584_v47 = vcombine.low %v212_v35, %v244_v36  ;;  %v6586_v48 = vcombine.low %v213_v37, %v245_v38  ;;  %v6653_v35 = vcombine.high %v278_v29, %v310_v30  ;;  %v214_v37 = vld [vmem:[%s9918_s1 + $0x630] sm:$0xff] }
  0x38   :  { %v6523_v50 = vcombine.high %v149_v45, %v181_v46  ;;  %v246_v38 = vld [vmem:[%s9918_s1 + $0x730] sm:$0xff] }
  0x3a   :  { %3191 = vmatpush1.bf16.msra.mxu0 %v6516_v53  ;;  %3234 = vmatpush1.bf16.msra.mxu1 %v6518_v54  ;;  %v85_v53 = vld [vmem:[%s9918_s1 + $0x228] sm:$0xff] }
  0x3b   :  { %3192 = vmatprep.subr.bf16.mxu0 %v6453_v55  ;;  %3235 = vmatprep.subr.bf16.mxu1 %v6455_v56  ;;  %v117_v54 = vld [vmem:[%s9918_s1 + $0x328] sm:$0xff]  ;;  %v6520_v55 = vcombine.low %v148_v43, %v180_v44  ;;  %v6522_v56 = vcombine.low %v149_v45, %v181_v46  ;;  %v6589_v43 = vcombine.high %v214_v37, %v246_v38  ;;  %v150_v45 = vld [vmem:[%s9918_s1 + $0x430] sm:$0xff] }
  0x3c   :  { %v6459_v58 = vcombine.high %v85_v53, %v117_v54  ;;  %v182_v46 = vld [vmem:[%s9918_s1 + $0x530] sm:$0xff] }
  0x3e   :  { %3193 = vmatpush1.bf16.msra.mxu0 %v6452_v61  ;;  %3236 = vmatpush1.bf16.msra.mxu1 %v6454_v62  ;;  %v21_v61 = vld [vmem:[%s9918_s1 + $0x28] sm:$0xff] }
  0x3f   :  { %3194 = vmatprep.subr.bf16.mxu0 %v6389_v63  ;;  %3237 = vmatprep.subr.bf16.mxu1 %v6391_v0  ;;  %v53_v62 = vld [vmem:[%s9918_s1 + $0x128] sm:$0xff]  ;;  %v6456_v63 = vcombine.low %v84_v51, %v116_v52  ;;  %v6458_v0 = vcombine.low %v85_v53, %v117_v54  ;;  %v6525_v51 = vcombine.high %v150_v45, %v182_v46  ;;  %v86_v53 = vld [vmem:[%s9918_s1 + $0x230] sm:$0xff] }
  0x40   :  { %v6395_v2 = vcombine.high %v21_v61, %v53_v62  ;;  %v118_v54 = vld [vmem:[%s9918_s1 + $0x330] sm:$0xff] }
  0x42   :  { %3195 = vmatpush1.bf16.msra.mxu0 %v6388_v6  ;;  %3238 = vmatpush1.bf16.msra.mxu1 %v6390_v7  ;;  %v471_v6 = vld [vmem:[%s9918_s1 + $0xe38] sm:$0xff] }
  0x43   :  { %3266 = vmatprep.subr.bf16.mxu0 %v6841_v8  ;;  %3309 = vmatprep.subr.bf16.mxu1 %v6843_v9  ;;  %v503_v7 = vld [vmem:[%s9918_s1 + $0xf38] sm:$0xff]  ;;  %v6392_v8 = vcombine.low %v20_v59, %v52_v60  ;;  %v6394_v9 = vcombine.low %v21_v61, %v53_v62  ;;  %v6461_v59 = vcombine.high %v86_v53, %v118_v54  ;;  %v22_v61 = vld [vmem:[%s9918_s1 + $0x30] sm:$0xff] }
  0x44   :  { %v6847_v12 = vcombine.high %v471_v6, %v503_v7  ;;  %v54_v62 = vld [vmem:[%s9918_s1 + $0x130] sm:$0xff] }
  0x45   :  { %3213 = vmatmul.mubr.bf16.vlgmr.msra.gmra.mxu0 %v7172_v10  ;;  %3256 = vmatmul.mubr.bf16.vlgmr.msra.gmra.mxu1 %v7172_v10 }
  0x46   :  { %3267 = vmatpush1.bf16.msra.mxu0 %v6840_v15  ;;  %3310 = vmatpush1.bf16.msra.mxu1 %v6842_v16  ;;  %v407_v15 = vld [vmem:[%s9918_s1 + $0xc38] sm:$0xff] }
  0x47   :  { %3268 = vmatprep.subr.bf16.mxu0 %v6777_v17  ;;  %3311 = vmatprep.subr.bf16.mxu1 %v6779_v18  ;;  %v439_v16 = vld [vmem:[%s9918_s1 + $0xd38] sm:$0xff]  ;;  %v6844_v17 = vcombine.low %v470_v4, %v502_v5  ;;  %v6846_v18 = vcombine.low %v471_v6, %v503_v7  ;;  %v6397_v4 = vcombine.high %v22_v61, %v54_v62  ;;  %v472_v6 = vld [vmem:[%s9918_s1 + $0xe40] sm:$0xff] }
  0x48   :  { %3298 = vmatprep.mubr.bf16.mxu0 %v7031_v3  ;;  %3341 = vmatprep.mubr.bf16.mxu1 %v7031_v3  ;;  %v6783_v20 = vcombine.high %v407_v15, %v439_v16  ;;  %v504_v7 = vld [vmem:[%s9918_s1 + $0xf40] sm:$0xff] }
  0x4a   :  { %3269 = vmatpush1.bf16.msra.mxu0 %v6776_v23  ;;  %3312 = vmatpush1.bf16.msra.mxu1 %v6778_v24  ;;  %v343_v23 = vld [vmem:[%s9918_s1 + $0xa38] sm:$0xff] }
  0x4b   :  { %3270 = vmatprep.subr.bf16.mxu0 %v6713_v25  ;;  %3313 = vmatprep.subr.bf16.mxu1 %v6715_v26  ;;  %v375_v24 = vld [vmem:[%s9918_s1 + $0xb38] sm:$0xff]  ;;  %v6780_v25 = vcombine.low %v406_v13, %v438_v14  ;;  %v6782_v26 = vcombine.low %v407_v15, %v439_v16  ;;  %v6849_v13 = vcombine.high %v472_v6, %v504_v7  ;;  %v408_v15 = vld [vmem:[%s9918_s1 + $0xc40] sm:$0xff] }
  0x4c   :  { %v6719_v28 = vcombine.high %v343_v23, %v375_v24  ;;  %v440_v16 = vld [vmem:[%s9918_s1 + $0xd40] sm:$0xff] }
  0x4e   :  { %3271 = vmatpush1.bf16.msra.mxu0 %v6712_v31  ;;  %3314 = vmatpush1.bf16.msra.mxu1 %v6714_v32  ;;  %v279_v31 = vld [vmem:[%s9918_s1 + $0x838] sm:$0xff] }
  0x4f   :  { %3272 = vmatprep.subr.bf16.mxu0 %v6649_v33  ;;  %3315 = vmatprep.subr.bf16.mxu1 %v6651_v34  ;;  %v311_v32 = vld [vmem:[%s9918_s1 + $0x938] sm:$0xff]  ;;  %v6716_v33 = vcombine.low %v342_v21, %v374_v22  ;;  %v6718_v34 = vcombine.low %v343_v23, %v375_v24  ;;  %v6785_v21 = vcombine.high %v408_v15, %v440_v16  ;;  %v344_v23 = vld [vmem:[%s9918_s1 + $0xa40] sm:$0xff] }
  0x50   :  { %v6655_v36 = vcombine.high %v279_v31, %v311_v32  ;;  %v376_v24 = vld [vmem:[%s9918_s1 + $0xb40] sm:$0xff] }
  0x52   :  { %3273 = vmatpush1.bf16.msra.mxu0 %v6648_v39  ;;  %3316 = vmatpush1.bf16.msra.mxu1 %v6650_v40  ;;  %v215_v39 = vld [vmem:[%s9918_s1 + $0x638] sm:$0xff] }
  0x53   :  { %3274 = vmatprep.subr.bf16.mxu0 %v6585_v41  ;;  %3317 = vmatprep.subr.bf16.mxu1 %v6587_v42  ;;  %v247_v40 = vld [vmem:[%s9918_s1 + $0x738] sm:$0xff]  ;;  %v6652_v41 = vcombine.low %v278_v29, %v310_v30  ;;  %v6654_v42 = vcombine.low %v279_v31, %v311_v32  ;;  %v6721_v29 = vcombine.high %v344_v23, %v376_v24  ;;  %v280_v31 = vld [vmem:[%s9918_s1 + $0x840] sm:$0xff] }
  0x54   :  { %v6591_v44 = vcombine.high %v215_v39, %v247_v40  ;;  %v312_v32 = vld [vmem:[%s9918_s1 + $0x940] sm:$0xff] }
  0x56   :  { %3275 = vmatpush1.bf16.msra.mxu0 %v6584_v47  ;;  %3318 = vmatpush1.bf16.msra.mxu1 %v6586_v48  ;;  %v151_v47 = vld [vmem:[%s9918_s1 + $0x438] sm:$0xff] }
  0x57   :  { %3276 = vmatprep.subr.bf16.mxu0 %v6521_v49  ;;  %3319 = vmatprep.subr.bf16.mxu1 %v6523_v50  ;;  %v183_v48 = vld [vmem:[%s9918_s1 + $0x538] sm:$0xff]  ;;  %v6588_v49 = vcombine.low %v214_v37, %v246_v38  ;;  %v6590_v50 = vcombine.low %v215_v39, %v247_v40  ;;  %v6657_v37 = vcombine.high %v280_v31, %v312_v32  ;;  %v216_v39 = vld [vmem:[%s9918_s1 + $0x640] sm:$0xff] }
  0x58   :  { %v6527_v52 = vcombine.high %v151_v47, %v183_v48  ;;  %v248_v40 = vld [vmem:[%s9918_s1 + $0x740] sm:$0xff] }
  0x5a   :  { %3277 = vmatpush1.bf16.msra.mxu0 %v6520_v55  ;;  %3320 = vmatpush1.bf16.msra.mxu1 %v6522_v56  ;;  %v87_v55 = vld [vmem:[%s9918_s1 + $0x238] sm:$0xff] }
  0x5b   :  { %3278 = vmatprep.subr.bf16.mxu0 %v6457_v57  ;;  %3321 = vmatprep.subr.bf16.mxu1 %v6459_v58  ;;  %v119_v56 = vld [vmem:[%s9918_s1 + $0x338] sm:$0xff]  ;;  %v6524_v57 = vcombine.low %v150_v45, %v182_v46  ;;  %v6526_v58 = vcombine.low %v151_v47, %v183_v48  ;;  %v6593_v45 = vcombine.high %v216_v39, %v248_v40  ;;  %v152_v47 = vld [vmem:[%s9918_s1 + $0x440] sm:$0xff] }
  0x5c   :  { %v6463_v60 = vcombine.high %v87_v55, %v119_v56  ;;  %v184_v48 = vld [vmem:[%s9918_s1 + $0x540] sm:$0xff] }
  0x5e   :  { %3279 = vmatpush1.bf16.msra.mxu0 %v6456_v63  ;;  %3322 = vmatpush1.bf16.msra.mxu1 %v6458_v0  ;;  %v23_v63 = vld [vmem:[%s9918_s1 + $0x38] sm:$0xff] }
  0x5f   :  { %3280 = vmatprep.subr.bf16.mxu0 %v6393_v1  ;;  %3323 = vmatprep.subr.bf16.mxu1 %v6395_v2  ;;  %v55_v0 = vld [vmem:[%s9918_s1 + $0x138] sm:$0xff]  ;;  %v6460_v1 = vcombine.low %v86_v53, %v118_v54  ;;  %v6462_v2 = vcombine.low %v87_v55, %v119_v56  ;;  %v6529_v53 = vcombine.high %v152_v47, %v184_v48  ;;  %v88_v55 = vld [vmem:[%s9918_s1 + $0x240] sm:$0xff] }
  0x60   :  { %v6399_v5 = vcombine.high %v23_v63, %v55_v0  ;;  %v120_v56 = vld [vmem:[%s9918_s1 + $0x340] sm:$0xff] }
  0x62   :  { %3281 = vmatpush1.bf16.msra.mxu0 %v6392_v8  ;;  %3324 = vmatpush1.bf16.msra.mxu1 %v6394_v9  ;;  %v473_v8 = vld [vmem:[%s9918_s1 + $0xe48] sm:$0xff] }
  0x63   :  { %3352 = vmatprep.subr.bf16.mxu0 %v6845_v11  ;;  %3395 = vmatprep.subr.bf16.mxu1 %v6847_v12  ;;  %v505_v9 = vld [vmem:[%s9918_s1 + $0xf48] sm:$0xff]  ;;  %v6396_v11 = vcombine.low %v22_v61, %v54_v62  ;;  %v6398_v12 = vcombine.low %v23_v63, %v55_v0  ;;  %v6465_v61 = vcombine.high %v88_v55, %v120_v56  ;;  %v24_v63 = vld [vmem:[%s9918_s1 + $0x40] sm:$0xff] }
  0x64   :  { %v6851_v14 = vcombine.high %v473_v8, %v505_v9  ;;  %v56_v0 = vld [vmem:[%s9918_s1 + $0x140] sm:$0xff] }
  0x65   :  { %3299 = vmatmul.mubr.bf16.vlgmr.msra.gmra.mxu0 %v7172_v10  ;;  %3342 = vmatmul.mubr.bf16.vlgmr.msra.gmra.mxu1 %v7172_v10 }
  0x66   :  { %3353 = vmatpush1.bf16.msra.mxu0 %v6844_v17  ;;  %3396 = vmatpush1.bf16.msra.mxu1 %v6846_v18  ;;  %v409_v17 = vld [vmem:[%s9918_s1 + $0xc48] sm:$0xff] }
  0x67   :  { %3354 = vmatprep.subr.bf16.mxu0 %v6781_v19  ;;  %3397 = vmatprep.subr.bf16.mxu1 %v6783_v20  ;;  %v441_v18 = vld [vmem:[%s9918_s1 + $0xd48] sm:$0xff]  ;;  %v6848_v19 = vcombine.low %v472_v6, %v504_v7  ;;  %v6850_v20 = vcombine.low %v473_v8, %v505_v9  ;;  %v6401_v6 = vcombine.high %v24_v63, %v56_v0  ;;  %v474_v8 = vld [vmem:[%s9918_s1 + $0xe50] sm:$0xff] }
  0x68   :  { %3384 = vmatprep.mubr.bf16.mxu0 %v7031_v3  ;;  %3427 = vmatprep.mubr.bf16.mxu1 %v7031_v3  ;;  %v6787_v22 = vcombine.high %v409_v17, %v441_v18  ;;  %v506_v9 = vld [vmem:[%s9918_s1 + $0xf50] sm:$0xff] }
  0x6a   :  { %3355 = vmatpush1.bf16.msra.mxu0 %v6780_v25  ;;  %3398 = vmatpush1.bf16.msra.mxu1 %v6782_v26  ;;  %v345_v25 = vld [vmem:[%s9918_s1 + $0xa48] sm:$0xff] }
  0x6b   :  { %3356 = vmatprep.subr.bf16.mxu0 %v6717_v27  ;;  %3399 = vmatprep.subr.bf16.mxu1 %v6719_v28  ;;  %v377_v26 = vld [vmem:[%s9918_s1 + $0xb48] sm:$0xff]  ;;  %v6784_v27 = vcombine.low %v408_v15, %v440_v16  ;;  %v6786_v28 = vcombine.low %v409_v17, %v441_v18  ;;  %v6853_v15 = vcombine.high %v474_v8, %v506_v9  ;;  %v410_v17 = vld [vmem:[%s9918_s1 + $0xc50] sm:$0xff] }
  0x6c   :  { %v6723_v30 = vcombine.high %v345_v25, %v377_v26  ;;  %v442_v18 = vld [vmem:[%s9918_s1 + $0xd50] sm:$0xff] }
  0x6e   :  { %3357 = vmatpush1.bf16.msra.mxu0 %v6716_v33  ;;  %3400 = vmatpush1.bf16.msra.mxu1 %v6718_v34  ;;  %v281_v33 = vld [vmem:[%s9918_s1 + $0x848] sm:$0xff] }
  0x6f   :  { %3358 = vmatprep.subr.bf16.mxu0 %v6653_v35  ;;  %3401 = vmatprep.subr.bf16.mxu1 %v6655_v36  ;;  %v313_v34 = vld [vmem:[%s9918_s1 + $0x948] sm:$0xff]  ;;  %v6720_v35 = vcombine.low %v344_v23, %v376_v24  ;;  %v6722_v36 = vcombine.low %v345_v25, %v377_v26  ;;  %v6789_v23 = vcombine.high %v410_v17, %v442_v18  ;;  %v346_v25 = vld [vmem:[%s9918_s1 + $0xa50] sm:$0xff] }
  0x70   :  { %v6659_v38 = vcombine.high %v281_v33, %v313_v34  ;;  %v378_v26 = vld [vmem:[%s9918_s1 + $0xb50] sm:$0xff] }
  0x72   :  { %3359 = vmatpush1.bf16.msra.mxu0 %v6652_v41  ;;  %3402 = vmatpush1.bf16.msra.mxu1 %v6654_v42  ;;  %v217_v41 = vld [vmem:[%s9918_s1 + $0x648] sm:$0xff] }
  0x73   :  { %3360 = vmatprep.subr.bf16.mxu0 %v6589_v43  ;;  %3403 = vmatprep.subr.bf16.mxu1 %v6591_v44  ;;  %v249_v42 = vld [vmem:[%s9918_s1 + $0x748] sm:$0xff]  ;;  %v6656_v43 = vcombine.low %v280_v31, %v312_v32  ;;  %v6658_v44 = vcombine.low %v281_v33, %v313_v34  ;;  %v6725_v31 = vcombine.high %v346_v25, %v378_v26  ;;  %v282_v33 = vld [vmem:[%s9918_s1 + $0x850] sm:$0xff] }
  0x74   :  { %v6595_v46 = vcombine.high %v217_v41, %v249_v42  ;;  %v314_v34 = vld [vmem:[%s9918_s1 + $0x950] sm:$0xff] }
  0x76   :  { %3361 = vmatpush1.bf16.msra.mxu0 %v6588_v49  ;;  %3404 = vmatpush1.bf16.msra.mxu1 %v6590_v50  ;;  %v153_v49 = vld [vmem:[%s9918_s1 + $0x448] sm:$0xff] }
  0x77   :  { %3362 = vmatprep.subr.bf16.mxu0 %v6525_v51  ;;  %3405 = vmatprep.subr.bf16.mxu1 %v6527_v52  ;;  %v185_v50 = vld [vmem:[%s9918_s1 + $0x548] sm:$0xff]  ;;  %v6592_v51 = vcombine.low %v216_v39, %v248_v40  ;;  %v6594_v52 = vcombine.low %v217_v41, %v249_v42  ;;  %v218_v40 = vld [vmem:[%s9918_s1 + $0x650] sm:$0xff]  ;;  %v219_v42 = vld [vmem:[%s9918_s1 + $0x658] sm:$0xff] }
  0x78   :  { %v6531_v54 = vcombine.high %v153_v49, %v185_v50  ;;  %v250_v41 = vld [vmem:[%s9918_s1 + $0x750] sm:$0xff] }
  0x7a   :  { %3363 = vmatpush1.bf16.msra.mxu0 %v6524_v57  ;;  %3406 = vmatpush1.bf16.msra.mxu1 %v6526_v58  ;;  %v89_v57 = vld [vmem:[%s9918_s1 + $0x248] sm:$0xff] }
  0x7b   :  { %3364 = vmatprep.subr.bf16.mxu0 %v6461_v59  ;;  %3407 = vmatprep.subr.bf16.mxu1 %v6463_v60  ;;  %v121_v58 = vld [vmem:[%s9918_s1 + $0x348] sm:$0xff]  ;;  %v6528_v59 = vcombine.low %v152_v47, %v184_v48  ;;  %v6530_v60 = vcombine.low %v153_v49, %v185_v50  ;;  %v154_v48 = vld [vmem:[%s9918_s1 + $0x450] sm:$0xff]  ;;  %v155_v50 = vld [vmem:[%s9918_s1 + $0x458] sm:$0xff] }
  0x7c   :  { %v6467_v62 = vcombine.high %v89_v57, %v121_v58  ;;  %v186_v49 = vld [vmem:[%s9918_s1 + $0x550] sm:$0xff] }
  0x7e   :  { %3365 = vmatpush1.bf16.msra.mxu0 %v6460_v1  ;;  %3408 = vmatpush1.bf16.msra.mxu1 %v6462_v2  ;;  %v25_v1 = vld [vmem:[%s9918_s1 + $0x48] sm:$0xff] }
  0x7f   :  { %3366 = vmatprep.subr.bf16.mxu0 %v6397_v4  ;;  %3409 = vmatprep.subr.bf16.mxu1 %v6399_v5  ;;  %v57_v2 = vld [vmem:[%s9918_s1 + $0x148] sm:$0xff]  ;;  %v6464_v4 = vcombine.low %v88_v55, %v120_v56  ;;  %v6466_v5 = vcombine.low %v89_v57, %v121_v58  ;;  %v90_v56 = vld [vmem:[%s9918_s1 + $0x250] sm:$0xff]  ;;  %v91_v58 = vld [vmem:[%s9918_s1 + $0x258] sm:$0xff] }
  0x80   :  { %v6403_v7 = vcombine.high %v25_v1, %v57_v2  ;;  %v122_v57 = vld [vmem:[%s9918_s1 + $0x350] sm:$0xff] }
  0x82   :  { %3367 = vmatpush1.bf16.msra.mxu0 %v6396_v11  ;;  %3410 = vmatpush1.bf16.msra.mxu1 %v6398_v12  ;;  %v475_v11 = vld [vmem:[%s9918_s1 + $0xe58] sm:$0xff] }
  0x83   :  { %3438 = vmatprep.subr.bf16.mxu0 %v6849_v13  ;;  %3481 = vmatprep.subr.bf16.mxu1 %v6851_v14  ;;  %v507_v12 = vld [vmem:[%s9918_s1 + $0xf58] sm:$0xff]  ;;  %v6400_v13 = vcombine.low %v24_v63, %v56_v0  ;;  %v6402_v14 = vcombine.low %v25_v1, %v57_v2  ;;  %v26_v0 = vld [vmem:[%s9918_s1 + $0x50] sm:$0xff] }
  0x84   :  { %v6855_v16 = vcombine.high %v475_v11, %v507_v12  ;;  %v58_v1 = vld [vmem:[%s9918_s1 + $0x150] sm:$0xff]  ;;  %v27_v2 = vld [vmem:[%s9918_s1 + $0x58] sm:$0xff] }
  0x85   :  { %3385 = vmatmul.mubr.bf16.vlgmr.msra.gmra.mxu0 %v7172_v10  ;;  %3428 = vmatmul.mubr.bf16.vlgmr.msra.gmra.mxu1 %v7172_v10 }
  0x86   :  { %3439 = vmatpush1.bf16.msra.mxu0 %v6848_v19  ;;  %3482 = vmatpush1.bf16.msra.mxu1 %v6850_v20  ;;  %v411_v19 = vld [vmem:[%s9918_s1 + $0xc58] sm:$0xff] }
  0x87   :  { %3440 = vmatprep.subr.bf16.mxu0 %v6785_v21  ;;  %3483 = vmatprep.subr.bf16.mxu1 %v6787_v22  ;;  %v443_v20 = vld [vmem:[%s9918_s1 + $0xd58] sm:$0xff]  ;;  %v6852_v21 = vcombine.low %v474_v8, %v506_v9  ;;  %v6854_v22 = vcombine.low %v475_v11, %v507_v12  ;;  %v476_v9 = vld [vmem:[%s9918_s1 + $0xe60] sm:$0xff]  ;;  %v477_v12 = vld [vmem:[%s9918_s1 + $0xe68] sm:$0xff] }
  0x88   :  { %3470 = vmatprep.mubr.bf16.mxu0 %v7031_v3  ;;  %3513 = vmatprep.mubr.bf16.mxu1 %v7031_v3  ;;  %v6791_v24 = vcombine.high %v411_v19, %v443_v20  ;;  %v508_v11 = vld [vmem:[%s9918_s1 + $0xf60] sm:$0xff] }
  0x8a   :  { %3441 = vmatpush1.bf16.msra.mxu0 %v6784_v27  ;;  %3484 = vmatpush1.bf16.msra.mxu1 %v6786_v28  ;;  %v347_v27 = vld [vmem:[%s9918_s1 + $0xa58] sm:$0xff] }
  0x8b   :  { %3442 = vmatprep.subr.bf16.mxu0 %v6721_v29  ;;  %3485 = vmatprep.subr.bf16.mxu1 %v6723_v30  ;;  %v379_v28 = vld [vmem:[%s9918_s1 + $0xb58] sm:$0xff]  ;;  %v6788_v29 = vcombine.low %v410_v17, %v442_v18  ;;  %v6790_v30 = vcombine.low %v411_v19, %v443_v20  ;;  %v412_v18 = vld [vmem:[%s9918_s1 + $0xc60] sm:$0xff]  ;;  %v413_v20 = vld [vmem:[%s9918_s1 + $0xc68] sm:$0xff] }
  0x8c   :  { %v6727_v32 = vcombine.high %v347_v27, %v379_v28  ;;  %v444_v19 = vld [vmem:[%s9918_s1 + $0xd60] sm:$0xff] }
  0x8e   :  { %3443 = vmatpush1.bf16.msra.mxu0 %v6720_v35  ;;  %3486 = vmatpush1.bf16.msra.mxu1 %v6722_v36  ;;  %v315_v35 = vld [vmem:[%s9918_s1 + $0x958] sm:$0xff]  ;;  %v6724_v36 = vcombine.low %v346_v25, %v378_v26  ;;  %v348_v26 = vld [vmem:[%s9918_s1 + $0xa60] sm:$0xff] }
  0x8f   :  { %3444 = vmatprep.subr.bf16.mxu0 %v6657_v37  ;;  %3487 = vmatprep.subr.bf16.mxu1 %v6659_v38  ;;  %v6726_v37 = vcombine.low %v347_v27, %v379_v28  ;;  %v6661_v38 = vcombine.high %v282_v33, %v314_v34  ;;  %v380_v27 = vld [vmem:[%s9918_s1 + $0xb60] sm:$0xff] }
  0x90   :  { %v7689_v28 = vld [vmem:[%s9919_s0] sm:$0xff]  }
  0x92   :  { %3445 = vmatpush1.bf16.msra.mxu0 %v6656_v43  ;;  %3488 = vmatpush1.bf16.msra.mxu1 %v6658_v44  ;;  %v251_v43 = vld [vmem:[%s9918_s1 + $0x758] sm:$0xff]  ;;  %v6660_v44 = vcombine.low %v282_v33, %v314_v34  ;;  %v6729_v33 = vcombine.high %v348_v26, %v380_v27 }
  0x93   :  { %3446 = vmatprep.subr.bf16.mxu0 %v6593_v45  ;;  %3489 = vmatprep.subr.bf16.mxu1 %v6595_v46  ;;  %v6597_v46 = vcombine.high %v218_v40, %v250_v41  ;;  %v6599_v47 = vcombine.high %v219_v42, %v251_v43 }
  0x96   :  { %3447 = vmatpush1.bf16.msra.mxu0 %v6592_v51  ;;  %3490 = vmatpush1.bf16.msra.mxu1 %v6594_v52  ;;  %v187_v51 = vld [vmem:[%s9918_s1 + $0x558] sm:$0xff]  ;;  %v6596_v52 = vcombine.low %v218_v40, %v250_v41 }
  0x97   :  { %3448 = vmatprep.subr.bf16.mxu0 %v6529_v53  ;;  %3491 = vmatprep.subr.bf16.mxu1 %v6531_v54  ;;  %v6598_v53 = vcombine.low %v219_v42, %v251_v43  ;;  %v6533_v54 = vcombine.high %v154_v48, %v186_v49  ;;  %v6535_v55 = vcombine.high %v155_v50, %v187_v51  ;;  %v220_v42 = vld [vmem:[%s9918_s1 + $0x660] sm:$0xff] }
  0x98   :  { %v252_v43 = vld [vmem:[%s9918_s1 + $0x760] sm:$0xff] }
  0x9a   :  { %3449 = vmatpush1.bf16.msra.mxu0 %v6528_v59  ;;  %3492 = vmatpush1.bf16.msra.mxu1 %v6530_v60  ;;  %v123_v59 = vld [vmem:[%s9918_s1 + $0x358] sm:$0xff]  ;;  %v6532_v60 = vcombine.low %v154_v48, %v186_v49  ;;  %v6601_v48 = vcombine.high %v220_v42, %v252_v43 }
  0x9b   :  { %3450 = vmatprep.subr.bf16.mxu0 %v6465_v61  ;;  %3493 = vmatprep.subr.bf16.mxu1 %v6467_v62  ;;  %v6534_v61 = vcombine.low %v155_v50, %v187_v51  ;;  %v6469_v62 = vcombine.high %v90_v56, %v122_v57  ;;  %v6471_v63 = vcombine.high %v91_v58, %v123_v59  ;;  %v156_v50 = vld [vmem:[%s9918_s1 + $0x460] sm:$0xff] }
  0x9c   :  { %v188_v51 = vld [vmem:[%s9918_s1 + $0x560] sm:$0xff] }
  0x9e   :  { %3451 = vmatpush1.bf16.msra.mxu0 %v6464_v4  ;;  %3494 = vmatpush1.bf16.msra.mxu1 %v6466_v5  ;;  %v59_v4 = vld [vmem:[%s9918_s1 + $0x158] sm:$0xff]  ;;  %v6468_v5 = vcombine.low %v90_v56, %v122_v57  ;;  %v6537_v56 = vcombine.high %v156_v50, %v188_v51 }
  0x9f   :  { %3452 = vmatprep.subr.bf16.mxu0 %v6401_v6  ;;  %3495 = vmatprep.subr.bf16.mxu1 %v6403_v7  ;;  %v6470_v6 = vcombine.low %v91_v58, %v123_v59  ;;  %v6405_v7 = vcombine.high %v26_v0, %v58_v1  ;;  %v6407_v8 = vcombine.high %v27_v2, %v59_v4  ;;  %v92_v58 = vld [vmem:[%s9918_s1 + $0x260] sm:$0xff] }
  0xa0   :  { %v124_v59 = vld [vmem:[%s9918_s1 + $0x360] sm:$0xff] }
  0xa2   :  { %3453 = vmatpush1.bf16.msra.mxu0 %v6400_v13  ;;  %3496 = vmatpush1.bf16.msra.mxu1 %v6402_v14  ;;  %v509_v13 = vld [vmem:[%s9918_s1 + $0xf68] sm:$0xff]  ;;  %v6404_v14 = vcombine.low %v26_v0, %v58_v1  ;;  %v6473_v0 = vcombine.high %v92_v58, %v124_v59 }
  0xa3   :  { %3524 = vmatprep.subr.bf16.mxu0 %v6853_v15  ;;  %3567 = vmatprep.subr.bf16.mxu1 %v6855_v16  ;;  %v6406_v15 = vcombine.low %v27_v2, %v59_v4  ;;  %v6857_v16 = vcombine.high %v476_v9, %v508_v11  ;;  %v6859_v17 = vcombine.high %v477_v12, %v509_v13  ;;  %v28_v2 = vld [vmem:[%s9918_s1 + $0x60] sm:$0xff] }
  0xa4   :  { %v60_v4 = vld [vmem:[%s9918_s1 + $0x160] sm:$0xff] }
  0xa5   :  { %3471 = vmatmul.mubr.bf16.vlgmr.msra.gmra.mxu0 %v7172_v10  ;;  %3514 = vmatmul.mubr.bf16.vlgmr.msra.gmra.mxu1 %v7172_v10  ;;  %v283_v10 = vld [vmem:[%s9918_s1 + $0x858] sm:$0xff] }
  0xa6   :  { %3525 = vmatpush1.bf16.msra.mxu0 %v6852_v21  ;;  %3568 = vmatpush1.bf16.msra.mxu1 %v6854_v22  ;;  %v6663_v39 = vcombine.high %v283_v10, %v315_v35  ;;  %v6662_v45 = vcombine.low %v283_v10, %v315_v35  ;;  %v445_v21 = vld [vmem:[%s9918_s1 + $0xd68] sm:$0xff]  ;;  %v6856_v22 = vcombine.low %v476_v9, %v508_v11  ;;  %v284_v10 = vld [vmem:[%s9918_s1 + $0x860] sm:$0xff] }
  0xa7   :  { %3526 = vmatprep.subr.bf16.mxu0 %v6789_v23  ;;  %3569 = vmatprep.subr.bf16.mxu1 %v6791_v24  ;;  %v6858_v23 = vcombine.low %v477_v12, %v509_v13  ;;  %v6793_v24 = vcombine.high %v412_v18, %v444_v19  ;;  %v6795_v25 = vcombine.high %v413_v20, %v445_v21  ;;  %v316_v35 = vld [vmem:[%s9918_s1 + $0x960] sm:$0xff]  ;;  %v478_v12 = vld [vmem:[%s9918_s1 + $0xe70] sm:$0xff] }
  0xa8   :  { %3556 = vmatprep.mubr.bf16.mxu0 %v7031_v3  ;;  %3599 = vmatprep.mubr.bf16.mxu1 %v7031_v3  ;;  %v6665_v40 = vcombine.high %v284_v10, %v316_v35  ;;  %v6409_v9 = vcombine.high %v28_v2, %v60_v4  ;;  %v510_v13 = vld [vmem:[%s9918_s1 + $0xf70] sm:$0xff] }
  0xaa   :  { %3527 = vmatpush1.bf16.msra.mxu0 %v6788_v29  ;;  %3570 = vmatpush1.bf16.msra.mxu1 %v6790_v30  ;;  %v349_v29 = vld [vmem:[%s9918_s1 + $0xa68] sm:$0xff] }
  0xab   :  { %3528 = vmatprep.subr.bf16.mxu0 %v6725_v31  ;;  %3571 = vmatprep.subr.bf16.mxu1 %v6727_v32  ;;  %v381_v30 = vld [vmem:[%s9918_s1 + $0xb68] sm:$0xff]  ;;  %v6792_v31 = vcombine.low %v412_v18, %v444_v19  ;;  %v6794_v32 = vcombine.low %v413_v20, %v445_v21  ;;  %v6861_v18 = vcombine.high %v478_v12, %v510_v13  ;;  %v7776_v20 = vld [vmem:[%s9918_s1 + $0xc70] sm:$0xff] }
  0xac   :  { %v6731_v34 = vcombine.high %v349_v29, %v381_v30  ;;  %v7781_v21 = vld [vmem:[%s9918_s1 + $0xd70] sm:$0xff] }
  0xae   :  { %3529 = vmatpush1.bf16.msra.mxu0 %v6724_v36  ;;  %3572 = vmatpush1.bf16.msra.mxu1 %v6726_v37  ;;  %v285_v36 = vld [vmem:[%s9918_s1 + $0x868] sm:$0xff] }
  0xaf   :  { %3530 = vmatprep.subr.bf16.mxu0 %v6661_v38  ;;  %3573 = vmatprep.subr.bf16.mxu1 %v6663_v39  ;;  %v317_v37 = vld [vmem:[%s9918_s1 + $0x968] sm:$0xff]  ;;  %v6728_v38 = vcombine.low %v348_v26, %v380_v27  ;;  %v6730_v39 = vcombine.low %v349_v29, %v381_v30  ;;  %v6860_v26 = vcombine.low %v478_v12, %v510_v13  ;;  %v7806_v27 = vld [vmem:[%s9918_s1 + $0xa78] sm:$0xff]  ;;  %v7816_v30 = vld [vmem:[%s9918_s1 + $0x870] sm:$0xff] }
  0xb0   :  { %v6667_v41 = vcombine.high %v285_v36, %v317_v37  ;;  %v7811_v29 = vld [vmem:[%s9918_s1 + $0xb78] sm:$0xff] }
  0xb2   :  { %3531 = vmatpush1.bf16.msra.mxu0 %v6660_v44  ;;  %3574 = vmatpush1.bf16.msra.mxu1 %v6662_v45  ;;  %v221_v44 = vld [vmem:[%s9918_s1 + $0x668] sm:$0xff] }
  0xb3   :  { %3532 = vmatprep.subr.bf16.mxu0 %v6597_v46  ;;  %3575 = vmatprep.subr.bf16.mxu1 %v6599_v47  ;;  %v253_v45 = vld [vmem:[%s9918_s1 + $0x768] sm:$0xff]  ;;  %v6664_v46 = vcombine.low %v284_v10, %v316_v35  ;;  %v6666_v47 = vcombine.low %v285_v36, %v317_v37  ;;  %v7833_v10 = vld [vmem:[%s9918_s1 + $0x978] sm:$0xff]  ;;  %v6796_v35 = vcombine.low %v7776_v20, %v7781_v21 }
  0xb4   :  { %v6603_v49 = vcombine.high %v221_v44, %v253_v45 }
  0xb6   :  { %3533 = vmatpush1.bf16.msra.mxu0 %v6596_v52  ;;  %3576 = vmatpush1.bf16.msra.mxu1 %v6598_v53  ;;  %v157_v52 = vld [vmem:[%s9918_s1 + $0x468] sm:$0xff] }
  0xb7   :  { %3534 = vmatprep.subr.bf16.mxu0 %v6533_v54  ;;  %3577 = vmatprep.subr.bf16.mxu1 %v6535_v55  ;;  %v189_v53 = vld [vmem:[%s9918_s1 + $0x568] sm:$0xff]  ;;  %v6600_v54 = vcombine.low %v220_v42, %v252_v43  ;;  %v6602_v55 = vcombine.low %v221_v44, %v253_v45  ;;  %v6734_v43 = vcombine.low %v7806_v27, %v7811_v29  ;;  %v7863_v45 = vld [vmem:[%s9918_s1 + $0x678] sm:$0xff] }
  0xb8   :  { %v6539_v57 = vcombine.high %v157_v52, %v189_v53  ;;  %v6735_v44 = vcombine.high %v7806_v27, %v7811_v29 }
  0xba   :  { %3535 = vmatpush1.bf16.msra.mxu0 %v6532_v60  ;;  %3578 = vmatpush1.bf16.msra.mxu1 %v6534_v61  ;;  %v93_v60 = vld [vmem:[%s9918_s1 + $0x268] sm:$0xff] }
  0xbb   :  { %3536 = vmatprep.subr.bf16.mxu0 %v6469_v62  ;;  %3579 = vmatprep.subr.bf16.mxu1 %v6471_v63  ;;  %v125_v61 = vld [vmem:[%s9918_s1 + $0x368] sm:$0xff]  ;;  %v6536_v62 = vcombine.low %v156_v50, %v188_v51  ;;  %v6538_v63 = vcombine.low %v157_v52, %v189_v53  ;;  %v7880_v51 = vld [vmem:[%s9918_s1 + $0x470] sm:$0xff] }
  0xbc   :  { %v6475_v1 = vcombine.high %v93_v60, %v125_v61  ;;  %v7885_v52 = vld [vmem:[%s9918_s1 + $0x570] sm:$0xff] }
  0xbe   :  { %3537 = vmatpush1.bf16.msra.mxu0 %v6468_v5  ;;  %3580 = vmatpush1.bf16.msra.mxu1 %v6470_v6  ;;  %v29_v5 = vld [vmem:[%s9918_s1 + $0x68] sm:$0xff] }
  0xbf   :  { %3538 = vmatprep.subr.bf16.mxu0 %v6405_v7  ;;  %3581 = vmatprep.subr.bf16.mxu1 %v6407_v8  ;;  %v61_v6 = vld [vmem:[%s9918_s1 + $0x168] sm:$0xff]  ;;  %v6472_v7 = vcombine.low %v92_v58, %v124_v59  ;;  %v6474_v8 = vcombine.low %v93_v60, %v125_v61  ;;  %v7032_v59 = vmov 1983009808  }
  0xc0   :  { %v6411_v11 = vcombine.high %v29_v5, %v61_v6  ;;  %v7893_v60 = vunpack.c.l.s4 %v7032_v59 }
  0xc2   :  { %3539 = vmatpush1.bf16.msra.mxu0 %v6404_v14  ;;  %3582 = vmatpush1.bf16.msra.mxu1 %v6406_v15  ;;  %v479_v14 = vld [vmem:[%s9918_s1 + $0xe78] sm:$0xff] }
  0xc3   :  { %3610 = vmatprep.subr.bf16.mxu0 %v6857_v16  ;;  %3653 = vmatprep.subr.bf16.mxu1 %v6859_v17  ;;  %v511_v15 = vld [vmem:[%s9918_s1 + $0xf78] sm:$0xff]  ;;  %v6408_v16 = vcombine.low %v28_v2, %v60_v4  ;;  %v6410_v17 = vcombine.low %v29_v5, %v61_v6  ;;  %v6540_v2 = vcombine.low %v7880_v51, %v7885_v52 }
  0xc4   :  { %v6863_v19 = vcombine.high %v479_v14, %v511_v15  ;;  %v6541_v4 = vcombine.high %v7880_v51, %v7885_v52  ;;  %v512_v51 = vld [vmem:[%s9918_s1 + $0xf80] sm:$0xff] }
  0xc5   :  { %3557 = vmatmul.mubr.bf16.vlgmr.msra.gmra.mxu0 %v7689_v28  ;;  %3600 = vmatmul.mubr.bf16.vlgmr.msra.gmra.mxu1 %v7689_v28 }
  0xc6   :  { %3611 = vmatpush1.bf16.msra.mxu0 %v6856_v22  ;;  %3654 = vmatpush1.bf16.msra.mxu1 %v6858_v23  ;;  %v7786_v22 = vld [vmem:[%s9918_s1 + $0xc78] sm:$0xff] }
  0xc7   :  { %3612 = vmatprep.subr.bf16.mxu0 %v6793_v24  ;;  %3655 = vmatprep.subr.bf16.mxu1 %v6795_v25  ;;  %v7791_v23 = vld [vmem:[%s9918_s1 + $0xd78] sm:$0xff]  ;;  %v7796_v24 = vld [vmem:[%s9918_s1 + $0xa70] sm:$0xff] }
  0xc8   :  { %3642 = vmatprep.mubr.bf16.mxu0 %v7031_v3  ;;  %3685 = vmatprep.mubr.bf16.mxu1 %v7031_v3  ;;  %v7801_v25 = vld [vmem:[%s9918_s1 + $0xb70] sm:$0xff]  ;;  %v6798_v36 = vcombine.low %v7786_v22, %v7791_v23  ;;  %v6799_v37 = vcombine.high %v7786_v22, %v7791_v23 }
  0xc9   :  { %v6732_v42 = vcombine.low %v7796_v24, %v7801_v25 }
  0xca   :  { %3613 = vmatpush1.bf16.msra.mxu0 %v6792_v31  ;;  %3656 = vmatpush1.bf16.msra.mxu1 %v6794_v32  ;;  %v6862_v31 = vcombine.low %v479_v14, %v511_v15  ;;  %v6797_v32 = vcombine.high %v7776_v20, %v7781_v21  ;;  %v6076_v15 = vlaneseq }
  0xcb   :  { %3614 = vmatprep.subr.bf16.mxu0 %v6729_v33  ;;  %3657 = vmatprep.subr.bf16.mxu1 %v6731_v34  ;;  %v7823_v33 = vld [vmem:[%s9918_s1 + $0x970] sm:$0xff]  ;;  %v7828_v34 = vld [vmem:[%s9918_s1 + $0x878] sm:$0xff] }
  0xcc   :  { %v6670_v50 = vcombine.low %v7828_v34, %v7833_v10 }
  0xce   :  { %3615 = vmatpush1.bf16.msra.mxu0 %v6728_v38  ;;  %3658 = vmatpush1.bf16.msra.mxu1 %v6730_v39  ;;  %v6733_v38 = vcombine.high %v7796_v24, %v7801_v25  ;;  %v7846_v39 = vld [vmem:[%s9918_s1 + $0x670] sm:$0xff]  ;;  %v7926_v24 = vld [vmem:[%s9918_s1 + $0x478] sm:$0xff] }
  0xcf   :  { %3616 = vmatprep.subr.bf16.mxu0 %v6665_v40  ;;  %3659 = vmatprep.subr.bf16.mxu1 %v6667_v41  ;;  %v7851_v40 = vld [vmem:[%s9918_s1 + $0x770] sm:$0xff]  ;;  %v7931_v25 = vld [vmem:[%s9918_s1 + $0x578] sm:$0xff] }
  0xd2   :  { %3617 = vmatpush1.bf16.msra.mxu0 %v6664_v46  ;;  %3660 = vmatpush1.bf16.msra.mxu1 %v6666_v47  ;;  %v7868_v46 = vld [vmem:[%s9918_s1 + $0x778] sm:$0xff] }
  0xd3   :  { %3618 = vmatprep.subr.bf16.mxu0 %v6601_v48  ;;  %3661 = vmatprep.subr.bf16.mxu1 %v6603_v49  ;;  %v6668_v48 = vcombine.low %v7816_v30, %v7823_v33  ;;  %v6669_v49 = vcombine.high %v7816_v30, %v7823_v33  ;;  %v6606_v61 = vcombine.low %v7863_v45, %v7868_v46  ;;  %v126_v30 = vld [vmem:[%s9918_s1 + $0x370] sm:$0xff] }
  0xd6   :  { %3619 = vmatpush1.bf16.msra.mxu0 %v6600_v54  ;;  %3662 = vmatpush1.bf16.msra.mxu1 %v6602_v55  ;;  %v6671_v54 = vcombine.high %v7828_v34, %v7833_v10  ;;  %v6604_v55 = vcombine.low %v7846_v39, %v7851_v40 }
  0xd7   :  { %3620 = vmatprep.subr.bf16.mxu0 %v6537_v56  ;;  %3663 = vmatprep.subr.bf16.mxu1 %v6539_v57  ;;  %v6605_v56 = vcombine.high %v7846_v39, %v7851_v40  ;;  %v62_v39 = vld [vmem:[%s9918_s1 + $0x170] sm:$0xff] }
  0xda   :  { %3621 = vmatpush1.bf16.msra.mxu0 %v6536_v62  ;;  %3664 = vmatpush1.bf16.msra.mxu1 %v6538_v63  ;;  %v6607_v62 = vcombine.high %v7863_v45, %v7868_v46 }
  0xdb   :  { %3622 = vmatprep.subr.bf16.mxu0 %v6473_v0  ;;  %3665 = vmatprep.subr.bf16.mxu1 %v6475_v1 }
  0xde   :  { %3623 = vmatpush1.bf16.msra.mxu0 %v6472_v7  ;;  %3666 = vmatpush1.bf16.msra.mxu1 %v6474_v8 }
  0xdf   :  { %3624 = vmatprep.subr.bf16.mxu0 %v6409_v9  ;;  %3667 = vmatprep.subr.bf16.mxu1 %v6411_v11 }
  0xe2   :  { %3625 = vmatpush1.bf16.msra.mxu0 %v6408_v16  ;;  %3668 = vmatpush1.bf16.msra.mxu1 %v6410_v17 }
  0xe3   :  { %3696 = vmatprep.subr.bf16.mxu0 %v6861_v18  ;;  %3739 = vmatprep.subr.bf16.mxu1 %v6863_v19 }
  0xe5   :  { %v3128_v41 = vpop.f32.mrf.mxu0  ;;  %3643 = vmatmul.mubr.bf16.vlgmr.msra.gmra.mxu0 %v7689_v28  ;;  %v3171_v47 = vpop.f32.mrf.mxu1  ;;  %3686 = vmatmul.mubr.bf16.vlgmr.msra.gmra.mxu1 %v7689_v28 }
  0xe6   :  { %3697 = vmatpush1.bf16.msra.mxu0 %v6860_v26  ;;  %3740 = vmatpush1.bf16.msra.mxu1 %v6862_v31  ;;  %v5366_v63 = vmul.f32 %v3128_v41, %v3128_v41  ;;  %v5368_v5 = vmul.f32 %v3171_v47, %v3171_v47 }
  0xe7   :  { %v3130_v53 = vpop.f32.mrf.mxu0  ;;  %3698 = vmatprep.subr.bf16.mxu0 %v6797_v32  ;;  %v3173_v58 = vpop.f32.mrf.mxu1  ;;  %3741 = vmatprep.subr.bf16.mxu1 %v6799_v37 }
  0xe8   :  { %v6960_v57 = vpack.c.bf16 %v3130_v53, %v3128_v41  ;;  %3728 = vmatprep.mubr.bf16.mxu0 %v7031_v3  ;;  %v6961_v0 = vpack.c.bf16 %v3173_v58, %v3171_v47  ;;  %3771 = vmatprep.mubr.bf16.mxu1 %v7031_v3  ;;  %v5367_v6 = vmul.f32 %v3130_v53, %v3130_v53 }
  0xe9   :  { %v3132_v1 = vpop.f32.mrf.mxu0  ;;  %v3175_v9 = vpop.f32.mrf.mxu1  ;;  %v5369_v11 = vmul.f32 %v3173_v58, %v3173_v58 }
  0xea   :  { %4854 = vst [vmem:[%s9920_s2] sm:$0xff] %v6960_v57  ;;  %v4918_v7 = vadd.f32 %v3132_v1, %v3128_v41  ;;  %v5430_v8 = vmul.f32 %v3132_v1, %v3132_v1  ;;  %3699 = vmatpush1.bf16.msra.mxu0 %v6796_v35  ;;  %4855 = vst [vmem:[%s9920_s2 + $0x8] sm:$0xff] %v6961_v0  ;;  %v4932_v12 = vadd.f32 %v3175_v9, %v3171_v47 }
  0xeb   :  { %v5432_v13 = vmul.f32 %v3175_v9, %v3175_v9  ;;  %3742 = vmatpush1.bf16.msra.mxu1 %v6798_v36  ;;  %v3134_v14 = vpop.f32.mrf.mxu0  ;;  %3700 = vmatprep.subr.bf16.mxu0 %v6733_v38  ;;  %v3177_v20 = vpop.f32.mrf.mxu1 }
  0xec   :  { %v4919_v16 = vrot.slane %v4918_v7, 4  ;;  %v5494_v17 = vadd.f32 %v5430_v8, %v5366_v63  ;;  %v6992_v18 = vpack.c.bf16 %v3134_v14, %v3132_v1  ;;  %v4925_v19 = vadd.f32 %v3134_v14, %v3130_v53  ;;  %3743 = vmatprep.subr.bf16.mxu1 %v6735_v44 }
  0xed   :  { %v4933_v21 = vrot.slane %v4932_v12, 4  ;;  %v5508_v22 = vadd.f32 %v5432_v13, %v5368_v5  ;;  %v5431_v23 = vmul.f32 %v3134_v14, %v3134_v14  ;;  %v6993_v26 = vpack.c.bf16 %v3177_v20, %v3175_v9 }
  0xee   :  { %v4920_v31 = vadd.f32 %v4919_v16, %v4918_v7  ;;  %v5495_v32 = vrot.slane %v5494_v17, 4  ;;  %4886 = vst [vmem:[%s9920_s2 + $0x100] sm:$0xff] %v6992_v18  ;;  %v4926_v35 = vrot.slane %v4925_v19, 4  ;;  %v4939_v36 = vadd.f32 %v3177_v20, %v3173_v58  ;;  %3701 = vmatpush1.bf16.msra.mxu0 %v6732_v42  ;;  %v94_v7 = vld [vmem:[%s9918_s1 + $0x270] sm:$0xff] }
  0xef   :  { %v4934_v37 = vadd.f32 %v4933_v21, %v4932_v12  ;;  %v5509_v38 = vrot.slane %v5508_v22, 4  ;;  %v5501_v41 = vadd.f32 %v5431_v23, %v5367_v6  ;;  %4887 = vst [vmem:[%s9920_s2 + $0x108] sm:$0xff] %v6993_v26  ;;  %v5433_v44 = vmul.f32 %v3177_v20, %v3177_v20  ;;  %3744 = vmatpush1.bf16.msra.mxu1 %v6734_v43  ;;  %v127_v12 = vld [vmem:[%s9918_s1 + $0x378] sm:$0xff]  ;;  %v30_v21 = vld [vmem:[%s9918_s1 + $0x70] sm:$0xff] }
  0xf0   :  { %3702 = vmatprep.subr.bf16.mxu0 %v6669_v49  ;;  %v4921_v47 = vrot.slane %v4920_v31, 2  ;;  %v5496_v53 = vadd.f32 %v5495_v32, %v5494_v17  ;;  %v4927_v57 = vadd.f32 %v4926_v35, %v4925_v19  ;;  %v4940_v58 = vrot.slane %v4939_v36, 4  ;;  %3745 = vmatprep.subr.bf16.mxu1 %v6671_v54 }
  0xf1   :  { %v4935_v42 = vrot.slane %v4934_v37, 2  ;;  %v5510_v59 = vadd.f32 %v5509_v38, %v5508_v22  ;;  %v5502_v27 = vrot.slane %v5501_v41, 4  ;;  %v5515_v29 = vadd.f32 %v5433_v44, %v5369_v11  ;;  %v95_v11 = vld [vmem:[%s9918_s1 + $0x278] sm:$0xff] }
  0xf2   :  { %v4922_v43 = vadd.f32 %v4921_v47, %v4920_v31  ;;  %v5497_v49 = vrot.slane %v5496_v53, 2  ;;  %v4928_v63 = vrot.slane %v4927_v57, 2  ;;  %v4941_v0 = vadd.f32 %v4940_v58, %v4939_v36  ;;  %3703 = vmatpush1.bf16.msra.mxu0 %v6668_v48  ;;  %v63_v31 = vld [vmem:[%s9918_s1 + $0x178] sm:$0xff] }
  0xf3   :  { %v5511_v54 = vrot.slane %v5510_v59, 2  ;;  %v5503_v1 = vadd.f32 %v5502_v27, %v5501_v41  ;;  %v5516_v5 = vrot.slane %v5515_v29, 4  ;;  %3746 = vmatpush1.bf16.msra.mxu1 %v6670_v50  ;;  %3704 = vmatprep.subr.bf16.mxu0 %v6605_v56  ;;  %v6543_v6 = vcombine.high %v7926_v24, %v7931_v25 }
  0xf4   :  { %v5498_v33 = vadd.f32 %v5497_v49, %v5496_v53  ;;  %v4936_v48 = vadd.f32 %v4935_v42, %v4934_v37  ;;  %v4929_v8 = vadd.f32 %v4928_v63, %v4927_v57  ;;  %v4942_v34 = vrot.slane %v4941_v0, 2  ;;  %3747 = vmatprep.subr.bf16.mxu1 %v6607_v62  ;;  %v480_v57 = vld [vmem:[%s9918_s1 + $0xe80] sm:$0xff]  ;;  %v513_v42 = vld [vmem:[%s9918_s1 + $0xf88] sm:$0xff] }
  0xf5   :  { %v5512_v10 = vadd.f32 %v5511_v54, %v5510_v59  ;;  %v5504_v50 = vrot.slane %v5503_v1, 2  ;;  %v5517_v56 = vadd.f32 %v5516_v5, %v5515_v29  ;;  %v6542_v9 = vcombine.low %v7926_v24, %v7931_v25  ;;  %v481_v25 = vld [vmem:[%s9918_s1 + $0xe88] sm:$0xff]  ;;  %v8009_v5 = vld [vmem:[%s9918_s1 + $0xc80] sm:$0xff] }
  0xf6   :  { %v4923_v13 = vrot.slane %v4922_v43, 1  ;;  %v5499_v14 = vrot.slane %v5498_v33, 1  ;;  %v4943_v16 = vadd.f32 %v4942_v34, %v4941_v0  ;;  %3705 = vmatpush1.bf16.msra.mxu0 %v6604_v55  ;;  %v6477_v62 = vcombine.high %v94_v7, %v126_v30 }
  0xf7   :  { %v5513_v17 = vrot.slane %v5512_v10, 1  ;;  %v4930_v18 = vrot.slane %v4929_v8, 1  ;;  %v5505_v19 = vadd.f32 %v5504_v50, %v5503_v1  ;;  %v5518_v20 = vrot.slane %v5517_v56, 2  ;;  %3748 = vmatpush1.bf16.msra.mxu1 %v6606_v61  ;;  %3706 = vmatprep.subr.bf16.mxu0 %v6541_v4  ;;  %v31_v4 = vld [vmem:[%s9918_s1 + $0x78] sm:$0xff]  ;;  %v8045_v50 = vld [vmem:[%s9918_s1 + $0xb88] sm:$0xff] }
  0xf8   :  { %v4937_v40 = vrot.slane %v4936_v48, 1  ;;  %v6075_v55 = vunpack.c.0.s8 %v7893_v60  ;;  %v6077_v22 = vshrl.u32 %v6076_v15, 7  ;;  %3749 = vmatprep.subr.bf16.mxu1 %v6543_v6  ;;  %v6479_v45 = vcombine.high %v95_v11, %v127_v12  ;;  %v8014_v6 = vld [vmem:[%s9918_s1 + $0xd80] sm:$0xff] }
  0xf9   :  { %v5500_v46 = vadd.f32 %v5499_v14, %v5498_v33  ;;  %v5506_v61 = vrot.slane %v5505_v19, 1  ;;  %v4944_v23 = vrot.slane %v4943_v16, 1  ;;  %v5519_v26 = vadd.f32 %v5518_v20, %v5517_v56  ;;  %v8029_v33 = vld [vmem:[%s9918_s1 + $0xa80] sm:$0xff]  ;;  %v8067_v14 = vld [vmem:[%s9918_s1 + $0x988] sm:$0xff] }
  0xfa   :  { %v4924_v32 = vadd.f32 %v4923_v13, %v4922_v43  ;;  %3707 = vmatpush1.bf16.msra.mxu0 %v6540_v2  ;;  %v6476_v60 = vcombine.low %v94_v7, %v126_v30  ;;  %v6478_v15 = vcombine.low %v95_v11, %v127_v12  ;;  %v6413_v35 = vcombine.high %v30_v21, %v62_v39  ;;  %v8019_v7 = vld [vmem:[%s9918_s1 + $0xc88] sm:$0xff]  ;;  %v8050_v56 = vld [vmem:[%s9918_s1 + $0x880] sm:$0xff] }
  0xfb   :  { %v5514_v36 = vadd.f32 %v5513_v17, %v5512_v10  ;;  %v4931_v37 = vadd.f32 %v4930_v18, %v4929_v8  ;;  %v5507_v38 = vadd.f32 %v5506_v61, %v5505_v19  ;;  %v5520_v41 = vrot.slane %v5519_v26, 1  ;;  %3750 = vmatpush1.bf16.msra.mxu1 %v6542_v9  ;;  %3708 = vmatprep.subr.bf16.mxu0 %v6477_v62  ;;  %v8024_v30 = vld [vmem:[%s9918_s1 + $0xd88] sm:$0xff]  ;;  %v8057_v12 = vld [vmem:[%s9918_s1 + $0x980] sm:$0xff] }
  0xfc   :  { %v4938_v44 = vadd.f32 %v4937_v40, %v4936_v48  ;;  %v7987_v47 = vsub.s32 %v6075_v55, %v6077_v22  ;;  %3751 = vmatprep.subr.bf16.mxu1 %v6479_v45  ;;  %v6415_v53 = vcombine.high %v31_v4, %v63_v31  ;;  %v5943_v52 = vsel %vm5942_vm0, %v4924_v32, %v5500_v46  ;;  %v8034_v48 = vld [vmem:[%s9918_s1 + $0xb80] sm:$0xff]  ;;  %v8040_v10 = vld [vmem:[%s9918_s1 + $0xa88] sm:$0xff] }
  0xfd   :  { %v5944_v2 = vsel %vm5942_vm0, %v4931_v37, %v5507_v38  ;;  %v4945_v58 = vadd.f32 %v4944_v23, %v4943_v16  ;;  %v5521_v24 = vadd.f32 %v5520_v41, %v5519_v26  ;;  %v6412_v27 = vcombine.low %v30_v21, %v62_v39  ;;  %v8062_v13 = vld [vmem:[%s9918_s1 + $0x888] sm:$0xff]  ;;  %v8078_v19 = vld [vmem:[%s9918_s1 + $0x680] sm:$0xff] }
  0xfe   :  { %v6071_v59 = vcombine.low %v5943_v52, %v5944_v2  ;;  %3709 = vmatpush1.bf16.msra.mxu0 %v6476_v60  ;;  %v6414_v29 = vcombine.low %v31_v4, %v63_v31  ;;  %v5945_v43 = vsel %vm5942_vm0, %v4938_v44, %v5514_v36  ;;  %v6865_v63 = vcombine.high %v480_v57, %v512_v51  ;;  %v8083_v20 = vld [vmem:[%s9918_s1 + $0x780] sm:$0xff]  ;;  %v8097_v45 = vld [vmem:[%s9918_s1 + $0x688] sm:$0xff] }
  0xff   :  { %v5946_v49 = vsel %vm5942_vm0, %v4945_v58, %v5521_v24  ;;  %3752 = vmatpush1.bf16.msra.mxu1 %v6478_v15  ;;  %3710 = vmatprep.subr.bf16.mxu0 %v6413_v35  ;;  %v6867_v1 = vcombine.high %v481_v25, %v513_v42  ;;  %v6864_v34 = vcombine.low %v480_v57, %v512_v51  ;;  %v8102_v46 = vld [vmem:[%s9918_s1 + $0x788] sm:$0xff]  ;;  %v8117_v31 = vld [vmem:[%s9918_s1 + $0x480] sm:$0xff] }
 0x100   :  { %v6079_v0 = vrot.slane %v6071_v59, %v7987_v47  ;;  %v6072_v54 = vcombine.low %v5945_v43, %v5946_v49  ;;  %3753 = vmatprep.subr.bf16.mxu1 %v6415_v53  ;;  %v6866_v9 = vcombine.low %v481_v25, %v513_v42  ;;  %v6801_v11 = vcombine.high %v8009_v5, %v8014_v6  ;;  %v8122_v32 = vld [vmem:[%s9918_s1 + $0x580] sm:$0xff] }
 0x101   :  { %v6800_v62 = vcombine.low %v8009_v5, %v8014_v6  ;;  %v6802_v17 = vcombine.low %v8019_v7, %v8024_v30  ;;  %v6803_v18 = vcombine.high %v8019_v7, %v8024_v30  ;;  %v6736_v39 = vcombine.low %v8029_v33, %v8034_v48 }
 0x102   :  { %v6086_v8 = vrot.slane %v6072_v54, %v7987_v47  ;;  %3711 = vmatpush1.bf16.msra.mxu0 %v6412_v27  ;;  %v6737_v40 = vcombine.high %v8029_v33, %v8034_v48  ;;  %v6738_v55 = vcombine.low %v8040_v10, %v8045_v50  ;;  %v6739_v22 = vcombine.high %v8040_v10, %v8045_v50 }
 0x103   :  { %3754 = vmatpush1.bf16.msra.mxu1 %v6414_v29  ;;  %3782 = vmatprep.subr.bf16.mxu0 %v6865_v63  ;;  %v6672_v23 = vcombine.low %v8050_v56, %v8057_v12  ;;  %v6673_v26 = vcombine.high %v8050_v56, %v8057_v12  ;;  %v6674_v4 = vcombine.low %v8062_v13, %v8067_v14  ;;  %v128_v56 = vld [vmem:[%s9918_s1 + $0x380] sm:$0xff] }
 0x104   :  { %v6087_v16 = vcombine.low %v6079_v0, %v6086_v8  ;;  %3825 = vmatprep.subr.bf16.mxu1 %v6867_v1  ;;  %v6675_v15 = vcombine.high %v8062_v13, %v8067_v14  ;;  %v6608_v35 = vcombine.low %v8078_v19, %v8083_v20  ;;  %v6609_v36 = vcombine.high %v8078_v19, %v8083_v20  ;;  %v64_v19 = vld [vmem:[%s9918_s1 + $0x180] sm:$0xff] }
 0x105   :  { %v3214_v21 = vpop.f32.mrf.mxu0  ;;  %3729 = vmatmul.mubr.bf16.vlgmr.msra.gmra.mxu0 %v7689_v28  ;;  %v3257_v61 = vpop.f32.mrf.mxu1  ;;  %v6610_v41 = vcombine.low %v8097_v45, %v8102_v46  ;;  %v6611_v44 = vcombine.high %v8097_v45, %v8102_v46  ;;  %v6544_v52 = vcombine.low %v8117_v31, %v8122_v32  ;;  %v6545_v2 = vcombine.high %v8117_v31, %v8122_v32  ;;  %v33_v46 = vld [vmem:[%s9918_s1 + $0x88] sm:$0xff]  ;;  %v514_v31 = vld [vmem:[%s9918_s1 + $0xf90] sm:$0xff] }
 0x106   :  { %6359 = vst [vmem:[%s9921_s3] sm:$0xff] %v6087_v16  ;;  %3772 = vmatmul.mubr.bf16.vlgmr.msra.gmra.mxu1 %v7689_v28  ;;  %3783 = vmatpush1.bf16.msra.mxu0 %v6864_v34  ;;  %v5370_v53 = vmul.f32 %v3214_v21, %v3214_v21  ;;  %v5372_v58 = vmul.f32 %v3257_v61, %v3257_v61 }
 0x107   :  { %3826 = vmatpush1.bf16.msra.mxu1 %v6866_v9  ;;  %v3216_v60 = vpop.f32.mrf.mxu0  ;;  %3784 = vmatprep.subr.bf16.mxu0 %v6801_v11  ;;  %v3259_v38 = vpop.f32.mrf.mxu1 }
 0x108   :  { %v6962_v37 = vpack.c.bf16 %v3216_v60, %v3214_v21  ;;  %3827 = vmatprep.subr.bf16.mxu1 %v6803_v18  ;;  %3814 = vmatprep.mubr.bf16.mxu0 %v7031_v3  ;;  %v6963_v57 = vpack.c.bf16 %v3259_v38, %v3257_v61  ;;  %v5371_v24 = vmul.f32 %v3216_v60, %v3216_v60 }
 0x109   :  { %v3218_v51 = vpop.f32.mrf.mxu0  ;;  %3857 = vmatprep.mubr.bf16.mxu1 %v7031_v3  ;;  %v3261_v59 = vpop.f32.mrf.mxu1  ;;  %v5373_v27 = vmul.f32 %v3259_v38, %v3259_v38 }
 0x10a   :  { %4856 = vst [vmem:[%s9920_s2 + $0x10] sm:$0xff] %v6962_v37  ;;  %v4946_v25 = vadd.f32 %v3218_v51, %v3214_v21  ;;  %v5434_v42 = vmul.f32 %v3218_v51, %v3218_v51  ;;  %3785 = vmatpush1.bf16.msra.mxu0 %v6800_v62  ;;  %4857 = vst [vmem:[%s9920_s2 + $0x18] sm:$0xff] %v6963_v57  ;;  %v4960_v29 = vadd.f32 %v3261_v59, %v3257_v61  ;;  %v193_v61 = vld [vmem:[%s9918_s1 + $0x588] sm:$0xff] }
 0x10b   :  { %v5436_v43 = vmul.f32 %v3261_v59, %v3261_v59  ;;  %3828 = vmatpush1.bf16.msra.mxu1 %v6802_v17  ;;  %v3220_v49 = vpop.f32.mrf.mxu0  ;;  %3786 = vmatprep.subr.bf16.mxu0 %v6737_v40  ;;  %v3263_v5 = vpop.f32.mrf.mxu1 }
 0x10c   :  { %v4947_v63 = vrot.slane %v4946_v25, 4  ;;  %v5522_v0 = vadd.f32 %v5434_v42, %v5370_v53  ;;  %v6994_v54 = vpack.c.bf16 %v3220_v49, %v3218_v51  ;;  %v4953_v1 = vadd.f32 %v3220_v49, %v3216_v60  ;;  %3829 = vmatprep.subr.bf16.mxu1 %v6739_v22 }
 0x10d   :  { %v4961_v6 = vrot.slane %v4960_v29, 4  ;;  %v5536_v7 = vadd.f32 %v5436_v43, %v5372_v58  ;;  %v5435_v30 = vmul.f32 %v3220_v49, %v3220_v49  ;;  %v6995_v33 = vpack.c.bf16 %v3263_v5, %v3261_v59  ;;  %v97_v59 = vld [vmem:[%s9918_s1 + $0x288] sm:$0xff] }
 0x10e   :  { %v4948_v48 = vadd.f32 %v4947_v63, %v4946_v25  ;;  %v5523_v8 = vrot.slane %v5522_v0, 4  ;;  %4888 = vst [vmem:[%s9920_s2 + $0x110] sm:$0xff] %v6994_v54  ;;  %v4954_v34 = vrot.slane %v4953_v1, 4  ;;  %v4967_v9 = vadd.f32 %v3263_v5, %v3259_v38  ;;  %3787 = vmatpush1.bf16.msra.mxu0 %v6736_v39  ;;  %v161_v39 = vld [vmem:[%s9918_s1 + $0x488] sm:$0xff] }
 0x10f   :  { %v4962_v11 = vadd.f32 %v4961_v6, %v4960_v29  ;;  %v5537_v16 = vrot.slane %v5536_v7, 4  ;;  %v5529_v62 = vadd.f32 %v5435_v30, %v5371_v24  ;;  %4889 = vst [vmem:[%s9920_s2 + $0x118] sm:$0xff] %v6995_v33  ;;  %v5437_v17 = vmul.f32 %v3263_v5, %v3263_v5  ;;  %3830 = vmatpush1.bf16.msra.mxu1 %v6738_v55  ;;  %v96_v24 = vld [vmem:[%s9918_s1 + $0x280] sm:$0xff] }
 0x110   :  { %3788 = vmatprep.subr.bf16.mxu0 %v6673_v26  ;;  %v4949_v18 = vrot.slane %v4948_v48, 2  ;;  %v5524_v21 = vadd.f32 %v5523_v8, %v5522_v0  ;;  %v4955_v40 = vadd.f32 %v4954_v34, %v4953_v1  ;;  %v4968_v22 = vrot.slane %v4967_v9, 4  ;;  %3831 = vmatprep.subr.bf16.mxu1 %v6675_v15  ;;  %v32_v5 = vld [vmem:[%s9918_s1 + $0x80] sm:$0xff] }
 0x111   :  { %v4963_v60 = vrot.slane %v4962_v11, 2  ;;  %v5538_v37 = vadd.f32 %v5537_v16, %v5536_v7  ;;  %v5530_v38 = vrot.slane %v5529_v62, 4  ;;  %v5543_v53 = vadd.f32 %v5437_v17, %v5373_v27  ;;  %v129_v27 = vld [vmem:[%s9918_s1 + $0x388] sm:$0xff] }
 0x112   :  { %v4950_v10 = vadd.f32 %v4949_v18, %v4948_v48  ;;  %v5525_v50 = vrot.slane %v5524_v21, 2  ;;  %v4956_v55 = vrot.slane %v4955_v40, 2  ;;  %v4969_v26 = vadd.f32 %v4968_v22, %v4967_v9  ;;  %3789 = vmatpush1.bf16.msra.mxu0 %v6672_v23  ;;  %v482_v18 = vld [vmem:[%s9918_s1 + $0xe90] sm:$0xff]  ;;  %v483_v22 = vld [vmem:[%s9918_s1 + $0xe98] sm:$0xff] }
 0x113   :  { %v5539_v15 = vrot.slane %v5538_v37, 2  ;;  %v5531_v57 = vadd.f32 %v5530_v38, %v5529_v62  ;;  %v5544_v51 = vrot.slane %v5543_v53, 4  ;;  %3832 = vmatpush1.bf16.msra.mxu1 %v6674_v4  ;;  %3790 = vmatprep.subr.bf16.mxu0 %v6609_v36  ;;  %v6547_v58 = vcombine.high %v161_v39, %v193_v61 }
 0x114   :  { %v5526_v12 = vadd.f32 %v5525_v50, %v5524_v21  ;;  %v4964_v23 = vadd.f32 %v4963_v60, %v4962_v11  ;;  %v4957_v25 = vadd.f32 %v4956_v55, %v4955_v40  ;;  %v4970_v42 = vrot.slane %v4969_v26, 2  ;;  %3833 = vmatprep.subr.bf16.mxu1 %v6611_v44 }
 0x115   :  { %v5540_v13 = vadd.f32 %v5539_v15, %v5538_v37  ;;  %v5532_v14 = vrot.slane %v5531_v57, 2  ;;  %v5545_v4 = vadd.f32 %v5544_v51, %v5543_v53  ;;  %v6546_v36 = vcombine.low %v161_v39, %v193_v61  ;;  %v515_v39 = vld [vmem:[%s9918_s1 + $0xf98] sm:$0xff]  ;;  %v8229_v15 = vld [vmem:[%s9918_s1 + $0xc90] sm:$0xff] }
 0x116   :  { %v4951_v29 = vrot.slane %v4950_v10, 1  ;;  %v5527_v43 = vrot.slane %v5526_v12, 1  ;;  %v4971_v49 = vadd.f32 %v4970_v42, %v4969_v26  ;;  %3791 = vmatpush1.bf16.msra.mxu0 %v6608_v35  ;;  %v6481_v44 = vcombine.high %v96_v24, %v128_v56  ;;  %v8239_v51 = vld [vmem:[%s9918_s1 + $0xc98] sm:$0xff] }
 0x117   :  { %v5541_v63 = vrot.slane %v5540_v13, 1  ;;  %v4958_v0 = vrot.slane %v4957_v25, 1  ;;  %v5533_v54 = vadd.f32 %v5532_v14, %v5531_v57  ;;  %v5546_v1 = vrot.slane %v5545_v4, 2  ;;  %3834 = vmatpush1.bf16.msra.mxu1 %v6610_v41  ;;  %3792 = vmatprep.subr.bf16.mxu0 %v6545_v2  ;;  %v65_v41 = vld [vmem:[%s9918_s1 + $0x188] sm:$0xff]  ;;  %v8234_v57 = vld [vmem:[%s9918_s1 + $0xd90] sm:$0xff]  ;;  %v8265_v42 = vld [vmem:[%s9918_s1 + $0xb98] sm:$0xff] }
 0x118   :  { %v4965_v20 = vrot.slane %v4964_v23, 1  ;;  %3835 = vmatprep.subr.bf16.mxu1 %v6547_v58  ;;  %v6483_v35 = vcombine.high %v97_v59, %v129_v27  ;;  %v5528_v6 = vadd.f32 %v5527_v43, %v5526_v12  ;;  %v4972_v30 = vrot.slane %v4971_v49, 1  ;;  %v8244_v58 = vld [vmem:[%s9918_s1 + $0xd98] sm:$0xff] }
 0x119   :  { %v5534_v7 = vrot.slane %v5533_v54, 1  ;;  %v5547_v45 = vadd.f32 %v5546_v1, %v5545_v4  ;;  %v4952_v2 = vadd.f32 %v4951_v29, %v4950_v10  ;;  %v6480_v33 = vcombine.low %v96_v24, %v128_v56  ;;  %v8249_v24 = vld [vmem:[%s9918_s1 + $0xa90] sm:$0xff] }
 0x11a   :  { %3793 = vmatpush1.bf16.msra.mxu0 %v6544_v52  ;;  %v6482_v48 = vcombine.low %v97_v59, %v129_v27  ;;  %v6417_v8 = vcombine.high %v32_v5, %v64_v19  ;;  %v5542_v34 = vadd.f32 %v5541_v63, %v5540_v13  ;;  %v4959_v9 = vadd.f32 %v4958_v0, %v4957_v25  ;;  %v8254_v56 = vld [vmem:[%s9918_s1 + $0xb90] sm:$0xff]  ;;  %v8260_v25 = vld [vmem:[%s9918_s1 + $0xa98] sm:$0xff] }
 0x11b   :  { %v5535_v11 = vadd.f32 %v5534_v7, %v5533_v54  ;;  %v5548_v16 = vrot.slane %v5547_v45, 1  ;;  %3836 = vmatpush1.bf16.msra.mxu1 %v6546_v36  ;;  %3794 = vmatprep.subr.bf16.mxu0 %v6481_v44  ;;  %v4966_v62 = vadd.f32 %v4965_v20, %v4964_v23  ;;  %v6419_v17 = vcombine.high %v33_v46, %v65_v41  ;;  %v8270_v13 = vld [vmem:[%s9918_s1 + $0x890] sm:$0xff]  ;;  %v8282_v59 = vld [vmem:[%s9918_s1 + $0x898] sm:$0xff] }
 0x11c   :  { %3837 = vmatprep.subr.bf16.mxu1 %v6483_v35  ;;  %v5947_v32 = vsel %vm5942_vm0, %v4952_v2, %v5528_v6  ;;  %v4973_v21 = vadd.f32 %v4972_v30, %v4971_v49  ;;  %v6416_v60 = vcombine.low %v32_v5, %v64_v19  ;;  %v6418_v37 = vcombine.low %v33_v46, %v65_v41  ;;  %v8277_v36 = vld [vmem:[%s9918_s1 + $0x990] sm:$0xff]  ;;  %v8287_v27 = vld [vmem:[%s9918_s1 + $0x998] sm:$0xff] }
 0x11d   :  { %v5948_v52 = vsel %vm5942_vm0, %v4959_v9, %v5535_v11  ;;  %v5549_v40 = vadd.f32 %v5548_v16, %v5547_v45  ;;  %v5949_v38 = vsel %vm5942_vm0, %v4966_v62, %v5542_v34  ;;  %v6869_v10 = vcombine.high %v482_v18, %v514_v31  ;;  %v8298_v63 = vld [vmem:[%s9918_s1 + $0x690] sm:$0xff]  ;;  %v8317_v35 = vld [vmem:[%s9918_s1 + $0x698] sm:$0xff] }
 0x11e   :  { %v6088_v61 = vcombine.low %v5947_v32, %v5948_v52  ;;  %3795 = vmatpush1.bf16.msra.mxu0 %v6480_v33  ;;  %v6871_v26 = vcombine.high %v483_v22, %v515_v39  ;;  %v6868_v23 = vcombine.low %v482_v18, %v514_v31  ;;  %v6870_v14 = vcombine.low %v483_v22, %v515_v39  ;;  %v8303_v0 = vld [vmem:[%s9918_s1 + $0x790] sm:$0xff]  ;;  %v8322_v6 = vld [vmem:[%s9918_s1 + $0x798] sm:$0xff] }
 0x11f   :  { %v5950_v53 = vsel %vm5942_vm0, %v4973_v21, %v5549_v40  ;;  %3838 = vmatpush1.bf16.msra.mxu1 %v6482_v48  ;;  %3796 = vmatprep.subr.bf16.mxu0 %v6417_v8  ;;  %v6805_v4 = vcombine.high %v8229_v15, %v8234_v57  ;;  %v6804_v43 = vcombine.low %v8229_v15, %v8234_v57  ;;  %v8337_v41 = vld [vmem:[%s9918_s1 + $0x490] sm:$0xff] }
 0x120   :  { %v6096_v50 = vrot.slane %v6088_v61, %v7987_v47  ;;  %v6089_v55 = vcombine.low %v5949_v38, %v5950_v53  ;;  %3839 = vmatprep.subr.bf16.mxu1 %v6419_v17  ;;  %v6806_v49 = vcombine.low %v8239_v51, %v8244_v58  ;;  %v6807_v44 = vcombine.high %v8239_v51, %v8244_v58  ;;  %v8342_v2 = vld [vmem:[%s9918_s1 + $0x590] sm:$0xff] }
 0x121   :  { %v6740_v1 = vcombine.low %v8249_v24, %v8254_v56  ;;  %v6741_v5 = vcombine.high %v8249_v24, %v8254_v56  ;;  %v6742_v19 = vcombine.low %v8260_v25, %v8265_v42  ;;  %v6743_v20 = vcombine.high %v8260_v25, %v8265_v42 }
 0x122   :  { %v6103_v12 = vrot.slane %v6089_v55, %v7987_v47  ;;  %3797 = vmatpush1.bf16.msra.mxu0 %v6416_v60  ;;  %v6676_v30 = vcombine.low %v8270_v13, %v8277_v36  ;;  %v6677_v45 = vcombine.high %v8270_v13, %v8277_v36  ;;  %v6678_v46 = vcombine.low %v8282_v59, %v8287_v27  ;;  %v130_v13 = vld [vmem:[%s9918_s1 + $0x390] sm:$0xff] }
 0x123   :  { %3840 = vmatpush1.bf16.msra.mxu1 %v6418_v37  ;;  %3868 = vmatprep.subr.bf16.mxu0 %v6869_v10  ;;  %v6679_v33 = vcombine.high %v8282_v59, %v8287_v27  ;;  %v6612_v48 = vcombine.low %v8298_v63, %v8303_v0  ;;  %v6613_v8 = vcombine.high %v8298_v63, %v8303_v0  ;;  %v66_v63 = vld [vmem:[%s9918_s1 + $0x190] sm:$0xff] }
 0x124   :  { %v6104_v29 = vcombine.low %v6096_v50, %v6103_v12  ;;  %3911 = vmatprep.subr.bf16.mxu1 %v6871_v26  ;;  %v6614_v11 = vcombine.low %v8317_v35, %v8322_v6  ;;  %v6615_v16 = vcombine.high %v8317_v35, %v8322_v6  ;;  %v6548_v31 = vcombine.low %v8337_v41, %v8342_v2  ;;  %v35_v6 = vld [vmem:[%s9918_s1 + $0x98] sm:$0xff] }
 0x125   :  { %v3300_v54 = vpop.f32.mrf.mxu0  ;;  %3815 = vmatmul.mubr.bf16.vlgmr.msra.gmra.mxu0 %v7689_v28  ;;  %v3343_v7 = vpop.f32.mrf.mxu1  ;;  %v6549_v32 = vcombine.high %v8337_v41, %v8342_v2  ;;  %v516_v41 = vld [vmem:[%s9918_s1 + $0xfa0] sm:$0xff] }
 0x126   :  { %6360 = vst [vmem:[%s9921_s3 + $0x8] sm:$0xff] %v6104_v29  ;;  %3858 = vmatmul.mubr.bf16.vlgmr.msra.gmra.mxu1 %v7689_v28  ;;  %3869 = vmatpush1.bf16.msra.mxu0 %v6868_v23  ;;  %v5374_v62 = vmul.f32 %v3300_v54, %v3300_v54  ;;  %v5376_v52 = vmul.f32 %v3343_v7, %v3343_v7 }
 0x127   :  { %3912 = vmatpush1.bf16.msra.mxu1 %v6870_v14  ;;  %v3302_v28 = vpop.f32.mrf.mxu0  ;;  %3870 = vmatprep.subr.bf16.mxu0 %v6805_v4  ;;  %v3345_v9 = vpop.f32.mrf.mxu1 }
 0x128   :  { %v6964_v34 = vpack.c.bf16 %v3302_v28, %v3300_v54  ;;  %3913 = vmatprep.subr.bf16.mxu1 %v6807_v44  ;;  %3900 = vmatprep.mubr.bf16.mxu0 %v7031_v3  ;;  %v6965_v17 = vpack.c.bf16 %v3345_v9, %v3343_v7  ;;  %v5375_v21 = vmul.f32 %v3302_v28, %v3302_v28 }
 0x129   :  { %v3304_v18 = vpop.f32.mrf.mxu0  ;;  %3943 = vmatprep.mubr.bf16.mxu1 %v7031_v3  ;;  %v3347_v39 = vpop.f32.mrf.mxu1  ;;  %v5377_v61 = vmul.f32 %v3345_v9, %v3345_v9 }
 0x12a   :  { %4858 = vst [vmem:[%s9920_s2 + $0x20] sm:$0xff] %v6964_v34  ;;  %v4974_v40 = vadd.f32 %v3304_v18, %v3300_v54  ;;  %v5438_v22 = vmul.f32 %v3304_v18, %v3304_v18  ;;  %3871 = vmatpush1.bf16.msra.mxu0 %v6804_v43  ;;  %4859 = vst [vmem:[%s9920_s2 + $0x28] sm:$0xff] %v6965_v17  ;;  %v4988_v60 = vadd.f32 %v3347_v39, %v3343_v7 }
 0x12b   :  { %v5440_v37 = vmul.f32 %v3347_v39, %v3347_v39  ;;  %3914 = vmatpush1.bf16.msra.mxu1 %v6806_v49  ;;  %v3306_v38 = vpop.f32.mrf.mxu0  ;;  %3872 = vmatprep.subr.bf16.mxu0 %v6741_v5  ;;  %v3349_v26 = vpop.f32.mrf.mxu1 }
 0x12c   :  { %v4975_v53 = vrot.slane %v4974_v40, 4  ;;  %v5550_v10 = vadd.f32 %v5438_v22, %v5374_v62  ;;  %v6996_v50 = vpack.c.bf16 %v3306_v38, %v3304_v18  ;;  %v4981_v55 = vadd.f32 %v3306_v38, %v3302_v28  ;;  %3915 = vmatprep.subr.bf16.mxu1 %v6743_v20  ;;  %v195_v20 = vld [vmem:[%s9918_s1 + $0x598] sm:$0xff] }
 0x12d   :  { %v4989_v15 = vrot.slane %v4988_v60, 4  ;;  %v5564_v57 = vadd.f32 %v5440_v37, %v5376_v52  ;;  %v5439_v51 = vmul.f32 %v3306_v38, %v3306_v38  ;;  %v6997_v58 = vpack.c.bf16 %v3349_v26, %v3347_v39  ;;  %v98_v52 = vld [vmem:[%s9918_s1 + $0x290] sm:$0xff]  ;;  %v99_v22 = vld [vmem:[%s9918_s1 + $0x298] sm:$0xff] }
 0x12e   :  { %v4976_v24 = vadd.f32 %v4975_v53, %v4974_v40  ;;  %v5551_v56 = vrot.slane %v5550_v10, 4  ;;  %4890 = vst [vmem:[%s9920_s2 + $0x120] sm:$0xff] %v6996_v50  ;;  %v4982_v12 = vrot.slane %v4981_v55, 4  ;;  %v4995_v23 = vadd.f32 %v3349_v26, %v3345_v9  ;;  %3873 = vmatpush1.bf16.msra.mxu0 %v6740_v1  ;;  %v163_v1 = vld [vmem:[%s9918_s1 + $0x498] sm:$0xff] }
 0x12f   :  { %v4990_v14 = vadd.f32 %v4989_v15, %v4988_v60  ;;  %v5565_v4 = vrot.slane %v5564_v57, 4  ;;  %v5557_v29 = vadd.f32 %v5439_v51, %v5375_v21  ;;  %4891 = vst [vmem:[%s9920_s2 + $0x128] sm:$0xff] %v6997_v58  ;;  %v5441_v43 = vmul.f32 %v3349_v26, %v3349_v26  ;;  %3916 = vmatpush1.bf16.msra.mxu1 %v6742_v19  ;;  %v131_v39 = vld [vmem:[%s9918_s1 + $0x398] sm:$0xff] }
 0x130   :  { %3874 = vmatprep.subr.bf16.mxu0 %v6677_v45  ;;  %v4977_v49 = vrot.slane %v4976_v24, 2  ;;  %v5552_v44 = vadd.f32 %v5551_v56, %v5550_v10  ;;  %v4983_v54 = vadd.f32 %v4982_v12, %v4981_v55  ;;  %v4996_v5 = vrot.slane %v4995_v23, 4  ;;  %3917 = vmatprep.subr.bf16.mxu1 %v6679_v33  ;;  %v34_v55 = vld [vmem:[%s9918_s1 + $0x90] sm:$0xff] }
 0x131   :  { %v4991_v7 = vrot.slane %v4990_v14, 2  ;;  %v5566_v28 = vadd.f32 %v5565_v4, %v5564_v57  ;;  %v5558_v34 = vrot.slane %v5557_v29, 4  ;;  %v5571_v9 = vadd.f32 %v5441_v43, %v5377_v61  ;;  %v484_v43 = vld [vmem:[%s9918_s1 + $0xea0] sm:$0xff] }
 0x132   :  { %v4978_v25 = vadd.f32 %v4977_v49, %v4976_v24  ;;  %v5553_v42 = vrot.slane %v5552_v44, 2  ;;  %v4984_v19 = vrot.slane %v4983_v54, 2  ;;  %v4997_v45 = vadd.f32 %v4996_v5, %v4995_v23  ;;  %3875 = vmatpush1.bf16.msra.mxu0 %v6676_v30  ;;  %v517_v5 = vld [vmem:[%s9918_s1 + $0xfa8] sm:$0xff] }
 0x133   :  { %v5567_v33 = vrot.slane %v5566_v28, 2  ;;  %v5559_v62 = vadd.f32 %v5558_v34, %v5557_v29  ;;  %v5572_v17 = vrot.slane %v5571_v9, 4  ;;  %3918 = vmatpush1.bf16.msra.mxu1 %v6678_v46  ;;  %3876 = vmatprep.subr.bf16.mxu0 %v6613_v8  ;;  %v6551_v18 = vcombine.high %v163_v1, %v195_v20 }
 0x134   :  { %v5554_v36 = vadd.f32 %v5553_v42, %v5552_v44  ;;  %v4992_v30 = vadd.f32 %v4991_v7, %v4990_v14  ;;  %v4985_v21 = vadd.f32 %v4984_v19, %v4983_v54  ;;  %v4998_v40 = vrot.slane %v4997_v45, 2  ;;  %3919 = vmatprep.subr.bf16.mxu1 %v6615_v16  ;;  %v485_v54 = vld [vmem:[%s9918_s1 + $0xea8] sm:$0xff] }
 0x135   :  { %v5568_v59 = vadd.f32 %v5567_v33, %v5566_v28  ;;  %v5560_v27 = vrot.slane %v5559_v62, 2  ;;  %v5573_v46 = vadd.f32 %v5572_v17, %v5571_v9  ;;  %v6550_v8 = vcombine.low %v163_v1, %v195_v20  ;;  %v8454_v33 = vld [vmem:[%s9918_s1 + $0xda0] sm:$0xff]  ;;  %v8464_v17 = vld [vmem:[%s9918_s1 + $0xda8] sm:$0xff] }
 0x136   :  { %v4979_v61 = vrot.slane %v4978_v25, 1  ;;  %v5555_v60 = vrot.slane %v5554_v36, 1  ;;  %v4999_v37 = vadd.f32 %v4998_v40, %v4997_v45  ;;  %3877 = vmatpush1.bf16.msra.mxu0 %v6612_v48  ;;  %v6485_v16 = vcombine.high %v98_v52, %v130_v13  ;;  %v8449_v45 = vld [vmem:[%s9918_s1 + $0xca0] sm:$0xff] }
 0x137   :  { %v5569_v38 = vrot.slane %v5568_v59, 1  ;;  %v4986_v53 = vrot.slane %v4985_v21, 1  ;;  %v5561_v10 = vadd.f32 %v5560_v27, %v5559_v62  ;;  %v5574_v50 = vrot.slane %v5573_v46, 2  ;;  %3920 = vmatpush1.bf16.msra.mxu1 %v6614_v11  ;;  %3878 = vmatprep.subr.bf16.mxu0 %v6549_v32  ;;  %v67_v11 = vld [vmem:[%s9918_s1 + $0x198] sm:$0xff]  ;;  %v8459_v62 = vld [vmem:[%s9918_s1 + $0xca8] sm:$0xff]  ;;  %v8490_v40 = vld [vmem:[%s9918_s1 + $0x8a0] sm:$0xff] }
 0x138   :  { %v4993_v0 = vrot.slane %v4992_v30, 1  ;;  %3921 = vmatprep.subr.bf16.mxu1 %v6551_v18  ;;  %v6487_v48 = vcombine.high %v99_v22, %v131_v39  ;;  %v5556_v26 = vadd.f32 %v5555_v60, %v5554_v36  ;;  %v5000_v57 = vrot.slane %v4999_v37, 1  ;;  %v8469_v18 = vld [vmem:[%s9918_s1 + $0xaa0] sm:$0xff] }
 0x139   :  { %v5562_v15 = vrot.slane %v5561_v10, 1  ;;  %v5575_v35 = vadd.f32 %v5574_v50, %v5573_v46  ;;  %v4980_v32 = vadd.f32 %v4979_v61, %v4978_v25  ;;  %v6484_v51 = vcombine.low %v98_v52, %v130_v13  ;;  %v8474_v52 = vld [vmem:[%s9918_s1 + $0xba0] sm:$0xff] }
 0x13a   :  { %3879 = vmatpush1.bf16.msra.mxu0 %v6548_v31  ;;  %v6486_v58 = vcombine.low %v99_v22, %v131_v39  ;;  %v6421_v24 = vcombine.high %v34_v55, %v66_v63  ;;  %v5570_v56 = vadd.f32 %v5569_v38, %v5568_v59  ;;  %v4987_v12 = vadd.f32 %v4986_v53, %v4985_v21  ;;  %v8485_v21 = vld [vmem:[%s9918_s1 + $0xba8] sm:$0xff]  ;;  %v8497_v46 = vld [vmem:[%s9918_s1 + $0x9a0] sm:$0xff] }
 0x13b   :  { %v5563_v23 = vadd.f32 %v5562_v15, %v5561_v10  ;;  %v5576_v14 = vrot.slane %v5575_v35, 1  ;;  %3922 = vmatpush1.bf16.msra.mxu1 %v6550_v8  ;;  %3880 = vmatprep.subr.bf16.mxu0 %v6485_v16  ;;  %v4994_v4 = vadd.f32 %v4993_v0, %v4992_v30  ;;  %v6423_v29 = vcombine.high %v35_v6, %v67_v11  ;;  %v8480_v30 = vld [vmem:[%s9918_s1 + $0xaa8] sm:$0xff]  ;;  %v8518_v16 = vld [vmem:[%s9918_s1 + $0x6a0] sm:$0xff] }
 0x13c   :  { %3923 = vmatprep.subr.bf16.mxu1 %v6487_v48  ;;  %v5951_v2 = vsel %vm5942_vm0, %v4980_v32, %v5556_v26  ;;  %v5001_v49 = vadd.f32 %v5000_v57, %v4999_v37  ;;  %v6420_v20 = vcombine.low %v34_v55, %v66_v63  ;;  %v6422_v7 = vcombine.low %v35_v6, %v67_v11  ;;  %v8502_v8 = vld [vmem:[%s9918_s1 + $0x8a8] sm:$0xff]  ;;  %v8523_v38 = vld [vmem:[%s9918_s1 + $0x7a0] sm:$0xff] }
 0x13d   :  { %v5952_v31 = vsel %vm5942_vm0, %v4987_v12, %v5563_v23  ;;  %v5577_v44 = vadd.f32 %v5576_v14, %v5575_v35  ;;  %v5953_v28 = vsel %vm5942_vm0, %v4994_v4, %v5570_v56  ;;  %v6873_v9 = vcombine.high %v484_v43, %v516_v41  ;;  %v8507_v22 = vld [vmem:[%s9918_s1 + $0x9a8] sm:$0xff]  ;;  %v8528_v10 = vld [vmem:[%s9919_s0] sm:$0xff]  }
 0x13e   :  { %v6105_v1 = vcombine.low %v5951_v2, %v5952_v31  ;;  %3881 = vmatpush1.bf16.msra.mxu0 %v6484_v51  ;;  %v6875_v19 = vcombine.high %v485_v54, %v517_v5  ;;  %v6872_v36 = vcombine.low %v484_v43, %v516_v41  ;;  %v6874_v59 = vcombine.low %v485_v54, %v517_v5  ;;  %v8542_v48 = vld [vmem:[%s9918_s1 + $0x6a8] sm:$0xff]  ;;  %v8562_v11 = vld [vmem:[%s9918_s1 + $0x4a0] sm:$0xff] }
 0x13f   :  { %v5954_v34 = vsel %vm5942_vm0, %v5001_v49, %v5577_v44  ;;  %3924 = vmatpush1.bf16.msra.mxu1 %v6486_v58  ;;  %3882 = vmatprep.subr.bf16.mxu0 %v6421_v24  ;;  %v6809_v27 = vcombine.high %v8449_v45, %v8454_v33  ;;  %v6808_v61 = vcombine.low %v8449_v45, %v8454_v33  ;;  %v8547_v26 = vld [vmem:[%s9918_s1 + $0x7a8] sm:$0xff]  ;;  %v8567_v32 = vld [vmem:[%s9918_s1 + $0x5a0] sm:$0xff] }
 0x140   :  { %v6113_v25 = vrot.slane %v6105_v1, %v7987_v47  ;;  %v6106_v42 = vcombine.low %v5953_v28, %v5954_v34  ;;  %3925 = vmatprep.subr.bf16.mxu1 %v6423_v29  ;;  %v6810_v60 = vcombine.low %v8459_v62, %v8464_v17  ;;  %v6811_v37 = vcombine.high %v8459_v62, %v8464_v17 }
 0x141   :  { %v6744_v50 = vcombine.low %v8469_v18, %v8474_v52  ;;  %v6745_v55 = vcombine.high %v8469_v18, %v8474_v52  ;;  %v6746_v63 = vcombine.low %v8480_v30, %v8485_v21  ;;  %v6747_v0 = vcombine.high %v8480_v30, %v8485_v21 }
 0x142   :  { %v6120_v13 = vrot.slane %v6106_v42, %v7987_v47  ;;  %3883 = vmatpush1.bf16.msra.mxu0 %v6420_v20  ;;  %v6680_v57 = vcombine.low %v8490_v40, %v8497_v46  ;;  %v6681_v35 = vcombine.high %v8490_v40, %v8497_v46  ;;  %v6682_v6 = vcombine.low %v8502_v8, %v8507_v22  ;;  %v132_v40 = vld [vmem:[%s9918_s1 + $0x3a0] sm:$0xff] }
 0x143   :  { %3926 = vmatpush1.bf16.msra.mxu1 %v6422_v7  ;;  %3954 = vmatprep.subr.bf16.mxu0 %v6873_v9  ;;  %v6683_v58 = vcombine.high %v8502_v8, %v8507_v22  ;;  %v6616_v24 = vcombine.low %v8518_v16, %v8523_v38  ;;  %v6617_v56 = vcombine.high %v8518_v16, %v8523_v38  ;;  %v68_v16 = vld [vmem:[%s9918_s1 + $0x1a0] sm:$0xff] }
 0x144   :  { %v6121_v39 = vcombine.low %v6113_v25, %v6120_v13  ;;  %3997 = vmatprep.subr.bf16.mxu1 %v6875_v19  ;;  %v6618_v14 = vcombine.low %v8542_v48, %v8547_v26  ;;  %v6619_v4 = vcombine.high %v8542_v48, %v8547_v26  ;;  %v6552_v2 = vcombine.low %v8562_v11, %v8567_v32  ;;  %v37_v26 = vld [vmem:[%s9918_s1 + $0xa8] sm:$0xff] }
 0x145   :  { %v3386_v53 = vpop.f32.mrf.mxu0  ;;  %3901 = vmatmul.mubr.bf16.vlgmr.msra.gmra.mxu0 %v8528_v10  ;;  %v3429_v15 = vpop.f32.mrf.mxu1  ;;  %v6553_v31 = vcombine.high %v8562_v11, %v8567_v32  ;;  %v518_v11 = vld [vmem:[%s9918_s1 + $0xfb0] sm:$0xff] }
 0x146   :  { %6361 = vst [vmem:[%s9921_s3 + $0x10] sm:$0xff] %v6121_v39  ;;  %3944 = vmatmul.mubr.bf16.vlgmr.msra.gmra.mxu1 %v8528_v10  ;;  %3955 = vmatpush1.bf16.msra.mxu0 %v6872_v36  ;;  %v5378_v29 = vmul.f32 %v3386_v53, %v3386_v53  ;;  %v5380_v49 = vmul.f32 %v3429_v15, %v3429_v15 }
 0x147   :  { %3998 = vmatpush1.bf16.msra.mxu1 %v6874_v59  ;;  %v3388_v51 = vpop.f32.mrf.mxu0  ;;  %3956 = vmatprep.subr.bf16.mxu0 %v6809_v27  ;;  %v3431_v23 = vpop.f32.mrf.mxu1 }
 0x148   :  { %v6966_v12 = vpack.c.bf16 %v3388_v51, %v3386_v53  ;;  %3999 = vmatprep.subr.bf16.mxu1 %v6811_v37  ;;  %3986 = vmatprep.mubr.bf16.mxu0 %v7031_v3  ;;  %v6967_v43 = vpack.c.bf16 %v3431_v23, %v3429_v15  ;;  %v5379_v44 = vmul.f32 %v3388_v51, %v3388_v51 }
 0x149   :  { %v3390_v41 = vpop.f32.mrf.mxu0  ;;  %4029 = vmatprep.mubr.bf16.mxu1 %v7031_v3  ;;  %v3433_v1 = vpop.f32.mrf.mxu1  ;;  %v5381_v20 = vmul.f32 %v3431_v23, %v3431_v23 }
 0x14a   :  { %4860 = vst [vmem:[%s9920_s2 + $0x30] sm:$0xff] %v6966_v12  ;;  %v5002_v54 = vadd.f32 %v3390_v41, %v3386_v53  ;;  %v5442_v5 = vmul.f32 %v3390_v41, %v3390_v41  ;;  %3957 = vmatpush1.bf16.msra.mxu0 %v6808_v61  ;;  %4861 = vst [vmem:[%s9920_s2 + $0x38] sm:$0xff] %v6967_v43  ;;  %v5016_v7 = vadd.f32 %v3433_v1, %v3429_v15  ;;  %v197_v15 = vld [vmem:[%s9918_s1 + $0x5a8] sm:$0xff] }
 0x14b   :  { %v5444_v28 = vmul.f32 %v3433_v1, %v3433_v1  ;;  %4000 = vmatpush1.bf16.msra.mxu1 %v6810_v60  ;;  %v3392_v34 = vpop.f32.mrf.mxu0  ;;  %3958 = vmatprep.subr.bf16.mxu0 %v6745_v55  ;;  %v3435_v45 = vpop.f32.mrf.mxu1 }
 0x14c   :  { %v5003_v9 = vrot.slane %v5002_v54, 4  ;;  %v5578_v25 = vadd.f32 %v5442_v5, %v5378_v29  ;;  %v6998_v42 = vpack.c.bf16 %v3392_v34, %v3390_v41  ;;  %v5009_v19 = vadd.f32 %v3392_v34, %v3388_v51  ;;  %4001 = vmatprep.subr.bf16.mxu1 %v6747_v0 }
 0x14d   :  { %v5017_v33 = vrot.slane %v5016_v7, 4  ;;  %v5592_v62 = vadd.f32 %v5444_v28, %v5380_v49  ;;  %v5443_v17 = vmul.f32 %v3392_v34, %v3392_v34  ;;  %v6999_v18 = vpack.c.bf16 %v3435_v45, %v3433_v1  ;;  %v101_v1 = vld [vmem:[%s9918_s1 + $0x2a8] sm:$0xff] }
 0x14e   :  { %v5004_v52 = vadd.f32 %v5003_v9, %v5002_v54  ;;  %v5579_v13 = vrot.slane %v5578_v25, 4  ;;  %4892 = vst [vmem:[%s9920_s2 + $0x130] sm:$0xff] %v6998_v42  ;;  %v5010_v36 = vrot.slane %v5009_v19, 4  ;;  %v5023_v59 = vadd.f32 %v3435_v45, %v3431_v23  ;;  %3959 = vmatpush1.bf16.msra.mxu0 %v6744_v50  ;;  %v165_v50 = vld [vmem:[%s9918_s1 + $0x4a8] sm:$0xff] }
 0x14f   :  { %v5018_v27 = vadd.f32 %v5017_v33, %v5016_v7  ;;  %v5593_v39 = vrot.slane %v5592_v62, 4  ;;  %v5585_v61 = vadd.f32 %v5443_v17, %v5379_v44  ;;  %4893 = vst [vmem:[%s9920_s2 + $0x138] sm:$0xff] %v6999_v18  ;;  %v5445_v60 = vmul.f32 %v3435_v45, %v3435_v45  ;;  %4002 = vmatpush1.bf16.msra.mxu1 %v6746_v63  ;;  %v100_v44 = vld [vmem:[%s9918_s1 + $0x2a0] sm:$0xff] }
 0x150   :  { %3960 = vmatprep.subr.bf16.mxu0 %v6681_v35  ;;  %v5005_v37 = vrot.slane %v5004_v52, 2  ;;  %v5580_v53 = vadd.f32 %v5579_v13, %v5578_v25  ;;  %v5011_v55 = vadd.f32 %v5010_v36, %v5009_v19  ;;  %v5024_v0 = vrot.slane %v5023_v59, 4  ;;  %4003 = vmatprep.subr.bf16.mxu1 %v6683_v58  ;;  %v36_v45 = vld [vmem:[%s9918_s1 + $0xa0] sm:$0xff] }
 0x151   :  { %v5019_v51 = vrot.slane %v5018_v27, 2  ;;  %v5594_v12 = vadd.f32 %v5593_v39, %v5592_v62  ;;  %v5586_v23 = vrot.slane %v5585_v61, 4  ;;  %v5599_v29 = vadd.f32 %v5445_v60, %v5381_v20  ;;  %v133_v20 = vld [vmem:[%s9918_s1 + $0x3a8] sm:$0xff] }
 0x152   :  { %v5006_v30 = vadd.f32 %v5005_v37, %v5004_v52  ;;  %v5581_v21 = vrot.slane %v5580_v53, 2  ;;  %v5012_v63 = vrot.slane %v5011_v55, 2  ;;  %v5025_v35 = vadd.f32 %v5024_v0, %v5023_v59  ;;  %3961 = vmatpush1.bf16.msra.mxu0 %v6680_v57  ;;  %v486_v37 = vld [vmem:[%s9918_s1 + $0xeb0] sm:$0xff]  ;;  %v487_v0 = vld [vmem:[%s9918_s1 + $0xeb8] sm:$0xff] }
 0x153   :  { %v5595_v58 = vrot.slane %v5594_v12, 2  ;;  %v5587_v43 = vadd.f32 %v5586_v23, %v5585_v61  ;;  %v5600_v41 = vrot.slane %v5599_v29, 4  ;;  %4004 = vmatpush1.bf16.msra.mxu1 %v6682_v6  ;;  %3962 = vmatprep.subr.bf16.mxu0 %v6617_v56  ;;  %v6555_v49 = vcombine.high %v165_v50, %v197_v15 }
 0x154   :  { %v5582_v46 = vadd.f32 %v5581_v21, %v5580_v53  ;;  %v5020_v57 = vadd.f32 %v5019_v51, %v5018_v27  ;;  %v5013_v54 = vadd.f32 %v5012_v63, %v5011_v55  ;;  %v5026_v5 = vrot.slane %v5025_v35, 2  ;;  %4005 = vmatprep.subr.bf16.mxu1 %v6619_v4 }
 0x155   :  { %v5596_v8 = vadd.f32 %v5595_v58, %v5594_v12  ;;  %v5588_v22 = vrot.slane %v5587_v43, 2  ;;  %v5601_v6 = vadd.f32 %v5600_v41, %v5599_v29  ;;  %v6554_v56 = vcombine.low %v165_v50, %v197_v15  ;;  %v519_v50 = vld [vmem:[%s9918_s1 + $0xfb8] sm:$0xff]  ;;  %v8674_v58 = vld [vmem:[%s9918_s1 + $0xcb0] sm:$0xff] }
 0x156   :  { %v5007_v7 = vrot.slane %v5006_v30, 1  ;;  %v5583_v28 = vrot.slane %v5582_v46, 1  ;;  %v5027_v34 = vadd.f32 %v5026_v5, %v5025_v35  ;;  %3963 = vmatpush1.bf16.msra.mxu0 %v6616_v24  ;;  %v6489_v4 = vcombine.high %v100_v44, %v132_v40  ;;  %v8684_v41 = vld [vmem:[%s9918_s1 + $0xcb8] sm:$0xff] }
 0x157   :  { %v5597_v9 = vrot.slane %v5596_v8, 1  ;;  %v5014_v25 = vrot.slane %v5013_v54, 1  ;;  %v5589_v42 = vadd.f32 %v5588_v22, %v5587_v43  ;;  %v5602_v19 = vrot.slane %v5601_v6, 2  ;;  %4006 = vmatpush1.bf16.msra.mxu1 %v6618_v14  ;;  %3964 = vmatprep.subr.bf16.mxu0 %v6553_v31  ;;  %v69_v14 = vld [vmem:[%s9918_s1 + $0x1a8] sm:$0xff]  ;;  %v8679_v43 = vld [vmem:[%s9918_s1 + $0xdb0] sm:$0xff]  ;;  %v8710_v5 = vld [vmem:[%s9918_s1 + $0xbb8] sm:$0xff] }
 0x158   :  { %v5021_v38 = vrot.slane %v5020_v57, 1  ;;  %4007 = vmatprep.subr.bf16.mxu1 %v6555_v49  ;;  %v6491_v24 = vcombine.high %v101_v1, %v133_v20  ;;  %v5584_v33 = vadd.f32 %v5583_v28, %v5582_v46  ;;  %v5028_v17 = vrot.slane %v5027_v34, 1  ;;  %v8689_v49 = vld [vmem:[%s9918_s1 + $0xdb8] sm:$0xff] }
 0x159   :  { %v5590_v62 = vrot.slane %v5589_v42, 1  ;;  %v5603_v48 = vadd.f32 %v5602_v19, %v5601_v6  ;;  %v5008_v31 = vadd.f32 %v5007_v7, %v5006_v30  ;;  %v6488_v18 = vcombine.low %v100_v44, %v132_v40  ;;  %v8694_v44 = vld [vmem:[%s9918_s1 + $0xab0] sm:$0xff] }
 0x15a   :  { %3965 = vmatpush1.bf16.msra.mxu0 %v6552_v2  ;;  %v6490_v52 = vcombine.low %v101_v1, %v133_v20  ;;  %v6425_v13 = vcombine.high %v36_v45, %v68_v16  ;;  %v5598_v36 = vadd.f32 %v5597_v9, %v5596_v8  ;;  %v5015_v59 = vadd.f32 %v5014_v25, %v5013_v54  ;;  %v8699_v40 = vld [vmem:[%s9918_s1 + $0xbb0] sm:$0xff]  ;;  %v8705_v54 = vld [vmem:[%s9918_s1 + $0xab8] sm:$0xff] }
 0x15b   :  { %v5591_v27 = vadd.f32 %v5590_v62, %v5589_v42  ;;  %v5604_v39 = vrot.slane %v5603_v48, 1  ;;  %4008 = vmatpush1.bf16.msra.mxu1 %v6554_v56  ;;  %3966 = vmatprep.subr.bf16.mxu0 %v6489_v4  ;;  %v5022_v61 = vadd.f32 %v5021_v38, %v5020_v57  ;;  %v6427_v60 = vcombine.high %v37_v26, %v69_v14  ;;  %v8715_v8 = vld [vmem:[%s9918_s1 + $0x8b0] sm:$0xff]  ;;  %v8727_v1 = vld [vmem:[%s9918_s1 + $0x8b8] sm:$0xff] }
 0x15c   :  { %4009 = vmatprep.subr.bf16.mxu1 %v6491_v24  ;;  %v5955_v32 = vsel %vm5942_vm0, %v5008_v31, %v5584_v33  ;;  %v5029_v53 = vadd.f32 %v5028_v17, %v5027_v34  ;;  %v6424_v51 = vcombine.low %v36_v45, %v68_v16  ;;  %v6426_v12 = vcombine.low %v37_v26, %v69_v14  ;;  %v8722_v56 = vld [vmem:[%s9918_s1 + $0x9b0] sm:$0xff]  ;;  %v8732_v20 = vld [vmem:[%s9918_s1 + $0x9b8] sm:$0xff] }
 0x15d   :  { %v5956_v2 = vsel %vm5942_vm0, %v5015_v59, %v5591_v27  ;;  %v5605_v55 = vadd.f32 %v5604_v39, %v5603_v48  ;;  %v5957_v23 = vsel %vm5942_vm0, %v5022_v61, %v5598_v36  ;;  %v6877_v30 = vcombine.high %v486_v37, %v518_v11  ;;  %v8743_v9 = vld [vmem:[%s9918_s1 + $0x6b0] sm:$0xff]  ;;  %v8762_v24 = vld [vmem:[%s9918_s1 + $0x6b8] sm:$0xff] }
 0x15e   :  { %v6122_v15 = vcombine.low %v5955_v32, %v5956_v2  ;;  %3967 = vmatpush1.bf16.msra.mxu0 %v6488_v18  ;;  %v6879_v35 = vcombine.high %v487_v0, %v519_v50  ;;  %v6876_v57 = vcombine.low %v486_v37, %v518_v11  ;;  %v6878_v22 = vcombine.low %v487_v0, %v519_v50  ;;  %v8748_v25 = vld [vmem:[%s9918_s1 + $0x7b0] sm:$0xff]  ;;  %v8767_v33 = vld [vmem:[%s9918_s1 + $0x7b8] sm:$0xff] }
 0x15f   :  { %v5958_v29 = vsel %vm5942_vm0, %v5029_v53, %v5605_v55  ;;  %4010 = vmatpush1.bf16.msra.mxu1 %v6490_v52  ;;  %3968 = vmatprep.subr.bf16.mxu0 %v6425_v13  ;;  %v6813_v6 = vcombine.high %v8674_v58, %v8679_v43  ;;  %v6812_v28 = vcombine.low %v8674_v58, %v8679_v43  ;;  %v8782_v14 = vld [vmem:[%s9918_s1 + $0x4b0] sm:$0xff] }
 0x160   :  { %v6130_v21 = vrot.slane %v6122_v15, %v7987_v47  ;;  %v6123_v63 = vcombine.low %v5957_v23, %v5958_v29  ;;  %4011 = vmatprep.subr.bf16.mxu1 %v6427_v60  ;;  %v6814_v34 = vcombine.low %v8684_v41, %v8689_v49  ;;  %v6815_v4 = vcombine.high %v8684_v41, %v8689_v49  ;;  %v8787_v31 = vld [vmem:[%s9918_s1 + $0x5b0] sm:$0xff] }
 0x161   :  { %v6748_v19 = vcombine.low %v8694_v44, %v8699_v40  ;;  %v6749_v45 = vcombine.high %v8694_v44, %v8699_v40  ;;  %v6750_v16 = vcombine.low %v8705_v54, %v8710_v5  ;;  %v6751_v38 = vcombine.high %v8705_v54, %v8710_v5 }
 0x162   :  { %v6137_v46 = vrot.slane %v6123_v63, %v7987_v47  ;;  %3969 = vmatpush1.bf16.msra.mxu0 %v6424_v51  ;;  %v6684_v17 = vcombine.low %v8715_v8, %v8722_v56  ;;  %v6685_v48 = vcombine.high %v8715_v8, %v8722_v56  ;;  %v6686_v26 = vcombine.low %v8727_v1, %v8732_v20  ;;  %v134_v8 = vld [vmem:[%s9918_s1 + $0x3b0] sm:$0xff] }
 0x163   :  { %4012 = vmatpush1.bf16.msra.mxu1 %v6426_v12  ;;  %4040 = vmatprep.subr.bf16.mxu0 %v6877_v30  ;;  %v6687_v52 = vcombine.high %v8727_v1, %v8732_v20  ;;  %v6620_v13 = vcombine.low %v8743_v9, %v8748_v25  ;;  %v6621_v36 = vcombine.high %v8743_v9, %v8748_v25  ;;  %v70_v9 = vld [vmem:[%s9918_s1 + $0x1b0] sm:$0xff] }
 0x164   :  { %v6138_v7 = vcombine.low %v6130_v21, %v6137_v46  ;;  %4083 = vmatprep.subr.bf16.mxu1 %v6879_v35  ;;  %v6622_v39 = vcombine.low %v8762_v24, %v8767_v33  ;;  %v6623_v61 = vcombine.high %v8762_v24, %v8767_v33  ;;  %v6556_v32 = vcombine.low %v8782_v14, %v8787_v31  ;;  %v39_v33 = vld [vmem:[%s9918_s1 + $0xb8] sm:$0xff] }
 0x165   :  { %v3472_v42 = vpop.f32.mrf.mxu0  ;;  %3987 = vmatmul.mubr.bf16.vlgmr.msra.gmra.mxu0 %v8528_v10  ;;  %v3515_v62 = vpop.f32.mrf.mxu1  ;;  %v6557_v2 = vcombine.high %v8782_v14, %v8787_v31  ;;  %v520_v14 = vld [vmem:[%s9918_s1 + $0xfc0] sm:$0xff] }
 0x166   :  { %6362 = vst [vmem:[%s9921_s3 + $0x18] sm:$0xff] %v6138_v7  ;;  %4030 = vmatmul.mubr.bf16.vlgmr.msra.gmra.mxu1 %v8528_v10  ;;  %4041 = vmatpush1.bf16.msra.mxu0 %v6876_v57  ;;  %v5382_v60 = vmul.f32 %v3472_v42, %v3472_v42  ;;  %v5384_v53 = vmul.f32 %v3515_v62, %v3515_v62 }
 0x167   :  { %4084 = vmatpush1.bf16.msra.mxu1 %v6878_v22  ;;  %v3474_v18 = vpop.f32.mrf.mxu0  ;;  %4042 = vmatprep.subr.bf16.mxu0 %v6813_v6  ;;  %v3517_v27 = vpop.f32.mrf.mxu1 }
 0x168   :  { %v6968_v59 = vpack.c.bf16 %v3474_v18, %v3472_v42  ;;  %4085 = vmatprep.subr.bf16.mxu1 %v6815_v4  ;;  %4072 = vmatprep.mubr.bf16.mxu0 %v7031_v3  ;;  %v6969_v37 = vpack.c.bf16 %v3517_v27, %v3515_v62  ;;  %v5383_v55 = vmul.f32 %v3474_v18, %v3474_v18 }
 0x169   :  { %v3476_v11 = vpop.f32.mrf.mxu0  ;;  %4115 = vmatprep.mubr.bf16.mxu1 %v7031_v3  ;;  %v3519_v15 = vpop.f32.mrf.mxu1  ;;  %v5385_v51 = vmul.f32 %v3517_v27, %v3517_v27 }
 0x16a   :  { %4862 = vst [vmem:[%s9920_s2 + $0x40] sm:$0xff] %v6968_v59  ;;  %v5030_v0 = vadd.f32 %v3476_v11, %v3472_v42  ;;  %v5446_v50 = vmul.f32 %v3476_v11, %v3476_v11  ;;  %4043 = vmatpush1.bf16.msra.mxu0 %v6812_v28  ;;  %4863 = vst [vmem:[%s9920_s2 + $0x48] sm:$0xff] %v6969_v37  ;;  %v5044_v12 = vadd.f32 %v3519_v15, %v3515_v62  ;;  %v199_v62 = vld [vmem:[%s9918_s1 + $0x5b8] sm:$0xff] }
 0x16b   :  { %v5448_v23 = vmul.f32 %v3519_v15, %v3519_v15  ;;  %4086 = vmatpush1.bf16.msra.mxu1 %v6814_v34  ;;  %v3478_v29 = vpop.f32.mrf.mxu0  ;;  %4044 = vmatprep.subr.bf16.mxu0 %v6749_v45  ;;  %v3521_v58 = vpop.f32.mrf.mxu1 }
 0x16c   :  { %v5031_v30 = vrot.slane %v5030_v0, 4  ;;  %v5606_v21 = vadd.f32 %v5446_v50, %v5382_v60  ;;  %v7000_v63 = vpack.c.bf16 %v3478_v29, %v3476_v11  ;;  %v5037_v35 = vadd.f32 %v3478_v29, %v3474_v18  ;;  %4087 = vmatprep.subr.bf16.mxu1 %v6751_v38 }
 0x16d   :  { %v5045_v43 = vrot.slane %v5044_v12, 4  ;;  %v5620_v41 = vadd.f32 %v5448_v23, %v5384_v53  ;;  %v5447_v49 = vmul.f32 %v3478_v29, %v3478_v29  ;;  %v7001_v44 = vpack.c.bf16 %v3521_v58, %v3519_v15  ;;  %v103_v15 = vld [vmem:[%s9918_s1 + $0x2b8] sm:$0xff] }
 0x16e   :  { %v5032_v40 = vadd.f32 %v5031_v30, %v5030_v0  ;;  %v5607_v46 = vrot.slane %v5606_v21, 4  ;;  %4894 = vst [vmem:[%s9920_s2 + $0x140] sm:$0xff] %v7000_v63  ;;  %v5038_v57 = vrot.slane %v5037_v35, 4  ;;  %v5051_v22 = vadd.f32 %v3521_v58, %v3517_v27  ;;  %4045 = vmatpush1.bf16.msra.mxu0 %v6748_v19  ;;  %v167_v19 = vld [vmem:[%s9918_s1 + $0x4b8] sm:$0xff] }
 0x16f   :  { %v5046_v6 = vadd.f32 %v5045_v43, %v5044_v12  ;;  %v5621_v7 = vrot.slane %v5620_v41, 4  ;;  %v5613_v28 = vadd.f32 %v5447_v49, %v5383_v55  ;;  %4895 = vst [vmem:[%s9920_s2 + $0x148] sm:$0xff] %v7001_v44  ;;  %v5449_v34 = vmul.f32 %v3521_v58, %v3521_v58  ;;  %4088 = vmatpush1.bf16.msra.mxu1 %v6750_v16  ;;  %v102_v55 = vld [vmem:[%s9918_s1 + $0x2b0] sm:$0xff] }
 0x170   :  { %4046 = vmatprep.subr.bf16.mxu0 %v6685_v48  ;;  %v5033_v4 = vrot.slane %v5032_v40, 2  ;;  %v5608_v42 = vadd.f32 %v5607_v46, %v5606_v21  ;;  %v5039_v45 = vadd.f32 %v5038_v57, %v5037_v35  ;;  %v5052_v38 = vrot.slane %v5051_v22, 4  ;;  %4089 = vmatprep.subr.bf16.mxu1 %v6687_v52  ;;  %v38_v58 = vld [vmem:[%s9918_s1 + $0xb0] sm:$0xff] }
 0x171   :  { %v5047_v18 = vrot.slane %v5046_v6, 2  ;;  %v5622_v59 = vadd.f32 %v5621_v7, %v5620_v41  ;;  %v5614_v27 = vrot.slane %v5613_v28, 4  ;;  %v5627_v60 = vadd.f32 %v5449_v34, %v5385_v51  ;;  %v135_v51 = vld [vmem:[%s9918_s1 + $0x3b8] sm:$0xff] }
 0x172   :  { %v5034_v54 = vadd.f32 %v5033_v4, %v5032_v40  ;;  %v5609_v5 = vrot.slane %v5608_v42, 2  ;;  %v5040_v16 = vrot.slane %v5039_v45, 2  ;;  %v5053_v48 = vadd.f32 %v5052_v38, %v5051_v22  ;;  %4047 = vmatpush1.bf16.msra.mxu0 %v6684_v17  ;;  %v488_v4 = vld [vmem:[%s9918_s1 + $0xec0] sm:$0xff]  ;;  %v489_v38 = vld [vmem:[%s9918_s1 + $0xec8] sm:$0xff] }
 0x173   :  { %v5623_v52 = vrot.slane %v5622_v59, 2  ;;  %v5615_v37 = vadd.f32 %v5614_v27, %v5613_v28  ;;  %v5628_v11 = vrot.slane %v5627_v60, 4  ;;  %4090 = vmatpush1.bf16.msra.mxu1 %v6686_v26  ;;  %4048 = vmatprep.subr.bf16.mxu0 %v6621_v36  ;;  %v6559_v53 = vcombine.high %v167_v19, %v199_v62 }
 0x174   :  { %v5610_v56 = vadd.f32 %v5609_v5, %v5608_v42  ;;  %v5048_v17 = vadd.f32 %v5047_v18, %v5046_v6  ;;  %v5041_v0 = vadd.f32 %v5040_v16, %v5039_v45  ;;  %v5054_v50 = vrot.slane %v5053_v48, 2  ;;  %4091 = vmatprep.subr.bf16.mxu1 %v6623_v61 }
 0x175   :  { %v5624_v1 = vadd.f32 %v5623_v52, %v5622_v59  ;;  %v5616_v20 = vrot.slane %v5615_v37, 2  ;;  %v5629_v26 = vadd.f32 %v5628_v11, %v5627_v60  ;;  %v6558_v36 = vcombine.low %v167_v19, %v199_v62  ;;  %v521_v19 = vld [vmem:[%s9918_s1 + $0xfc8] sm:$0xff]  ;;  %v8894_v52 = vld [vmem:[%s9918_s1 + $0xcc0] sm:$0xff] }
 0x176   :  { %v5035_v12 = vrot.slane %v5034_v54, 1  ;;  %v5611_v23 = vrot.slane %v5610_v56, 1  ;;  %v5055_v29 = vadd.f32 %v5054_v50, %v5053_v48  ;;  %4049 = vmatpush1.bf16.msra.mxu0 %v6620_v13  ;;  %v6493_v61 = vcombine.high %v102_v55, %v134_v8  ;;  %v8904_v11 = vld [vmem:[%s9918_s1 + $0xcc8] sm:$0xff] }
 0x177   :  { %v5625_v30 = vrot.slane %v5624_v1, 1  ;;  %v5042_v21 = vrot.slane %v5041_v0, 1  ;;  %v5617_v63 = vadd.f32 %v5616_v20, %v5615_v37  ;;  %v5630_v35 = vrot.slane %v5629_v26, 2  ;;  %4092 = vmatpush1.bf16.msra.mxu1 %v6622_v39  ;;  %4050 = vmatprep.subr.bf16.mxu0 %v6557_v2  ;;  %v71_v39 = vld [vmem:[%s9918_s1 + $0x1b8] sm:$0xff]  ;;  %v8899_v37 = vld [vmem:[%s9918_s1 + $0xdc0] sm:$0xff]  ;;  %v8930_v50 = vld [vmem:[%s9918_s1 + $0xbc8] sm:$0xff] }
 0x178   :  { %v5049_v25 = vrot.slane %v5048_v17, 1  ;;  %4093 = vmatprep.subr.bf16.mxu1 %v6559_v53  ;;  %v6495_v13 = vcombine.high %v103_v15, %v135_v51  ;;  %v5612_v43 = vadd.f32 %v5611_v23, %v5610_v56  ;;  %v5056_v49 = vrot.slane %v5055_v29, 1  ;;  %v8909_v53 = vld [vmem:[%s9918_s1 + $0xdc8] sm:$0xff] }
 0x179   :  { %v5618_v41 = vrot.slane %v5617_v63, 1  ;;  %v5631_v24 = vadd.f32 %v5630_v35, %v5629_v26  ;;  %v5036_v2 = vadd.f32 %v5035_v12, %v5034_v54  ;;  %v6492_v44 = vcombine.low %v102_v55, %v134_v8  ;;  %v8914_v55 = vld [vmem:[%s9918_s1 + $0xac0] sm:$0xff] }
 0x17a   :  { %4051 = vmatpush1.bf16.msra.mxu0 %v6556_v32  ;;  %v6494_v40 = vcombine.low %v103_v15, %v135_v51  ;;  %v6429_v46 = vcombine.high %v38_v58, %v70_v9  ;;  %v5626_v57 = vadd.f32 %v5625_v30, %v5624_v1  ;;  %v5043_v22 = vadd.f32 %v5042_v21, %v5041_v0  ;;  %v8919_v8 = vld [vmem:[%s9918_s1 + $0xbc0] sm:$0xff]  ;;  %v8925_v0 = vld [vmem:[%s9918_s1 + $0xac8] sm:$0xff] }
 0x17b   :  { %v5619_v6 = vadd.f32 %v5618_v41, %v5617_v63  ;;  %v5632_v7 = vrot.slane %v5631_v24, 1  ;;  %4094 = vmatpush1.bf16.msra.mxu1 %v6558_v36  ;;  %4052 = vmatprep.subr.bf16.mxu0 %v6493_v61  ;;  %v5050_v28 = vadd.f32 %v5049_v25, %v5048_v17  ;;  %v6431_v34 = vcombine.high %v39_v33, %v71_v39  ;;  %v8935_v1 = vld [vmem:[%s9918_s1 + $0x8c0] sm:$0xff]  ;;  %v8947_v15 = vld [vmem:[%s9918_s1 + $0x8c8] sm:$0xff] }
 0x17c   :  { %4095 = vmatprep.subr.bf16.mxu1 %v6495_v13  ;;  %v5959_v31 = vsel %vm5942_vm0, %v5036_v2, %v5612_v43  ;;  %v5057_v42 = vadd.f32 %v5056_v49, %v5055_v29  ;;  %v6428_v18 = vcombine.low %v38_v58, %v70_v9  ;;  %v6430_v59 = vcombine.low %v39_v33, %v71_v39  ;;  %v8942_v36 = vld [vmem:[%s9918_s1 + $0x9c0] sm:$0xff]  ;;  %v8952_v51 = vld [vmem:[%s9918_s1 + $0x9c8] sm:$0xff] }
 0x17d   :  { %v5960_v32 = vsel %vm5942_vm0, %v5043_v22, %v5619_v6  ;;  %v5633_v45 = vadd.f32 %v5632_v7, %v5631_v24  ;;  %v5961_v27 = vsel %vm5942_vm0, %v5050_v28, %v5626_v57  ;;  %v6881_v54 = vcombine.high %v488_v4, %v520_v14  ;;  %v8963_v30 = vld [vmem:[%s9918_s1 + $0x6c0] sm:$0xff]  ;;  %v8982_v13 = vld [vmem:[%s9918_s1 + $0x6c8] sm:$0xff] }
 0x17e   :  { %v6139_v62 = vcombine.low %v5959_v31, %v5960_v32  ;;  %4053 = vmatpush1.bf16.msra.mxu0 %v6492_v44  ;;  %v6883_v48 = vcombine.high %v489_v38, %v521_v19  ;;  %v6880_v17 = vcombine.low %v488_v4, %v520_v14  ;;  %v6882_v20 = vcombine.low %v489_v38, %v521_v19  ;;  %v8968_v21 = vld [vmem:[%s9918_s1 + $0x7c0] sm:$0xff]  ;;  %v8987_v43 = vld [vmem:[%s9918_s1 + $0x7c8] sm:$0xff] }
 0x17f   :  { %v5962_v60 = vsel %vm5942_vm0, %v5057_v42, %v5633_v45  ;;  %4096 = vmatpush1.bf16.msra.mxu1 %v6494_v40  ;;  %4054 = vmatprep.subr.bf16.mxu0 %v6429_v46  ;;  %v6817_v26 = vcombine.high %v8894_v52, %v8899_v37  ;;  %v6816_v23 = vcombine.low %v8894_v52, %v8899_v37  ;;  %v9002_v39 = vld [vmem:[%s9918_s1 + $0x4c0] sm:$0xff] }
 0x180   :  { %v6147_v5 = vrot.slane %v6139_v62, %v7987_v47  ;;  %v6140_v16 = vcombine.low %v5961_v27, %v5962_v60  ;;  %4097 = vmatprep.subr.bf16.mxu1 %v6431_v34  ;;  %v6818_v29 = vcombine.low %v8904_v11, %v8909_v53  ;;  %v6819_v61 = vcombine.high %v8904_v11, %v8909_v53  ;;  %v9007_v2 = vld [vmem:[%s9918_s1 + $0x5c0] sm:$0xff] }
 0x181   :  { %v6752_v35 = vcombine.low %v8914_v55, %v8919_v8  ;;  %v6753_v58 = vcombine.high %v8914_v55, %v8919_v8  ;;  %v6754_v9 = vcombine.low %v8925_v0, %v8930_v50  ;;  %v6755_v25 = vcombine.high %v8925_v0, %v8930_v50 }
 0x182   :  { %v6154_v56 = vrot.slane %v6140_v16, %v7987_v47  ;;  %4055 = vmatpush1.bf16.msra.mxu0 %v6428_v18  ;;  %v6688_v49 = vcombine.low %v8935_v1, %v8942_v36  ;;  %v6689_v24 = vcombine.high %v8935_v1, %v8942_v36  ;;  %v6690_v33 = vcombine.low %v8947_v15, %v8952_v51  ;;  %v136_v1 = vld [vmem:[%s9918_s1 + $0x3c0] sm:$0xff] }
 0x183   :  { %4098 = vmatpush1.bf16.msra.mxu1 %v6430_v59  ;;  %4126 = vmatprep.subr.bf16.mxu0 %v6881_v54  ;;  %v6691_v44 = vcombine.high %v8947_v15, %v8952_v51  ;;  %v6624_v40 = vcombine.low %v8963_v30, %v8968_v21  ;;  %v6625_v46 = vcombine.high %v8963_v30, %v8968_v21  ;;  %v72_v30 = vld [vmem:[%s9918_s1 + $0x1c0] sm:$0xff] }
 0x184   :  { %v6155_v12 = vcombine.low %v6147_v5, %v6154_v56  ;;  %4169 = vmatprep.subr.bf16.mxu1 %v6883_v48  ;;  %v6626_v6 = vcombine.low %v8982_v13, %v8987_v43  ;;  %v6627_v7 = vcombine.high %v8982_v13, %v8987_v43  ;;  %v6560_v14 = vcombine.low %v9002_v39, %v9007_v2  ;;  %v41_v43 = vld [vmem:[%s9918_s1 + $0xc8] sm:$0xff] }
 0x185   :  { %v3558_v63 = vpop.f32.mrf.mxu0  ;;  %4073 = vmatmul.mubr.bf16.vlgmr.msra.gmra.mxu0 %v8528_v10  ;;  %v3601_v41 = vpop.f32.mrf.mxu1  ;;  %v6561_v31 = vcombine.high %v9002_v39, %v9007_v2  ;;  %v522_v39 = vld [vmem:[%s9918_s1 + $0xfd0] sm:$0xff] }
 0x186   :  { %6363 = vst [vmem:[%s9921_s3 + $0x20] sm:$0xff] %v6155_v12  ;;  %4116 = vmatmul.mubr.bf16.vlgmr.msra.gmra.mxu1 %v8528_v10  ;;  %4127 = vmatpush1.bf16.msra.mxu0 %v6880_v17  ;;  %v5386_v28 = vmul.f32 %v3558_v63, %v3558_v63  ;;  %v5388_v32 = vmul.f32 %v3601_v41, %v3601_v41 }
 0x187   :  { %4170 = vmatpush1.bf16.msra.mxu1 %v6882_v20  ;;  %v3560_v10 = vpop.f32.mrf.mxu0  ;;  %4128 = vmatprep.subr.bf16.mxu0 %v6817_v26  ;;  %v3603_v22 = vpop.f32.mrf.mxu1 }
 0x188   :  { %v6970_v57 = vpack.c.bf16 %v3560_v10, %v3558_v63  ;;  %4171 = vmatprep.subr.bf16.mxu1 %v6819_v61  ;;  %4158 = vmatprep.mubr.bf16.mxu0 %v7031_v3  ;;  %v6971_v34 = vpack.c.bf16 %v3603_v22, %v3601_v41  ;;  %v5387_v42 = vmul.f32 %v3560_v10, %v3560_v10 }
 0x189   :  { %v3562_v4 = vpop.f32.mrf.mxu0  ;;  %4201 = vmatprep.mubr.bf16.mxu1 %v7031_v3  ;;  %v3605_v19 = vpop.f32.mrf.mxu1  ;;  %v5389_v62 = vmul.f32 %v3603_v22, %v3603_v22 }
 0x18a   :  { %4864 = vst [vmem:[%s9920_s2 + $0x50] sm:$0xff] %v6970_v57  ;;  %v5058_v45 = vadd.f32 %v3562_v4, %v3558_v63  ;;  %v5450_v38 = vmul.f32 %v3562_v4, %v3562_v4  ;;  %4129 = vmatpush1.bf16.msra.mxu0 %v6816_v23  ;;  %4865 = vst [vmem:[%s9920_s2 + $0x58] sm:$0xff] %v6971_v34  ;;  %v5072_v18 = vadd.f32 %v3605_v19, %v3601_v41 }
 0x18b   :  { %v5452_v59 = vmul.f32 %v3605_v19, %v3605_v19  ;;  %4172 = vmatpush1.bf16.msra.mxu1 %v6818_v29  ;;  %v3564_v27 = vpop.f32.mrf.mxu0  ;;  %4130 = vmatprep.subr.bf16.mxu0 %v6753_v58  ;;  %v3607_v48 = vpop.f32.mrf.mxu1 }
 0x18c   :  { %v5059_v60 = vrot.slane %v5058_v45, 4  ;;  %v5634_v54 = vadd.f32 %v5450_v38, %v5386_v28  ;;  %v7002_v5 = vpack.c.bf16 %v3564_v27, %v3562_v4  ;;  %v5065_v16 = vadd.f32 %v3564_v27, %v3560_v10  ;;  %4173 = vmatprep.subr.bf16.mxu1 %v6755_v25  ;;  %v201_v25 = vld [vmem:[%s9918_s1 + $0x5c8] sm:$0xff] }
 0x18d   :  { %v5073_v52 = vrot.slane %v5072_v18, 4  ;;  %v5648_v37 = vadd.f32 %v5452_v59, %v5388_v32  ;;  %v5451_v11 = vmul.f32 %v3564_v27, %v3564_v27  ;;  %v7003_v53 = vpack.c.bf16 %v3607_v48, %v3605_v19  ;;  %v104_v32 = vld [vmem:[%s9918_s1 + $0x2c0] sm:$0xff]  ;;  %v105_v38 = vld [vmem:[%s9918_s1 + $0x2c8] sm:$0xff] }
 0x18e   :  { %v5060_v55 = vadd.f32 %v5059_v60, %v5058_v45  ;;  %v5635_v8 = vrot.slane %v5634_v54, 4  ;;  %4896 = vst [vmem:[%s9920_s2 + $0x150] sm:$0xff] %v7002_v5  ;;  %v5066_v56 = vrot.slane %v5065_v16, 4  ;;  %v5079_v17 = vadd.f32 %v3607_v48, %v3603_v22  ;;  %4131 = vmatpush1.bf16.msra.mxu0 %v6752_v35  ;;  %v169_v35 = vld [vmem:[%s9918_s1 + $0x4c8] sm:$0xff] }
 0x18f   :  { %v5074_v20 = vadd.f32 %v5073_v52, %v5072_v18  ;;  %v5649_v26 = vrot.slane %v5648_v37, 4  ;;  %v5641_v12 = vadd.f32 %v5451_v11, %v5387_v42  ;;  %4897 = vst [vmem:[%s9920_s2 + $0x158] sm:$0xff] %v7003_v53  ;;  %v5453_v23 = vmul.f32 %v3607_v48, %v3607_v48  ;;  %4174 = vmatpush1.bf16.msra.mxu1 %v6754_v9  ;;  %v137_v19 = vld [vmem:[%s9918_s1 + $0x3c8] sm:$0xff] }
 0x190   :  { %4132 = vmatprep.subr.bf16.mxu0 %v6689_v24  ;;  %v5061_v29 = vrot.slane %v5060_v55, 2  ;;  %v5636_v61 = vadd.f32 %v5635_v8, %v5634_v54  ;;  %v5067_v63 = vadd.f32 %v5066_v56, %v5065_v16  ;;  %v5080_v58 = vrot.slane %v5079_v17, 4  ;;  %4175 = vmatprep.subr.bf16.mxu1 %v6691_v44  ;;  %v40_v16 = vld [vmem:[%s9918_s1 + $0xc0] sm:$0xff] }
 0x191   :  { %v5075_v41 = vrot.slane %v5074_v20, 2  ;;  %v5650_v10 = vadd.f32 %v5649_v26, %v5648_v37  ;;  %v5642_v57 = vrot.slane %v5641_v12, 4  ;;  %v5655_v22 = vadd.f32 %v5453_v23, %v5389_v62  ;;  %v490_v23 = vld [vmem:[%s9918_s1 + $0xed0] sm:$0xff] }
 0x192   :  { %v5062_v0 = vadd.f32 %v5061_v29, %v5060_v55  ;;  %v5637_v50 = vrot.slane %v5636_v61, 2  ;;  %v5068_v9 = vrot.slane %v5067_v63, 2  ;;  %v5081_v24 = vadd.f32 %v5080_v58, %v5079_v17  ;;  %4133 = vmatpush1.bf16.msra.mxu0 %v6688_v49  ;;  %v523_v58 = vld [vmem:[%s9918_s1 + $0xfd8] sm:$0xff] }
 0x193   :  { %v5651_v44 = vrot.slane %v5650_v10, 2  ;;  %v5643_v28 = vadd.f32 %v5642_v57, %v5641_v12  ;;  %v5656_v34 = vrot.slane %v5655_v22, 4  ;;  %4176 = vmatpush1.bf16.msra.mxu1 %v6690_v33  ;;  %4134 = vmatprep.subr.bf16.mxu0 %v6625_v46  ;;  %v6563_v4 = vcombine.high %v169_v35, %v201_v25 }
 0x194   :  { %v5638_v36 = vadd.f32 %v5637_v50, %v5636_v61  ;;  %v5076_v49 = vadd.f32 %v5075_v41, %v5074_v20  ;;  %v5069_v42 = vadd.f32 %v5068_v9, %v5067_v63  ;;  %v5082_v45 = vrot.slane %v5081_v24, 2  ;;  %4177 = vmatprep.subr.bf16.mxu1 %v6627_v7  ;;  %v491_v63 = vld [vmem:[%s9918_s1 + $0xed8] sm:$0xff] }
 0x195   :  { %v5652_v15 = vadd.f32 %v5651_v44, %v5650_v10  ;;  %v5644_v51 = vrot.slane %v5643_v28, 2  ;;  %v5657_v33 = vadd.f32 %v5656_v34, %v5655_v22  ;;  %v6562_v46 = vcombine.low %v169_v35, %v201_v25  ;;  %v9119_v44 = vld [vmem:[%s9918_s1 + $0xdd0] sm:$0xff]  ;;  %v9129_v34 = vld [vmem:[%s9918_s1 + $0xdd8] sm:$0xff] }
 0x196   :  { %v5063_v62 = vrot.slane %v5062_v0, 1  ;;  %v5639_v18 = vrot.slane %v5638_v36, 1  ;;  %v5083_v59 = vadd.f32 %v5082_v45, %v5081_v24  ;;  %4135 = vmatpush1.bf16.msra.mxu0 %v6624_v40  ;;  %v6497_v7 = vcombine.high %v104_v32, %v136_v1  ;;  %v9114_v24 = vld [vmem:[%s9918_s1 + $0xcd0] sm:$0xff] }
 0x197   :  { %v5653_v27 = vrot.slane %v5652_v15, 1  ;;  %v5070_v60 = vrot.slane %v5069_v42, 1  ;;  %v5645_v54 = vadd.f32 %v5644_v51, %v5643_v28  ;;  %v5658_v5 = vrot.slane %v5657_v33, 2  ;;  %4178 = vmatpush1.bf16.msra.mxu1 %v6626_v6  ;;  %4136 = vmatprep.subr.bf16.mxu0 %v6561_v31  ;;  %v73_v6 = vld [vmem:[%s9918_s1 + $0x1c8] sm:$0xff]  ;;  %v9124_v28 = vld [vmem:[%s9918_s1 + $0xcd8] sm:$0xff]  ;;  %v9155_v45 = vld [vmem:[%s9918_s1 + $0x8d0] sm:$0xff] }
 0x198   :  { %v5077_v21 = vrot.slane %v5076_v49, 1  ;;  %4179 = vmatprep.subr.bf16.mxu1 %v6563_v4  ;;  %v6499_v40 = vcombine.high %v105_v38, %v137_v19  ;;  %v5640_v48 = vadd.f32 %v5639_v18, %v5638_v36  ;;  %v5084_v37 = vrot.slane %v5083_v59, 1  ;;  %v9134_v4 = vld [vmem:[%s9918_s1 + $0xad0] sm:$0xff] }
 0x199   :  { %v5646_v52 = vrot.slane %v5645_v54, 1  ;;  %v5659_v13 = vadd.f32 %v5658_v5, %v5657_v33  ;;  %v5064_v31 = vadd.f32 %v5063_v62, %v5062_v0  ;;  %v6496_v11 = vcombine.low %v104_v32, %v136_v1  ;;  %v9139_v32 = vld [vmem:[%s9918_s1 + $0xbd0] sm:$0xff] }
 0x19a   :  { %4137 = vmatpush1.bf16.msra.mxu0 %v6560_v14  ;;  %v6498_v53 = vcombine.low %v105_v38, %v137_v19  ;;  %v6433_v55 = vcombine.high %v40_v16, %v72_v30  ;;  %v5654_v8 = vadd.f32 %v5653_v27, %v5652_v15  ;;  %v5071_v56 = vadd.f32 %v5070_v60, %v5069_v42  ;;  %v9150_v42 = vld [vmem:[%s9918_s1 + $0xbd8] sm:$0xff]  ;;  %v9162_v33 = vld [vmem:[%s9918_s1 + $0x9d0] sm:$0xff] }
 0x19b   :  { %v5647_v17 = vadd.f32 %v5646_v52, %v5645_v54  ;;  %v5660_v20 = vrot.slane %v5659_v13, 1  ;;  %4180 = vmatpush1.bf16.msra.mxu1 %v6562_v46  ;;  %4138 = vmatprep.subr.bf16.mxu0 %v6497_v7  ;;  %v5078_v26 = vadd.f32 %v5077_v21, %v5076_v49  ;;  %v6435_v12 = vcombine.high %v41_v43, %v73_v6  ;;  %v9145_v49 = vld [vmem:[%s9918_s1 + $0xad8] sm:$0xff]  ;;  %v9183_v7 = vld [vmem:[%s9918_s1 + $0x6d0] sm:$0xff]  ;;  %v9193_v54 = vld [vmem:[%s9919_s0] sm:$0xff]  }
 0x19c   :  { %4181 = vmatprep.subr.bf16.mxu1 %v6499_v40  ;;  %v5963_v2 = vsel %vm5942_vm0, %v5064_v31, %v5640_v48  ;;  %v5085_v29 = vadd.f32 %v5084_v37, %v5083_v59  ;;  %v6432_v25 = vcombine.low %v40_v16, %v72_v30  ;;  %v6434_v41 = vcombine.low %v41_v43, %v73_v6  ;;  %v9167_v46 = vld [vmem:[%s9918_s1 + $0x8d8] sm:$0xff]  ;;  %v9188_v27 = vld [vmem:[%s9918_s1 + $0x7d0] sm:$0xff] }
 0x19d   :  { %v5964_v14 = vsel %vm5942_vm0, %v5071_v56, %v5647_v17  ;;  %v5661_v61 = vadd.f32 %v5660_v20, %v5659_v13  ;;  %v5965_v10 = vsel %vm5942_vm0, %v5078_v26, %v5654_v8  ;;  %v6885_v22 = vcombine.high %v490_v23, %v522_v39  ;;  %v9172_v38 = vld [vmem:[%s9918_s1 + $0x9d8] sm:$0xff]  ;;  %v9227_v6 = vld [vmem:[%s9918_s1 + $0x4d0] sm:$0xff] }
 0x19e   :  { %v6156_v35 = vcombine.low %v5963_v2, %v5964_v14  ;;  %4139 = vmatpush1.bf16.msra.mxu0 %v6496_v11  ;;  %v6887_v9 = vcombine.high %v491_v63, %v523_v58  ;;  %v6884_v36 = vcombine.low %v490_v23, %v522_v39  ;;  %v6886_v15 = vcombine.low %v491_v63, %v523_v58  ;;  %v9207_v40 = vld [vmem:[%s9918_s1 + $0x6d8] sm:$0xff]  ;;  %v9232_v31 = vld [vmem:[%s9918_s1 + $0x5d0] sm:$0xff] }
 0x19f   :  { %v5966_v57 = vsel %vm5942_vm0, %v5085_v29, %v5661_v61  ;;  %4182 = vmatpush1.bf16.msra.mxu1 %v6498_v53  ;;  %4140 = vmatprep.subr.bf16.mxu0 %v6433_v55  ;;  %v6821_v51 = vcombine.high %v9114_v24, %v9119_v44  ;;  %v6820_v62 = vcombine.low %v9114_v24, %v9119_v44  ;;  %v9212_v48 = vld [vmem:[%s9918_s1 + $0x7d8] sm:$0xff] }
 0x1a0   :  { %v6164_v0 = vrot.slane %v6156_v35, %v7987_v47  ;;  %v6157_v50 = vcombine.low %v5965_v10, %v5966_v57  ;;  %4183 = vmatprep.subr.bf16.mxu1 %v6435_v12  ;;  %v6822_v18 = vcombine.low %v9124_v28, %v9129_v34  ;;  %v6823_v59 = vcombine.high %v9124_v28, %v9129_v34 }
 0x1a1   :  { %v6756_v5 = vcombine.low %v9134_v4, %v9139_v32  ;;  %v6757_v16 = vcombine.high %v9134_v4, %v9139_v32  ;;  %v6758_v30 = vcombine.low %v9145_v49, %v9150_v42  ;;  %v6759_v21 = vcombine.high %v9145_v49, %v9150_v42 }
 0x1a2   :  { %v6171_v1 = vrot.slane %v6157_v50, %v7987_v47  ;;  %4141 = vmatpush1.bf16.msra.mxu0 %v6432_v25  ;;  %v6692_v37 = vcombine.low %v9155_v45, %v9162_v33  ;;  %v6693_v13 = vcombine.high %v9155_v45, %v9162_v33  ;;  %v6694_v43 = vcombine.low %v9167_v46, %v9172_v38  ;;  %v138_v45 = vld [vmem:[%s9918_s1 + $0x3d0] sm:$0xff] }
 0x1a3   :  { %4184 = vmatpush1.bf16.msra.mxu1 %v6434_v41  ;;  %4212 = vmatprep.subr.bf16.mxu0 %v6885_v22  ;;  %v6695_v53 = vcombine.high %v9167_v46, %v9172_v38  ;;  %v6628_v55 = vcombine.low %v9183_v7, %v9188_v27  ;;  %v6629_v8 = vcombine.high %v9183_v7, %v9188_v27  ;;  %v74_v7 = vld [vmem:[%s9918_s1 + $0x1d0] sm:$0xff] }
 0x1a4   :  { %v6172_v19 = vcombine.low %v6164_v0, %v6171_v1  ;;  %4255 = vmatprep.subr.bf16.mxu1 %v6887_v9  ;;  %v6630_v20 = vcombine.low %v9207_v40, %v9212_v48  ;;  %v6631_v26 = vcombine.high %v9207_v40, %v9212_v48  ;;  %v6564_v2 = vcombine.low %v9227_v6, %v9232_v31  ;;  %v43_v48 = vld [vmem:[%s9918_s1 + $0xd8] sm:$0xff] }
 0x1a5   :  { %v3644_v60 = vpop.f32.mrf.mxu0  ;;  %4159 = vmatmul.mubr.bf16.vlgmr.msra.gmra.mxu0 %v9193_v54  ;;  %v3687_v52 = vpop.f32.mrf.mxu1  ;;  %v6565_v14 = vcombine.high %v9227_v6, %v9232_v31  ;;  %v524_v6 = vld [vmem:[%s9918_s1 + $0xfe0] sm:$0xff] }
 0x1a6   :  { %6364 = vst [vmem:[%s9921_s3 + $0x28] sm:$0xff] %v6172_v19  ;;  %4202 = vmatmul.mubr.bf16.vlgmr.msra.gmra.mxu1 %v9193_v54  ;;  %4213 = vmatpush1.bf16.msra.mxu0 %v6884_v36  ;;  %v5390_v12 = vmul.f32 %v3644_v60, %v3644_v60  ;;  %v5392_v29 = vmul.f32 %v3687_v52, %v3687_v52 }
 0x1a7   :  { %4256 = vmatpush1.bf16.msra.mxu1 %v6886_v15  ;;  %v3646_v11 = vpop.f32.mrf.mxu0  ;;  %4214 = vmatprep.subr.bf16.mxu0 %v6821_v51  ;;  %v3689_v17 = vpop.f32.mrf.mxu1 }
 0x1a8   :  { %v6972_v56 = vpack.c.bf16 %v3646_v11, %v3644_v60  ;;  %4257 = vmatprep.subr.bf16.mxu1 %v6823_v59  ;;  %4244 = vmatprep.mubr.bf16.mxu0 %v7031_v3  ;;  %v6973_v23 = vpack.c.bf16 %v3689_v17, %v3687_v52  ;;  %v5391_v61 = vmul.f32 %v3646_v11, %v3646_v11 }
 0x1a9   :  { %v3648_v39 = vpop.f32.mrf.mxu0  ;;  %4287 = vmatprep.mubr.bf16.mxu1 %v7031_v3  ;;  %v3691_v35 = vpop.f32.mrf.mxu1  ;;  %v5393_v25 = vmul.f32 %v3689_v17, %v3689_v17 }
 0x1aa   :  { %4866 = vst [vmem:[%s9920_s2 + $0x60] sm:$0xff] %v6972_v56  ;;  %v5086_v63 = vadd.f32 %v3648_v39, %v3644_v60  ;;  %v5454_v58 = vmul.f32 %v3648_v39, %v3648_v39  ;;  %4215 = vmatpush1.bf16.msra.mxu0 %v6820_v62  ;;  %4867 = vst [vmem:[%s9920_s2 + $0x68] sm:$0xff] %v6973_v23  ;;  %v5100_v41 = vadd.f32 %v3691_v35, %v3687_v52  ;;  %v203_v52 = vld [vmem:[%s9918_s1 + $0x5d8] sm:$0xff] }
 0x1ab   :  { %v5456_v10 = vmul.f32 %v3691_v35, %v3691_v35  ;;  %4258 = vmatpush1.bf16.msra.mxu1 %v6822_v18  ;;  %v3650_v57 = vpop.f32.mrf.mxu0  ;;  %4216 = vmatprep.subr.bf16.mxu0 %v6757_v16  ;;  %v3693_v24 = vpop.f32.mrf.mxu1 }
 0x1ac   :  { %v5087_v22 = vrot.slane %v5086_v63, 4  ;;  %v5662_v0 = vadd.f32 %v5454_v58, %v5390_v12  ;;  %v7004_v50 = vpack.c.bf16 %v3650_v57, %v3648_v39  ;;  %v5093_v9 = vadd.f32 %v3650_v57, %v3646_v11  ;;  %4259 = vmatprep.subr.bf16.mxu1 %v6759_v21 }
 0x1ad   :  { %v5101_v44 = vrot.slane %v5100_v41, 4  ;;  %v5676_v28 = vadd.f32 %v5456_v10, %v5392_v29  ;;  %v5455_v34 = vmul.f32 %v3650_v57, %v3650_v57  ;;  %v7005_v4 = vpack.c.bf16 %v3693_v24, %v3691_v35  ;;  %v107_v35 = vld [vmem:[%s9918_s1 + $0x2d8] sm:$0xff] }
 0x1ae   :  { %v5088_v32 = vadd.f32 %v5087_v22, %v5086_v63  ;;  %v5663_v1 = vrot.slane %v5662_v0, 4  ;;  %4898 = vst [vmem:[%s9920_s2 + $0x160] sm:$0xff] %v7004_v50  ;;  %v5094_v36 = vrot.slane %v5093_v9, 4  ;;  %v5107_v15 = vadd.f32 %v3693_v24, %v3689_v17  ;;  %4217 = vmatpush1.bf16.msra.mxu0 %v6756_v5  ;;  %v171_v5 = vld [vmem:[%s9918_s1 + $0x4d8] sm:$0xff] }
 0x1af   :  { %v5102_v51 = vadd.f32 %v5101_v44, %v5100_v41  ;;  %v5677_v19 = vrot.slane %v5676_v28, 4  ;;  %v5669_v62 = vadd.f32 %v5455_v34, %v5391_v61  ;;  %4899 = vst [vmem:[%s9920_s2 + $0x168] sm:$0xff] %v7005_v4  ;;  %v5457_v18 = vmul.f32 %v3693_v24, %v3693_v24  ;;  %4260 = vmatpush1.bf16.msra.mxu1 %v6758_v30  ;;  %v106_v61 = vld [vmem:[%s9918_s1 + $0x2d0] sm:$0xff] }
 0x1b0   :  { %4218 = vmatprep.subr.bf16.mxu0 %v6693_v13  ;;  %v5089_v59 = vrot.slane %v5088_v32, 2  ;;  %v5664_v60 = vadd.f32 %v5663_v1, %v5662_v0  ;;  %v5095_v16 = vadd.f32 %v5094_v36, %v5093_v9  ;;  %v5108_v21 = vrot.slane %v5107_v15, 4  ;;  %4261 = vmatprep.subr.bf16.mxu1 %v6695_v53  ;;  %v42_v24 = vld [vmem:[%s9918_s1 + $0xd0] sm:$0xff] }
 0x1b1   :  { %v5103_v11 = vrot.slane %v5102_v51, 2  ;;  %v5678_v56 = vadd.f32 %v5677_v19, %v5676_v28  ;;  %v5670_v17 = vrot.slane %v5669_v62, 4  ;;  %v5683_v12 = vadd.f32 %v5457_v18, %v5393_v25  ;;  %v139_v25 = vld [vmem:[%s9918_s1 + $0x3d8] sm:$0xff] }
 0x1b2   :  { %v5090_v49 = vadd.f32 %v5089_v59, %v5088_v32  ;;  %v5665_v42 = vrot.slane %v5664_v60, 2  ;;  %v5096_v30 = vrot.slane %v5095_v16, 2  ;;  %v5109_v13 = vadd.f32 %v5108_v21, %v5107_v15  ;;  %4219 = vmatpush1.bf16.msra.mxu0 %v6692_v37  ;;  %v492_v59 = vld [vmem:[%s9918_s1 + $0xee0] sm:$0xff]  ;;  %v493_v21 = vld [vmem:[%s9918_s1 + $0xee8] sm:$0xff] }
 0x1b3   :  { %v5679_v53 = vrot.slane %v5678_v56, 2  ;;  %v5671_v23 = vadd.f32 %v5670_v17, %v5669_v62  ;;  %v5684_v39 = vrot.slane %v5683_v12, 4  ;;  %4262 = vmatpush1.bf16.msra.mxu1 %v6694_v43  ;;  %4220 = vmatprep.subr.bf16.mxu0 %v6629_v8  ;;  %v6567_v29 = vcombine.high %v171_v5, %v203_v52 }
 0x1b4   :  { %v5666_v33 = vadd.f32 %v5665_v42, %v5664_v60  ;;  %v5104_v37 = vadd.f32 %v5103_v11, %v5102_v51  ;;  %v5097_v63 = vadd.f32 %v5096_v30, %v5095_v16  ;;  %v5110_v58 = vrot.slane %v5109_v13, 2  ;;  %4263 = vmatprep.subr.bf16.mxu1 %v6631_v26 }
 0x1b5   :  { %v5680_v46 = vadd.f32 %v5679_v53, %v5678_v56  ;;  %v5672_v38 = vrot.slane %v5671_v23, 2  ;;  %v5685_v43 = vadd.f32 %v5684_v39, %v5683_v12  ;;  %v6566_v8 = vcombine.low %v171_v5, %v203_v52  ;;  %v525_v5 = vld [vmem:[%s9918_s1 + $0xfe8] sm:$0xff]  ;;  %v9339_v53 = vld [vmem:[%s9918_s1 + $0xce0] sm:$0xff] }
 0x1b6   :  { %v5091_v41 = vrot.slane %v5090_v49, 1  ;;  %v5667_v10 = vrot.slane %v5666_v33, 1  ;;  %v5111_v57 = vadd.f32 %v5110_v58, %v5109_v13  ;;  %4221 = vmatpush1.bf16.msra.mxu0 %v6628_v55  ;;  %v6501_v26 = vcombine.high %v106_v61, %v138_v45  ;;  %v9349_v39 = vld [vmem:[%s9918_s1 + $0xce8] sm:$0xff] }
 0x1b7   :  { %v5681_v22 = vrot.slane %v5680_v46, 1  ;;  %v5098_v0 = vrot.slane %v5097_v63, 1  ;;  %v5673_v50 = vadd.f32 %v5672_v38, %v5671_v23  ;;  %v5686_v9 = vrot.slane %v5685_v43, 2  ;;  %4264 = vmatpush1.bf16.msra.mxu1 %v6630_v20  ;;  %4222 = vmatprep.subr.bf16.mxu0 %v6565_v14  ;;  %v75_v20 = vld [vmem:[%s9918_s1 + $0x1d8] sm:$0xff]  ;;  %v9344_v23 = vld [vmem:[%s9918_s1 + $0xde0] sm:$0xff]  ;;  %v9375_v58 = vld [vmem:[%s9918_s1 + $0xbe8] sm:$0xff] }
 0x1b8   :  { %v5105_v27 = vrot.slane %v5104_v37, 1  ;;  %4265 = vmatprep.subr.bf16.mxu1 %v6567_v29  ;;  %v6503_v55 = vcombine.high %v107_v35, %v139_v25  ;;  %v5668_v44 = vadd.f32 %v5667_v10, %v5666_v33  ;;  %v5112_v34 = vrot.slane %v5111_v57, 1  ;;  %v9354_v29 = vld [vmem:[%s9918_s1 + $0xde8] sm:$0xff] }
 0x1b9   :  { %v5674_v28 = vrot.slane %v5673_v50, 1  ;;  %v5687_v40 = vadd.f32 %v5686_v9, %v5685_v43  ;;  %v5092_v14 = vadd.f32 %v5091_v41, %v5090_v49  ;;  %v6500_v4 = vcombine.low %v106_v61, %v138_v45  ;;  %v9359_v61 = vld [vmem:[%s9918_s1 + $0xae0] sm:$0xff] }
 0x1ba   :  { %4223 = vmatpush1.bf16.msra.mxu0 %v6564_v2  ;;  %v6502_v32 = vcombine.low %v107_v35, %v139_v25  ;;  %v6437_v1 = vcombine.high %v42_v24, %v74_v7  ;;  %v5682_v36 = vadd.f32 %v5681_v22, %v5680_v46  ;;  %v5099_v15 = vadd.f32 %v5098_v0, %v5097_v63  ;;  %v9364_v45 = vld [vmem:[%s9918_s1 + $0xbe0] sm:$0xff]  ;;  %v9370_v63 = vld [vmem:[%s9918_s1 + $0xae8] sm:$0xff] }
 0x1bb   :  { %v5675_v51 = vadd.f32 %v5674_v28, %v5673_v50  ;;  %v5688_v19 = vrot.slane %v5687_v40, 1  ;;  %4266 = vmatpush1.bf16.msra.mxu1 %v6566_v8  ;;  %4224 = vmatprep.subr.bf16.mxu0 %v6501_v26  ;;  %v5106_v62 = vadd.f32 %v5105_v27, %v5104_v37  ;;  %v6439_v18 = vcombine.high %v43_v48, %v75_v20  ;;  %v9380_v46 = vld [vmem:[%s9918_s1 + $0x8e0] sm:$0xff]  ;;  %v9392_v35 = vld [vmem:[%s9918_s1 + $0x8e8] sm:$0xff] }
 0x1bc   :  { %4267 = vmatprep.subr.bf16.mxu1 %v6503_v55  ;;  %v5967_v31 = vsel %vm5942_vm0, %v5092_v14, %v5668_v44  ;;  %v5113_v60 = vadd.f32 %v5112_v34, %v5111_v57  ;;  %v6436_v11 = vcombine.low %v42_v24, %v74_v7  ;;  %v6438_v56 = vcombine.low %v43_v48, %v75_v20  ;;  %v9387_v8 = vld [vmem:[%s9918_s1 + $0x9e0] sm:$0xff]  ;;  %v9397_v25 = vld [vmem:[%s9918_s1 + $0x9e8] sm:$0xff] }
 0x1bd   :  { %v5968_v2 = vsel %vm5942_vm0, %v5099_v15, %v5675_v51  ;;  %v5689_v16 = vadd.f32 %v5688_v19, %v5687_v40  ;;  %v5969_v17 = vsel %vm5942_vm0, %v5106_v62, %v5682_v36  ;;  %v6889_v49 = vcombine.high %v492_v59, %v524_v6  ;;  %v9408_v22 = vld [vmem:[%s9918_s1 + $0x6e0] sm:$0xff]  ;;  %v9427_v55 = vld [vmem:[%s9918_s1 + $0x6e8] sm:$0xff] }
 0x1be   :  { %v6173_v52 = vcombine.low %v5967_v31, %v5968_v2  ;;  %4225 = vmatpush1.bf16.msra.mxu0 %v6500_v4  ;;  %v6891_v13 = vcombine.high %v493_v21, %v525_v5  ;;  %v6888_v37 = vcombine.low %v492_v59, %v524_v6  ;;  %v6890_v38 = vcombine.low %v493_v21, %v525_v5  ;;  %v9413_v0 = vld [vmem:[%s9918_s1 + $0x7e0] sm:$0xff]  ;;  %v9432_v44 = vld [vmem:[%s9918_s1 + $0x7e8] sm:$0xff] }
 0x1bf   :  { %v5970_v12 = vsel %vm5942_vm0, %v5113_v60, %v5689_v16  ;;  %4268 = vmatpush1.bf16.msra.mxu1 %v6502_v32  ;;  %4226 = vmatprep.subr.bf16.mxu0 %v6437_v1  ;;  %v6825_v43 = vcombine.high %v9339_v53, %v9344_v23  ;;  %v6824_v10 = vcombine.low %v9339_v53, %v9344_v23  ;;  %v9447_v20 = vld [vmem:[%s9918_s1 + $0x4e0] sm:$0xff] }
 0x1c0   :  { %v6181_v42 = vrot.slane %v6173_v52, %v7987_v47  ;;  %v6174_v30 = vcombine.low %v5969_v17, %v5970_v12  ;;  %4269 = vmatprep.subr.bf16.mxu1 %v6439_v18  ;;  %v6826_v57 = vcombine.low %v9349_v39, %v9354_v29  ;;  %v6827_v26 = vcombine.high %v9349_v39, %v9354_v29  ;;  %v9452_v14 = vld [vmem:[%s9918_s1 + $0x5e0] sm:$0xff] }
 0x1c1   :  { %v6760_v9 = vcombine.low %v9359_v61, %v9364_v45  ;;  %v6761_v24 = vcombine.high %v9359_v61, %v9364_v45  ;;  %v6762_v7 = vcombine.low %v9370_v63, %v9375_v58  ;;  %v6763_v27 = vcombine.high %v9370_v63, %v9375_v58 }
 0x1c2   :  { %v6188_v33 = vrot.slane %v6174_v30, %v7987_v47  ;;  %4227 = vmatpush1.bf16.msra.mxu0 %v6436_v11  ;;  %v6696_v34 = vcombine.low %v9380_v46, %v9387_v8  ;;  %v6697_v40 = vcombine.high %v9380_v46, %v9387_v8  ;;  %v6698_v48 = vcombine.low %v9392_v35, %v9397_v25  ;;  %v140_v46 = vld [vmem:[%s9918_s1 + $0x3e0] sm:$0xff] }
 0x1c3   :  { %4270 = vmatpush1.bf16.msra.mxu1 %v6438_v56  ;;  %4298 = vmatprep.subr.bf16.mxu0 %v6889_v49  ;;  %v6699_v32 = vcombine.high %v9392_v35, %v9397_v25  ;;  %v6632_v1 = vcombine.low %v9408_v22, %v9413_v0  ;;  %v6633_v36 = vcombine.high %v9408_v22, %v9413_v0  ;;  %v76_v22 = vld [vmem:[%s9918_s1 + $0x1e0] sm:$0xff] }
 0x1c4   :  { %v6189_v41 = vcombine.low %v6181_v42, %v6188_v33  ;;  %4341 = vmatprep.subr.bf16.mxu1 %v6891_v13  ;;  %v6634_v19 = vcombine.low %v9427_v55, %v9432_v44  ;;  %v6635_v62 = vcombine.high %v9427_v55, %v9432_v44  ;;  %v6568_v31 = vcombine.low %v9447_v20, %v9452_v14  ;;  %v45_v44 = vld [vmem:[%s9918_s1 + $0xe8] sm:$0xff] }
 0x1c5   :  { %v3730_v50 = vpop.f32.mrf.mxu0  ;;  %4245 = vmatmul.mubr.bf16.vlgmr.msra.gmra.mxu0 %v9193_v54  ;;  %v6569_v2 = vcombine.high %v9447_v20, %v9452_v14  ;;  %v526_v20 = vld [vmem:[%s9918_s1 + $0xff0] sm:$0xff] }
 0x1c6   :  { %6365 = vst [vmem:[%s9921_s3 + $0x30] sm:$0xff] %v6189_v41  ;;  %v3773_v28 = vpop.f32.mrf.mxu1  ;;  %4288 = vmatmul.mubr.bf16.vlgmr.msra.gmra.mxu1 %v9193_v54  ;;  %4299 = vmatpush1.bf16.msra.mxu0 %v6888_v37  ;;  %v5394_v18 = vmul.f32 %v3730_v50, %v3730_v50 }
 0x1c7   :  { %4342 = vmatpush1.bf16.msra.mxu1 %v6890_v38  ;;  %v3732_v4 = vpop.f32.mrf.mxu0  ;;  %4300 = vmatprep.subr.bf16.mxu0 %v6825_v43  ;;  %v5396_v60 = vmul.f32 %v3773_v28, %v3773_v28 }
 0x1c8   :  { %v6974_v15 = vpack.c.bf16 %v3732_v4, %v3730_v50  ;;  %v3775_v51 = vpop.f32.mrf.mxu1  ;;  %4343 = vmatprep.subr.bf16.mxu1 %v6827_v26  ;;  %4330 = vmatprep.mubr.bf16.mxu0 %v7031_v3  ;;  %v5395_v16 = vmul.f32 %v3732_v4, %v3732_v4 }
 0x1c9   :  { %v6975_v59 = vpack.c.bf16 %v3775_v51, %v3773_v28  ;;  %v3734_v6 = vpop.f32.mrf.mxu0  ;;  %4373 = vmatprep.mubr.bf16.mxu1 %v7031_v3  ;;  %v5397_v11 = vmul.f32 %v3775_v51, %v3775_v51 }
 0x1ca   :  { %4868 = vst [vmem:[%s9920_s2 + $0x70] sm:$0xff] %v6974_v15  ;;  %v5114_v21 = vadd.f32 %v3734_v6, %v3730_v50  ;;  %v5458_v5 = vmul.f32 %v3734_v6, %v3734_v6  ;;  %v3777_v52 = vpop.f32.mrf.mxu1  ;;  %4301 = vmatpush1.bf16.msra.mxu0 %v6824_v10 }
 0x1cb   :  { %4869 = vst [vmem:[%s9920_s2 + $0x78] sm:$0xff] %v6975_v59  ;;  %v5128_v56 = vadd.f32 %v3777_v52, %v3773_v28  ;;  %v5460_v17 = vmul.f32 %v3777_v52, %v3777_v52  ;;  %4344 = vmatpush1.bf16.msra.mxu1 %v6826_v57  ;;  %v3736_v12 = vpop.f32.mrf.mxu0  ;;  %4302 = vmatprep.subr.bf16.mxu0 %v6761_v24  ;;  %v205_v28 = vld [vmem:[%s9918_s1 + $0x5e8] sm:$0xff] }
 0x1cc   :  { %v5115_v49 = vrot.slane %v5114_v21, 4  ;;  %v5690_v42 = vadd.f32 %v5458_v5, %v5394_v18  ;;  %v7006_v30 = vpack.c.bf16 %v3736_v12, %v3734_v6  ;;  %v5121_v13 = vadd.f32 %v3736_v12, %v3732_v4  ;;  %v3779_v53 = vpop.f32.mrf.mxu1  ;;  %4345 = vmatprep.subr.bf16.mxu1 %v6763_v27 }
 0x1cd   :  { %v5129_v23 = vrot.slane %v5128_v56, 4  ;;  %v5704_v39 = vadd.f32 %v5460_v17, %v5396_v60  ;;  %v5459_v29 = vmul.f32 %v3736_v12, %v3736_v12  ;;  %v7007_v61 = vpack.c.bf16 %v3779_v53, %v3777_v52  ;;  %v109_v52 = vld [vmem:[%s9918_s1 + $0x2e8] sm:$0xff] }
 0x1ce   :  { %v5116_v45 = vadd.f32 %v5115_v49, %v5114_v21  ;;  %v5691_v33 = vrot.slane %v5690_v42, 4  ;;  %4900 = vst [vmem:[%s9920_s2 + $0x170] sm:$0xff] %v7006_v30  ;;  %v5122_v37 = vrot.slane %v5121_v13, 4  ;;  %v5135_v38 = vadd.f32 %v3779_v53, %v3775_v51  ;;  %4303 = vmatpush1.bf16.msra.mxu0 %v6760_v9  ;;  %v173_v9 = vld [vmem:[%s9918_s1 + $0x4e8] sm:$0xff] }
 0x1cf   :  { %v5130_v43 = vadd.f32 %v5129_v23, %v5128_v56  ;;  %v5705_v41 = vrot.slane %v5704_v39, 4  ;;  %v5697_v10 = vadd.f32 %v5459_v29, %v5395_v16  ;;  %4901 = vst [vmem:[%s9920_s2 + $0x178] sm:$0xff] %v7007_v61  ;;  %v5461_v57 = vmul.f32 %v3779_v53, %v3779_v53  ;;  %4346 = vmatpush1.bf16.msra.mxu1 %v6762_v7  ;;  %v108_v16 = vld [vmem:[%s9918_s1 + $0x2e0] sm:$0xff] }
 0x1d0   :  { %4304 = vmatprep.subr.bf16.mxu0 %v6697_v40  ;;  %v5117_v26 = vrot.slane %v5116_v45, 2  ;;  %v5692_v50 = vadd.f32 %v5691_v33, %v5690_v42  ;;  %v5123_v24 = vadd.f32 %v5122_v37, %v5121_v13  ;;  %v5136_v27 = vrot.slane %v5135_v38, 4  ;;  %4347 = vmatprep.subr.bf16.mxu1 %v6699_v32  ;;  %v44_v53 = vld [vmem:[%s9918_s1 + $0xe0] sm:$0xff] }
 0x1d1   :  { %v5131_v4 = vrot.slane %v5130_v43, 2  ;;  %v5706_v15 = vadd.f32 %v5705_v41, %v5704_v39  ;;  %v5698_v51 = vrot.slane %v5697_v10, 4  ;;  %v5711_v18 = vadd.f32 %v5461_v57, %v5397_v11  ;;  %v141_v11 = vld [vmem:[%s9918_s1 + $0x3e8] sm:$0xff] }
 0x1d2   :  { %v5118_v63 = vadd.f32 %v5117_v26, %v5116_v45  ;;  %v5693_v58 = vrot.slane %v5692_v50, 2  ;;  %v5124_v7 = vrot.slane %v5123_v24, 2  ;;  %v5137_v40 = vadd.f32 %v5136_v27, %v5135_v38  ;;  %4305 = vmatpush1.bf16.msra.mxu0 %v6696_v34  ;;  %v494_v26 = vld [vmem:[%s9918_s1 + $0xef0] sm:$0xff]  ;;  %v495_v27 = vld [vmem:[%s9918_s1 + $0xef8] sm:$0xff] }
 0x1d3   :  { %v5707_v32 = vrot.slane %v5706_v15, 2  ;;  %v5699_v59 = vadd.f32 %v5698_v51, %v5697_v10  ;;  %v5712_v6 = vrot.slane %v5711_v18, 4  ;;  %4348 = vmatpush1.bf16.msra.mxu1 %v6698_v48  ;;  %4306 = vmatprep.subr.bf16.mxu0 %v6633_v36  ;;  %v6571_v60 = vcombine.high %v173_v9, %v205_v28 }
 0x1d4   :  { %v5694_v8 = vadd.f32 %v5693_v58, %v5692_v50  ;;  %v5132_v34 = vadd.f32 %v5131_v4, %v5130_v43  ;;  %v5125_v21 = vadd.f32 %v5124_v7, %v5123_v24  ;;  %v5138_v5 = vrot.slane %v5137_v40, 2  ;;  %4349 = vmatprep.subr.bf16.mxu1 %v6635_v62 }
 0x1d5   :  { %v5708_v35 = vadd.f32 %v5707_v32, %v5706_v15  ;;  %v5700_v25 = vrot.slane %v5699_v59, 2  ;;  %v5713_v48 = vadd.f32 %v5712_v6, %v5711_v18  ;;  %v6570_v36 = vcombine.low %v173_v9, %v205_v28  ;;  %v527_v9 = vld [vmem:[%s9918_s1 + $0xff8] sm:$0xff]  ;;  %v9559_v32 = vld [vmem:[%s9918_s1 + $0xcf0] sm:$0xff] }
 0x1d6   :  { %v5119_v56 = vrot.slane %v5118_v63, 1  ;;  %v5695_v17 = vrot.slane %v5694_v8, 1  ;;  %v5139_v12 = vadd.f32 %v5138_v5, %v5137_v40  ;;  %4307 = vmatpush1.bf16.msra.mxu0 %v6632_v1  ;;  %v6505_v62 = vcombine.high %v108_v16, %v140_v46  ;;  %v9569_v6 = vld [vmem:[%s9918_s1 + $0xcf8] sm:$0xff] }
 0x1d7   :  { %v5709_v49 = vrot.slane %v5708_v35, 1  ;;  %v5126_v42 = vrot.slane %v5125_v21, 1  ;;  %v5701_v30 = vadd.f32 %v5700_v25, %v5699_v59  ;;  %v5714_v13 = vrot.slane %v5713_v48, 2  ;;  %4350 = vmatpush1.bf16.msra.mxu1 %v6634_v19  ;;  %4308 = vmatprep.subr.bf16.mxu0 %v6569_v2  ;;  %v77_v19 = vld [vmem:[%s9918_s1 + $0x1e8] sm:$0xff]  ;;  %v9564_v59 = vld [vmem:[%s9918_s1 + $0xdf0] sm:$0xff]  ;;  %v9595_v5 = vld [vmem:[%s9918_s1 + $0xbf8] sm:$0xff] }
 0x1d8   :  { %v5133_v0 = vrot.slane %v5132_v34, 1  ;;  %4351 = vmatprep.subr.bf16.mxu1 %v6571_v60  ;;  %v6507_v1 = vcombine.high %v109_v52, %v141_v11  ;;  %v5696_v23 = vadd.f32 %v5695_v17, %v5694_v8  ;;  %v5140_v29 = vrot.slane %v5139_v12, 1  ;;  %v9574_v60 = vld [vmem:[%s9918_s1 + $0xdf8] sm:$0xff] }
 0x1d9   :  { %v5702_v39 = vrot.slane %v5701_v30, 1  ;;  %v5715_v55 = vadd.f32 %v5714_v13, %v5713_v48  ;;  %v5120_v2 = vadd.f32 %v5119_v56, %v5118_v63  ;;  %v6504_v61 = vcombine.low %v108_v16, %v140_v46  ;;  %v9579_v16 = vld [vmem:[%s9918_s1 + $0xaf0] sm:$0xff] }
 0x1da   :  { %4309 = vmatpush1.bf16.msra.mxu0 %v6568_v31  ;;  %v6506_v45 = vcombine.low %v109_v52, %v141_v11  ;;  %v6441_v33 = vcombine.high %v44_v53, %v76_v22  ;;  %v5710_v37 = vadd.f32 %v5709_v49, %v5708_v35  ;;  %v5127_v38 = vadd.f32 %v5126_v42, %v5125_v21  ;;  %v9584_v46 = vld [vmem:[%s9918_s1 + $0xbf0] sm:$0xff]  ;;  %v9590_v21 = vld [vmem:[%s9918_s1 + $0xaf8] sm:$0xff] }
 0x1db   :  { %v5703_v43 = vadd.f32 %v5702_v39, %v5701_v30  ;;  %v5716_v41 = vrot.slane %v5715_v55, 1  ;;  %4352 = vmatpush1.bf16.msra.mxu1 %v6570_v36  ;;  %4310 = vmatprep.subr.bf16.mxu0 %v6505_v62  ;;  %v5134_v10 = vadd.f32 %v5133_v0, %v5132_v34  ;;  %v6443_v57 = vcombine.high %v45_v44, %v77_v19  ;;  %v9600_v35 = vld [vmem:[%s9918_s1 + $0x8f0] sm:$0xff]  ;;  %v9612_v52 = vld [vmem:[%s9918_s1 + $0x8f8] sm:$0xff] }
 0x1dc   :  { %4353 = vmatprep.subr.bf16.mxu1 %v6507_v1  ;;  %v5971_v14 = vsel %vm5942_vm0, %v5120_v2, %v5696_v23  ;;  %v5141_v50 = vadd.f32 %v5140_v29, %v5139_v12  ;;  %v6440_v4 = vcombine.low %v44_v53, %v76_v22  ;;  %v6442_v15 = vcombine.low %v45_v44, %v77_v19  ;;  %v9607_v36 = vld [vmem:[%s9918_s1 + $0x9f0] sm:$0xff]  ;;  %v9617_v11 = vld [vmem:[%s9918_s1 + $0x9f8] sm:$0xff] }
 0x1dd   :  { %v5972_v31 = vsel %vm5942_vm0, %v5127_v38, %v5703_v43  ;;  %v5717_v24 = vadd.f32 %v5716_v41, %v5715_v55  ;;  %v5973_v51 = vsel %vm5942_vm0, %v5134_v10, %v5710_v37  ;;  %v6893_v63 = vcombine.high %v494_v26, %v526_v20  ;;  %v9628_v49 = vld [vmem:[%s9918_s1 + $0x6f0] sm:$0xff]  ;;  %v9647_v1 = vld [vmem:[%s9918_s1 + $0x6f8] sm:$0xff] }
 0x1de   :  { %v6190_v28 = vcombine.low %v5971_v14, %v5972_v31  ;;  %4311 = vmatpush1.bf16.msra.mxu0 %v6504_v61  ;;  %v6895_v40 = vcombine.high %v495_v27, %v527_v9  ;;  %v6892_v34 = vcombine.low %v494_v26, %v526_v20  ;;  %v6894_v25 = vcombine.low %v495_v27, %v527_v9  ;;  %v9633_v42 = vld [vmem:[%s9918_s1 + $0x7f0] sm:$0xff]  ;;  %v9652_v23 = vld [vmem:[%s9918_s1 + $0x7f8] sm:$0xff] }
 0x1df   :  { %v5974_v18 = vsel %vm5942_vm0, %v5141_v50, %v5717_v24  ;;  %4354 = vmatpush1.bf16.msra.mxu1 %v6506_v45  ;;  %4312 = vmatprep.subr.bf16.mxu0 %v6441_v33  ;;  %v6829_v48 = vcombine.high %v9559_v32, %v9564_v59  ;;  %v6828_v17 = vcombine.low %v9559_v32, %v9564_v59  ;;  %v9667_v19 = vld [vmem:[%s9918_s1 + $0x4f0] sm:$0xff] }
 0x1e0   :  { %v6198_v58 = vrot.slane %v6190_v28, %v7987_v47  ;;  %v6191_v7 = vcombine.low %v5973_v51, %v5974_v18  ;;  %4355 = vmatprep.subr.bf16.mxu1 %v6443_v57  ;;  %v6830_v12 = vcombine.low %v9569_v6, %v9574_v60  ;;  %v6831_v62 = vcombine.high %v9569_v6, %v9574_v60  ;;  %v9672_v2 = vld [vmem:[%s9918_s1 + $0x5f0] sm:$0xff] }
 0x1e1   :  { %v6764_v13 = vcombine.low %v9579_v16, %v9584_v46  ;;  %v6765_v53 = vcombine.high %v9579_v16, %v9584_v46  ;;  %v6766_v22 = vcombine.low %v9590_v21, %v9595_v5  ;;  %v6767_v0 = vcombine.high %v9590_v21, %v9595_v5 }
 0x1e2   :  { %v6205_v8 = vrot.slane %v6191_v7, %v7987_v47  ;;  %4313 = vmatpush1.bf16.msra.mxu0 %v6440_v4  ;;  %v6700_v29 = vcombine.low %v9600_v35, %v9607_v36  ;;  %v6701_v55 = vcombine.high %v9600_v35, %v9607_v36  ;;  %v6702_v44 = vcombine.low %v9612_v52, %v9617_v11  ;;  %v142_v35 = vld [vmem:[%s9918_s1 + $0x3f0] sm:$0xff] }
 0x1e3   :  { %4356 = vmatpush1.bf16.msra.mxu1 %v6442_v15  ;;  %4384 = vmatprep.subr.bf16.mxu0 %v6893_v63  ;;  %v6703_v61 = vcombine.high %v9612_v52, %v9617_v11  ;;  %v6636_v45 = vcombine.low %v9628_v49, %v9633_v42  ;;  %v6637_v33 = vcombine.high %v9628_v49, %v9633_v42  ;;  %v78_v49 = vld [vmem:[%s9918_s1 + $0x1f0] sm:$0xff] }
 0x1e4   :  { %v6206_v56 = vcombine.low %v6198_v58, %v6205_v8  ;;  %4427 = vmatprep.subr.bf16.mxu1 %v6895_v40  ;;  %v6638_v43 = vcombine.low %v9647_v1, %v9652_v23  ;;  %v6639_v41 = vcombine.high %v9647_v1, %v9652_v23  ;;  %v6572_v20 = vcombine.low %v9667_v19, %v9672_v2  ;;  %v47_v23 = vld [vmem:[%s9918_s1 + $0xf8] sm:$0xff] }
 0x1e5   :  { %v3816_v30 = vpop.f32.mrf.mxu0  ;;  %4331 = vmatmul.mubr.bf16.vlgmr.msra.gmra.mxu0 %v9193_v54  ;;  %v6573_v14 = vcombine.high %v9667_v19, %v9672_v2 }
 0x1e6   :  { %6366 = vst [vmem:[%s9921_s3 + $0x38] sm:$0xff] %v6206_v56  ;;  %v3859_v39 = vpop.f32.mrf.mxu1  ;;  %4374 = vmatmul.mubr.bf16.vlgmr.msra.gmra.mxu1 %v9193_v54  ;;  %4385 = vmatpush1.bf16.msra.mxu0 %v6892_v34  ;;  %v5398_v10 = vmul.f32 %v3816_v30, %v3816_v30 }
 0x1e7   :  { %4428 = vmatpush1.bf16.msra.mxu1 %v6894_v25  ;;  %v3818_v54 = vpop.f32.mrf.mxu0  ;;  %4386 = vmatprep.subr.bf16.mxu0 %v6829_v48  ;;  %v5400_v31 = vmul.f32 %v3859_v39, %v3859_v39 }
 0x1e8   :  { %v6976_v37 = vpack.c.bf16 %v3818_v54, %v3816_v30  ;;  %v3861_v38 = vpop.f32.mrf.mxu1  ;;  %4429 = vmatprep.subr.bf16.mxu1 %v6831_v62  ;;  %4416 = vmatprep.mubr.bf16.mxu0 %v7031_v3  ;;  %v5399_v50 = vmul.f32 %v3818_v54, %v3818_v54 }
 0x1e9   :  { %v6977_v57 = vpack.c.bf16 %v3861_v38, %v3859_v39  ;;  %v3820_v26 = vpop.f32.mrf.mxu0  ;;  %4459 = vmatprep.mubr.bf16.mxu1 %v7031_v3  ;;  %v5401_v28 = vmul.f32 %v3861_v38, %v3861_v38 }
 0x1ea   :  { %4870 = vst [vmem:[%s9920_s2 + $0x80] sm:$0xff] %v6976_v37  ;;  %v5142_v24 = vadd.f32 %v3820_v26, %v3816_v30  ;;  %v5462_v27 = vmul.f32 %v3820_v26, %v3820_v26  ;;  %v3863_v9 = vpop.f32.mrf.mxu1  ;;  %4387 = vmatpush1.bf16.msra.mxu0 %v6828_v17 }
 0x1eb   :  { %4871 = vst [vmem:[%s9920_s2 + $0x88] sm:$0xff] %v6977_v57  ;;  %v5156_v4 = vadd.f32 %v3863_v9, %v3859_v39  ;;  %v5464_v15 = vmul.f32 %v3863_v9, %v3863_v9  ;;  %4430 = vmatpush1.bf16.msra.mxu1 %v6830_v12  ;;  %v3822_v51 = vpop.f32.mrf.mxu0  ;;  %4388 = vmatprep.subr.bf16.mxu0 %v6765_v53  ;;  %v207_v53 = vld [vmem:[%s9918_s1 + $0x5f8] sm:$0xff] }
 0x1ec   :  { %v5143_v3 = vrot.slane %v5142_v24, 4  ;;  %v5718_v18 = vadd.f32 %v5462_v27, %v5398_v10  ;;  %v7008_v63 = vpack.c.bf16 %v3822_v51, %v3820_v26  ;;  %v5149_v58 = vadd.f32 %v3822_v51, %v3818_v54  ;;  %v3865_v7 = vpop.f32.mrf.mxu1  ;;  %4431 = vmatprep.subr.bf16.mxu1 %v6767_v0  ;;  %v110_v26 = vld [vmem:[%s9918_s1 + $0x2f0] sm:$0xff]  ;;  %v143_v27 = vld [vmem:[%s9918_s1 + $0x3f8] sm:$0xff] }
 0x1ed   :  { %v5157_v40 = vrot.slane %v5156_v4, 4  ;;  %v5732_v32 = vadd.f32 %v5464_v15, %v5400_v31  ;;  %v5463_v59 = vmul.f32 %v3822_v51, %v3822_v51  ;;  %v7009_v6 = vpack.c.bf16 %v3865_v7, %v3863_v9 }
 0x1ee   :  { %v5144_v60 = vadd.f32 %v5143_v3, %v5142_v24  ;;  %v5719_v16 = vrot.slane %v5718_v18, 4  ;;  %4902 = vst [vmem:[%s9920_s2 + $0x180] sm:$0xff] %v7008_v63  ;;  %v5150_v46 = vrot.slane %v5149_v58, 4  ;;  %v5163_v8 = vadd.f32 %v3865_v7, %v3861_v38  ;;  %4389 = vmatpush1.bf16.msra.mxu0 %v6764_v13  ;;  %v175_v13 = vld [vmem:[%s9918_s1 + $0x4f8] sm:$0xff]  ;;  %v46_v63 = vld [vmem:[%s9918_s1 + $0xf0] sm:$0xff] }
 0x1ef   :  { %v5158_v34 = vadd.f32 %v5157_v40, %v5156_v4  ;;  %v5733_v25 = vrot.slane %v5732_v32, 4  ;;  %v5725_v48 = vadd.f32 %v5463_v59, %v5399_v50  ;;  %4903 = vst [vmem:[%s9920_s2 + $0x188] sm:$0xff] %v7009_v6  ;;  %v5465_v56 = vmul.f32 %v3865_v7, %v3865_v7  ;;  %4432 = vmatpush1.bf16.msra.mxu1 %v6766_v22  ;;  %v111_v24 = vld [vmem:[%s9918_s1 + $0x2f8] sm:$0xff] }
 0x1f0   :  { %4390 = vmatprep.subr.bf16.mxu0 %v6701_v55  ;;  %v5145_v17 = vrot.slane %v5144_v60, 2  ;;  %v5720_v12 = vadd.f32 %v5719_v16, %v5718_v18  ;;  %v5151_v62 = vadd.f32 %v5150_v46, %v5149_v58  ;;  %v5164_v30 = vrot.slane %v5163_v8, 4  ;;  %4433 = vmatprep.subr.bf16.mxu1 %v6703_v61 }
 0x1f1   :  { %v5159_v0 = vrot.slane %v5158_v34, 2  ;;  %v5734_v39 = vadd.f32 %v5733_v25, %v5732_v32  ;;  %v5726_v54 = vrot.slane %v5725_v48, 4  ;;  %v5739_v37 = vadd.f32 %v5465_v56, %v5401_v28 }
 0x1f2   :  { %v5146_v21 = vadd.f32 %v5145_v17, %v5144_v60  ;;  %v5721_v5 = vrot.slane %v5720_v12, 2  ;;  %v5152_v22 = vrot.slane %v5151_v62, 2  ;;  %v5165_v55 = vadd.f32 %v5164_v30, %v5163_v8  ;;  %4391 = vmatpush1.bf16.msra.mxu0 %v6700_v29 }
 0x1f3   :  { %v5735_v61 = vrot.slane %v5734_v39, 2  ;;  %v5727_v38 = vadd.f32 %v5726_v54, %v5725_v48  ;;  %v5740_v10 = vrot.slane %v5739_v37, 4  ;;  %4434 = vmatpush1.bf16.msra.mxu1 %v6702_v44  ;;  %4392 = vmatprep.subr.bf16.mxu0 %v6637_v33  ;;  %v6575_v57 = vcombine.high %v175_v13, %v207_v53 }
 0x1f4   :  { %v5722_v36 = vadd.f32 %v5721_v5, %v5720_v12  ;;  %v5160_v29 = vadd.f32 %v5159_v0, %v5158_v34  ;;  %v5153_v31 = vadd.f32 %v5152_v22, %v5151_v62  ;;  %v5166_v50 = vrot.slane %v5165_v55, 2  ;;  %4435 = vmatprep.subr.bf16.mxu1 %v6639_v41 }
 0x1f5   :  { %v5736_v52 = vadd.f32 %v5735_v61, %v5734_v39  ;;  %v5728_v11 = vrot.slane %v5727_v38, 2  ;;  %v5741_v44 = vadd.f32 %v5740_v10, %v5739_v37  ;;  %v6574_v33 = vcombine.low %v175_v13, %v207_v53  ;;  %v7030_v37 = vld [vmem:[%s9919_s0] sm:$0xff]  }
 0x1f6   :  { %v5147_v9 = vrot.slane %v5146_v21, 1  ;;  %v5723_v28 = vrot.slane %v5722_v36, 1  ;;  %v5167_v4 = vadd.f32 %v5166_v50, %v5165_v55  ;;  %4393 = vmatpush1.bf16.msra.mxu0 %v6636_v45  ;;  %v6509_v41 = vcombine.high %v110_v26, %v142_v35 }
 0x1f7   :  { %v5737_v15 = vrot.slane %v5736_v52, 1  ;;  %v5154_v51 = vrot.slane %v5153_v31, 1  ;;  %v5729_v3 = vadd.f32 %v5728_v11, %v5727_v38  ;;  %v5742_v18 = vrot.slane %v5741_v44, 2  ;;  %4436 = vmatpush1.bf16.msra.mxu1 %v6638_v43  ;;  %4394 = vmatprep.subr.bf16.mxu0 %v6573_v14  ;;  %v79_v43 = vld [vmem:[%s9918_s1 + $0x1f8] sm:$0xff] }
 0x1f8   :  { %v5161_v42 = vrot.slane %v5160_v29, 1  ;;  %4437 = vmatprep.subr.bf16.mxu1 %v6575_v57  ;;  %v6511_v45 = vcombine.high %v111_v24, %v143_v27  ;;  %v5724_v58 = vadd.f32 %v5723_v28, %v5722_v36  ;;  %v5168_v40 = vrot.slane %v5167_v4, 1 }
 0x1f9   :  { %v5730_v7 = vrot.slane %v5729_v3, 1  ;;  %v5743_v1 = vadd.f32 %v5742_v18, %v5741_v44  ;;  %v5148_v14 = vadd.f32 %v5147_v9, %v5146_v21  ;;  %v6508_v32 = vcombine.low %v110_v26, %v142_v35 }
 0x1fa   :  { %4395 = vmatpush1.bf16.msra.mxu0 %v6572_v20  ;;  %v6510_v59 = vcombine.low %v111_v24, %v143_v27  ;;  %v6445_v6 = vcombine.high %v46_v63, %v78_v49  ;;  %v5738_v60 = vadd.f32 %v5737_v15, %v5736_v52  ;;  %v5155_v16 = vadd.f32 %v5154_v51, %v5153_v31 }
 0x1fb   :  { %v5731_v46 = vadd.f32 %v5730_v7, %v5729_v3  ;;  %v5744_v8 = vrot.slane %v5743_v1, 1  ;;  %4438 = vmatpush1.bf16.msra.mxu1 %v6574_v33  ;;  %4396 = vmatprep.subr.bf16.mxu0 %v6509_v41  ;;  %v5162_v34 = vadd.f32 %v5161_v42, %v5160_v29  ;;  %v6447_v25 = vcombine.high %v47_v23, %v79_v43 }
 0x1fc   :  { %4439 = vmatprep.subr.bf16.mxu1 %v6511_v45  ;;  %v5975_v48 = vsel %vm5942_vm0, %v5148_v14, %v5724_v58  ;;  %v5169_v17 = vadd.f32 %v5168_v40, %v5167_v4  ;;  %v6444_v2 = vcombine.low %v46_v63, %v78_v49  ;;  %v6446_v30 = vcombine.low %v47_v23, %v79_v43 }
 0x1fd   :  { %v5976_v56 = vsel %vm5942_vm0, %v5155_v16, %v5731_v46  ;;  %v5745_v12 = vadd.f32 %v5744_v8, %v5743_v1  ;;  %v5977_v20 = vsel %vm5942_vm0, %v5162_v34, %v5738_v60 }
 0x1fe   :  { %v6207_v19 = vcombine.low %v5975_v48, %v5976_v56  ;;  %4397 = vmatpush1.bf16.msra.mxu0 %v6508_v32 }
 0x1ff   :  { %v5978_v62 = vsel %vm5942_vm0, %v5169_v17, %v5745_v12  ;;  %4440 = vmatpush1.bf16.msra.mxu1 %v6510_v59  ;;  %4398 = vmatprep.subr.bf16.mxu0 %v6445_v6 }
 0x200   :  { %v6215_v13 = vrot.slane %v6207_v19, %v7987_v47  ;;  %v6208_v53 = vcombine.low %v5977_v20, %v5978_v62  ;;  %4441 = vmatprep.subr.bf16.mxu1 %v6447_v25 }
 0x202   :  { %v6222_v0 = vrot.slane %v6208_v53, %v7987_v47  ;;  %4399 = vmatpush1.bf16.msra.mxu0 %v6444_v2 }
 0x203   :  { %4442 = vmatpush1.bf16.msra.mxu1 %v6446_v30 }
 0x204   :  { %v6223_v39 = vcombine.low %v6215_v13, %v6222_v0 }
 0x205   :  { %v3902_v54 = vpop.f32.mrf.mxu0  ;;  %4417 = vmatmul.mubr.bf16.vlgmr.msra.gmra.mxu0 %v7030_v37 }
 0x206   :  { %6367 = vst [vmem:[%s9921_s3 + $0x40] sm:$0xff] %v6223_v39  ;;  %v3945_v21 = vpop.f32.mrf.mxu1  ;;  %4460 = vmatmul.mubr.bf16.vlgmr.msra.gmra.mxu1 %v7030_v37  ;;  %v5402_v10 = vmul.f32 %v3902_v54, %v3902_v54 }
 0x207   :  { %v3904_v5 = vpop.f32.mrf.mxu0  ;;  %v5404_v57 = vmul.f32 %v3945_v21, %v3945_v21 }
 0x208   :  { %v6978_v22 = vpack.c.bf16 %v3904_v5, %v3902_v54  ;;  %v3947_v55 = vpop.f32.mrf.mxu1  ;;  %v5403_v29 = vmul.f32 %v3904_v5, %v3904_v5 }
 0x209   :  { %v6979_v61 = vpack.c.bf16 %v3947_v55, %v3945_v21  ;;  %v3906_v38 = vpop.f32.mrf.mxu0  ;;  %v5405_v31 = vmul.f32 %v3947_v55, %v3947_v55 }
 0x20a   :  { %4872 = vst [vmem:[%s9920_s2 + $0x90] sm:$0xff] %v6978_v22  ;;  %v5170_v26 = vadd.f32 %v3906_v38, %v3902_v54  ;;  %v5466_v35 = vmul.f32 %v3906_v38, %v3906_v38  ;;  %v3949_v36 = vpop.f32.mrf.mxu1 }
 0x20b   :  { %4873 = vst [vmem:[%s9920_s2 + $0x98] sm:$0xff] %v6979_v61  ;;  %v5184_v50 = vadd.f32 %v3949_v36, %v3945_v21  ;;  %v5468_v52 = vmul.f32 %v3949_v36, %v3949_v36  ;;  %v3908_v11 = vpop.f32.mrf.mxu0 }
 0x20c   :  { %v5171_v44 = vrot.slane %v5170_v26, 4  ;;  %v5746_v33 = vadd.f32 %v5466_v35, %v5402_v10  ;;  %v7010_v24 = vpack.c.bf16 %v3908_v11, %v3906_v38  ;;  %v5177_v27 = vadd.f32 %v3908_v11, %v3904_v5  ;;  %v3951_v9 = vpop.f32.mrf.mxu1 }
 0x20d   :  { %v5185_v28 = vrot.slane %v5184_v50, 4  ;;  %v5760_v4 = vadd.f32 %v5468_v52, %v5404_v57  ;;  %v5467_v41 = vmul.f32 %v3908_v11, %v3908_v11  ;;  %v7011_v15 = vpack.c.bf16 %v3951_v9, %v3949_v36 }
 0x20e   :  { %v5172_v51 = vadd.f32 %v5171_v44, %v5170_v26  ;;  %v5747_v3 = vrot.slane %v5746_v33, 4  ;;  %4904 = vst [vmem:[%s9920_s2 + $0x190] sm:$0xff] %v7010_v24  ;;  %v5178_v18 = vrot.slane %v5177_v27, 4  ;;  %v5191_v63 = vadd.f32 %v3951_v9, %v3947_v55 }
 0x20f   :  { %v5186_v49 = vadd.f32 %v5185_v28, %v5184_v50  ;;  %v5761_v42 = vrot.slane %v5760_v4, 4  ;;  %v5753_v45 = vadd.f32 %v5467_v41, %v5403_v29  ;;  %4905 = vst [vmem:[%s9920_s2 + $0x198] sm:$0xff] %v7011_v15  ;;  %v5469_v58 = vmul.f32 %v3951_v9, %v3951_v9 }
 0x210   :  { %v5173_v7 = vrot.slane %v5172_v51, 2  ;;  %v5748_v40 = vadd.f32 %v5747_v3, %v5746_v33  ;;  %v5179_v1 = vadd.f32 %v5178_v18, %v5177_v27  ;;  %v5192_v23 = vrot.slane %v5191_v63, 4 }
 0x211   :  { %v5187_v43 = vrot.slane %v5186_v49, 2  ;;  %v5762_v14 = vadd.f32 %v5761_v42, %v5760_v4  ;;  %v5754_v32 = vrot.slane %v5753_v45, 4  ;;  %v5767_v59 = vadd.f32 %v5469_v58, %v5405_v31 }
 0x212   :  { %v5174_v6 = vadd.f32 %v5173_v7, %v5172_v51  ;;  %v5749_v60 = vrot.slane %v5748_v40, 2  ;;  %v5180_v16 = vrot.slane %v5179_v1, 2  ;;  %v5193_v46 = vadd.f32 %v5192_v23, %v5191_v63 }
 0x213   :  { %v5763_v8 = vrot.slane %v5762_v14, 2  ;;  %v5755_v34 = vadd.f32 %v5754_v32, %v5753_v45  ;;  %v5768_v25 = vrot.slane %v5767_v59, 4  ;;  %v5188_v56 = vadd.f32 %v5187_v43, %v5186_v49 }
 0x214   :  { %v5750_v48 = vadd.f32 %v5749_v60, %v5748_v40  ;;  %v5181_v17 = vadd.f32 %v5180_v16, %v5179_v1  ;;  %v5194_v12 = vrot.slane %v5193_v46, 2  ;;  %v5175_v62 = vrot.slane %v5174_v6, 1 }
 0x215   :  { %v5764_v19 = vadd.f32 %v5763_v8, %v5762_v14  ;;  %v5756_v2 = vrot.slane %v5755_v34, 2  ;;  %v5769_v20 = vadd.f32 %v5768_v25, %v5767_v59  ;;  %v5189_v37 = vrot.slane %v5188_v56, 1 }
 0x216   :  { %v5751_v30 = vrot.slane %v5750_v48, 1  ;;  %v5195_v13 = vadd.f32 %v5194_v12, %v5193_v46  ;;  %v5182_v0 = vrot.slane %v5181_v17, 1  ;;  %v5176_v61 = vadd.f32 %v5175_v62, %v5174_v6 }
 0x217   :  { %v5765_v53 = vrot.slane %v5764_v19, 1  ;;  %v5757_v39 = vadd.f32 %v5756_v2, %v5755_v34  ;;  %v5770_v54 = vrot.slane %v5769_v20, 2  ;;  %v5190_v35 = vadd.f32 %v5189_v37, %v5188_v56 }
 0x218   :  { %v5752_v21 = vadd.f32 %v5751_v30, %v5750_v48  ;;  %v5196_v22 = vrot.slane %v5195_v13, 1  ;;  %v5183_v10 = vadd.f32 %v5182_v0, %v5181_v17 }
 0x219   :  { %v5758_v5 = vrot.slane %v5757_v39, 1  ;;  %v5771_v55 = vadd.f32 %v5770_v54, %v5769_v20  ;;  %v5766_v38 = vadd.f32 %v5765_v53, %v5764_v19 }
 0x21a   :  { %v5979_v36 = vsel %vm5942_vm0, %v5176_v61, %v5752_v21  ;;  %v5197_v31 = vadd.f32 %v5196_v22, %v5195_v13 }
 0x21b   :  { %v5759_v57 = vadd.f32 %v5758_v5, %v5757_v39  ;;  %v5772_v26 = vrot.slane %v5771_v55, 1  ;;  %v5981_v11 = vsel %vm5942_vm0, %v5190_v35, %v5766_v38 }
 0x21d   :  { %v5980_v29 = vsel %vm5942_vm0, %v5183_v10, %v5759_v57  ;;  %v5773_v50 = vadd.f32 %v5772_v26, %v5771_v55 }
 0x21e   :  { %v6224_v52 = vcombine.low %v5979_v36, %v5980_v29 }
 0x21f   :  { %v5982_v44 = vsel %vm5942_vm0, %v5197_v31, %v5773_v50 }
 0x220   :  { %v6232_v33 = vrot.slane %v6224_v52, %v7987_v47  ;;  %v6225_v24 = vcombine.low %v5981_v11, %v5982_v44 }
 0x222   :  { %v6239_v27 = vrot.slane %v6225_v24, %v7987_v47 }
 0x224   :  { %v6240_v9 = vcombine.low %v6232_v33, %v6239_v27 }
 0x225   :  { %v3988_v28 = vpop.f32.mrf.mxu0 }
 0x226   :  { %6368 = vst [vmem:[%s9921_s3 + $0x48] sm:$0xff] %v6240_v9  ;;  %v4031_v4 = vpop.f32.mrf.mxu1  ;;  %v5406_v63 = vmul.f32 %v3988_v28, %v3988_v28 }
 0x227   :  { %v3990_v41 = vpop.f32.mrf.mxu0  ;;  %v5408_v49 = vmul.f32 %v4031_v4, %v4031_v4 }
 0x228   :  { %v6980_v15 = vpack.c.bf16 %v3990_v41, %v3988_v28  ;;  %v4033_v51 = vpop.f32.mrf.mxu1  ;;  %v5407_v7 = vmul.f32 %v3990_v41, %v3990_v41 }
 0x229   :  { %v6981_v3 = vpack.c.bf16 %v4033_v51, %v4031_v4  ;;  %v3992_v18 = vpop.f32.mrf.mxu0  ;;  %v5409_v40 = vmul.f32 %v4033_v51, %v4033_v51 }
 0x22a   :  { %4874 = vst [vmem:[%s9920_s2 + $0xa0] sm:$0xff] %v6980_v15  ;;  %v5198_v42 = vadd.f32 %v3992_v18, %v3988_v28  ;;  %v5470_v45 = vmul.f32 %v3992_v18, %v3992_v18  ;;  %v4035_v58 = vpop.f32.mrf.mxu1 }
 0x22b   :  { %4875 = vst [vmem:[%s9920_s2 + $0xa8] sm:$0xff] %v6981_v3  ;;  %v5212_v1 = vadd.f32 %v4035_v58, %v4031_v4  ;;  %v5472_v23 = vmul.f32 %v4035_v58, %v4035_v58  ;;  %v3994_v43 = vpop.f32.mrf.mxu0 }
 0x22c   :  { %v5199_v14 = vrot.slane %v5198_v42, 4  ;;  %v5774_v32 = vadd.f32 %v5470_v45, %v5406_v63  ;;  %v7012_v59 = vpack.c.bf16 %v3994_v43, %v3992_v18  ;;  %v5205_v6 = vadd.f32 %v3994_v43, %v3990_v41  ;;  %v4037_v60 = vpop.f32.mrf.mxu1 }
 0x22d   :  { %v5213_v16 = vrot.slane %v5212_v1, 4  ;;  %v5788_v46 = vadd.f32 %v5472_v23, %v5408_v49  ;;  %v5471_v8 = vmul.f32 %v3994_v43, %v3994_v43  ;;  %v7013_v34 = vpack.c.bf16 %v4037_v60, %v4035_v58 }
 0x22e   :  { %v5200_v25 = vadd.f32 %v5199_v14, %v5198_v42  ;;  %v5775_v48 = vrot.slane %v5774_v32, 4  ;;  %4906 = vst [vmem:[%s9920_s2 + $0x1a0] sm:$0xff] %v7012_v59  ;;  %v5206_v56 = vrot.slane %v5205_v6, 4  ;;  %v5219_v17 = vadd.f32 %v4037_v60, %v4033_v51 }
 0x22f   :  { %v5214_v12 = vadd.f32 %v5213_v16, %v5212_v1  ;;  %v5789_v19 = vrot.slane %v5788_v46, 4  ;;  %v5781_v2 = vadd.f32 %v5471_v8, %v5407_v7  ;;  %4907 = vst [vmem:[%s9920_s2 + $0x1a8] sm:$0xff] %v7013_v34  ;;  %v5473_v20 = vmul.f32 %v4037_v60, %v4037_v60 }
 0x230   :  { %v5201_v62 = vrot.slane %v5200_v25, 2  ;;  %v5776_v30 = vadd.f32 %v5775_v48, %v5774_v32  ;;  %v5207_v13 = vadd.f32 %v5206_v56, %v5205_v6  ;;  %v5220_v53 = vrot.slane %v5219_v17, 4 }
 0x231   :  { %v5215_v0 = vrot.slane %v5214_v12, 2  ;;  %v5790_v39 = vadd.f32 %v5789_v19, %v5788_v46  ;;  %v5782_v54 = vrot.slane %v5781_v2, 4  ;;  %v5795_v37 = vadd.f32 %v5473_v20, %v5409_v40 }
 0x232   :  { %v5202_v21 = vadd.f32 %v5201_v62, %v5200_v25  ;;  %v5777_v5 = vrot.slane %v5776_v30, 2  ;;  %v5208_v22 = vrot.slane %v5207_v13, 2  ;;  %v5221_v55 = vadd.f32 %v5220_v53, %v5219_v17 }
 0x233   :  { %v5791_v61 = vrot.slane %v5790_v39, 2  ;;  %v5783_v38 = vadd.f32 %v5782_v54, %v5781_v2  ;;  %v5796_v10 = vrot.slane %v5795_v37, 4  ;;  %v5216_v26 = vadd.f32 %v5215_v0, %v5214_v12 }
 0x234   :  { %v5778_v57 = vadd.f32 %v5777_v5, %v5776_v30  ;;  %v5209_v35 = vadd.f32 %v5208_v22, %v5207_v13  ;;  %v5222_v36 = vrot.slane %v5221_v55, 2  ;;  %v5203_v52 = vrot.slane %v5202_v21, 1 }
 0x235   :  { %v5792_v29 = vadd.f32 %v5791_v61, %v5790_v39  ;;  %v5784_v31 = vrot.slane %v5783_v38, 2  ;;  %v5797_v50 = vadd.f32 %v5796_v10, %v5795_v37  ;;  %v5217_v28 = vrot.slane %v5216_v26, 1 }
 0x236   :  { %v5779_v11 = vrot.slane %v5778_v57, 1  ;;  %v5223_v44 = vadd.f32 %v5222_v36, %v5221_v55  ;;  %v5210_v24 = vrot.slane %v5209_v35, 1  ;;  %v5204_v3 = vadd.f32 %v5203_v52, %v5202_v21 }
 0x237   :  { %v5793_v33 = vrot.slane %v5792_v29, 1  ;;  %v5785_v27 = vadd.f32 %v5784_v31, %v5783_v38  ;;  %v5798_v9 = vrot.slane %v5797_v50, 2  ;;  %v5218_v45 = vadd.f32 %v5217_v28, %v5216_v26 }
 0x238   :  { %v5780_v4 = vadd.f32 %v5779_v11, %v5778_v57  ;;  %v5224_v15 = vrot.slane %v5223_v44, 1  ;;  %v5211_v63 = vadd.f32 %v5210_v24, %v5209_v35 }
 0x239   :  { %v5786_v41 = vrot.slane %v5785_v27, 1  ;;  %v5799_v51 = vadd.f32 %v5798_v9, %v5797_v50  ;;  %v5794_v18 = vadd.f32 %v5793_v33, %v5792_v29 }
 0x23a   :  { %v5983_v58 = vsel %vm5942_vm0, %v5204_v3, %v5780_v4  ;;  %v5225_v40 = vadd.f32 %v5224_v15, %v5223_v44 }
 0x23b   :  { %v5787_v49 = vadd.f32 %v5786_v41, %v5785_v27  ;;  %v5800_v42 = vrot.slane %v5799_v51, 1  ;;  %v5985_v43 = vsel %vm5942_vm0, %v5218_v45, %v5794_v18 }
 0x23d   :  { %v5984_v7 = vsel %vm5942_vm0, %v5211_v63, %v5787_v49  ;;  %v5801_v1 = vadd.f32 %v5800_v42, %v5799_v51 }
 0x23e   :  { %v6241_v23 = vcombine.low %v5983_v58, %v5984_v7 }
 0x23f   :  { %v5986_v14 = vsel %vm5942_vm0, %v5225_v40, %v5801_v1 }
 0x240   :  { %v6249_v32 = vrot.slane %v6241_v23, %v7987_v47  ;;  %v6242_v59 = vcombine.low %v5985_v43, %v5986_v14 }
 0x242   :  { %v6256_v6 = vrot.slane %v6242_v59, %v7987_v47 }
 0x244   :  { %v6257_v60 = vcombine.low %v6249_v32, %v6256_v6 }
 0x245   :  { %v4074_v16 = vpop.f32.mrf.mxu0 }
 0x246   :  { %6369 = vst [vmem:[%s9921_s3 + $0x50] sm:$0xff] %v6257_v60  ;;  %v4117_v46 = vpop.f32.mrf.mxu1  ;;  %v5410_v17 = vmul.f32 %v4074_v16, %v4074_v16 }
 0x247   :  { %v4076_v8 = vpop.f32.mrf.mxu0  ;;  %v5412_v12 = vmul.f32 %v4117_v46, %v4117_v46 }
 0x248   :  { %v6982_v34 = vpack.c.bf16 %v4076_v8, %v4074_v16  ;;  %v4119_v25 = vpop.f32.mrf.mxu1  ;;  %v5411_v62 = vmul.f32 %v4076_v8, %v4076_v8 }
 0x249   :  { %v6983_v48 = vpack.c.bf16 %v4119_v25, %v4117_v46  ;;  %v4078_v56 = vpop.f32.mrf.mxu0  ;;  %v5413_v30 = vmul.f32 %v4119_v25, %v4119_v25 }
 0x24a   :  { %4876 = vst [vmem:[%s9920_s2 + $0xb0] sm:$0xff] %v6982_v34  ;;  %v5226_v19 = vadd.f32 %v4078_v56, %v4074_v16  ;;  %v5474_v2 = vmul.f32 %v4078_v56, %v4078_v56  ;;  %v4121_v20 = vpop.f32.mrf.mxu1 }
 0x24b   :  { %4877 = vst [vmem:[%s9920_s2 + $0xb8] sm:$0xff] %v6983_v48  ;;  %v5240_v13 = vadd.f32 %v4121_v20, %v4117_v46  ;;  %v5476_v53 = vmul.f32 %v4121_v20, %v4121_v20  ;;  %v4080_v0 = vpop.f32.mrf.mxu0 }
 0x24c   :  { %v5227_v39 = vrot.slane %v5226_v19, 4  ;;  %v5802_v54 = vadd.f32 %v5474_v2, %v5410_v17  ;;  %v7014_v37 = vpack.c.bf16 %v4080_v0, %v4078_v56  ;;  %v5233_v21 = vadd.f32 %v4080_v0, %v4076_v8  ;;  %v4123_v5 = vpop.f32.mrf.mxu1 }
 0x24d   :  { %v5241_v22 = vrot.slane %v5240_v13, 4  ;;  %v5816_v55 = vadd.f32 %v5476_v53, %v5412_v12  ;;  %v5475_v61 = vmul.f32 %v4080_v0, %v4080_v0  ;;  %v7015_v38 = vpack.c.bf16 %v4123_v5, %v4121_v20 }
 0x24e   :  { %v5228_v10 = vadd.f32 %v5227_v39, %v5226_v19  ;;  %v5803_v57 = vrot.slane %v5802_v54, 4  ;;  %4908 = vst [vmem:[%s9920_s2 + $0x1b0] sm:$0xff] %v7014_v37  ;;  %v5234_v26 = vrot.slane %v5233_v21, 4  ;;  %v5247_v35 = vadd.f32 %v4123_v5, %v4119_v25 }
 0x24f   :  { %v5242_v36 = vadd.f32 %v5241_v22, %v5240_v13  ;;  %v5817_v29 = vrot.slane %v5816_v55, 4  ;;  %v5809_v31 = vadd.f32 %v5475_v61, %v5411_v62  ;;  %4909 = vst [vmem:[%s9920_s2 + $0x1b8] sm:$0xff] %v7015_v38  ;;  %v5477_v50 = vmul.f32 %v4123_v5, %v4123_v5 }
 0x250   :  { %v5229_v52 = vrot.slane %v5228_v10, 2  ;;  %v5804_v11 = vadd.f32 %v5803_v57, %v5802_v54  ;;  %v5235_v44 = vadd.f32 %v5234_v26, %v5233_v21  ;;  %v5248_v33 = vrot.slane %v5247_v35, 4 }
 0x251   :  { %v5243_v24 = vrot.slane %v5242_v36, 2  ;;  %v5818_v27 = vadd.f32 %v5817_v29, %v5816_v55  ;;  %v5810_v9 = vrot.slane %v5809_v31, 4  ;;  %v5823_v28 = vadd.f32 %v5477_v50, %v5413_v30 }
 0x252   :  { %v5230_v4 = vadd.f32 %v5229_v52, %v5228_v10  ;;  %v5805_v41 = vrot.slane %v5804_v11, 2  ;;  %v5236_v15 = vrot.slane %v5235_v44, 2  ;;  %v5249_v51 = vadd.f32 %v5248_v33, %v5247_v35 }
 0x253   :  { %v5819_v3 = vrot.slane %v5818_v27, 2  ;;  %v5811_v18 = vadd.f32 %v5810_v9, %v5809_v31  ;;  %v5824_v63 = vrot.slane %v5823_v28, 4  ;;  %v5244_v42 = vadd.f32 %v5243_v24, %v5242_v36 }
 0x254   :  { %v5806_v49 = vadd.f32 %v5805_v41, %v5804_v11  ;;  %v5237_v45 = vadd.f32 %v5236_v15, %v5235_v44  ;;  %v5250_v58 = vrot.slane %v5249_v51, 2  ;;  %v5231_v23 = vrot.slane %v5230_v4, 1 }
 0x255   :  { %v5820_v7 = vadd.f32 %v5819_v3, %v5818_v27  ;;  %v5812_v40 = vrot.slane %v5811_v18, 2  ;;  %v5825_v1 = vadd.f32 %v5824_v63, %v5823_v28  ;;  %v5245_v16 = vrot.slane %v5244_v42, 1 }
 0x256   :  { %v5807_v43 = vrot.slane %v5806_v49, 1  ;;  %v5251_v14 = vadd.f32 %v5250_v58, %v5249_v51  ;;  %v5238_v59 = vrot.slane %v5237_v45, 1  ;;  %v5232_v48 = vadd.f32 %v5231_v23, %v5230_v4 }
 0x257   :  { %v5821_v32 = vrot.slane %v5820_v7, 1  ;;  %v5813_v6 = vadd.f32 %v5812_v40, %v5811_v18  ;;  %v5826_v60 = vrot.slane %v5825_v1, 2  ;;  %v5246_v2 = vadd.f32 %v5245_v16, %v5244_v42 }
 0x258   :  { %v5808_v46 = vadd.f32 %v5807_v43, %v5806_v49  ;;  %v5252_v34 = vrot.slane %v5251_v14, 1  ;;  %v5239_v17 = vadd.f32 %v5238_v59, %v5237_v45 }
 0x259   :  { %v5814_v8 = vrot.slane %v5813_v6, 1  ;;  %v5827_v25 = vadd.f32 %v5826_v60, %v5825_v1  ;;  %v5822_v56 = vadd.f32 %v5821_v32, %v5820_v7 }
 0x25a   :  { %v5987_v20 = vsel %vm5942_vm0, %v5232_v48, %v5808_v46  ;;  %v5253_v30 = vadd.f32 %v5252_v34, %v5251_v14 }
 0x25b   :  { %v5815_v12 = vadd.f32 %v5814_v8, %v5813_v6  ;;  %v5828_v19 = vrot.slane %v5827_v25, 1  ;;  %v5989_v0 = vsel %vm5942_vm0, %v5246_v2, %v5822_v56 }
 0x25d   :  { %v5988_v62 = vsel %vm5942_vm0, %v5239_v17, %v5815_v12  ;;  %v5829_v13 = vadd.f32 %v5828_v19, %v5827_v25 }
 0x25e   :  { %v6258_v53 = vcombine.low %v5987_v20, %v5988_v62 }
 0x25f   :  { %v5990_v39 = vsel %vm5942_vm0, %v5253_v30, %v5829_v13 }
 0x260   :  { %v6266_v54 = vrot.slane %v6258_v53, %v7987_v47  ;;  %v6259_v37 = vcombine.low %v5989_v0, %v5990_v39 }
 0x262   :  { %v6273_v21 = vrot.slane %v6259_v37, %v7987_v47 }
 0x264   :  { %v6274_v5 = vcombine.low %v6266_v54, %v6273_v21 }
 0x265   :  { %v4160_v22 = vpop.f32.mrf.mxu0 }
 0x266   :  { %6370 = vst [vmem:[%s9921_s3 + $0x58] sm:$0xff] %v6274_v5  ;;  %v4203_v55 = vpop.f32.mrf.mxu1  ;;  %v5414_v35 = vmul.f32 %v4160_v22, %v4160_v22 }
 0x267   :  { %v4162_v61 = vpop.f32.mrf.mxu0  ;;  %v5416_v36 = vmul.f32 %v4203_v55, %v4203_v55 }
 0x268   :  { %v6984_v38 = vpack.c.bf16 %v4162_v61, %v4160_v22  ;;  %v4205_v10 = vpop.f32.mrf.mxu1  ;;  %v5415_v52 = vmul.f32 %v4162_v61, %v4162_v61 }
 0x269   :  { %v6985_v57 = vpack.c.bf16 %v4205_v10, %v4203_v55  ;;  %v4164_v26 = vpop.f32.mrf.mxu0  ;;  %v5417_v11 = vmul.f32 %v4205_v10, %v4205_v10 }
 0x26a   :  { %4878 = vst [vmem:[%s9920_s2 + $0xc0] sm:$0xff] %v6984_v38  ;;  %v5254_v29 = vadd.f32 %v4164_v26, %v4160_v22  ;;  %v5478_v31 = vmul.f32 %v4164_v26, %v4164_v26  ;;  %v4207_v50 = vpop.f32.mrf.mxu1 }
 0x26b   :  { %4879 = vst [vmem:[%s9920_s2 + $0xc8] sm:$0xff] %v6985_v57  ;;  %v5268_v44 = vadd.f32 %v4207_v50, %v4203_v55  ;;  %v5480_v33 = vmul.f32 %v4207_v50, %v4207_v50  ;;  %v4166_v24 = vpop.f32.mrf.mxu0 }
 0x26c   :  { %v5255_v27 = vrot.slane %v5254_v29, 4  ;;  %v5830_v9 = vadd.f32 %v5478_v31, %v5414_v35  ;;  %v7016_v28 = vpack.c.bf16 %v4166_v24, %v4164_v26  ;;  %v5261_v4 = vadd.f32 %v4166_v24, %v4162_v61  ;;  %v4209_v41 = vpop.f32.mrf.mxu1 }
 0x26d   :  { %v5269_v15 = vrot.slane %v5268_v44, 4  ;;  %v5844_v51 = vadd.f32 %v5480_v33, %v5416_v36  ;;  %v5479_v3 = vmul.f32 %v4166_v24, %v4166_v24  ;;  %v7017_v18 = vpack.c.bf16 %v4209_v41, %v4207_v50 }
 0x26e   :  { %v5256_v63 = vadd.f32 %v5255_v27, %v5254_v29  ;;  %v5831_v49 = vrot.slane %v5830_v9, 4  ;;  %4910 = vst [vmem:[%s9920_s2 + $0x1c0] sm:$0xff] %v7016_v28  ;;  %v5262_v42 = vrot.slane %v5261_v4, 4  ;;  %v5275_v45 = vadd.f32 %v4209_v41, %v4205_v10 }
 0x26f   :  { %v5270_v58 = vadd.f32 %v5269_v15, %v5268_v44  ;;  %v5845_v7 = vrot.slane %v5844_v51, 4  ;;  %v5837_v40 = vadd.f32 %v5479_v3, %v5415_v52  ;;  %4911 = vst [vmem:[%s9920_s2 + $0x1c8] sm:$0xff] %v7017_v18  ;;  %v5481_v1 = vmul.f32 %v4209_v41, %v4209_v41 }
 0x270   :  { %v5257_v23 = vrot.slane %v5256_v63, 2  ;;  %v5832_v43 = vadd.f32 %v5831_v49, %v5830_v9  ;;  %v5263_v14 = vadd.f32 %v5262_v42, %v5261_v4  ;;  %v5276_v32 = vrot.slane %v5275_v45, 4 }
 0x271   :  { %v5271_v59 = vrot.slane %v5270_v58, 2  ;;  %v5846_v6 = vadd.f32 %v5845_v7, %v5844_v51  ;;  %v5838_v60 = vrot.slane %v5837_v40, 4  ;;  %v5851_v16 = vadd.f32 %v5481_v1, %v5417_v11 }
 0x272   :  { %v5258_v46 = vadd.f32 %v5257_v23, %v5256_v63  ;;  %v5833_v8 = vrot.slane %v5832_v43, 2  ;;  %v5264_v34 = vrot.slane %v5263_v14, 2  ;;  %v5277_v25 = vadd.f32 %v5276_v32, %v5275_v45 }
 0x273   :  { %v5847_v48 = vrot.slane %v5846_v6, 2  ;;  %v5839_v56 = vadd.f32 %v5838_v60, %v5837_v40  ;;  %v5852_v17 = vrot.slane %v5851_v16, 4  ;;  %v5272_v19 = vadd.f32 %v5271_v59, %v5270_v58 }
 0x274   :  { %v5834_v12 = vadd.f32 %v5833_v8, %v5832_v43  ;;  %v5265_v2 = vadd.f32 %v5264_v34, %v5263_v14  ;;  %v5278_v20 = vrot.slane %v5277_v25, 2  ;;  %v5259_v53 = vrot.slane %v5258_v46, 1 }
 0x275   :  { %v5848_v62 = vadd.f32 %v5847_v48, %v5846_v6  ;;  %v5840_v30 = vrot.slane %v5839_v56, 2  ;;  %v5853_v13 = vadd.f32 %v5852_v17, %v5851_v16  ;;  %v5273_v22 = vrot.slane %v5272_v19, 1 }
 0x276   :  { %v5835_v0 = vrot.slane %v5834_v12, 1  ;;  %v5279_v39 = vadd.f32 %v5278_v20, %v5277_v25  ;;  %v5266_v37 = vrot.slane %v5265_v2, 1  ;;  %v5260_v57 = vadd.f32 %v5259_v53, %v5258_v46 }
 0x277   :  { %v5849_v54 = vrot.slane %v5848_v62, 1  ;;  %v5841_v21 = vadd.f32 %v5840_v30, %v5839_v56  ;;  %v5854_v5 = vrot.slane %v5853_v13, 2  ;;  %v5274_v31 = vadd.f32 %v5273_v22, %v5272_v19 }
 0x278   :  { %v5836_v55 = vadd.f32 %v5835_v0, %v5834_v12  ;;  %v5280_v38 = vrot.slane %v5279_v39, 1  ;;  %v5267_v35 = vadd.f32 %v5266_v37, %v5265_v2 }
 0x279   :  { %v5842_v61 = vrot.slane %v5841_v21, 1  ;;  %v5855_v10 = vadd.f32 %v5854_v5, %v5853_v13  ;;  %v5850_v26 = vadd.f32 %v5849_v54, %v5848_v62 }
 0x27a   :  { %v5991_v50 = vsel %vm5942_vm0, %v5260_v57, %v5836_v55  ;;  %v5281_v11 = vadd.f32 %v5280_v38, %v5279_v39 }
 0x27b   :  { %v5843_v36 = vadd.f32 %v5842_v61, %v5841_v21  ;;  %v5856_v29 = vrot.slane %v5855_v10, 1  ;;  %v5993_v24 = vsel %vm5942_vm0, %v5274_v31, %v5850_v26 }
 0x27d   :  { %v5992_v52 = vsel %vm5942_vm0, %v5267_v35, %v5843_v36  ;;  %v5857_v44 = vadd.f32 %v5856_v29, %v5855_v10 }
 0x27e   :  { %v6275_v33 = vcombine.low %v5991_v50, %v5992_v52 }
 0x27f   :  { %v5994_v27 = vsel %vm5942_vm0, %v5281_v11, %v5857_v44 }
 0x280   :  { %v6283_v9 = vrot.slane %v6275_v33, %v7987_v47  ;;  %v6276_v28 = vcombine.low %v5993_v24, %v5994_v27 }
 0x282   :  { %v6290_v4 = vrot.slane %v6276_v28, %v7987_v47 }
 0x284   :  { %v6291_v41 = vcombine.low %v6283_v9, %v6290_v4 }
 0x285   :  { %v4246_v15 = vpop.f32.mrf.mxu0 }
 0x286   :  { %6371 = vst [vmem:[%s9921_s3 + $0x60] sm:$0xff] %v6291_v41  ;;  %v4289_v51 = vpop.f32.mrf.mxu1  ;;  %v5418_v45 = vmul.f32 %v4246_v15, %v4246_v15 }
 0x287   :  { %v4248_v3 = vpop.f32.mrf.mxu0  ;;  %v5420_v58 = vmul.f32 %v4289_v51, %v4289_v51 }
 0x288   :  { %v6986_v18 = vpack.c.bf16 %v4248_v3, %v4246_v15  ;;  %v4291_v63 = vpop.f32.mrf.mxu1  ;;  %v5419_v23 = vmul.f32 %v4248_v3, %v4248_v3 }
 0x289   :  { %v6987_v49 = vpack.c.bf16 %v4291_v63, %v4289_v51  ;;  %v4250_v42 = vpop.f32.mrf.mxu0  ;;  %v5421_v43 = vmul.f32 %v4291_v63, %v4291_v63 }
 0x28a   :  { %4880 = vst [vmem:[%s9920_s2 + $0xd0] sm:$0xff] %v6986_v18  ;;  %v5282_v7 = vadd.f32 %v4250_v42, %v4246_v15  ;;  %v5482_v40 = vmul.f32 %v4250_v42, %v4250_v42  ;;  %v4293_v1 = vpop.f32.mrf.mxu1 }
 0x28b   :  { %4881 = vst [vmem:[%s9920_s2 + $0xd8] sm:$0xff] %v6987_v49  ;;  %v5296_v14 = vadd.f32 %v4293_v1, %v4289_v51  ;;  %v5484_v32 = vmul.f32 %v4293_v1, %v4293_v1  ;;  %v4252_v59 = vpop.f32.mrf.mxu0 }
 0x28c   :  { %v5283_v6 = vrot.slane %v5282_v7, 4  ;;  %v5858_v60 = vadd.f32 %v5482_v40, %v5418_v45  ;;  %v7018_v16 = vpack.c.bf16 %v4252_v59, %v4250_v42  ;;  %v5289_v46 = vadd.f32 %v4252_v59, %v4248_v3  ;;  %v4295_v8 = vpop.f32.mrf.mxu1 }
 0x28d   :  { %v5297_v34 = vrot.slane %v5296_v14, 4  ;;  %v5872_v25 = vadd.f32 %v5484_v32, %v5420_v58  ;;  %v5483_v48 = vmul.f32 %v4252_v59, %v4252_v59  ;;  %v7019_v56 = vpack.c.bf16 %v4295_v8, %v4293_v1 }
 0x28e   :  { %v5284_v17 = vadd.f32 %v5283_v6, %v5282_v7  ;;  %v5859_v12 = vrot.slane %v5858_v60, 4  ;;  %4912 = vst [vmem:[%s9920_s2 + $0x1d0] sm:$0xff] %v7018_v16  ;;  %v5290_v19 = vrot.slane %v5289_v46, 4  ;;  %v5303_v2 = vadd.f32 %v4295_v8, %v4291_v63 }
 0x28f   :  { %v5298_v20 = vadd.f32 %v5297_v34, %v5296_v14  ;;  %v5873_v62 = vrot.slane %v5872_v25, 4  ;;  %v5865_v30 = vadd.f32 %v5483_v48, %v5419_v23  ;;  %4913 = vst [vmem:[%s9920_s2 + $0x1d8] sm:$0xff] %v7019_v56  ;;  %v5485_v13 = vmul.f32 %v4295_v8, %v4295_v8 }
 0x290   :  { %v5285_v53 = vrot.slane %v5284_v17, 2  ;;  %v5860_v0 = vadd.f32 %v5859_v12, %v5858_v60  ;;  %v5291_v39 = vadd.f32 %v5290_v19, %v5289_v46  ;;  %v5304_v54 = vrot.slane %v5303_v2, 4 }
 0x291   :  { %v5299_v37 = vrot.slane %v5298_v20, 2  ;;  %v5874_v21 = vadd.f32 %v5873_v62, %v5872_v25  ;;  %v5866_v5 = vrot.slane %v5865_v30, 4  ;;  %v5879_v22 = vadd.f32 %v5485_v13, %v5421_v43 }
 0x292   :  { %v5286_v55 = vadd.f32 %v5285_v53, %v5284_v17  ;;  %v5861_v61 = vrot.slane %v5860_v0, 2  ;;  %v5292_v38 = vrot.slane %v5291_v39, 2  ;;  %v5305_v10 = vadd.f32 %v5304_v54, %v5303_v2 }
 0x293   :  { %v5875_v57 = vrot.slane %v5874_v21, 2  ;;  %v5867_v26 = vadd.f32 %v5866_v5, %v5865_v30  ;;  %v5880_v35 = vrot.slane %v5879_v22, 4  ;;  %v5300_v29 = vadd.f32 %v5299_v37, %v5298_v20 }
 0x294   :  { %v5862_v36 = vadd.f32 %v5861_v61, %v5860_v0  ;;  %v5293_v31 = vadd.f32 %v5292_v38, %v5291_v39  ;;  %v5306_v50 = vrot.slane %v5305_v10, 2  ;;  %v5287_v33 = vrot.slane %v5286_v55, 1 }
 0x295   :  { %v5876_v52 = vadd.f32 %v5875_v57, %v5874_v21  ;;  %v5868_v11 = vrot.slane %v5867_v26, 2  ;;  %v5881_v44 = vadd.f32 %v5880_v35, %v5879_v22  ;;  %v5301_v15 = vrot.slane %v5300_v29, 1 }
 0x296   :  { %v5863_v24 = vrot.slane %v5862_v36, 1  ;;  %v5307_v27 = vadd.f32 %v5306_v50, %v5305_v10  ;;  %v5294_v28 = vrot.slane %v5293_v31, 1  ;;  %v5288_v49 = vadd.f32 %v5287_v33, %v5286_v55 }
 0x297   :  { %v5877_v9 = vrot.slane %v5876_v52, 1  ;;  %v5869_v4 = vadd.f32 %v5868_v11, %v5867_v26  ;;  %v5882_v41 = vrot.slane %v5881_v44, 2  ;;  %v5302_v40 = vadd.f32 %v5301_v15, %v5300_v29 }
 0x298   :  { %v5864_v51 = vadd.f32 %v5863_v24, %v5862_v36  ;;  %v5308_v18 = vrot.slane %v5307_v27, 1  ;;  %v5295_v45 = vadd.f32 %v5294_v28, %v5293_v31 }
 0x299   :  { %v5870_v3 = vrot.slane %v5869_v4, 1  ;;  %v5883_v63 = vadd.f32 %v5882_v41, %v5881_v44  ;;  %v5878_v42 = vadd.f32 %v5877_v9, %v5876_v52 }
 0x29a   :  { %v5995_v1 = vsel %vm5942_vm0, %v5288_v49, %v5864_v51  ;;  %v5309_v43 = vadd.f32 %v5308_v18, %v5307_v27 }
 0x29b   :  { %v5871_v58 = vadd.f32 %v5870_v3, %v5869_v4  ;;  %v5884_v7 = vrot.slane %v5883_v63, 1  ;;  %v5997_v59 = vsel %vm5942_vm0, %v5302_v40, %v5878_v42 }
 0x29d   :  { %v5996_v23 = vsel %vm5942_vm0, %v5295_v45, %v5871_v58  ;;  %v5885_v14 = vadd.f32 %v5884_v7, %v5883_v63 }
 0x29e   :  { %v6292_v32 = vcombine.low %v5995_v1, %v5996_v23 }
 0x29f   :  { %v5998_v6 = vsel %vm5942_vm0, %v5309_v43, %v5885_v14 }
 0x2a0   :  { %v6300_v60 = vrot.slane %v6292_v32, %v7987_v47  ;;  %v6293_v16 = vcombine.low %v5997_v59, %v5998_v6 }
 0x2a2   :  { %v6307_v46 = vrot.slane %v6293_v16, %v7987_v47 }
 0x2a4   :  { %v6308_v8 = vcombine.low %v6300_v60, %v6307_v46 }
 0x2a5   :  { %v4332_v34 = vpop.f32.mrf.mxu0 }
 0x2a6   :  { %6372 = vst [vmem:[%s9921_s3 + $0x68] sm:$0xff] %v6308_v8  ;;  %v4375_v25 = vpop.f32.mrf.mxu1  ;;  %v5422_v2 = vmul.f32 %v4332_v34, %v4332_v34 }
 0x2a7   :  { %v4334_v48 = vpop.f32.mrf.mxu0  ;;  %v5424_v20 = vmul.f32 %v4375_v25, %v4375_v25 }
 0x2a8   :  { %v6988_v56 = vpack.c.bf16 %v4334_v48, %v4332_v34  ;;  %v4377_v17 = vpop.f32.mrf.mxu1  ;;  %v5423_v53 = vmul.f32 %v4334_v48, %v4334_v48 }
 0x2a9   :  { %v6989_v12 = vpack.c.bf16 %v4377_v17, %v4375_v25  ;;  %v4336_v19 = vpop.f32.mrf.mxu0  ;;  %v5425_v0 = vmul.f32 %v4377_v17, %v4377_v17 }
 0x2aa   :  { %4882 = vst [vmem:[%s9920_s2 + $0xe0] sm:$0xff] %v6988_v56  ;;  %v5310_v62 = vadd.f32 %v4336_v19, %v4332_v34  ;;  %v5486_v30 = vmul.f32 %v4336_v19, %v4336_v19  ;;  %v4379_v13 = vpop.f32.mrf.mxu1 }
 0x2ab   :  { %4883 = vst [vmem:[%s9920_s2 + $0xe8] sm:$0xff] %v6989_v12  ;;  %v5324_v39 = vadd.f32 %v4379_v13, %v4375_v25  ;;  %v5488_v54 = vmul.f32 %v4379_v13, %v4379_v13  ;;  %v4338_v37 = vpop.f32.mrf.mxu0 }
 0x2ac   :  { %v5311_v21 = vrot.slane %v5310_v62, 4  ;;  %v5886_v5 = vadd.f32 %v5486_v30, %v5422_v2  ;;  %v7020_v22 = vpack.c.bf16 %v4338_v37, %v4336_v19  ;;  %v5317_v55 = vadd.f32 %v4338_v37, %v4334_v48  ;;  %v4381_v61 = vpop.f32.mrf.mxu1 }
 0x2ad   :  { %v5325_v38 = vrot.slane %v5324_v39, 4  ;;  %v5900_v10 = vadd.f32 %v5488_v54, %v5424_v20  ;;  %v5487_v57 = vmul.f32 %v4338_v37, %v4338_v37  ;;  %v7021_v26 = vpack.c.bf16 %v4381_v61, %v4379_v13 }
 0x2ae   :  { %v5312_v35 = vadd.f32 %v5311_v21, %v5310_v62  ;;  %v5887_v36 = vrot.slane %v5886_v5, 4  ;;  %4914 = vst [vmem:[%s9920_s2 + $0x1e0] sm:$0xff] %v7020_v22  ;;  %v5318_v29 = vrot.slane %v5317_v55, 4  ;;  %v5331_v31 = vadd.f32 %v4381_v61, %v4377_v17 }
 0x2af   :  { %v5326_v50 = vadd.f32 %v5325_v38, %v5324_v39  ;;  %v5901_v52 = vrot.slane %v5900_v10, 4  ;;  %v5893_v11 = vadd.f32 %v5487_v57, %v5423_v53  ;;  %4915 = vst [vmem:[%s9920_s2 + $0x1e8] sm:$0xff] %v7021_v26  ;;  %v5489_v44 = vmul.f32 %v4381_v61, %v4381_v61 }
 0x2b0   :  { %v5313_v33 = vrot.slane %v5312_v35, 2  ;;  %v5888_v24 = vadd.f32 %v5887_v36, %v5886_v5  ;;  %v5319_v27 = vadd.f32 %v5318_v29, %v5317_v55  ;;  %v5332_v9 = vrot.slane %v5331_v31, 4 }
 0x2b1   :  { %v5327_v28 = vrot.slane %v5326_v50, 2  ;;  %v5902_v4 = vadd.f32 %v5901_v52, %v5900_v10  ;;  %v5894_v41 = vrot.slane %v5893_v11, 4  ;;  %v5907_v15 = vadd.f32 %v5489_v44, %v5425_v0 }
 0x2b2   :  { %v5314_v51 = vadd.f32 %v5313_v33, %v5312_v35  ;;  %v5889_v3 = vrot.slane %v5888_v24, 2  ;;  %v5320_v18 = vrot.slane %v5319_v27, 2  ;;  %v5333_v63 = vadd.f32 %v5332_v9, %v5331_v31 }
 0x2b3   :  { %v5903_v49 = vrot.slane %v5902_v4, 2  ;;  %v5895_v42 = vadd.f32 %v5894_v41, %v5893_v11  ;;  %v5908_v45 = vrot.slane %v5907_v15, 4  ;;  %v5328_v7 = vadd.f32 %v5327_v28, %v5326_v50 }
 0x2b4   :  { %v5890_v58 = vadd.f32 %v5889_v3, %v5888_v24  ;;  %v5321_v40 = vadd.f32 %v5320_v18, %v5319_v27  ;;  %v5334_v1 = vrot.slane %v5333_v63, 2  ;;  %v5315_v32 = vrot.slane %v5314_v51, 1 }
 0x2b5   :  { %v5904_v23 = vadd.f32 %v5903_v49, %v5902_v4  ;;  %v5896_v43 = vrot.slane %v5895_v42, 2  ;;  %v5909_v14 = vadd.f32 %v5908_v45, %v5907_v15  ;;  %v5329_v34 = vrot.slane %v5328_v7, 1 }
 0x2b6   :  { %v5891_v59 = vrot.slane %v5890_v58, 1  ;;  %v5335_v6 = vadd.f32 %v5334_v1, %v5333_v63  ;;  %v5322_v16 = vrot.slane %v5321_v40, 1  ;;  %v5316_v12 = vadd.f32 %v5315_v32, %v5314_v51 }
 0x2b7   :  { %v5905_v60 = vrot.slane %v5904_v23, 1  ;;  %v5897_v46 = vadd.f32 %v5896_v43, %v5895_v42  ;;  %v5910_v8 = vrot.slane %v5909_v14, 2  ;;  %v5330_v30 = vadd.f32 %v5329_v34, %v5328_v7 }
 0x2b8   :  { %v5892_v25 = vadd.f32 %v5891_v59, %v5890_v58  ;;  %v5336_v56 = vrot.slane %v5335_v6, 1  ;;  %v5323_v2 = vadd.f32 %v5322_v16, %v5321_v40 }
 0x2b9   :  { %v5898_v48 = vrot.slane %v5897_v46, 1  ;;  %v5911_v17 = vadd.f32 %v5910_v8, %v5909_v14  ;;  %v5906_v19 = vadd.f32 %v5905_v60, %v5904_v23 }
 0x2ba   :  { %v5999_v13 = vsel %vm5942_vm0, %v5316_v12, %v5892_v25  ;;  %v5337_v0 = vadd.f32 %v5336_v56, %v5335_v6 }
 0x2bb   :  { %v5899_v20 = vadd.f32 %v5898_v48, %v5897_v46  ;;  %v5912_v62 = vrot.slane %v5911_v17, 1  ;;  %v6001_v37 = vsel %vm5942_vm0, %v5330_v30, %v5906_v19 }
 0x2bd   :  { %v6000_v53 = vsel %vm5942_vm0, %v5323_v2, %v5899_v20  ;;  %v5913_v39 = vadd.f32 %v5912_v62, %v5911_v17 }
 0x2be   :  { %v6309_v54 = vcombine.low %v5999_v13, %v6000_v53 }
 0x2bf   :  { %v6002_v21 = vsel %vm5942_vm0, %v5337_v0, %v5913_v39 }
 0x2c0   :  { %v6317_v5 = vrot.slane %v6309_v54, %v7987_v47  ;;  %v6310_v22 = vcombine.low %v6001_v37, %v6002_v21 }
 0x2c2   :  { %v6324_v55 = vrot.slane %v6310_v22, %v7987_v47 }
 0x2c4   :  { %v6325_v61 = vcombine.low %v6317_v5, %v6324_v55 }
 0x2c5   :  { %v4418_v38 = vpop.f32.mrf.mxu0 }
 0x2c6   :  { %6373 = vst [vmem:[%s9921_s3 + $0x70] sm:$0xff] %v6325_v61  ;;  %v4461_v10 = vpop.f32.mrf.mxu1  ;;  %v5426_v31 = vmul.f32 %v4418_v38, %v4418_v38 }
 0x2c7   :  { %v4420_v57 = vpop.f32.mrf.mxu0  ;;  %v5428_v50 = vmul.f32 %v4461_v10, %v4461_v10 }
 0x2c8   :  { %v6990_v26 = vpack.c.bf16 %v4420_v57, %v4418_v38  ;;  %v4463_v35 = vpop.f32.mrf.mxu1  ;;  %v5427_v33 = vmul.f32 %v4420_v57, %v4420_v57 }
 0x2c9   :  { %v6991_v36 = vpack.c.bf16 %v4463_v35, %v4461_v10  ;;  %v4422_v29 = vpop.f32.mrf.mxu0  ;;  %v5429_v24 = vmul.f32 %v4463_v35, %v4463_v35 }
 0x2ca   :  { %4884 = vst [vmem:[%s9920_s2 + $0xf0] sm:$0xff] %v6990_v26  ;;  %v5338_v52 = vadd.f32 %v4422_v29, %v4418_v38  ;;  %v5490_v11 = vmul.f32 %v4422_v29, %v4422_v29  ;;  %v4465_v44 = vpop.f32.mrf.mxu1 }
 0x2cb   :  { %4885 = vst [vmem:[%s9920_s2 + $0xf8] sm:$0xff] %v6991_v36  ;;  %v5352_v27 = vadd.f32 %v4465_v44, %v4461_v10  ;;  %v5492_v9 = vmul.f32 %v4465_v44, %v4465_v44  ;;  %v4424_v28 = vpop.f32.mrf.mxu0 }
 0x2cc   :  { %v5339_v4 = vrot.slane %v5338_v52, 4  ;;  %v5914_v41 = vadd.f32 %v5490_v11, %v5426_v31  ;;  %v7022_v15 = vpack.c.bf16 %v4424_v28, %v4422_v29  ;;  %v5345_v51 = vadd.f32 %v4424_v28, %v4420_v57  ;;  %v4467_v3 = vpop.f32.mrf.mxu1 }
 0x2cd   :  { %v5353_v18 = vrot.slane %v5352_v27, 4  ;;  %v5928_v63 = vadd.f32 %v5492_v9, %v5428_v50  ;;  %v5491_v49 = vmul.f32 %v4424_v28, %v4424_v28  ;;  %v7023_v42 = vpack.c.bf16 %v4467_v3, %v4465_v44 }
 0x2ce   :  { %v5340_v45 = vadd.f32 %v5339_v4, %v5338_v52  ;;  %v5915_v58 = vrot.slane %v5914_v41, 4  ;;  %4916 = vst [vmem:[%s9920_s2 + $0x1f0] sm:$0xff] %v7022_v15  ;;  %v5346_v7 = vrot.slane %v5345_v51, 4  ;;  %v5359_v40 = vadd.f32 %v4467_v3, %v4463_v35 }
 0x2cf   :  { %v5354_v1 = vadd.f32 %v5353_v18, %v5352_v27  ;;  %v5929_v23 = vrot.slane %v5928_v63, 4  ;;  %v5921_v43 = vadd.f32 %v5491_v49, %v5427_v33  ;;  %4917 = vst [vmem:[%s9920_s2 + $0x1f8] sm:$0xff] %v7023_v42  ;;  %v5493_v14 = vmul.f32 %v4467_v3, %v4467_v3 }
 0x2d0   :  { %v5341_v32 = vrot.slane %v5340_v45, 2  ;;  %v5916_v59 = vadd.f32 %v5915_v58, %v5914_v41  ;;  %v5347_v6 = vadd.f32 %v5346_v7, %v5345_v51  ;;  %v5360_v60 = vrot.slane %v5359_v40, 4 }
 0x2d1   :  { %v5355_v16 = vrot.slane %v5354_v1, 2  ;;  %v5930_v46 = vadd.f32 %v5929_v23, %v5928_v63  ;;  %v5922_v8 = vrot.slane %v5921_v43, 4  ;;  %v5935_v34 = vadd.f32 %v5493_v14, %v5429_v24 }
 0x2d2   :  { %v5342_v25 = vadd.f32 %v5341_v32, %v5340_v45  ;;  %v5917_v48 = vrot.slane %v5916_v59, 2  ;;  %v5348_v56 = vrot.slane %v5347_v6, 2  ;;  %v5361_v17 = vadd.f32 %v5360_v60, %v5359_v40 }
 0x2d3   :  { %v5931_v12 = vrot.slane %v5930_v46, 2  ;;  %v5923_v19 = vadd.f32 %v5922_v8, %v5921_v43  ;;  %v5936_v2 = vrot.slane %v5935_v34, 4  ;;  %v5356_v62 = vadd.f32 %v5355_v16, %v5354_v1 }
 0x2d4   :  { %v5918_v20 = vadd.f32 %v5917_v48, %v5916_v59  ;;  %v5349_v30 = vadd.f32 %v5348_v56, %v5347_v6  ;;  %v5362_v13 = vrot.slane %v5361_v17, 2  ;;  %v5343_v54 = vrot.slane %v5342_v25, 1 }
 0x2d5   :  { %v5932_v53 = vadd.f32 %v5931_v12, %v5930_v46  ;;  %v5924_v0 = vrot.slane %v5923_v19, 2  ;;  %v5937_v39 = vadd.f32 %v5936_v2, %v5935_v34  ;;  %v5357_v38 = vrot.slane %v5356_v62, 1 }
 0x2d6   :  { %v5919_v37 = vrot.slane %v5918_v20, 1  ;;  %v5363_v21 = vadd.f32 %v5362_v13, %v5361_v17  ;;  %v5350_v22 = vrot.slane %v5349_v30, 1  ;;  %v5344_v36 = vadd.f32 %v5343_v54, %v5342_v25 }
 0x2d7   :  { %v5933_v5 = vrot.slane %v5932_v53, 1  ;;  %v5925_v55 = vadd.f32 %v5924_v0, %v5923_v19  ;;  %v5938_v61 = vrot.slane %v5937_v39, 2  ;;  %v5358_v11 = vadd.f32 %v5357_v38, %v5356_v62 }
 0x2d8   :  { %v5920_v10 = vadd.f32 %v5919_v37, %v5918_v20  ;;  %v5364_v26 = vrot.slane %v5363_v21, 1  ;;  %v5351_v31 = vadd.f32 %v5350_v22, %v5349_v30 }
 0x2d9   :  { %v5926_v57 = vrot.slane %v5925_v55, 1  ;;  %v5939_v35 = vadd.f32 %v5938_v61, %v5937_v39  ;;  %v5934_v29 = vadd.f32 %v5933_v5, %v5932_v53 }
 0x2da   :  { %v6003_v44 = vsel %vm5942_vm0, %v5344_v36, %v5920_v10  ;;  %v5365_v24 = vadd.f32 %v5364_v26, %v5363_v21 }
 0x2db   :  { %v5927_v50 = vadd.f32 %v5926_v57, %v5925_v55  ;;  %v5940_v52 = vrot.slane %v5939_v35, 1  ;;  %v6005_v28 = vsel %vm5942_vm0, %v5358_v11, %v5934_v29 }
 0x2dd   :  { %v6004_v33 = vsel %vm5942_vm0, %v5351_v31, %v5927_v50  ;;  %v5941_v27 = vadd.f32 %v5940_v52, %v5939_v35 }
 0x2de   :  { %v6326_v9 = vcombine.low %v6003_v44, %v6004_v33 }
 0x2df   :  { %v6006_v4 = vsel %vm5942_vm0, %v5365_v24, %v5941_v27 }
 0x2e0   :  { %v6334_v41 = vrot.slane %v6326_v9, %v7987_v47  ;;  %v6327_v15 = vcombine.low %v6005_v28, %v6006_v4 }
 0x2e2   :  { %v6341_v51 = vrot.slane %v6327_v15, %v7987_v47 }
 0x2e4   :  { %v6342_v3 = vcombine.low %v6334_v41, %v6341_v51 }
 0x2e6   :  { %6374 = vst [vmem:[%s9921_s3 + $0x78] sm:$0xff] %v6342_v3 }

// kernel: mul.58
= control target key start
LH: loop header
LB: loop body
LE: loop exit
PB: predicated region body
PF: predicated region fallthrough
CT: control target
= control target key end

     0   :  { %s34_s0 = inlined_call_operand.vmem [shape: f32[256], index: 0, kind: input, shape index: {}]   ;;  %s35_s1 = inlined_call_operand.vmem [shape: f32[256], index: 1, kind: input, shape index: {}]   ;;  %s36_s2 = inlined_call_operand.vmem [shape: f32[256], index: 2, kind: output, shape index: {}]  }
   0x1   :  { %v3_v0 = vld [vmem:[%s34_s0] sm:$0x3] }
   0x2   :  { %v4_v1 = vld [vmem:[%s35_s1] sm:$0x3] }
   0x3   :  { %v7_v2 = vmul.f32 %v4_v1, %v3_v0 }
   0x5   :  { %9 = vst [vmem:[%s36_s2] sm:$0x3] %v7_v2 }

// kernel: generator_forward.6
= control target key start
LH: loop header
LB: loop body
LE: loop exit
PB: predicated region body
PF: predicated region fallthrough
CT: control target
= control target key end

     0   :  { %s3426_s12 = smov 0   ;;  %s3428_s13 = smov 0   ;;  %s3817_s0 = inlined_call_operand.vmem [shape: bf16[4,32,2048], index: 0, kind: input, shape index: {}]   ;;  %s3818_s1 = inlined_call_operand.vmem [shape: bf16[4,2048,256], index: 1, kind: input, shape index: {}]   ;;  %s3819_s2 = inlined_call_operand.vmem [shape: bf16[4,32,256], index: 2, kind: output, shape index: {0}]   ;;  %s3820_s3 = inlined_call_operand.vmem [shape: f32[4,1,2,256], index: 3, kind: output, shape index: {1}]  }
   0x1   :  { %s3430_s14 = smov 0  }
   0x2 LB: > { %s26_s15 = sadd.s32 1, %s3400_s13  ;;  %p2662_p0 = scmp.ge.s32.totalorder %s3404_s14, 1  ;;  %s3404_s14 = sphi %s3430_s14, %s14_s14   ;;  %s3400_s13 = sphi %s3428_s13, %s3822_s13   ;;  %s3396_s12 = sphi %s3426_s12, %s3821_s12  }
   0x3   : > { %p28_p1 = scmp.ge.s32.totalorder %s26_s15, 4  ;;  %p174_p2 = scmp.lt.s32.totalorder %s3404_s14, 5 }
   0x5   : > { %s3824_s15 = smov (%p28_p1, %s26_s15), 0  ;;  %p175_p3 = pnand %p2662_p0, %p174_p2 }
   0x6   : > { %p223_p4 = scmp.lt.s32.totalorder (!%p175_p3), %s3396_s12, 3 }
   0x7   : > { %178 = sbr.rel (%p175_p3) target bundleno = 504 (0x1f8), region = 28 }
   0xc   : > { %s3826_s12 = smov (!%p223_p4, %s3396_s12), 3  ;;  %vm2482_vm0 = vcmask 1040384  }
   0xd   : > { %s2967_s16 = sshll.u32 %s3826_s12, 11  ;;  %s2966_s20 = sshll.u32 %s3826_s12, 8 }
   0xe   : > { %s3450_s19 = scalar_lea.vmem %s3818_s1, %s2967_s16  ;;  %s3500_s23 = scalar_lea.vmem %s3817_s0, %s2966_s20 }
   0xf   : > { %v2998_v0 = vld [vmem:[%s3450_s19 + $0x74] ss:$8 sps:$4 sm:$0xff]   ;;  %v3002_v2 = vld [vmem:[%s3450_s19 + $0x70] ss:$8 sps:$4 sm:$0xff]   ;;  %v3004_v4 = vld [vmem:[%s3450_s19 + $0x64] ss:$8 sps:$4 sm:$0xff]  }
  0x10   : > { %v3000_v1 = vld [vmem:[%s3450_s19 + $0x174] ss:$8 sps:$4 sm:$0xff]   ;;  %1986 = vmatprep.subr.bf16.mxu0 %v2998_v0  ;;  %v3003_v3 = vld [vmem:[%s3450_s19 + $0x170] ss:$8 sps:$4 sm:$0xff]   ;;  %v3006_v5 = vld [vmem:[%s3450_s19 + $0x164] ss:$8 sps:$4 sm:$0xff]  }
  0x11   : > { %2039 = vmatprep.subr.bf16.mxu1 %v3000_v1  ;;  %1987 = vmatpush1.bf16.msra.mxu0 %v3002_v2  ;;  %v3008_v6 = vld [vmem:[%s3450_s19 + $0x60] ss:$8 sps:$4 sm:$0xff]   ;;  %v3010_v8 = vld [vmem:[%s3450_s19 + $0x54] ss:$8 sps:$4 sm:$0xff]   ;;  %v3014_v10 = vld [vmem:[%s3450_s19 + $0x50] ss:$8 sps:$4 sm:$0xff]  }
  0x12   : > { %2040 = vmatpush1.bf16.msra.mxu1 %v3003_v3  ;;  %1988 = vmatprep.subr.bf16.mxu0 %v3004_v4  ;;  %v3009_v7 = vld [vmem:[%s3450_s19 + $0x160] ss:$8 sps:$4 sm:$0xff]   ;;  %v3012_v9 = vld [vmem:[%s3450_s19 + $0x154] ss:$8 sps:$4 sm:$0xff]   ;;  %v3015_v11 = vld [vmem:[%s3450_s19 + $0x150] ss:$8 sps:$4 sm:$0xff]  }
  0x13   : > { %2041 = vmatprep.subr.bf16.mxu1 %v3006_v5  ;;  %v3016_v12 = vld [vmem:[%s3450_s19 + $0x44] ss:$8 sps:$4 sm:$0xff]   ;;  %v3020_v14 = vld [vmem:[%s3450_s19 + $0x40] ss:$8 sps:$4 sm:$0xff]   ;;  %v3022_v16 = vld [vmem:[%s3450_s19 + $0x34] ss:$8 sps:$4 sm:$0xff]  }
  0x14   : > { %v3018_v13 = vld [vmem:[%s3450_s19 + $0x144] ss:$8 sps:$4 sm:$0xff]   ;;  %v3021_v15 = vld [vmem:[%s3450_s19 + $0x140] ss:$8 sps:$4 sm:$0xff]   ;;  %v3024_v17 = vld [vmem:[%s3450_s19 + $0x134] ss:$8 sps:$4 sm:$0xff]  }
  0x15   : > { %1989 = vmatpush1.bf16.msra.mxu0 %v3008_v6  ;;  %v3026_v18 = vld [vmem:[%s3450_s19 + $0x30] ss:$8 sps:$4 sm:$0xff]   ;;  %v3028_v20 = vld [vmem:[%s3450_s19 + $0x24] ss:$8 sps:$4 sm:$0xff]   ;;  %v3032_v22 = vld [vmem:[%s3450_s19 + $0x20] ss:$8 sps:$4 sm:$0xff]  }
  0x16   : > { %2042 = vmatpush1.bf16.msra.mxu1 %v3009_v7  ;;  %1990 = vmatprep.subr.bf16.mxu0 %v3010_v8  ;;  %v3027_v19 = vld [vmem:[%s3450_s19 + $0x130] ss:$8 sps:$4 sm:$0xff]   ;;  %v3030_v21 = vld [vmem:[%s3450_s19 + $0x124] ss:$8 sps:$4 sm:$0xff]   ;;  %v3033_v23 = vld [vmem:[%s3450_s19 + $0x120] ss:$8 sps:$4 sm:$0xff]  }
  0x17   : > { %2043 = vmatprep.subr.bf16.mxu1 %v3012_v9  ;;  %v3034_v24 = vld [vmem:[%s3450_s19 + $0x14] ss:$8 sps:$4 sm:$0xff]   ;;  %v3038_v26 = vld [vmem:[%s3450_s19 + $0x10] ss:$8 sps:$4 sm:$0xff]   ;;  %v3040_v28 = vld [vmem:[%s3450_s19 + $0x4] ss:$8 sps:$4 sm:$0xff]  }
  0x18   : > { %v3036_v25 = vld [vmem:[%s3450_s19 + $0x114] ss:$8 sps:$4 sm:$0xff]   ;;  %v3039_v27 = vld [vmem:[%s3450_s19 + $0x110] ss:$8 sps:$4 sm:$0xff]   ;;  %v3042_v29 = vld [vmem:[%s3450_s19 + $0x104] ss:$8 sps:$4 sm:$0xff]  }
  0x19   : > { %1991 = vmatpush1.bf16.msra.mxu0 %v3014_v10  ;;  %v3044_v30 = vld [vmem:[%s3450_s19] ss:$8 sps:$4 sm:$0xff]   ;;  %v3046_v32 = vld [vmem:[%s3450_s19 + $0xf4] ss:$8 sps:$4 sm:$0xff]   ;;  %v3050_v34 = vld [vmem:[%s3450_s19 + $0xf0] ss:$8 sps:$4 sm:$0xff]  }
  0x1a   : > { %2044 = vmatpush1.bf16.msra.mxu1 %v3015_v11  ;;  %1992 = vmatprep.subr.bf16.mxu0 %v3016_v12  ;;  %v3045_v31 = vld [vmem:[%s3450_s19 + $0x100] ss:$8 sps:$4 sm:$0xff]   ;;  %v3048_v33 = vld [vmem:[%s3450_s19 + $0x1f4] ss:$8 sps:$4 sm:$0xff]   ;;  %v3051_v35 = vld [vmem:[%s3450_s19 + $0x1f0] ss:$8 sps:$4 sm:$0xff]  }
  0x1b   : > { %2045 = vmatprep.subr.bf16.mxu1 %v3018_v13  ;;  %v3052_v36 = vld [vmem:[%s3450_s19 + $0xe4] ss:$8 sps:$4 sm:$0xff]   ;;  %v3056_v38 = vld [vmem:[%s3450_s19 + $0xe0] ss:$8 sps:$4 sm:$0xff]   ;;  %v3058_v40 = vld [vmem:[%s3450_s19 + $0xd4] ss:$8 sps:$4 sm:$0xff]  }
  0x1c   : > { %v3054_v37 = vld [vmem:[%s3450_s19 + $0x1e4] ss:$8 sps:$4 sm:$0xff]   ;;  %v3057_v39 = vld [vmem:[%s3450_s19 + $0x1e0] ss:$8 sps:$4 sm:$0xff]   ;;  %v3060_v41 = vld [vmem:[%s3450_s19 + $0x1d4] ss:$8 sps:$4 sm:$0xff]  }
  0x1d   : > { %1993 = vmatpush1.bf16.msra.mxu0 %v3020_v14  ;;  %v3062_v42 = vld [vmem:[%s3450_s19 + $0xd0] ss:$8 sps:$4 sm:$0xff]   ;;  %v3064_v44 = vld [vmem:[%s3450_s19 + $0xc4] ss:$8 sps:$4 sm:$0xff]   ;;  %v3068_v46 = vld [vmem:[%s3450_s19 + $0xc0] ss:$8 sps:$4 sm:$0xff]  }
  0x1e   : > { %2046 = vmatpush1.bf16.msra.mxu1 %v3021_v15  ;;  %1994 = vmatprep.subr.bf16.mxu0 %v3022_v16  ;;  %v3063_v43 = vld [vmem:[%s3450_s19 + $0x1d0] ss:$8 sps:$4 sm:$0xff]   ;;  %v3066_v45 = vld [vmem:[%s3450_s19 + $0x1c4] ss:$8 sps:$4 sm:$0xff]   ;;  %v3069_v47 = vld [vmem:[%s3450_s19 + $0x1c0] ss:$8 sps:$4 sm:$0xff]  }
  0x1f   : > { %2047 = vmatprep.subr.bf16.mxu1 %v3024_v17  ;;  %v258_v48 = vld [vmem:[%s3500_s23] sm:$0xff]  ;;  %v259_v50 = vld [vmem:[%s3500_s23 + $0x8] sm:$0xff]  ;;  %v3070_v52 = vld [vmem:[%s3450_s19 + $0xb4] ss:$8 sps:$4 sm:$0xff]   ;;  %s2968_s24 = sshll.u32 %s3826_s12, 5  ;;  %s2969_s28 = sshll.u32 %s3826_s12, 2 }
  0x20   : > { %v266_v49 = vld [vmem:[%s3500_s23 + $0x40] sm:$0xff]  ;;  %v267_v51 = vld [vmem:[%s3500_s23 + $0x48] sm:$0xff]  ;;  %v3072_v54 = vld [vmem:[%s3450_s19 + $0x1b4] ss:$8 sps:$4 sm:$0xff]   ;;  %s3798_s27 = scalar_lea.vmem %s3819_s2, %s2968_s24  ;;  %s257_s4 = scalar_lea.vmem %s3820_s3, %s2969_s28 }
  0x21   : > { %1995 = vmatpush1.bf16.msra.mxu0 %v3026_v18  ;;  %v2672_v53 = vcombine.high %v258_v48, %v266_v49  ;;  %v2674_v55 = vcombine.high %v259_v50, %v267_v51  ;;  %v3074_v56 = vld [vmem:[%s3450_s19 + $0xb0] ss:$8 sps:$4 sm:$0xff]   ;;  %v3076_v58 = vld [vmem:[%s3450_s19 + $0xa4] ss:$8 sps:$4 sm:$0xff]   ;;  %v3080_v60 = vld [vmem:[%s3450_s19 + $0xa0] ss:$8 sps:$4 sm:$0xff]   ;;  %v2671_v8 = vcombine.low %v258_v48, %v266_v49  ;;  %v2673_v9 = vcombine.low %v259_v50, %v267_v51 }
  0x22   : > { %2048 = vmatpush1.bf16.msra.mxu1 %v3027_v19  ;;  %1996 = vmatprep.subr.bf16.mxu0 %v3028_v20  ;;  %v3075_v57 = vld [vmem:[%s3450_s19 + $0x1b0] ss:$8 sps:$4 sm:$0xff]   ;;  %v3078_v59 = vld [vmem:[%s3450_s19 + $0x1a4] ss:$8 sps:$4 sm:$0xff]   ;;  %v3081_v61 = vld [vmem:[%s3450_s19 + $0x1a0] ss:$8 sps:$4 sm:$0xff]  }
  0x23   : > { %2049 = vmatprep.subr.bf16.mxu1 %v3030_v21  ;;  %2018 = vmatprep.mubr.bf16.mxu0 %v2672_v53  ;;  %v3082_v62 = vld [vmem:[%s3450_s19 + $0x94] ss:$8 sps:$4 sm:$0xff]   ;;  %v3086_v0 = vld [vmem:[%s3450_s19 + $0x90] ss:$8 sps:$4 sm:$0xff]   ;;  %v3088_v2 = vld [vmem:[%s3450_s19 + $0x84] ss:$8 sps:$4 sm:$0xff]  }
  0x24   : > { %2071 = vmatprep.mubr.bf16.mxu1 %v2674_v55  ;;  %v3084_v63 = vld [vmem:[%s3450_s19 + $0x194] ss:$8 sps:$4 sm:$0xff]   ;;  %v3087_v1 = vld [vmem:[%s3450_s19 + $0x190] ss:$8 sps:$4 sm:$0xff]   ;;  %v3090_v3 = vld [vmem:[%s3450_s19 + $0x184] ss:$8 sps:$4 sm:$0xff]  }
  0x25   : > { %1997 = vmatpush1.bf16.msra.mxu0 %v3032_v22  ;;  %v3092_v4 = vld [vmem:[%s3450_s19 + $0x80] ss:$8 sps:$4 sm:$0xff]   ;;  %v3096_v6 = vld [vmem:[%s3450_s19 + $0x274] ss:$8 sps:$4 sm:$0xff]   ;;  %v3094_v10 = vld [vmem:[%s3450_s19 + $0x270] ss:$8 sps:$4 sm:$0xff]  }
  0x26   : > { %2050 = vmatpush1.bf16.msra.mxu1 %v3033_v23  ;;  %1998 = vmatprep.subr.bf16.mxu0 %v3034_v24  ;;  %v3093_v5 = vld [vmem:[%s3450_s19 + $0x180] ss:$8 sps:$4 sm:$0xff]   ;;  %v3099_v7 = vld [vmem:[%s3450_s19 + $0x374] ss:$8 sps:$4 sm:$0xff]   ;;  %v3097_v11 = vld [vmem:[%s3450_s19 + $0x370] ss:$8 sps:$4 sm:$0xff]  }
  0x27   : > { %2051 = vmatprep.subr.bf16.mxu1 %v3036_v25  ;;  %v3102_v12 = vld [vmem:[%s3450_s19 + $0x264] ss:$8 sps:$4 sm:$0xff]   ;;  %v3100_v14 = vld [vmem:[%s3450_s19 + $0x260] ss:$8 sps:$4 sm:$0xff]   ;;  %v3108_v16 = vld [vmem:[%s3450_s19 + $0x254] ss:$8 sps:$4 sm:$0xff]  }
  0x28   : > { %v3105_v13 = vld [vmem:[%s3450_s19 + $0x364] ss:$8 sps:$4 sm:$0xff]   ;;  %v3103_v15 = vld [vmem:[%s3450_s19 + $0x360] ss:$8 sps:$4 sm:$0xff]   ;;  %v3111_v17 = vld [vmem:[%s3450_s19 + $0x354] ss:$8 sps:$4 sm:$0xff]  }
  0x29   : > { %1999 = vmatpush1.bf16.msra.mxu0 %v3038_v26  ;;  %v3106_v18 = vld [vmem:[%s3450_s19 + $0x250] ss:$8 sps:$4 sm:$0xff]   ;;  %v3114_v20 = vld [vmem:[%s3450_s19 + $0x244] ss:$8 sps:$4 sm:$0xff]   ;;  %v3112_v22 = vld [vmem:[%s3450_s19 + $0x240] ss:$8 sps:$4 sm:$0xff]  }
  0x2a   : > { %2052 = vmatpush1.bf16.msra.mxu1 %v3039_v27  ;;  %2000 = vmatprep.subr.bf16.mxu0 %v3040_v28  ;;  %v3109_v19 = vld [vmem:[%s3450_s19 + $0x350] ss:$8 sps:$4 sm:$0xff]   ;;  %v3117_v21 = vld [vmem:[%s3450_s19 + $0x344] ss:$8 sps:$4 sm:$0xff]   ;;  %v3115_v23 = vld [vmem:[%s3450_s19 + $0x340] ss:$8 sps:$4 sm:$0xff]  }
  0x2b   : > { %2053 = vmatprep.subr.bf16.mxu1 %v3042_v29  ;;  %v3120_v24 = vld [vmem:[%s3450_s19 + $0x234] ss:$8 sps:$4 sm:$0xff]   ;;  %v3118_v26 = vld [vmem:[%s3450_s19 + $0x230] ss:$8 sps:$4 sm:$0xff]   ;;  %v274_v28 = vld [vmem:[%s3500_s23 + $0x80] sm:$0xff] }
  0x2c   : > { %v3123_v25 = vld [vmem:[%s3450_s19 + $0x334] ss:$8 sps:$4 sm:$0xff]   ;;  %v3121_v27 = vld [vmem:[%s3450_s19 + $0x330] ss:$8 sps:$4 sm:$0xff]   ;;  %v282_v29 = vld [vmem:[%s3500_s23 + $0xc0] sm:$0xff] }
  0x2d   : > { %2001 = vmatpush1.bf16.msra.mxu0 %v3044_v30  ;;  %v275_v30 = vld [vmem:[%s3500_s23 + $0x88] sm:$0xff]  ;;  %v3567_v48 = vld [vmem:[%s3500_s23 + $0x18] sm:$0xff] }
  0x2e   : > { %2054 = vmatpush1.bf16.msra.mxu1 %v3045_v31  ;;  %2002 = vmatprep.subr.bf16.mxu0 %v3046_v32  ;;  %v283_v31 = vld [vmem:[%s3500_s23 + $0xc8] sm:$0xff]  ;;  %v3572_v50 = vld [vmem:[%s3500_s23 + $0x58] sm:$0xff] }
  0x2f   : > { %2055 = vmatprep.subr.bf16.mxu1 %v3048_v33  ;;  %v3126_v32 = vld [vmem:[%s3450_s19 + $0x224] ss:$8 sps:$4 sm:$0xff]   ;;  %v2688_v33 = vcombine.high %v274_v28, %v282_v29  ;;  %v2678_v51 = vcombine.high %v3567_v48, %v3572_v50  ;;  %v3139_v53 = vld [vmem:[%s3450_s19 + $0x300] ss:$8 sps:$4 sm:$0xff]   ;;  %v3147_v55 = vld [vmem:[%s3450_s19 + $0x3f4] ss:$8 sps:$4 sm:$0xff]  }
  0x31   : > { %2003 = vmatpush2.bf16.msra.mxu0 %v3050_v34  ;;  %v2690_v34 = vcombine.high %v275_v30, %v283_v31 }
  0x32   : > { %2056 = vmatpush2.bf16.msra.mxu1 %v3051_v35  ;;  %2004 = vmatprep.subr.bf16.mxu0 %v3052_v36  ;;  %v2687_v35 = vcombine.low %v274_v28, %v282_v29  ;;  %v3129_v36 = vld [vmem:[%s3450_s19 + $0x324] ss:$8 sps:$4 sm:$0xff]   ;;  %v2677_v29 = vcombine.low %v3567_v48, %v3572_v50 }
  0x33   : > { %2057 = vmatprep.subr.bf16.mxu1 %v3054_v37  ;;  %v2689_v37 = vcombine.low %v275_v30, %v283_v31  ;;  %v277_v30 = vld [vmem:[%s3500_s23 + $0x98] sm:$0xff]  ;;  %v3210_v48 = vld [vmem:[%s3450_s19 + $0x444] ss:$8 sps:$4 sm:$0xff]  }
  0x34   : > { %v285_v31 = vld [vmem:[%s3500_s23 + $0xd8] sm:$0xff] }
  0x35   : > { %2005 = vmatpush2.bf16.msra.mxu0 %v3056_v38  ;;  %v3124_v38 = vld [vmem:[%s3450_s19 + $0x220] ss:$8 sps:$4 sm:$0xff]  }
  0x36   : > { %2058 = vmatpush2.bf16.msra.mxu1 %v3057_v39  ;;  %2006 = vmatprep.subr.bf16.mxu0 %v3058_v40  ;;  %v3127_v39 = vld [vmem:[%s3450_s19 + $0x320] ss:$8 sps:$4 sm:$0xff]   ;;  %v3132_v40 = vld [vmem:[%s3450_s19 + $0x214] ss:$8 sps:$4 sm:$0xff]  }
  0x37   : > { %2059 = vmatprep.subr.bf16.mxu1 %v3060_v41  ;;  %v3135_v41 = vld [vmem:[%s3450_s19 + $0x314] ss:$8 sps:$4 sm:$0xff]  }
  0x39   : > { %2007 = vmatpush2.bf16.msra.mxu0 %v3062_v42  ;;  %v3130_v42 = vld [vmem:[%s3450_s19 + $0x210] ss:$8 sps:$4 sm:$0xff]  }
  0x3a   : > { %2060 = vmatpush2.bf16.msra.mxu1 %v3063_v43  ;;  %2008 = vmatprep.subr.bf16.mxu0 %v3064_v44  ;;  %v3133_v43 = vld [vmem:[%s3450_s19 + $0x310] ss:$8 sps:$4 sm:$0xff]   ;;  %v3138_v44 = vld [vmem:[%s3450_s19 + $0x204] ss:$8 sps:$4 sm:$0xff]  }
  0x3b   : > { %2061 = vmatprep.subr.bf16.mxu1 %v3066_v45  ;;  %v3141_v45 = vld [vmem:[%s3450_s19 + $0x304] ss:$8 sps:$4 sm:$0xff]  }
  0x3d   : > { %2009 = vmatpush2.bf16.msra.mxu0 %v3068_v46  ;;  %v3561_v46 = vld [vmem:[%s3500_s23 + $0x10] sm:$0xff] }
  0x3e   : > { %2062 = vmatpush2.bf16.msra.mxu1 %v3069_v47  ;;  %2010 = vmatprep.subr.bf16.mxu0 %v3070_v52  ;;  %v3564_v47 = vld [vmem:[%s3500_s23 + $0x50] sm:$0xff]  ;;  %v3136_v52 = vld [vmem:[%s3450_s19 + $0x200] ss:$8 sps:$4 sm:$0xff]  }
  0x3f   : > { %2063 = vmatprep.subr.bf16.mxu1 %v3072_v54  ;;  %v2676_v49 = vcombine.high %v3561_v46, %v3564_v47  ;;  %v3144_v54 = vld [vmem:[%s3450_s19 + $0x2f4] ss:$8 sps:$4 sm:$0xff]   ;;  %v2675_v28 = vcombine.low %v3561_v46, %v3564_v47  ;;  %v3637_v46 = vld [vmem:[%s3500_s23 + $0x28] sm:$0xff] }
  0x40   : > { %v3640_v47 = vld [vmem:[%s3500_s23 + $0x68] sm:$0xff] }
  0x41   : > { %2011 = vmatpush2.bf16.msra.mxu0 %v3074_v56  ;;  %v3142_v56 = vld [vmem:[%s3450_s19 + $0x2f0] ss:$8 sps:$4 sm:$0xff]  }
  0x42   : > { %2064 = vmatpush2.bf16.msra.mxu1 %v3075_v57  ;;  %2012 = vmatprep.subr.bf16.mxu0 %v3076_v58  ;;  %v3145_v57 = vld [vmem:[%s3450_s19 + $0x3f0] ss:$8 sps:$4 sm:$0xff]   ;;  %v3150_v58 = vld [vmem:[%s3450_s19 + $0x2e4] ss:$8 sps:$4 sm:$0xff]  }
  0x43   : > { %2065 = vmatprep.subr.bf16.mxu1 %v3078_v59  ;;  %v3153_v59 = vld [vmem:[%s3450_s19 + $0x3e4] ss:$8 sps:$4 sm:$0xff]  }
  0x45   : > { %2013 = vmatpush2.bf16.msra.mxu0 %v3080_v60  ;;  %v3148_v60 = vld [vmem:[%s3450_s19 + $0x2e0] ss:$8 sps:$4 sm:$0xff]  }
  0x46   : > { %2066 = vmatpush2.bf16.msra.mxu1 %v3081_v61  ;;  %2014 = vmatprep.subr.bf16.mxu0 %v3082_v62  ;;  %v3151_v61 = vld [vmem:[%s3450_s19 + $0x3e0] ss:$8 sps:$4 sm:$0xff]   ;;  %v3156_v62 = vld [vmem:[%s3450_s19 + $0x2d4] ss:$8 sps:$4 sm:$0xff]  }
  0x47   : > { %2067 = vmatprep.subr.bf16.mxu1 %v3084_v63  ;;  %v3159_v63 = vld [vmem:[%s3450_s19 + $0x3d4] ss:$8 sps:$4 sm:$0xff]  }
  0x49   : > { %2015 = vmatpush2.bf16.msra.mxu0 %v3086_v0  ;;  %v3154_v0 = vld [vmem:[%s3450_s19 + $0x2d0] ss:$8 sps:$4 sm:$0xff]  }
  0x4a   : > { %2068 = vmatpush2.bf16.msra.mxu1 %v3087_v1  ;;  %2016 = vmatprep.subr.bf16.mxu0 %v3088_v2  ;;  %v3157_v1 = vld [vmem:[%s3450_s19 + $0x3d0] ss:$8 sps:$4 sm:$0xff]   ;;  %v3162_v2 = vld [vmem:[%s3450_s19 + $0x2c4] ss:$8 sps:$4 sm:$0xff]  }
  0x4b   : > { %2069 = vmatprep.subr.bf16.mxu1 %v3090_v3  ;;  %v3165_v3 = vld [vmem:[%s3450_s19 + $0x3c4] ss:$8 sps:$4 sm:$0xff]  }
  0x4d   : > { %2017 = vmatpush2.bf16.msra.mxu0 %v3092_v4  ;;  %v3160_v4 = vld [vmem:[%s3450_s19 + $0x2c0] ss:$8 sps:$4 sm:$0xff]  }
  0x4e   : > { %2070 = vmatpush2.bf16.msra.mxu1 %v3093_v5  ;;  %2092 = vmatprep.subr.bf16.mxu0 %v3096_v6  ;;  %v3163_v5 = vld [vmem:[%s3450_s19 + $0x3c0] ss:$8 sps:$4 sm:$0xff]   ;;  %v3168_v6 = vld [vmem:[%s3450_s19 + $0x2b4] ss:$8 sps:$4 sm:$0xff]  }
  0x4f   : > { %2145 = vmatprep.subr.bf16.mxu1 %v3099_v7  ;;  %v3171_v7 = vld [vmem:[%s3450_s19 + $0x3b4] ss:$8 sps:$4 sm:$0xff]  }
  0x50   : > { %2019 = vmatmul.mubr.bf16.vlgmr.msra.gmra.mxu0 %v2671_v8  ;;  %v3166_v8 = vld [vmem:[%s3450_s19 + $0x2b0] ss:$8 sps:$4 sm:$0xff]  }
  0x51   : > { %2072 = vmatmul.mubr.bf16.vlgmr.msra.gmra.mxu1 %v2673_v9  ;;  %2093 = vmatpush1.bf16.msra.mxu0 %v3094_v10  ;;  %v3169_v9 = vld [vmem:[%s3450_s19 + $0x3b0] ss:$8 sps:$4 sm:$0xff]   ;;  %v3174_v10 = vld [vmem:[%s3450_s19 + $0x2a4] ss:$8 sps:$4 sm:$0xff]  }
  0x52   : > { %2146 = vmatpush1.bf16.msra.mxu1 %v3097_v11  ;;  %2094 = vmatprep.subr.bf16.mxu0 %v3102_v12  ;;  %v3177_v11 = vld [vmem:[%s3450_s19 + $0x3a4] ss:$8 sps:$4 sm:$0xff]   ;;  %v3172_v12 = vld [vmem:[%s3450_s19 + $0x2a0] ss:$8 sps:$4 sm:$0xff]  }
  0x53   : > { %2147 = vmatprep.subr.bf16.mxu1 %v3105_v13  ;;  %2028 = vmatprep.mubr.bf16.mxu0 %v2688_v33  ;;  %v3175_v13 = vld [vmem:[%s3450_s19 + $0x3a0] ss:$8 sps:$4 sm:$0xff]   ;;  %v3201_v33 = vld [vmem:[%s3450_s19 + $0x564] ss:$8 sps:$4 sm:$0xff]  }
  0x54   : > { %2081 = vmatprep.mubr.bf16.mxu1 %v2690_v34 }
  0x55   : > { %2095 = vmatpush1.bf16.msra.mxu0 %v3100_v14  ;;  %v3180_v14 = vld [vmem:[%s3450_s19 + $0x294] ss:$8 sps:$4 sm:$0xff]  }
  0x56   : > { %2148 = vmatpush1.bf16.msra.mxu1 %v3103_v15  ;;  %2096 = vmatprep.subr.bf16.mxu0 %v3108_v16  ;;  %v3183_v15 = vld [vmem:[%s3450_s19 + $0x394] ss:$8 sps:$4 sm:$0xff]   ;;  %v3178_v16 = vld [vmem:[%s3450_s19 + $0x290] ss:$8 sps:$4 sm:$0xff]  }
  0x57   : > { %2149 = vmatprep.subr.bf16.mxu1 %v3111_v17  ;;  %v3181_v17 = vld [vmem:[%s3450_s19 + $0x390] ss:$8 sps:$4 sm:$0xff]  }
  0x58   : > { %2029 = vmatmul.mubr.bf16.gmra.mxu0 %v2687_v35  ;;  %v2694_v35 = vcombine.high %v277_v30, %v285_v31 }
  0x59   : > { %2097 = vmatpush1.bf16.msra.mxu0 %v3106_v18  ;;  %2082 = vmatmul.mubr.bf16.gmra.mxu1 %v2689_v37  ;;  %v3186_v18 = vld [vmem:[%s3450_s19 + $0x284] ss:$8 sps:$4 sm:$0xff]   ;;  %v3199_v37 = vld [vmem:[%s3450_s19 + $0x560] ss:$8 sps:$4 sm:$0xff]  }
  0x5a   : > { %2150 = vmatpush1.bf16.msra.mxu1 %v3109_v19  ;;  %2098 = vmatprep.subr.bf16.mxu0 %v3114_v20  ;;  %v3189_v19 = vld [vmem:[%s3450_s19 + $0x384] ss:$8 sps:$4 sm:$0xff]   ;;  %v3184_v20 = vld [vmem:[%s3450_s19 + $0x280] ss:$8 sps:$4 sm:$0xff]  }
  0x5b   : > { %2151 = vmatprep.subr.bf16.mxu1 %v3117_v21  ;;  %2124 = vmatprep.mubr.bf16.mxu0 %v2676_v49  ;;  %v3187_v21 = vld [vmem:[%s3450_s19 + $0x380] ss:$8 sps:$4 sm:$0xff]   ;;  %v3213_v49 = vld [vmem:[%s3450_s19 + $0x544] ss:$8 sps:$4 sm:$0xff]  }
  0x5c   : > { %2177 = vmatprep.mubr.bf16.mxu1 %v2678_v51  ;;  %v2682_v51 = vcombine.high %v3637_v46, %v3640_v47 }
  0x5d   : > { %2099 = vmatpush1.bf16.msra.mxu0 %v3112_v22  ;;  %v3192_v22 = vld [vmem:[%s3450_s19 + $0x474] ss:$8 sps:$4 sm:$0xff]  }
  0x5e   : > { %2152 = vmatpush1.bf16.msra.mxu1 %v3115_v23  ;;  %2100 = vmatprep.subr.bf16.mxu0 %v3120_v24  ;;  %v3195_v23 = vld [vmem:[%s3450_s19 + $0x574] ss:$8 sps:$4 sm:$0xff]   ;;  %v3190_v24 = vld [vmem:[%s3450_s19 + $0x470] ss:$8 sps:$4 sm:$0xff]  }
  0x5f   : > { %2153 = vmatprep.subr.bf16.mxu1 %v3123_v25  ;;  %v3193_v25 = vld [vmem:[%s3450_s19 + $0x570] ss:$8 sps:$4 sm:$0xff]  }
  0x61   : > { %2101 = vmatpush1.bf16.msra.mxu0 %v3118_v26  ;;  %v276_v26 = vld [vmem:[%s3500_s23 + $0x90] sm:$0xff] }
  0x62   : > { %2154 = vmatpush1.bf16.msra.mxu1 %v3121_v27  ;;  %2102 = vmatprep.subr.bf16.mxu0 %v3126_v32  ;;  %v284_v27 = vld [vmem:[%s3500_s23 + $0xd0] sm:$0xff]  ;;  %v3198_v32 = vld [vmem:[%s3450_s19 + $0x464] ss:$8 sps:$4 sm:$0xff]  }
  0x63   : > { %2155 = vmatprep.subr.bf16.mxu1 %v3129_v36  ;;  %v2692_v34 = vcombine.high %v276_v26, %v284_v27  ;;  %v3196_v36 = vld [vmem:[%s3450_s19 + $0x460] ss:$8 sps:$4 sm:$0xff]  }
  0x65   : > { %2103 = vmatpush1.bf16.msra.mxu0 %v3124_v38  ;;  %v3204_v38 = vld [vmem:[%s3450_s19 + $0x454] ss:$8 sps:$4 sm:$0xff]  }
  0x66   : > { %2156 = vmatpush1.bf16.msra.mxu1 %v3127_v39  ;;  %2104 = vmatprep.subr.bf16.mxu0 %v3132_v40  ;;  %v3207_v39 = vld [vmem:[%s3450_s19 + $0x554] ss:$8 sps:$4 sm:$0xff]   ;;  %v3202_v40 = vld [vmem:[%s3450_s19 + $0x450] ss:$8 sps:$4 sm:$0xff]  }
  0x67   : > { %2157 = vmatprep.subr.bf16.mxu1 %v3135_v41  ;;  %v3205_v41 = vld [vmem:[%s3450_s19 + $0x550] ss:$8 sps:$4 sm:$0xff]  }
  0x69   : > { %2105 = vmatpush1.bf16.msra.mxu0 %v3130_v42  ;;  %v3631_v42 = vld [vmem:[%s3500_s23 + $0x20] sm:$0xff] }
  0x6a   : > { %2158 = vmatpush1.bf16.msra.mxu1 %v3133_v43  ;;  %2106 = vmatprep.subr.bf16.mxu0 %v3138_v44  ;;  %v3634_v43 = vld [vmem:[%s3500_s23 + $0x60] sm:$0xff]  ;;  %v2691_v44 = vcombine.low %v276_v26, %v284_v27 }
  0x6b   : > { %2159 = vmatprep.subr.bf16.mxu1 %v3141_v45  ;;  %v2693_v45 = vcombine.low %v277_v30, %v285_v31  ;;  %v2680_v50 = vcombine.high %v3631_v42, %v3634_v43  ;;  %v3270_v26 = vld [vmem:[%s3450_s19 + $0x4a4] ss:$8 sps:$4 sm:$0xff]   ;;  %v3276_v30 = vld [vmem:[%s3450_s19 + $0x494] ss:$8 sps:$4 sm:$0xff]  }
  0x6c   : > { %v3273_v27 = vld [vmem:[%s3450_s19 + $0x5a4] ss:$8 sps:$4 sm:$0xff]   ;;  %v3279_v31 = vld [vmem:[%s3450_s19 + $0x594] ss:$8 sps:$4 sm:$0xff]  }
  0x6d   : > { %2107 = vmatpush1.bf16.msra.mxu0 %v3136_v52  ;;  %v3208_v52 = vld [vmem:[%s3450_s19 + $0x440] ss:$8 sps:$4 sm:$0xff]  }
  0x6e   : > { %2160 = vmatpush1.bf16.msra.mxu1 %v3139_v53  ;;  %2108 = vmatprep.subr.bf16.mxu0 %v3144_v54  ;;  %v3211_v53 = vld [vmem:[%s3450_s19 + $0x540] ss:$8 sps:$4 sm:$0xff]   ;;  %v3216_v54 = vld [vmem:[%s3450_s19 + $0x434] ss:$8 sps:$4 sm:$0xff]  }
  0x6f   : > { %2161 = vmatprep.subr.bf16.mxu1 %v3147_v55  ;;  %v3219_v55 = vld [vmem:[%s3450_s19 + $0x534] ss:$8 sps:$4 sm:$0xff]  }
  0x71   : > { %2109 = vmatpush2.bf16.msra.mxu0 %v3142_v56  ;;  %v3214_v56 = vld [vmem:[%s3450_s19 + $0x430] ss:$8 sps:$4 sm:$0xff]  }
  0x72   : > { %2162 = vmatpush2.bf16.msra.mxu1 %v3145_v57  ;;  %2110 = vmatprep.subr.bf16.mxu0 %v3150_v58  ;;  %v3217_v57 = vld [vmem:[%s3450_s19 + $0x530] ss:$8 sps:$4 sm:$0xff]   ;;  %v3222_v58 = vld [vmem:[%s3450_s19 + $0x424] ss:$8 sps:$4 sm:$0xff]  }
  0x73   : > { %2163 = vmatprep.subr.bf16.mxu1 %v3153_v59  ;;  %v3225_v59 = vld [vmem:[%s3450_s19 + $0x524] ss:$8 sps:$4 sm:$0xff]  }
  0x75   : > { %2111 = vmatpush2.bf16.msra.mxu0 %v3148_v60  ;;  %v3220_v60 = vld [vmem:[%s3450_s19 + $0x420] ss:$8 sps:$4 sm:$0xff]  }
  0x76   : > { %2164 = vmatpush2.bf16.msra.mxu1 %v3151_v61  ;;  %2112 = vmatprep.subr.bf16.mxu0 %v3156_v62  ;;  %v3223_v61 = vld [vmem:[%s3450_s19 + $0x520] ss:$8 sps:$4 sm:$0xff]   ;;  %v3228_v62 = vld [vmem:[%s3450_s19 + $0x414] ss:$8 sps:$4 sm:$0xff]  }
  0x77   : > { %2165 = vmatprep.subr.bf16.mxu1 %v3159_v63  ;;  %v3231_v63 = vld [vmem:[%s3450_s19 + $0x514] ss:$8 sps:$4 sm:$0xff]  }
  0x79   : > { %2113 = vmatpush2.bf16.msra.mxu0 %v3154_v0  ;;  %v3226_v0 = vld [vmem:[%s3450_s19 + $0x410] ss:$8 sps:$4 sm:$0xff]  }
  0x7a   : > { %2166 = vmatpush2.bf16.msra.mxu1 %v3157_v1  ;;  %2114 = vmatprep.subr.bf16.mxu0 %v3162_v2  ;;  %v3229_v1 = vld [vmem:[%s3450_s19 + $0x510] ss:$8 sps:$4 sm:$0xff]   ;;  %v3234_v2 = vld [vmem:[%s3450_s19 + $0x404] ss:$8 sps:$4 sm:$0xff]  }
  0x7b   : > { %2167 = vmatprep.subr.bf16.mxu1 %v3165_v3  ;;  %v3237_v3 = vld [vmem:[%s3450_s19 + $0x504] ss:$8 sps:$4 sm:$0xff]  }
  0x7d   : > { %2115 = vmatpush2.bf16.msra.mxu0 %v3160_v4  ;;  %v3232_v4 = vld [vmem:[%s3450_s19 + $0x400] ss:$8 sps:$4 sm:$0xff]  }
  0x7e   : > { %2168 = vmatpush2.bf16.msra.mxu1 %v3163_v5  ;;  %2116 = vmatprep.subr.bf16.mxu0 %v3168_v6  ;;  %v3235_v5 = vld [vmem:[%s3450_s19 + $0x500] ss:$8 sps:$4 sm:$0xff]   ;;  %v3240_v6 = vld [vmem:[%s3450_s19 + $0x4f4] ss:$8 sps:$4 sm:$0xff]  }
  0x7f   : > { %2169 = vmatprep.subr.bf16.mxu1 %v3171_v7  ;;  %v3243_v7 = vld [vmem:[%s3450_s19 + $0x5f4] ss:$8 sps:$4 sm:$0xff]  }
  0x81   : > { %2117 = vmatpush2.bf16.msra.mxu0 %v3166_v8  ;;  %v3238_v8 = vld [vmem:[%s3450_s19 + $0x4f0] ss:$8 sps:$4 sm:$0xff]  }
  0x82   : > { %2170 = vmatpush2.bf16.msra.mxu1 %v3169_v9  ;;  %2118 = vmatprep.subr.bf16.mxu0 %v3174_v10  ;;  %v3241_v9 = vld [vmem:[%s3450_s19 + $0x5f0] ss:$8 sps:$4 sm:$0xff]   ;;  %v3246_v10 = vld [vmem:[%s3450_s19 + $0x4e4] ss:$8 sps:$4 sm:$0xff]  }
  0x83   : > { %2171 = vmatprep.subr.bf16.mxu1 %v3177_v11  ;;  %v3249_v11 = vld [vmem:[%s3450_s19 + $0x5e4] ss:$8 sps:$4 sm:$0xff]  }
  0x85   : > { %2119 = vmatpush2.bf16.msra.mxu0 %v3172_v12  ;;  %v3244_v12 = vld [vmem:[%s3450_s19 + $0x4e0] ss:$8 sps:$4 sm:$0xff]  }
  0x86   : > { %2172 = vmatpush2.bf16.msra.mxu1 %v3175_v13  ;;  %2120 = vmatprep.subr.bf16.mxu0 %v3180_v14  ;;  %v3247_v13 = vld [vmem:[%s3450_s19 + $0x5e0] ss:$8 sps:$4 sm:$0xff]   ;;  %v3252_v14 = vld [vmem:[%s3450_s19 + $0x4d4] ss:$8 sps:$4 sm:$0xff]  }
  0x87   : > { %2173 = vmatprep.subr.bf16.mxu1 %v3183_v15  ;;  %v3255_v15 = vld [vmem:[%s3450_s19 + $0x5d4] ss:$8 sps:$4 sm:$0xff]  }
  0x89   : > { %2121 = vmatpush2.bf16.msra.mxu0 %v3178_v16  ;;  %v3250_v16 = vld [vmem:[%s3450_s19 + $0x4d0] ss:$8 sps:$4 sm:$0xff]  }
  0x8a   : > { %2174 = vmatpush2.bf16.msra.mxu1 %v3181_v17  ;;  %2122 = vmatprep.subr.bf16.mxu0 %v3186_v18  ;;  %v3253_v17 = vld [vmem:[%s3450_s19 + $0x5d0] ss:$8 sps:$4 sm:$0xff]   ;;  %v3258_v18 = vld [vmem:[%s3450_s19 + $0x4c4] ss:$8 sps:$4 sm:$0xff]  }
  0x8b   : > { %2175 = vmatprep.subr.bf16.mxu1 %v3189_v19  ;;  %v3261_v19 = vld [vmem:[%s3450_s19 + $0x5c4] ss:$8 sps:$4 sm:$0xff]  }
  0x8d   : > { %2123 = vmatpush2.bf16.msra.mxu0 %v3184_v20  ;;  %v3256_v20 = vld [vmem:[%s3450_s19 + $0x4c0] ss:$8 sps:$4 sm:$0xff]  }
  0x8e   : > { %2176 = vmatpush2.bf16.msra.mxu1 %v3187_v21  ;;  %2198 = vmatprep.subr.bf16.mxu0 %v3192_v22  ;;  %v3259_v21 = vld [vmem:[%s3450_s19 + $0x5c0] ss:$8 sps:$4 sm:$0xff]   ;;  %v3264_v22 = vld [vmem:[%s3450_s19 + $0x4b4] ss:$8 sps:$4 sm:$0xff]  }
  0x8f   : > { %2251 = vmatprep.subr.bf16.mxu1 %v3195_v23  ;;  %v3267_v23 = vld [vmem:[%s3450_s19 + $0x5b4] ss:$8 sps:$4 sm:$0xff]  }
  0x90   : > { %2125 = vmatmul.mubr.bf16.vlgmr.msra.gmra.mxu0 %v2675_v28  ;;  %v3268_v28 = vld [vmem:[%s3450_s19 + $0x4a0] ss:$8 sps:$4 sm:$0xff]  }
  0x91   : > { %2178 = vmatmul.mubr.bf16.vlgmr.msra.gmra.mxu1 %v2677_v29  ;;  %2199 = vmatpush1.bf16.msra.mxu0 %v3190_v24  ;;  %v3262_v24 = vld [vmem:[%s3450_s19 + $0x4b0] ss:$8 sps:$4 sm:$0xff]   ;;  %v3271_v29 = vld [vmem:[%s3450_s19 + $0x5a0] ss:$8 sps:$4 sm:$0xff]  }
  0x92   : > { %2252 = vmatpush1.bf16.msra.mxu1 %v3193_v25  ;;  %2200 = vmatprep.subr.bf16.mxu0 %v3198_v32  ;;  %v3265_v25 = vld [vmem:[%s3450_s19 + $0x5b0] ss:$8 sps:$4 sm:$0xff]  }
  0x93   : > { %2253 = vmatprep.subr.bf16.mxu1 %v3201_v33  ;;  %2134 = vmatprep.mubr.bf16.mxu0 %v2692_v34  ;;  %v3274_v32 = vld [vmem:[%s3450_s19 + $0x490] ss:$8 sps:$4 sm:$0xff]   ;;  %v3282_v34 = vld [vmem:[%s3450_s19 + $0x484] ss:$8 sps:$4 sm:$0xff]  }
  0x94   : > { %2187 = vmatprep.mubr.bf16.mxu1 %v2694_v35  ;;  %v3277_v33 = vld [vmem:[%s3450_s19 + $0x590] ss:$8 sps:$4 sm:$0xff]   ;;  %v3285_v35 = vld [vmem:[%s3450_s19 + $0x584] ss:$8 sps:$4 sm:$0xff]  }
  0x95   : > { %2201 = vmatpush1.bf16.msra.mxu0 %v3196_v36  ;;  %v3280_v36 = vld [vmem:[%s3450_s19 + $0x480] ss:$8 sps:$4 sm:$0xff]  }
  0x96   : > { %2254 = vmatpush1.bf16.msra.mxu1 %v3199_v37  ;;  %2202 = vmatprep.subr.bf16.mxu0 %v3204_v38  ;;  %v3283_v37 = vld [vmem:[%s3450_s19 + $0x580] ss:$8 sps:$4 sm:$0xff]   ;;  %v3288_v38 = vld [vmem:[%s3450_s19 + $0x674] ss:$8 sps:$4 sm:$0xff]  }
  0x97   : > { %2255 = vmatprep.subr.bf16.mxu1 %v3207_v39  ;;  %v3291_v39 = vld [vmem:[%s3450_s19 + $0x774] ss:$8 sps:$4 sm:$0xff]  }
  0x98   : > { %2135 = vmatmul.mubr.bf16.gmra.mxu0 %v2691_v44  ;;  %v2681_v44 = vcombine.low %v3637_v46, %v3640_v47  ;;  %v3292_v46 = vld [vmem:[%s3450_s19 + $0x660] ss:$8 sps:$4 sm:$0xff]  }
  0x99   : > { %2188 = vmatmul.mubr.bf16.gmra.mxu1 %v2693_v45  ;;  %2203 = vmatpush1.bf16.msra.mxu0 %v3202_v40  ;;  %v278_v40 = vld [vmem:[%s3500_s23 + $0xa0] sm:$0xff] }
  0x9a   : > { %2256 = vmatpush1.bf16.msra.mxu1 %v3205_v41  ;;  %2204 = vmatprep.subr.bf16.mxu0 %v3210_v48  ;;  %v2679_v41 = vcombine.low %v3631_v42, %v3634_v43  ;;  %v286_v45 = vld [vmem:[%s3500_s23 + $0xe0] sm:$0xff]  ;;  %v279_v48 = vld [vmem:[%s3500_s23 + $0xa8] sm:$0xff] }
  0x9b   : > { %2257 = vmatprep.subr.bf16.mxu1 %v3213_v49  ;;  %2230 = vmatprep.mubr.bf16.mxu0 %v2680_v50  ;;  %v287_v49 = vld [vmem:[%s3500_s23 + $0xe8] sm:$0xff]  ;;  %v3286_v50 = vld [vmem:[%s3450_s19 + $0x670] ss:$8 sps:$4 sm:$0xff]   ;;  %v2696_v42 = vcombine.high %v278_v40, %v286_v45 }
  0x9c   : > { %2283 = vmatprep.mubr.bf16.mxu1 %v2682_v51  ;;  %v3289_v51 = vld [vmem:[%s3450_s19 + $0x770] ss:$8 sps:$4 sm:$0xff]   ;;  %v2698_v43 = vcombine.high %v279_v48, %v287_v49  ;;  %v3295_v47 = vld [vmem:[%s3450_s19 + $0x760] ss:$8 sps:$4 sm:$0xff]  }
  0x9d   : > { %2205 = vmatpush1.bf16.msra.mxu0 %v3208_v52  ;;  %v3294_v52 = vld [vmem:[%s3450_s19 + $0x664] ss:$8 sps:$4 sm:$0xff]  }
  0x9e   : > { %2258 = vmatpush1.bf16.msra.mxu1 %v3211_v53  ;;  %2206 = vmatprep.subr.bf16.mxu0 %v3216_v54  ;;  %v3297_v53 = vld [vmem:[%s3450_s19 + $0x764] ss:$8 sps:$4 sm:$0xff]   ;;  %v3300_v54 = vld [vmem:[%s3450_s19 + $0x654] ss:$8 sps:$4 sm:$0xff]  }
  0x9f   : > { %2259 = vmatprep.subr.bf16.mxu1 %v3219_v55  ;;  %v3303_v55 = vld [vmem:[%s3450_s19 + $0x754] ss:$8 sps:$4 sm:$0xff]  }
  0xa1   : > { %2207 = vmatpush1.bf16.msra.mxu0 %v3214_v56  ;;  %v3717_v56 = vld [vmem:[%s3500_s23 + $0x30] sm:$0xff] }
  0xa2   : > { %2260 = vmatpush1.bf16.msra.mxu1 %v3217_v57  ;;  %2208 = vmatprep.subr.bf16.mxu0 %v3222_v58  ;;  %v2695_v57 = vcombine.low %v278_v40, %v286_v45  ;;  %v2697_v58 = vcombine.low %v279_v48, %v287_v49  ;;  %v3358_v40 = vld [vmem:[%s3450_s19 + $0x6b0] ss:$8 sps:$4 sm:$0xff]   ;;  %v3369_v45 = vld [vmem:[%s3450_s19 + $0x7a4] ss:$8 sps:$4 sm:$0xff]   ;;  %v3364_v48 = vld [vmem:[%s3450_s19 + $0x6a0] ss:$8 sps:$4 sm:$0xff]  }
  0xa3   : > { %2261 = vmatprep.subr.bf16.mxu1 %v3225_v59  ;;  %v3720_v59 = vld [vmem:[%s3500_s23 + $0x70] sm:$0xff]  ;;  %v3367_v49 = vld [vmem:[%s3450_s19 + $0x7a0] ss:$8 sps:$4 sm:$0xff]  }
  0xa5   : > { %2209 = vmatpush1.bf16.msra.mxu0 %v3220_v60  ;;  %v3723_v60 = vld [vmem:[%s3500_s23 + $0x38] sm:$0xff] }
  0xa6   : > { %2262 = vmatpush1.bf16.msra.mxu1 %v3223_v61  ;;  %2210 = vmatprep.subr.bf16.mxu0 %v3228_v62  ;;  %v3726_v61 = vld [vmem:[%s3500_s23 + $0x78] sm:$0xff] }
  0xa7   : > { %2263 = vmatprep.subr.bf16.mxu1 %v3231_v63  ;;  %v3298_v62 = vld [vmem:[%s3450_s19 + $0x650] ss:$8 sps:$4 sm:$0xff]  }
  0xa8   : > { %v3301_v63 = vld [vmem:[%s3450_s19 + $0x750] ss:$8 sps:$4 sm:$0xff]  }
  0xa9   : > { %2211 = vmatpush1.bf16.msra.mxu0 %v3226_v0  ;;  %v3306_v0 = vld [vmem:[%s3450_s19 + $0x644] ss:$8 sps:$4 sm:$0xff]  }
  0xaa   : > { %2264 = vmatpush1.bf16.msra.mxu1 %v3229_v1  ;;  %2212 = vmatprep.subr.bf16.mxu0 %v3234_v2  ;;  %v3309_v1 = vld [vmem:[%s3450_s19 + $0x744] ss:$8 sps:$4 sm:$0xff]   ;;  %v2684_v2 = vcombine.high %v3717_v56, %v3720_v59 }
  0xab   : > { %2265 = vmatprep.subr.bf16.mxu1 %v3237_v3  ;;  %v2686_v3 = vcombine.high %v3723_v60, %v3726_v61 }
  0xad   : > { %2213 = vmatpush1.bf16.msra.mxu0 %v3232_v4  ;;  %v3304_v4 = vld [vmem:[%s3450_s19 + $0x640] ss:$8 sps:$4 sm:$0xff]  }
  0xae   : > { %2266 = vmatpush1.bf16.msra.mxu1 %v3235_v5  ;;  %2214 = vmatprep.subr.bf16.mxu0 %v3240_v6  ;;  %v3307_v5 = vld [vmem:[%s3450_s19 + $0x740] ss:$8 sps:$4 sm:$0xff]   ;;  %v3312_v6 = vld [vmem:[%s3450_s19 + $0x634] ss:$8 sps:$4 sm:$0xff]  }
  0xaf   : > { %2267 = vmatprep.subr.bf16.mxu1 %v3243_v7  ;;  %v3315_v7 = vld [vmem:[%s3450_s19 + $0x734] ss:$8 sps:$4 sm:$0xff]  }
  0xb1   : > { %2215 = vmatpush2.bf16.msra.mxu0 %v3238_v8  ;;  %v3310_v8 = vld [vmem:[%s3450_s19 + $0x630] ss:$8 sps:$4 sm:$0xff]  }
  0xb2   : > { %2268 = vmatpush2.bf16.msra.mxu1 %v3241_v9  ;;  %2216 = vmatprep.subr.bf16.mxu0 %v3246_v10  ;;  %v3313_v9 = vld [vmem:[%s3450_s19 + $0x730] ss:$8 sps:$4 sm:$0xff]   ;;  %v3318_v10 = vld [vmem:[%s3450_s19 + $0x624] ss:$8 sps:$4 sm:$0xff]  }
  0xb3   : > { %2269 = vmatprep.subr.bf16.mxu1 %v3249_v11  ;;  %v3321_v11 = vld [vmem:[%s3450_s19 + $0x724] ss:$8 sps:$4 sm:$0xff]  }
  0xb5   : > { %2217 = vmatpush2.bf16.msra.mxu0 %v3244_v12  ;;  %v3316_v12 = vld [vmem:[%s3450_s19 + $0x620] ss:$8 sps:$4 sm:$0xff]  }
  0xb6   : > { %2270 = vmatpush2.bf16.msra.mxu1 %v3247_v13  ;;  %2218 = vmatprep.subr.bf16.mxu0 %v3252_v14  ;;  %v3319_v13 = vld [vmem:[%s3450_s19 + $0x720] ss:$8 sps:$4 sm:$0xff]   ;;  %v3324_v14 = vld [vmem:[%s3450_s19 + $0x614] ss:$8 sps:$4 sm:$0xff]  }
  0xb7   : > { %2271 = vmatprep.subr.bf16.mxu1 %v3255_v15  ;;  %v3327_v15 = vld [vmem:[%s3450_s19 + $0x714] ss:$8 sps:$4 sm:$0xff]  }
  0xb9   : > { %2219 = vmatpush2.bf16.msra.mxu0 %v3250_v16  ;;  %v3322_v16 = vld [vmem:[%s3450_s19 + $0x610] ss:$8 sps:$4 sm:$0xff]  }
  0xba   : > { %2272 = vmatpush2.bf16.msra.mxu1 %v3253_v17  ;;  %2220 = vmatprep.subr.bf16.mxu0 %v3258_v18  ;;  %v3325_v17 = vld [vmem:[%s3450_s19 + $0x710] ss:$8 sps:$4 sm:$0xff]   ;;  %v3330_v18 = vld [vmem:[%s3450_s19 + $0x604] ss:$8 sps:$4 sm:$0xff]  }
  0xbb   : > { %2273 = vmatprep.subr.bf16.mxu1 %v3261_v19  ;;  %v3333_v19 = vld [vmem:[%s3450_s19 + $0x704] ss:$8 sps:$4 sm:$0xff]  }
  0xbd   : > { %2221 = vmatpush2.bf16.msra.mxu0 %v3256_v20  ;;  %v3328_v20 = vld [vmem:[%s3450_s19 + $0x600] ss:$8 sps:$4 sm:$0xff]  }
  0xbe   : > { %2274 = vmatpush2.bf16.msra.mxu1 %v3259_v21  ;;  %2222 = vmatprep.subr.bf16.mxu0 %v3264_v22  ;;  %v3331_v21 = vld [vmem:[%s3450_s19 + $0x700] ss:$8 sps:$4 sm:$0xff]   ;;  %v3336_v22 = vld [vmem:[%s3450_s19 + $0x6f4] ss:$8 sps:$4 sm:$0xff]  }
  0xbf   : > { %2275 = vmatprep.subr.bf16.mxu1 %v3267_v23  ;;  %v3339_v23 = vld [vmem:[%s3450_s19 + $0x7f4] ss:$8 sps:$4 sm:$0xff]  }
  0xc1   : > { %2223 = vmatpush2.bf16.msra.mxu0 %v3262_v24  ;;  %v3334_v24 = vld [vmem:[%s3450_s19 + $0x6f0] ss:$8 sps:$4 sm:$0xff]  }
  0xc2   : > { %2276 = vmatpush2.bf16.msra.mxu1 %v3265_v25  ;;  %2224 = vmatprep.subr.bf16.mxu0 %v3270_v26  ;;  %v3337_v25 = vld [vmem:[%s3450_s19 + $0x7f0] ss:$8 sps:$4 sm:$0xff]   ;;  %v3342_v26 = vld [vmem:[%s3450_s19 + $0x6e4] ss:$8 sps:$4 sm:$0xff]  }
  0xc3   : > { %2277 = vmatprep.subr.bf16.mxu1 %v3273_v27  ;;  %v3345_v27 = vld [vmem:[%s3450_s19 + $0x7e4] ss:$8 sps:$4 sm:$0xff]  }
  0xc5   : > { %2225 = vmatpush2.bf16.msra.mxu0 %v3268_v28  ;;  %v3340_v28 = vld [vmem:[%s3450_s19 + $0x6e0] ss:$8 sps:$4 sm:$0xff]  }
  0xc6   : > { %2278 = vmatpush2.bf16.msra.mxu1 %v3271_v29  ;;  %2226 = vmatprep.subr.bf16.mxu0 %v3276_v30  ;;  %v3343_v29 = vld [vmem:[%s3450_s19 + $0x7e0] ss:$8 sps:$4 sm:$0xff]   ;;  %v3348_v30 = vld [vmem:[%s3450_s19 + $0x6d4] ss:$8 sps:$4 sm:$0xff]  }
  0xc7   : > { %2279 = vmatprep.subr.bf16.mxu1 %v3279_v31  ;;  %v3351_v31 = vld [vmem:[%s3450_s19 + $0x7d4] ss:$8 sps:$4 sm:$0xff]  }
  0xc9   : > { %2227 = vmatpush2.bf16.msra.mxu0 %v3274_v32  ;;  %v3346_v32 = vld [vmem:[%s3450_s19 + $0x6d0] ss:$8 sps:$4 sm:$0xff]  }
  0xca   : > { %2280 = vmatpush2.bf16.msra.mxu1 %v3277_v33  ;;  %2228 = vmatprep.subr.bf16.mxu0 %v3282_v34  ;;  %v3349_v33 = vld [vmem:[%s3450_s19 + $0x7d0] ss:$8 sps:$4 sm:$0xff]   ;;  %v3354_v34 = vld [vmem:[%s3450_s19 + $0x6c4] ss:$8 sps:$4 sm:$0xff]  }
  0xcb   : > { %2281 = vmatprep.subr.bf16.mxu1 %v3285_v35  ;;  %v3357_v35 = vld [vmem:[%s3450_s19 + $0x7c4] ss:$8 sps:$4 sm:$0xff]  }
  0xcd   : > { %2229 = vmatpush2.bf16.msra.mxu0 %v3280_v36  ;;  %v3352_v36 = vld [vmem:[%s3450_s19 + $0x6c0] ss:$8 sps:$4 sm:$0xff]  }
  0xce   : > { %2282 = vmatpush2.bf16.msra.mxu1 %v3283_v37  ;;  %2304 = vmatprep.subr.bf16.mxu0 %v3288_v38  ;;  %v3355_v37 = vld [vmem:[%s3450_s19 + $0x7c0] ss:$8 sps:$4 sm:$0xff]   ;;  %v3360_v38 = vld [vmem:[%s3450_s19 + $0x6b4] ss:$8 sps:$4 sm:$0xff]  }
  0xcf   : > { %2357 = vmatprep.subr.bf16.mxu1 %v3291_v39  ;;  %v3363_v39 = vld [vmem:[%s3450_s19 + $0x7b4] ss:$8 sps:$4 sm:$0xff]  }
  0xd0   : > { %2231 = vmatmul.mubr.bf16.vlgmr.msra.gmra.mxu0 %v2679_v41  ;;  %v3361_v41 = vld [vmem:[%s3450_s19 + $0x7b0] ss:$8 sps:$4 sm:$0xff]  }
  0xd1   : > { %2284 = vmatmul.mubr.bf16.vlgmr.msra.gmra.mxu1 %v2681_v44  ;;  %2305 = vmatpush1.bf16.msra.mxu0 %v3286_v50  ;;  %v3366_v44 = vld [vmem:[%s3450_s19 + $0x6a4] ss:$8 sps:$4 sm:$0xff]   ;;  %v3372_v50 = vld [vmem:[%s3450_s19 + $0x694] ss:$8 sps:$4 sm:$0xff]  }
  0xd2   : > { %2358 = vmatpush1.bf16.msra.mxu1 %v3289_v51  ;;  %2306 = vmatprep.subr.bf16.mxu0 %v3294_v52  ;;  %v3375_v51 = vld [vmem:[%s3450_s19 + $0x794] ss:$8 sps:$4 sm:$0xff]   ;;  %v3370_v52 = vld [vmem:[%s3450_s19 + $0x690] ss:$8 sps:$4 sm:$0xff]  }
  0xd3   : > { %2359 = vmatprep.subr.bf16.mxu1 %v3297_v53  ;;  %2240 = vmatprep.mubr.bf16.mxu0 %v2696_v42  ;;  %v3373_v53 = vld [vmem:[%s3450_s19 + $0x790] ss:$8 sps:$4 sm:$0xff]   ;;  %v3378_v42 = vld [vmem:[%s3450_s19 + $0x684] ss:$8 sps:$4 sm:$0xff]  }
  0xd4   : > { %2293 = vmatprep.mubr.bf16.mxu1 %v2698_v43  ;;  %v3381_v43 = vld [vmem:[%s3450_s19 + $0x784] ss:$8 sps:$4 sm:$0xff]  }
  0xd5   : > { %2307 = vmatpush1.bf16.msra.mxu0 %v3292_v46  ;;  %v3376_v46 = vld [vmem:[%s3450_s19 + $0x680] ss:$8 sps:$4 sm:$0xff]  }
  0xd6   : > { %2360 = vmatpush1.bf16.msra.mxu1 %v3295_v47  ;;  %2308 = vmatprep.subr.bf16.mxu0 %v3300_v54  ;;  %v3379_v47 = vld [vmem:[%s3450_s19 + $0x780] ss:$8 sps:$4 sm:$0xff]   ;;  %v280_v54 = vld [vmem:[%s3500_s23 + $0xb0] sm:$0xff] }
  0xd7   : > { %2361 = vmatprep.subr.bf16.mxu1 %v3303_v55  ;;  %v288_v55 = vld [vmem:[%s3500_s23 + $0xf0] sm:$0xff] }
  0xd8   : > { %2241 = vmatmul.mubr.bf16.gmra.mxu0 %v2695_v57  ;;  %v281_v57 = vld [vmem:[%s3500_s23 + $0xb8] sm:$0xff] }
  0xd9   : > { %2294 = vmatmul.mubr.bf16.gmra.mxu1 %v2697_v58  ;;  %2309 = vmatpush1.bf16.msra.mxu0 %v3298_v62  ;;  %v289_v58 = vld [vmem:[%s3500_s23 + $0xf8] sm:$0xff]  ;;  %v2683_v62 = vcombine.low %v3717_v56, %v3720_v59 }
  0xda   : > { %2362 = vmatpush1.bf16.msra.mxu1 %v3301_v63  ;;  %2310 = vmatprep.subr.bf16.mxu0 %v3306_v0  ;;  %v2685_v63 = vcombine.low %v3723_v60, %v3726_v61  ;;  %v2700_v0 = vcombine.high %v280_v54, %v288_v55 }
  0xdb   : > { %2363 = vmatprep.subr.bf16.mxu1 %v3309_v1  ;;  %2336 = vmatprep.mubr.bf16.mxu0 %v2684_v2  ;;  %v2702_v1 = vcombine.high %v281_v57, %v289_v58  ;;  %v2699_v2 = vcombine.low %v280_v54, %v288_v55 }
  0xdc   : > { %2389 = vmatprep.mubr.bf16.mxu1 %v2686_v3  ;;  %v2701_v3 = vcombine.low %v281_v57, %v289_v58 }
  0xdd   : > { %2311 = vmatpush1.bf16.msra.mxu0 %v3304_v4 }
  0xde   : > { %2364 = vmatpush1.bf16.msra.mxu1 %v3307_v5  ;;  %2312 = vmatprep.subr.bf16.mxu0 %v3312_v6 }
  0xdf   : > { %2365 = vmatprep.subr.bf16.mxu1 %v3315_v7 }
  0xe1   : > { %2313 = vmatpush1.bf16.msra.mxu0 %v3310_v8 }
  0xe2   : > { %2366 = vmatpush1.bf16.msra.mxu1 %v3313_v9  ;;  %2314 = vmatprep.subr.bf16.mxu0 %v3318_v10 }
  0xe3   : > { %2367 = vmatprep.subr.bf16.mxu1 %v3321_v11 }
  0xe5   : > { %2315 = vmatpush1.bf16.msra.mxu0 %v3316_v12 }
  0xe6   : > { %2368 = vmatpush1.bf16.msra.mxu1 %v3319_v13  ;;  %2316 = vmatprep.subr.bf16.mxu0 %v3324_v14 }
  0xe7   : > { %2369 = vmatprep.subr.bf16.mxu1 %v3327_v15 }
  0xe9   : > { %2317 = vmatpush1.bf16.msra.mxu0 %v3322_v16 }
  0xea   : > { %2370 = vmatpush1.bf16.msra.mxu1 %v3325_v17  ;;  %2318 = vmatprep.subr.bf16.mxu0 %v3330_v18 }
  0xeb   : > { %2371 = vmatprep.subr.bf16.mxu1 %v3333_v19 }
  0xed   : > { %2319 = vmatpush1.bf16.msra.mxu0 %v3328_v20 }
  0xee   : > { %2372 = vmatpush1.bf16.msra.mxu1 %v3331_v21  ;;  %2320 = vmatprep.subr.bf16.mxu0 %v3336_v22 }
  0xef   : > { %2373 = vmatprep.subr.bf16.mxu1 %v3339_v23 }
  0xf1   : > { %2321 = vmatpush2.bf16.msra.mxu0 %v3334_v24 }
  0xf2   : > { %2374 = vmatpush2.bf16.msra.mxu1 %v3337_v25  ;;  %2322 = vmatprep.subr.bf16.mxu0 %v3342_v26 }
  0xf3   : > { %2375 = vmatprep.subr.bf16.mxu1 %v3345_v27 }
  0xf5   : > { %2323 = vmatpush2.bf16.msra.mxu0 %v3340_v28 }
  0xf6   : > { %2376 = vmatpush2.bf16.msra.mxu1 %v3343_v29  ;;  %2324 = vmatprep.subr.bf16.mxu0 %v3348_v30 }
  0xf7   : > { %2377 = vmatprep.subr.bf16.mxu1 %v3351_v31 }
  0xf9   : > { %2325 = vmatpush2.bf16.msra.mxu0 %v3346_v32 }
  0xfa   : > { %2378 = vmatpush2.bf16.msra.mxu1 %v3349_v33  ;;  %2326 = vmatprep.subr.bf16.mxu0 %v3354_v34 }
  0xfb   : > { %2379 = vmatprep.subr.bf16.mxu1 %v3357_v35 }
  0xfd   : > { %2327 = vmatpush2.bf16.msra.mxu0 %v3352_v36 }
  0xfe   : > { %2380 = vmatpush2.bf16.msra.mxu1 %v3355_v37  ;;  %2328 = vmatprep.subr.bf16.mxu0 %v3360_v38 }
  0xff   : > { %2381 = vmatprep.subr.bf16.mxu1 %v3363_v39 }
 0x101   : > { %2329 = vmatpush2.bf16.msra.mxu0 %v3358_v40 }
 0x102   : > { %2382 = vmatpush2.bf16.msra.mxu1 %v3361_v41  ;;  %2330 = vmatprep.subr.bf16.mxu0 %v3366_v44 }
 0x103   : > { %2383 = vmatprep.subr.bf16.mxu1 %v3369_v45 }
 0x105   : > { %2331 = vmatpush2.bf16.msra.mxu0 %v3364_v48 }
 0x106   : > { %2384 = vmatpush2.bf16.msra.mxu1 %v3367_v49  ;;  %2332 = vmatprep.subr.bf16.mxu0 %v3372_v50 }
 0x107   : > { %2385 = vmatprep.subr.bf16.mxu1 %v3375_v51 }
 0x109   : > { %2333 = vmatpush2.bf16.msra.mxu0 %v3370_v52 }
 0x10a   : > { %2386 = vmatpush2.bf16.msra.mxu1 %v3373_v53  ;;  %2334 = vmatprep.subr.bf16.mxu0 %v3378_v42 }
 0x10b   : > { %2387 = vmatprep.subr.bf16.mxu1 %v3381_v43 }
 0x10d   : > { %2335 = vmatpush2.bf16.msra.mxu0 %v3376_v46 }
 0x10e   : > { %2388 = vmatpush2.bf16.msra.mxu1 %v3379_v47 }
 0x110   : > { %2337 = vmatmul.mubr.bf16.vlgmr.msra.gmra.mxu0 %v2683_v62  ;;  %v2020_v4 = vpop.f32.mrf.mxu0 }
 0x111   : > { %2390 = vmatmul.mubr.bf16.vlgmr.msra.gmra.mxu1 %v2685_v63  ;;  %2346 = vmatprep.mubr.bf16.mxu0 %v2700_v0  ;;  %v2073_v5 = vpop.f32.mrf.mxu1 }
 0x112   : > { %2399 = vmatprep.mubr.bf16.mxu1 %v2702_v1  ;;  %v2022_v6 = vpop.f32.mrf.mxu0  ;;  %v2074_v44 = vadd.f32 %v2073_v5, %v2020_v4 }
 0x113   : > { %v2075_v7 = vpop.f32.mrf.mxu1 }
 0x114   : > { %v2024_v56 = vpop.f32.mrf.mxu0  ;;  %v2076_v45 = vadd.f32 %v2075_v7, %v2022_v6 }
 0x115   : > { %v2077_v59 = vpop.f32.mrf.mxu1 }
 0x116   : > { %v2026_v8 = vpop.f32.mrf.mxu0  ;;  %v2078_v51 = vadd.f32 %v2077_v59, %v2024_v56 }
 0x117   : > { %v2079_v61 = vpop.f32.mrf.mxu1 }
 0x118   : > { %2347 = vmatmul.mubr.bf16.gmra.mxu0 %v2699_v2  ;;  %v2030_v60 = vpop.f32.mrf.mxu0  ;;  %v2080_v53 = vadd.f32 %v2079_v61, %v2026_v8 }
 0x119   : > { %2400 = vmatmul.mubr.bf16.gmra.mxu1 %v2701_v3  ;;  %v2083_v9 = vpop.f32.mrf.mxu1 }
 0x11a   : > { %v2032_v10 = vpop.f32.mrf.mxu0  ;;  %v2084_v46 = vadd.f32 %v2083_v9, %v2030_v60 }
 0x11b   : > { %v2085_v11 = vpop.f32.mrf.mxu1 }
 0x11c   : > { %v2034_v12 = vpop.f32.mrf.mxu0  ;;  %v2086_v1 = vadd.f32 %v2085_v11, %v2032_v10 }
 0x11d   : > { %v2087_v13 = vpop.f32.mrf.mxu1 }
 0x11e   : > { %v2036_v14 = vpop.f32.mrf.mxu0  ;;  %v2088_v2 = vadd.f32 %v2087_v13, %v2034_v12 }
 0x11f   : > { %v2089_v16 = vpop.f32.mrf.mxu1 }
 0x120   : > { %v2090_v56 = vadd.f32 %v2089_v16, %v2036_v14 }
 0x150   : > { %v2126_v15 = vpop.f32.mrf.mxu0 }
 0x151   : > { %v2179_v17 = vpop.f32.mrf.mxu1  ;;  %v2127_v48 = vadd.f32 %v2126_v15, %v2074_v44 }
 0x152   : > { %v2128_v18 = vpop.f32.mrf.mxu0 }
 0x153   : > { %v2181_v19 = vpop.f32.mrf.mxu1  ;;  %v2129_v52 = vadd.f32 %v2128_v18, %v2076_v45  ;;  %v2180_v42 = vadd.f32 %v2179_v17, %v2127_v48 }
 0x154   : > { %v2130_v20 = vpop.f32.mrf.mxu0 }
 0x155   : > { %v2183_v21 = vpop.f32.mrf.mxu1  ;;  %v2131_v43 = vadd.f32 %v2130_v20, %v2078_v51  ;;  %v2182_v55 = vadd.f32 %v2181_v19, %v2129_v52 }
 0x156   : > { %v2132_v22 = vpop.f32.mrf.mxu0 }
 0x157   : > { %v2185_v23 = vpop.f32.mrf.mxu1  ;;  %v2133_v57 = vadd.f32 %v2132_v22, %v2080_v53  ;;  %v2184_v63 = vadd.f32 %v2183_v21, %v2131_v43 }
 0x158   : > { %v2136_v24 = vpop.f32.mrf.mxu0 }
 0x159   : > { %v2189_v25 = vpop.f32.mrf.mxu1  ;;  %v2137_v62 = vadd.f32 %v2136_v24, %v2084_v46  ;;  %v2186_v5 = vadd.f32 %v2185_v23, %v2133_v57 }
 0x15a   : > { %v2138_v26 = vpop.f32.mrf.mxu0 }
 0x15b   : > { %v2191_v27 = vpop.f32.mrf.mxu1  ;;  %v2139_v59 = vadd.f32 %v2138_v26, %v2086_v1  ;;  %v2190_v8 = vadd.f32 %v2189_v25, %v2137_v62 }
 0x15c   : > { %v2140_v28 = vpop.f32.mrf.mxu0 }
 0x15d   : > { %v2193_v29 = vpop.f32.mrf.mxu1  ;;  %v2141_v60 = vadd.f32 %v2140_v28, %v2088_v2  ;;  %v2192_v13 = vadd.f32 %v2191_v27, %v2139_v59 }
 0x15e   : > { %v2142_v30 = vpop.f32.mrf.mxu0 }
 0x15f   : > { %v2195_v31 = vpop.f32.mrf.mxu1  ;;  %v2143_v19 = vadd.f32 %v2142_v30, %v2090_v56  ;;  %v2194_v22 = vadd.f32 %v2193_v29, %v2141_v60 }
 0x161   : > { %v2196_v28 = vadd.f32 %v2195_v31, %v2143_v19 }
 0x190   : > { %v2232_v32 = vpop.f32.mrf.mxu0 }
 0x191   : > { %v2285_v33 = vpop.f32.mrf.mxu1  ;;  %v2233_v58 = vadd.f32 %v2232_v32, %v2180_v42 }
 0x192   : > { %v2234_v34 = vpop.f32.mrf.mxu0 }
 0x193   : > { %v2287_v35 = vpop.f32.mrf.mxu1  ;;  %v2235_v0 = vadd.f32 %v2234_v34, %v2182_v55  ;;  %v2286_v6 = vadd.f32 %v2285_v33, %v2233_v58 }
 0x194   : > { %v2236_v36 = vpop.f32.mrf.mxu0 }
 0x195   : > { %v2289_v37 = vpop.f32.mrf.mxu1  ;;  %v2237_v7 = vadd.f32 %v2236_v36, %v2184_v63  ;;  %v2288_v15 = vadd.f32 %v2287_v35, %v2235_v0 }
 0x196   : > { %v2238_v38 = vpop.f32.mrf.mxu0 }
 0x197   : > { %v2291_v39 = vpop.f32.mrf.mxu1  ;;  %v2239_v17 = vadd.f32 %v2238_v38, %v2186_v5  ;;  %v2290_v11 = vadd.f32 %v2289_v37, %v2237_v7 }
 0x198   : > { %v2242_v40 = vpop.f32.mrf.mxu0 }
 0x199   : > { %v2295_v41 = vpop.f32.mrf.mxu1  ;;  %v2243_v20 = vadd.f32 %v2242_v40, %v2190_v8  ;;  %v2292_v14 = vadd.f32 %v2291_v39, %v2239_v17 }
 0x19a   : > { %v2244_v49 = vpop.f32.mrf.mxu0 }
 0x19b   : > { %v2297_v50 = vpop.f32.mrf.mxu1  ;;  %v2245_v32 = vadd.f32 %v2244_v49, %v2192_v13  ;;  %v2296_v33 = vadd.f32 %v2295_v41, %v2243_v20 }
 0x19c   : > { %v2246_v47 = vpop.f32.mrf.mxu0 }
 0x19d   : > { %v2299_v54 = vpop.f32.mrf.mxu1  ;;  %v2247_v35 = vadd.f32 %v2246_v47, %v2194_v22  ;;  %v2298_v41 = vadd.f32 %v2297_v50, %v2245_v32 }
 0x19e   : > { %v2248_v3 = vpop.f32.mrf.mxu0 }
 0x19f   : > { %v2301_v4 = vpop.f32.mrf.mxu1  ;;  %v2249_v39 = vadd.f32 %v2248_v3, %v2196_v28  ;;  %v2300_v49 = vadd.f32 %v2299_v54, %v2247_v35 }
 0x1a1   : > { %v2302_v47 = vadd.f32 %v2301_v4, %v2249_v39 }
 0x1d0   : > { %v2338_v61 = vpop.f32.mrf.mxu0 }
 0x1d1   : > { %v2391_v9 = vpop.f32.mrf.mxu1  ;;  %v2339_v18 = vadd.f32 %v2338_v61, %v2286_v6 }
 0x1d2   : > { %v2340_v21 = vpop.f32.mrf.mxu0 }
 0x1d3   : > { %v2393_v10 = vpop.f32.mrf.mxu1  ;;  %v2341_v12 = vadd.f32 %v2340_v21, %v2288_v15  ;;  %v2392_v16 = vadd.f32 %v2391_v9, %v2339_v18 }
 0x1d4   : > { %v2342_v23 = vpop.f32.mrf.mxu0 }
 0x1d5   : > { %v2395_v24 = vpop.f32.mrf.mxu1  ;;  %v2394_v25 = vadd.f32 %v2393_v10, %v2341_v12  ;;  %v2343_v26 = vadd.f32 %v2342_v23, %v2290_v11  ;;  %v2456_v52 = vmul.f32 %v2392_v16, %v2392_v16 }
 0x1d6   : > { %v2344_v30 = vpop.f32.mrf.mxu0 }
 0x1d7   : > { %v2397_v34 = vpop.f32.mrf.mxu1  ;;  %v2970_v27 = vpack.c.bf16 %v2394_v25, %v2392_v16  ;;  %v2396_v29 = vadd.f32 %v2395_v24, %v2343_v26  ;;  %v2345_v36 = vadd.f32 %v2344_v30, %v2292_v14  ;;  %v2457_v5 = vmul.f32 %v2394_v25, %v2394_v25 }
 0x1d8   : > { %v2348_v37 = vpop.f32.mrf.mxu0 }
 0x1d9   : > { %v2401_v38 = vpop.f32.mrf.mxu1  ;;  %2434 = vst [vmem:[%s3798_s27] sm:$0xff] %v2970_v27  ;;  %v2398_v31 = vadd.f32 %v2397_v34, %v2345_v36  ;;  %v2349_v40 = vadd.f32 %v2348_v37, %v2296_v33  ;;  %v2458_v44 = vmul.f32 %v2396_v29, %v2396_v29  ;;  %v2438_v55 = vadd.f32 %v2396_v29, %v2392_v16 }
 0x1da   : > { %v2350_v45 = vpop.f32.mrf.mxu0 }
 0x1db   : > { %v2403_v48 = vpop.f32.mrf.mxu1  ;;  %v2971_v51 = vpack.c.bf16 %v2398_v31, %v2396_v29  ;;  %v2402_v53 = vadd.f32 %v2401_v38, %v2349_v40  ;;  %v2351_v42 = vadd.f32 %v2350_v45, %v2298_v41  ;;  %v2464_v58 = vadd.f32 %v2458_v44, %v2456_v52 }
 0x1dc   : > { %v2352_v43 = vpop.f32.mrf.mxu0  ;;  %v2459_v62 = vmul.f32 %v2398_v31, %v2398_v31  ;;  %v2447_v1 = vadd.f32 %v2398_v31, %v2394_v25 }
 0x1dd   : > { %v2405_v46 = vpop.f32.mrf.mxu1  ;;  %2435 = vst [vmem:[%s3798_s27 + $0x8] sm:$0xff] %v2971_v51  ;;  %v2353_v57 = vadd.f32 %v2352_v43, %v2300_v49  ;;  %v2460_v63 = vmul.f32 %v2402_v53, %v2402_v53  ;;  %v2404_v0 = vadd.f32 %v2403_v48, %v2351_v42  ;;  %v2439_v2 = vadd.f32 %v2438_v55, %v2402_v53 }
 0x1de   : > { %v2354_v50 = vpop.f32.mrf.mxu0  ;;  %v2473_v9 = vadd.f32 %v2459_v62, %v2457_v5 }
 0x1df   : > { %v2406_v3 = vadd.f32 %v2405_v46, %v2353_v57  ;;  %v2355_v54 = vadd.f32 %v2354_v50, %v2302_v47  ;;  %v2465_v6 = vadd.f32 %v2464_v58, %v2460_v63  ;;  %v2972_v7 = vpack.c.bf16 %v2404_v0, %v2402_v53  ;;  %v2407_v59 = vpop.f32.mrf.mxu1 }
 0x1e0   : > { %v2461_v56 = vmul.f32 %v2404_v0, %v2404_v0  ;;  %v2448_v4 = vadd.f32 %v2447_v1, %v2404_v0 }
 0x1e1   : > { %v2440_v8 = vadd.f32 %v2439_v2, %v2406_v3  ;;  %v2462_v60 = vmul.f32 %v2406_v3, %v2406_v3  ;;  %v2408_v61 = vadd.f32 %v2407_v59, %v2355_v54  ;;  %2436 = vst [vmem:[%s3798_s27 + $0x10] sm:$0xff] %v2972_v7 }
 0x1e2   : > { %v2474_v20 = vadd.f32 %v2473_v9, %v2461_v56 }
 0x1e3   : > { %v2441_v15 = vrot.slane %v2440_v8, 4  ;;  %v2466_v17 = vadd.f32 %v2465_v6, %v2462_v60  ;;  %v2973_v18 = vpack.c.bf16 %v2408_v61, %v2406_v3  ;;  %v2449_v19 = vadd.f32 %v2448_v4, %v2408_v61 }
 0x1e4   : > { %v2463_v21 = vmul.f32 %v2408_v61, %v2408_v61 }
 0x1e5   : > { %v2442_v10 = vadd.f32 %v2441_v15, %v2440_v8  ;;  %v2467_v11 = vrot.slane %v2466_v17, 4  ;;  %2437 = vst [vmem:[%s3798_s27 + $0x18] sm:$0xff] %v2973_v18  ;;  %v2450_v12 = vrot.slane %v2449_v19, 4 }
 0x1e6   : > { %v2475_v13 = vadd.f32 %v2474_v20, %v2463_v21 }
 0x1e7   : > { %v2443_v22 = vrot.slane %v2442_v10, 2  ;;  %v2468_v23 = vadd.f32 %v2467_v11, %v2466_v17  ;;  %v2451_v24 = vadd.f32 %v2450_v12, %v2449_v19 }
 0x1e8   : > { %v2476_v14 = vrot.slane %v2475_v13, 4 }
 0x1e9   : > { %v2469_v16 = vrot.slane %v2468_v23, 2  ;;  %v2452_v25 = vrot.slane %v2451_v24, 2  ;;  %v2444_v26 = vadd.f32 %v2443_v22, %v2442_v10 }
 0x1ea   : > { %v2477_v28 = vadd.f32 %v2476_v14, %v2475_v13 }
 0x1eb   : > { %v2470_v32 = vadd.f32 %v2469_v16, %v2468_v23  ;;  %v2453_v33 = vadd.f32 %v2452_v25, %v2451_v24  ;;  %v2445_v35 = vrot.slane %v2444_v26, 1 }
 0x1ec   : > { %v2478_v30 = vrot.slane %v2477_v28, 2 }
 0x1ed   : > { %v2471_v34 = vrot.slane %v2470_v32, 1  ;;  %v2454_v27 = vrot.slane %v2453_v33, 1  ;;  %v2446_v38 = vadd.f32 %v2445_v35, %v2444_v26 }
 0x1ee   : > { %v2479_v29 = vadd.f32 %v2478_v30, %v2477_v28 }
 0x1ef   : > { %v2472_v36 = vadd.f32 %v2471_v34, %v2470_v32  ;;  %v2455_v39 = vadd.f32 %v2454_v27, %v2453_v33 }
 0x1f0   : > { %v2480_v37 = vrot.slane %v2479_v29, 1 }
 0x1f1   : > { %v2483_v40 = vsel %vm2482_vm0, %v2446_v38, %v2472_v36 }
 0x1f2   : > { %v2481_v31 = vadd.f32 %v2480_v37, %v2479_v29 }
 0x1f4   : > { %v2484_v41 = vsel %vm2482_vm0, %v2455_v39, %v2481_v31 }
 0x1f5   : > { %v2487_v44 = vcombine.low %v2483_v40, %v2484_v41 }
 0x1f7   : > { %2963 = vst.sshfl [vmem:[%s257_s4] sm:$0x33 pattern:$0x76325410] %v2487_v44 }
 0x1f8 PF: > { %s14_s14 = sadd.s32 1, %s3404_s14   ;;  %s3821_s12 = smov %s3400_s13 }
 0x1f9   : > { %p11_p5 = scmp.ge.s32.totalorder %s14_s14, 6   ;;  %s3822_s13 = smov %s3824_s15 }
 0x1fb   :  { %13 = sbr.rel (!%p11_p5) target bundleno = 2 (0x2), region = 73 }

// kernel: generator_forward.7
= control target key start
LH: loop header
LB: loop body
LE: loop exit
PB: predicated region body
PF: predicated region fallthrough
CT: control target
= control target key end

     0   :  { %s2433_s12 = smov 0   ;;  %s2435_s13 = smov 0   ;;  %s2743_s0 = inlined_call_operand.vmem [shape: bf16[4,128,1024], index: 0, kind: input, shape index: {}]   ;;  %s2744_s1 = inlined_call_operand.vmem [shape: bf16[4,1024,128], index: 1, kind: input, shape index: {}]   ;;  %s2745_s2 = inlined_call_operand.vmem [shape: bf16[4,128,128], index: 2, kind: output, shape index: {0}]   ;;  %s2746_s3 = inlined_call_operand.vmem [shape: f32[4,1,2,128], index: 3, kind: output, shape index: {1}]  }
   0x1   :  { %s2437_s14 = smov 0  }
   0x2 LB: > { %s26_s15 = sadd.s32 1, %s2407_s13  ;;  %p1825_p0 = scmp.ge.s32.totalorder %s2411_s14, 1  ;;  %s2411_s14 = sphi %s2437_s14, %s14_s14   ;;  %s2407_s13 = sphi %s2435_s13, %s2748_s13   ;;  %s2403_s12 = sphi %s2433_s12, %s2747_s12  }
   0x3   : > { %p28_p1 = scmp.ge.s32.totalorder %s26_s15, 4  ;;  %p174_p2 = scmp.lt.s32.totalorder %s2411_s14, 5 }
   0x5   : > { %s2750_s15 = smov (%p28_p1, %s26_s15), 0  ;;  %p175_p3 = pnand %p1825_p0, %p174_p2 }
   0x6   : > { %p220_p4 = scmp.lt.s32.totalorder (!%p175_p3), %s2403_s12, 3 }
   0x7   : > { %178 = sbr.rel (%p175_p3) target bundleno = 392 (0x188), region = 28 }
   0xc   : > { %s2752_s12 = smov (!%p220_p4, %s2403_s12), 3  ;;  %vm1675_vm0 = vcmask 1040384  }
   0xd   : > { %s1979_s16 = sshll.u32 %s2752_s12, 9  ;;  %s1981_s23 = sshll.u32 %s2752_s12, 6 }
   0xe   : > { %s2459_s19 = scalar_lea.vmem %s2744_s1, %s1979_s16  ;;  %s2496_s22 = scalar_lea.vmem %s2743_s0, %s1979_s16 }
   0xf   : > { %v2325_v0 = vld [vmem:[%s2459_s19 + $0x78] sm:$0xff]   ;;  %v2329_v4 = vld [vmem:[%s2459_s19 + $0x70] sm:$0xff]   ;;  %v2333_v8 = vld [vmem:[%s2459_s19 + $0x68] sm:$0xff]   ;;  %s2689_s26 = scalar_lea.vmem %s2745_s2, %s1981_s23  ;;  %s1832_s27 = sshll.u32 %s2752_s12, 1 }
  0x10   : > { %v2326_v1 = vld [vmem:[%s2459_s19 + $0xf8] sm:$0xff]   ;;  %2045 = vmatprep.subr.bf16.mxu0 %v2325_v0  ;;  %v2330_v5 = vld [vmem:[%s2459_s19 + $0xf0] sm:$0xff]   ;;  %v2334_v9 = vld [vmem:[%s2459_s19 + $0xe8] sm:$0xff]   ;;  %s251_s30 = scalar_lea.vmem %s2746_s3, %s1832_s27 }
  0x11   : > { %v2327_v2 = vld [vmem:[%s2459_s19 + $0x38] sm:$0xff]   ;;  %2109 = vmatprep.subr.bf16.mxu1 %v2326_v1  ;;  %v2331_v6 = vld [vmem:[%s2459_s19 + $0x30] sm:$0xff]   ;;  %v2335_v10 = vld [vmem:[%s2459_s19 + $0x28] sm:$0xff]  }
  0x12   : > { %v2328_v3 = vld [vmem:[%s2459_s19 + $0xb8] sm:$0xff]   ;;  %2046 = vmatpush3.bf16.msra.mxu0 %v2327_v2  ;;  %v2332_v7 = vld [vmem:[%s2459_s19 + $0xb0] sm:$0xff]   ;;  %v2336_v11 = vld [vmem:[%s2459_s19 + $0xa8] sm:$0xff]  }
  0x13   : > { %2110 = vmatpush3.bf16.msra.mxu1 %v2328_v3  ;;  %2047 = vmatprep.subr.bf16.mxu0 %v2329_v4  ;;  %v2337_v12 = vld [vmem:[%s2459_s19 + $0x60] sm:$0xff]   ;;  %v2341_v16 = vld [vmem:[%s2459_s19 + $0x58] sm:$0xff]   ;;  %v2345_v20 = vld [vmem:[%s2459_s19 + $0x50] sm:$0xff]  }
  0x14   : > { %2111 = vmatprep.subr.bf16.mxu1 %v2330_v5  ;;  %v2338_v13 = vld [vmem:[%s2459_s19 + $0xe0] sm:$0xff]   ;;  %v2342_v17 = vld [vmem:[%s2459_s19 + $0xd8] sm:$0xff]   ;;  %v2346_v21 = vld [vmem:[%s2459_s19 + $0xd0] sm:$0xff]  }
  0x15   : > { %v2339_v14 = vld [vmem:[%s2459_s19 + $0x20] sm:$0xff]   ;;  %v2343_v18 = vld [vmem:[%s2459_s19 + $0x18] sm:$0xff]   ;;  %v2347_v22 = vld [vmem:[%s2459_s19 + $0x10] sm:$0xff]  }
  0x16   : > { %2048 = vmatpush3.bf16.msra.mxu0 %v2331_v6  ;;  %v2340_v15 = vld [vmem:[%s2459_s19 + $0xa0] sm:$0xff]   ;;  %v2344_v19 = vld [vmem:[%s2459_s19 + $0x98] sm:$0xff]   ;;  %v2348_v23 = vld [vmem:[%s2459_s19 + $0x90] sm:$0xff]  }
  0x17   : > { %2112 = vmatpush3.bf16.msra.mxu1 %v2332_v7  ;;  %2049 = vmatprep.subr.bf16.mxu0 %v2333_v8  ;;  %v2349_v24 = vld [vmem:[%s2459_s19 + $0x48] sm:$0xff]   ;;  %v2353_v28 = vld [vmem:[%s2459_s19 + $0x40] sm:$0xff]   ;;  %v2357_v40 = vld [vmem:[%s2459_s19 + $0x178] sm:$0xff]  }
  0x18   : > { %2113 = vmatprep.subr.bf16.mxu1 %v2334_v9  ;;  %v2350_v25 = vld [vmem:[%s2459_s19 + $0xc8] sm:$0xff]   ;;  %v2354_v29 = vld [vmem:[%s2459_s19 + $0xc0] sm:$0xff]   ;;  %v2358_v41 = vld [vmem:[%s2459_s19 + $0x138] sm:$0xff]  }
  0x19   : > { %v2351_v26 = vld [vmem:[%s2459_s19 + $0x8] sm:$0xff]   ;;  %v2355_v30 = vld [vmem:[%s2459_s19] sm:$0xff]   ;;  %v2359_v42 = vld [vmem:[%s2459_s19 + $0x1f8] sm:$0xff]  }
  0x1a   : > { %2050 = vmatpush3.bf16.msra.mxu0 %v2335_v10  ;;  %v2352_v27 = vld [vmem:[%s2459_s19 + $0x88] sm:$0xff]   ;;  %v2356_v31 = vld [vmem:[%s2459_s19 + $0x80] sm:$0xff]   ;;  %v2360_v43 = vld [vmem:[%s2459_s19 + $0x1b8] sm:$0xff]  }
  0x1b   : > { %2114 = vmatpush3.bf16.msra.mxu1 %v2336_v11  ;;  %2051 = vmatprep.subr.bf16.mxu0 %v2337_v12  ;;  %v253_v32 = vld [vmem:[%s2496_s22] sm:$0xff]  ;;  %v254_v34 = vld [vmem:[%s2496_s22 + $0x8] sm:$0xff]  ;;  %v2361_v50 = vld [vmem:[%s2459_s19 + $0x170] sm:$0xff]  }
  0x1c   : > { %2115 = vmatprep.subr.bf16.mxu1 %v2338_v13  ;;  %v257_v33 = vld [vmem:[%s2496_s22 + $0x20] sm:$0xff]  ;;  %v258_v37 = vld [vmem:[%s2496_s22 + $0x28] sm:$0xff]  ;;  %v2362_v52 = vld [vmem:[%s2459_s19 + $0x130] sm:$0xff]  }
  0x1d   : > { %v1833_v35 = vcombine.low %v253_v32, %v257_v33  ;;  %v1834_v36 = vcombine.high %v253_v32, %v257_v33  ;;  %v1835_v38 = vcombine.low %v254_v34, %v258_v37  ;;  %v1836_v39 = vcombine.high %v254_v34, %v258_v37  ;;  %v261_v44 = vld [vmem:[%s2496_s22 + $0x40] sm:$0xff]  ;;  %v262_v47 = vld [vmem:[%s2496_s22 + $0x48] sm:$0xff]  ;;  %v2363_v54 = vld [vmem:[%s2459_s19 + $0x1f0] sm:$0xff]  }
  0x1e   : > { %2052 = vmatpush3.bf16.msra.mxu0 %v2339_v14  ;;  %v265_v45 = vld [vmem:[%s2496_s22 + $0x60] sm:$0xff]  ;;  %v266_v48 = vld [vmem:[%s2496_s22 + $0x68] sm:$0xff]  ;;  %v2364_v55 = vld [vmem:[%s2459_s19 + $0x1b0] sm:$0xff]  }
  0x1f   : > { %2116 = vmatpush3.bf16.msra.mxu1 %v2340_v15  ;;  %2053 = vmatprep.subr.bf16.mxu0 %v2341_v16  ;;  %v1842_v46 = vcombine.high %v261_v44, %v265_v45  ;;  %v1844_v49 = vcombine.high %v262_v47, %v266_v48  ;;  %v1841_v51 = vcombine.low %v261_v44, %v265_v45  ;;  %v269_v56 = vld [vmem:[%s2496_s22 + $0x80] sm:$0xff]  ;;  %v270_v58 = vld [vmem:[%s2496_s22 + $0x88] sm:$0xff]  ;;  %v2379_v32 = vld [vmem:[%s2459_s19 + $0x1d0] sm:$0xff]  }
  0x20   : > { %2117 = vmatprep.subr.bf16.mxu1 %v2342_v17  ;;  %1181 = vmatprep.mubr.bf16.mxu0 %v1834_v36  ;;  %v1843_v53 = vcombine.low %v262_v47, %v266_v48  ;;  %v273_v57 = vld [vmem:[%s2496_s22 + $0xa0] sm:$0xff]  ;;  %v274_v59 = vld [vmem:[%s2496_s22 + $0xa8] sm:$0xff]  ;;  %v2380_v33 = vld [vmem:[%s2459_s19 + $0x190] sm:$0xff]  }
  0x21   : > { %1278 = vmatprep.mubr.bf16.mxu1 %v1836_v39  ;;  %v1850_v60 = vcombine.high %v269_v56, %v273_v57  ;;  %v1852_v61 = vcombine.high %v270_v58, %v274_v59  ;;  %v2365_v62 = vld [vmem:[%s2459_s19 + $0x168] sm:$0xff]   ;;  %v1849_v2 = vcombine.low %v269_v56, %v273_v57  ;;  %v277_v3 = vld [vmem:[%s2496_s22 + $0xc0] sm:$0xff]  ;;  %v1851_v6 = vcombine.low %v270_v58, %v274_v59 }
  0x22   : > { %2054 = vmatpush3.bf16.msra.mxu0 %v2343_v18  ;;  %v2366_v63 = vld [vmem:[%s2459_s19 + $0x128] sm:$0xff]   ;;  %v281_v4 = vld [vmem:[%s2496_s22 + $0xe0] sm:$0xff]  ;;  %v2373_v18 = vld [vmem:[%s2459_s19 + $0x158] sm:$0xff]  }
  0x23   : > { %2118 = vmatpush3.bf16.msra.mxu1 %v2344_v19  ;;  %2055 = vmatprep.subr.bf16.mxu0 %v2345_v20  ;;  %v2367_v0 = vld [vmem:[%s2459_s19 + $0x1e8] sm:$0xff]   ;;  %v1858_v7 = vcombine.high %v277_v3, %v281_v4  ;;  %v2369_v10 = vld [vmem:[%s2459_s19 + $0x160] sm:$0xff]   ;;  %v1857_v19 = vcombine.low %v277_v3, %v281_v4  ;;  %v2374_v20 = vld [vmem:[%s2459_s19 + $0x118] sm:$0xff]  }
  0x24   : > { %2119 = vmatprep.subr.bf16.mxu1 %v2346_v21  ;;  %v2368_v1 = vld [vmem:[%s2459_s19 + $0x1a8] sm:$0xff]   ;;  %v2370_v11 = vld [vmem:[%s2459_s19 + $0x120] sm:$0xff]  }
  0x25   : > { %v278_v5 = vld [vmem:[%s2496_s22 + $0xc8] sm:$0xff]  ;;  %v2371_v12 = vld [vmem:[%s2459_s19 + $0x1e0] sm:$0xff]  }
  0x26   : > { %2056 = vmatpush3.bf16.msra.mxu0 %v2347_v22  ;;  %v282_v8 = vld [vmem:[%s2496_s22 + $0xe8] sm:$0xff]  ;;  %v2372_v13 = vld [vmem:[%s2459_s19 + $0x1a0] sm:$0xff]  }
  0x27   : > { %2120 = vmatpush3.bf16.msra.mxu1 %v2348_v23  ;;  %2057 = vmatprep.subr.bf16.mxu0 %v2349_v24  ;;  %v1860_v9 = vcombine.high %v278_v5, %v282_v8  ;;  %v285_v14 = vld [vmem:[%s2496_s22 + $0x100] sm:$0xff]  ;;  %v286_v16 = vld [vmem:[%s2496_s22 + $0x108] sm:$0xff]  ;;  %v1859_v21 = vcombine.low %v278_v5, %v282_v8  ;;  %v2375_v23 = vld [vmem:[%s2459_s19 + $0x1d8] sm:$0xff]  }
  0x28   : > { %2121 = vmatprep.subr.bf16.mxu1 %v2350_v25  ;;  %v289_v15 = vld [vmem:[%s2496_s22 + $0x120] sm:$0xff]  ;;  %v290_v17 = vld [vmem:[%s2496_s22 + $0x128] sm:$0xff]  ;;  %v2376_v25 = vld [vmem:[%s2459_s19 + $0x198] sm:$0xff]  }
  0x29   : > { %v1866_v22 = vcombine.high %v285_v14, %v289_v15  ;;  %v1868_v24 = vcombine.high %v286_v16, %v290_v17  ;;  %v1865_v34 = vcombine.low %v285_v14, %v289_v15  ;;  %v2382_v39 = vld [vmem:[%s2459_s19 + $0x108] sm:$0xff]   ;;  %v2386_v48 = vld [vmem:[%s2459_s19 + $0x100] sm:$0xff]   ;;  %v264_v8 = vld [vmem:[%s2496_s22 + $0x58] sm:$0xff] }
  0x2a   : > { %2058 = vmatpush3.bf16.msra.mxu0 %v2351_v26  ;;  %v293_v26 = vld [vmem:[%s2496_s22 + $0x140] sm:$0xff]  ;;  %v302_v44 = vld [vmem:[%s2496_s22 + $0x188] sm:$0xff]  ;;  %v271_v14 = vld [vmem:[%s2496_s22 + $0x90] sm:$0xff] }
  0x2b   : > { %2122 = vmatpush3.bf16.msra.mxu1 %v2352_v27  ;;  %2059 = vmatprep.subr.bf16.mxu0 %v2353_v28  ;;  %v297_v27 = vld [vmem:[%s2496_s22 + $0x160] sm:$0xff]  ;;  %v2377_v28 = vld [vmem:[%s2459_s19 + $0x150] sm:$0xff]   ;;  %v306_v45 = vld [vmem:[%s2496_s22 + $0x1a8] sm:$0xff] }
  0x2c   : > { %2123 = vmatprep.subr.bf16.mxu1 %v2354_v29  ;;  %v294_v29 = vld [vmem:[%s2496_s22 + $0x148] sm:$0xff]  ;;  %v1874_v36 = vcombine.high %v293_v26, %v297_v27  ;;  %v1873_v47 = vcombine.low %v293_v26, %v297_v27  ;;  %v1883_v59 = vcombine.low %v302_v44, %v306_v45  ;;  %v275_v15 = vld [vmem:[%s2496_s22 + $0xb0] sm:$0xff] }
  0x2d   : > { %v310_v56 = vld [vmem:[%s2496_s22 + $0x1c8] sm:$0xff]  ;;  %v1853_v26 = vcombine.low %v271_v14, %v275_v15 }
  0x2e   : > { %2060 = vmatpush3.bf16.msra.mxu0 %v2355_v30  ;;  %v298_v30 = vld [vmem:[%s2496_s22 + $0x168] sm:$0xff] }
  0x2f   : > { %2124 = vmatpush3.bf16.msra.mxu1 %v2356_v31  ;;  %2173 = vmatprep.subr.bf16.mxu0 %v2357_v40  ;;  %v2378_v31 = vld [vmem:[%s2459_s19 + $0x110] sm:$0xff]   ;;  %v1876_v37 = vcombine.high %v294_v29, %v298_v30  ;;  %v2383_v40 = vld [vmem:[%s2459_s19 + $0x1c8] sm:$0xff]  }
  0x30   : > { %2237 = vmatprep.subr.bf16.mxu1 %v2359_v42  ;;  %v305_v42 = vld [vmem:[%s2496_s22 + $0x1a0] sm:$0xff]  ;;  %v314_v57 = vld [vmem:[%s2496_s22 + $0x1e8] sm:$0xff] }
  0x31   : > { %1182 = vmatmul.mubr.bf16.vlgmr.msra.gmra.mxu0 %v1833_v35  ;;  %v1867_v35 = vcombine.low %v286_v16, %v290_v17  ;;  %v1891_v3 = vcombine.low %v310_v56, %v314_v57  ;;  %v272_v16 = vld [vmem:[%s2496_s22 + $0x98] sm:$0xff] }
  0x32   : > { %1279 = vmatmul.mubr.bf16.vlgmr.msra.gmra.mxu1 %v1835_v38  ;;  %2174 = vmatpush3.bf16.msra.mxu0 %v2358_v41  ;;  %v2381_v38 = vld [vmem:[%s2459_s19 + $0x148] sm:$0xff]   ;;  %v301_v41 = vld [vmem:[%s2496_s22 + $0x180] sm:$0xff]  ;;  %v276_v17 = vld [vmem:[%s2496_s22 + $0xb8] sm:$0xff] }
  0x33   : > { %2238 = vmatpush3.bf16.msra.mxu1 %v2360_v43  ;;  %1189 = vmatprep.mubr.bf16.mxu0 %v1842_v46  ;;  %v2384_v43 = vld [vmem:[%s2459_s19 + $0x188] sm:$0xff]   ;;  %v2385_v46 = vld [vmem:[%s2459_s19 + $0x140] sm:$0xff]   ;;  %v1881_v58 = vcombine.low %v301_v41, %v305_v42  ;;  %v1855_v27 = vcombine.low %v272_v16, %v276_v17 }
  0x34   : > { %1286 = vmatprep.mubr.bf16.mxu1 %v1844_v49  ;;  %2175 = vmatprep.subr.bf16.mxu0 %v2361_v50  ;;  %v1875_v49 = vcombine.low %v294_v29, %v298_v30  ;;  %v1882_v50 = vcombine.high %v301_v41, %v305_v42  ;;  %v287_v30 = vld [vmem:[%s2496_s22 + $0x110] sm:$0xff]  ;;  %v300_v41 = vld [vmem:[%s2496_s22 + $0x178] sm:$0xff] }
  0x35   : > { %2239 = vmatprep.subr.bf16.mxu1 %v2363_v54  ;;  %v309_v54 = vld [vmem:[%s2496_s22 + $0x1c0] sm:$0xff] }
  0x36   : > { %2176 = vmatpush3.bf16.msra.mxu0 %v2362_v52  ;;  %v1884_v52 = vcombine.high %v302_v44, %v306_v45 }
  0x37   : > { %2240 = vmatpush3.bf16.msra.mxu1 %v2364_v55  ;;  %2177 = vmatprep.subr.bf16.mxu0 %v2365_v62  ;;  %v313_v55 = vld [vmem:[%s2496_s22 + $0x1e0] sm:$0xff]  ;;  %v255_v62 = vld [vmem:[%s2496_s22 + $0x10] sm:$0xff] }
  0x38   : > { %2241 = vmatprep.subr.bf16.mxu1 %v2367_v0  ;;  %v256_v0 = vld [vmem:[%s2496_s22 + $0x18] sm:$0xff] }
  0x39   : > { %1190 = vmatmul.mubr.bf16.gmra.mxu0 %v1841_v51  ;;  %v2387_v51 = vld [vmem:[%s2459_s19 + $0x1c0] sm:$0xff]  }
  0x3a   : > { %1287 = vmatmul.mubr.bf16.gmra.mxu1 %v1843_v53  ;;  %1197 = vmatprep.mubr.bf16.mxu0 %v1850_v60  ;;  %v2388_v53 = vld [vmem:[%s2459_s19 + $0x180] sm:$0xff]   ;;  %v1890_v60 = vcombine.high %v309_v54, %v313_v55 }
  0x3b   : > { %1294 = vmatprep.mubr.bf16.mxu1 %v1852_v61  ;;  %2178 = vmatpush3.bf16.msra.mxu0 %v2366_v63  ;;  %v1892_v61 = vcombine.high %v310_v56, %v314_v57  ;;  %v259_v63 = vld [vmem:[%s2496_s22 + $0x30] sm:$0xff]  ;;  %v312_v56 = vld [vmem:[%s2496_s22 + $0x1d8] sm:$0xff] }
  0x3c   : > { %2242 = vmatpush3.bf16.msra.mxu1 %v2368_v1  ;;  %2179 = vmatprep.subr.bf16.mxu0 %v2369_v10  ;;  %v260_v1 = vld [vmem:[%s2496_s22 + $0x38] sm:$0xff]  ;;  %v1838_v4 = vcombine.high %v255_v62, %v259_v63  ;;  %v1837_v10 = vcombine.low %v255_v62, %v259_v63 }
  0x3d   : > { %2243 = vmatprep.subr.bf16.mxu1 %v2371_v12  ;;  %v1840_v5 = vcombine.high %v256_v0, %v260_v1  ;;  %v316_v57 = vld [vmem:[%s2496_s22 + $0x1f8] sm:$0xff] }
  0x3e   : > { %v1895_v63 = vcombine.low %v312_v56, %v316_v57 }
  0x3f   : > { %2180 = vmatpush3.bf16.msra.mxu0 %v2370_v11  ;;  %v1839_v11 = vcombine.low %v256_v0, %v260_v1 }
  0x40   : > { %2244 = vmatpush3.bf16.msra.mxu1 %v2372_v13  ;;  %2181 = vmatprep.subr.bf16.mxu0 %v2373_v18 }
  0x41   : > { %1198 = vmatmul.mubr.bf16.gmra.mxu0 %v1849_v2  ;;  %2245 = vmatprep.subr.bf16.mxu1 %v2375_v23  ;;  %v1889_v2 = vcombine.low %v309_v54, %v313_v55  ;;  %v283_v23 = vld [vmem:[%s2496_s22 + $0xf0] sm:$0xff] }
  0x42   : > { %1295 = vmatmul.mubr.bf16.gmra.mxu1 %v1851_v6  ;;  %1205 = vmatprep.mubr.bf16.mxu0 %v1858_v7  ;;  %v263_v6 = vld [vmem:[%s2496_s22 + $0x50] sm:$0xff] }
  0x43   : > { %1302 = vmatprep.mubr.bf16.mxu1 %v1860_v9  ;;  %2182 = vmatpush3.bf16.msra.mxu0 %v2374_v20  ;;  %v267_v7 = vld [vmem:[%s2496_s22 + $0x70] sm:$0xff]  ;;  %v268_v9 = vld [vmem:[%s2496_s22 + $0x78] sm:$0xff]  ;;  %v1854_v20 = vcombine.high %v271_v14, %v275_v15 }
  0x44   : > { %2246 = vmatpush3.bf16.msra.mxu1 %v2376_v25  ;;  %2183 = vmatprep.subr.bf16.mxu0 %v2377_v28  ;;  %v1846_v12 = vcombine.high %v263_v6, %v267_v7  ;;  %v1848_v13 = vcombine.high %v264_v8, %v268_v9  ;;  %v1845_v18 = vcombine.low %v263_v6, %v267_v7  ;;  %v284_v25 = vld [vmem:[%s2496_s22 + $0xf8] sm:$0xff]  ;;  %v311_v54 = vld [vmem:[%s2496_s22 + $0x1d0] sm:$0xff] }
  0x45   : > { %2247 = vmatprep.subr.bf16.mxu1 %v2379_v32  ;;  %v288_v32 = vld [vmem:[%s2496_s22 + $0x118] sm:$0xff]  ;;  %v315_v55 = vld [vmem:[%s2496_s22 + $0x1f0] sm:$0xff] }
  0x46   : > { %v1893_v62 = vcombine.low %v311_v54, %v315_v55 }
  0x47   : > { %2184 = vmatpush3.bf16.msra.mxu0 %v2378_v31  ;;  %v291_v31 = vld [vmem:[%s2496_s22 + $0x130] sm:$0xff] }
  0x48   : > { %2248 = vmatpush3.bf16.msra.mxu1 %v2380_v33  ;;  %2185 = vmatprep.subr.bf16.mxu0 %v2381_v38  ;;  %v292_v33 = vld [vmem:[%s2496_s22 + $0x138] sm:$0xff]  ;;  %v295_v38 = vld [vmem:[%s2496_s22 + $0x150] sm:$0xff]  ;;  %v1869_v42 = vcombine.low %v287_v30, %v291_v31 }
  0x49   : > { %1206 = vmatmul.mubr.bf16.gmra.mxu0 %v1857_v19  ;;  %2249 = vmatprep.subr.bf16.mxu1 %v2383_v40  ;;  %v1847_v19 = vcombine.low %v264_v8, %v268_v9  ;;  %v296_v40 = vld [vmem:[%s2496_s22 + $0x158] sm:$0xff] }
  0x4a   : > { %1303 = vmatmul.mubr.bf16.gmra.mxu1 %v1859_v21  ;;  %1213 = vmatprep.mubr.bf16.mxu0 %v1866_v22  ;;  %v1856_v21 = vcombine.high %v272_v16, %v276_v17  ;;  %v279_v22 = vld [vmem:[%s2496_s22 + $0xd0] sm:$0xff]  ;;  %v1880_v45 = vcombine.high %v296_v40, %v300_v41 }
  0x4b   : > { %1310 = vmatprep.mubr.bf16.mxu1 %v1868_v24  ;;  %2186 = vmatpush3.bf16.msra.mxu0 %v2382_v39  ;;  %v280_v24 = vld [vmem:[%s2496_s22 + $0xd8] sm:$0xff]  ;;  %v1862_v28 = vcombine.high %v279_v22, %v283_v23  ;;  %v299_v39 = vld [vmem:[%s2496_s22 + $0x170] sm:$0xff] }
  0x4c   : > { %2250 = vmatpush3.bf16.msra.mxu1 %v2384_v43  ;;  %2187 = vmatprep.subr.bf16.mxu0 %v2385_v46  ;;  %v1864_v29 = vcombine.high %v280_v24, %v284_v25  ;;  %v1871_v43 = vcombine.low %v288_v32, %v292_v33  ;;  %v1878_v44 = vcombine.high %v295_v38, %v299_v39  ;;  %v303_v46 = vld [vmem:[%s2496_s22 + $0x190] sm:$0xff] }
  0x4d   : > { %2251 = vmatprep.subr.bf16.mxu1 %v2387_v51  ;;  %v1879_v51 = vcombine.low %v296_v40, %v300_v41 }
  0x4f   : > { %2188 = vmatpush3.bf16.msra.mxu0 %v2386_v48  ;;  %v304_v48 = vld [vmem:[%s2496_s22 + $0x198] sm:$0xff] }
  0x50   : > { %2252 = vmatpush3.bf16.msra.mxu1 %v2388_v53 }
  0x51   : > { %1214 = vmatmul.mubr.bf16.gmra.mxu0 %v1865_v34  ;;  %v1861_v34 = vcombine.low %v279_v22, %v283_v23 }
  0x52   : > { %1311 = vmatmul.mubr.bf16.gmra.mxu1 %v1867_v35  ;;  %1221 = vmatprep.mubr.bf16.mxu0 %v1874_v36  ;;  %v1863_v35 = vcombine.low %v280_v24, %v284_v25  ;;  %v1870_v36 = vcombine.high %v287_v30, %v291_v31 }
  0x53   : > { %1318 = vmatprep.mubr.bf16.mxu1 %v1876_v37  ;;  %v1872_v37 = vcombine.high %v288_v32, %v292_v33 }
  0x59   : > { %1222 = vmatmul.mubr.bf16.gmra.mxu0 %v1873_v47  ;;  %v307_v47 = vld [vmem:[%s2496_s22 + $0x1b0] sm:$0xff] }
  0x5a   : > { %1319 = vmatmul.mubr.bf16.gmra.mxu1 %v1875_v49  ;;  %1229 = vmatprep.mubr.bf16.mxu0 %v1882_v50  ;;  %v308_v49 = vld [vmem:[%s2496_s22 + $0x1b8] sm:$0xff]  ;;  %v1877_v50 = vcombine.low %v295_v38, %v299_v39 }
  0x5b   : > { %1326 = vmatprep.mubr.bf16.mxu1 %v1884_v52  ;;  %v1886_v52 = vcombine.high %v303_v46, %v307_v47  ;;  %v1888_v53 = vcombine.high %v304_v48, %v308_v49 }
  0x61   : > { %1230 = vmatmul.mubr.bf16.gmra.mxu0 %v1881_v58  ;;  %v1885_v58 = vcombine.low %v303_v46, %v307_v47 }
  0x62   : > { %1327 = vmatmul.mubr.bf16.gmra.mxu1 %v1883_v59  ;;  %1237 = vmatprep.mubr.bf16.mxu0 %v1890_v60  ;;  %v1887_v59 = vcombine.low %v304_v48, %v308_v49  ;;  %v1894_v60 = vcombine.high %v311_v54, %v315_v55 }
  0x63   : > { %1334 = vmatprep.mubr.bf16.mxu1 %v1892_v61  ;;  %v1896_v61 = vcombine.high %v312_v56, %v316_v57 }
  0x69   : > { %1238 = vmatmul.mubr.bf16.gmra.mxu0 %v1889_v2 }
  0x6a   : > { %1335 = vmatmul.mubr.bf16.gmra.mxu1 %v1891_v3  ;;  %1375 = vmatprep.mubr.bf16.mxu0 %v1838_v4 }
  0x6b   : > { %1472 = vmatprep.mubr.bf16.mxu1 %v1840_v5 }
  0x71   : > { %1376 = vmatmul.mubr.bf16.vlgmr.msra.gmra.mxu0 %v1837_v10 }
  0x72   : > { %1473 = vmatmul.mubr.bf16.vlgmr.msra.gmra.mxu1 %v1839_v11  ;;  %1383 = vmatprep.mubr.bf16.mxu0 %v1846_v12 }
  0x73   : > { %1480 = vmatprep.mubr.bf16.mxu1 %v1848_v13 }
  0x79   : > { %1384 = vmatmul.mubr.bf16.gmra.mxu0 %v1845_v18 }
  0x7a   : > { %1481 = vmatmul.mubr.bf16.gmra.mxu1 %v1847_v19  ;;  %1391 = vmatprep.mubr.bf16.mxu0 %v1854_v20 }
  0x7b   : > { %1488 = vmatprep.mubr.bf16.mxu1 %v1856_v21 }
  0x81   : > { %1392 = vmatmul.mubr.bf16.gmra.mxu0 %v1853_v26 }
  0x82   : > { %1489 = vmatmul.mubr.bf16.gmra.mxu1 %v1855_v27  ;;  %1399 = vmatprep.mubr.bf16.mxu0 %v1862_v28 }
  0x83   : > { %1496 = vmatprep.mubr.bf16.mxu1 %v1864_v29 }
  0x89   : > { %1400 = vmatmul.mubr.bf16.gmra.mxu0 %v1861_v34 }
  0x8a   : > { %1497 = vmatmul.mubr.bf16.gmra.mxu1 %v1863_v35  ;;  %1407 = vmatprep.mubr.bf16.mxu0 %v1870_v36 }
  0x8b   : > { %1504 = vmatprep.mubr.bf16.mxu1 %v1872_v37 }
  0x91   : > { %1408 = vmatmul.mubr.bf16.gmra.mxu0 %v1869_v42 }
  0x92   : > { %1505 = vmatmul.mubr.bf16.gmra.mxu1 %v1871_v43  ;;  %1415 = vmatprep.mubr.bf16.mxu0 %v1878_v44 }
  0x93   : > { %1512 = vmatprep.mubr.bf16.mxu1 %v1880_v45 }
  0x99   : > { %1416 = vmatmul.mubr.bf16.gmra.mxu0 %v1877_v50 }
  0x9a   : > { %1513 = vmatmul.mubr.bf16.gmra.mxu1 %v1879_v51  ;;  %1423 = vmatprep.mubr.bf16.mxu0 %v1886_v52 }
  0x9b   : > { %1520 = vmatprep.mubr.bf16.mxu1 %v1888_v53 }
  0xa1   : > { %1424 = vmatmul.mubr.bf16.gmra.mxu0 %v1885_v58 }
  0xa2   : > { %1521 = vmatmul.mubr.bf16.gmra.mxu1 %v1887_v59  ;;  %1431 = vmatprep.mubr.bf16.mxu0 %v1894_v60 }
  0xa3   : > { %1528 = vmatprep.mubr.bf16.mxu1 %v1896_v61 }
  0xa9   : > { %1432 = vmatmul.mubr.bf16.gmra.mxu0 %v1893_v62 }
  0xaa   : > { %1529 = vmatmul.mubr.bf16.gmra.mxu1 %v1895_v63 }
  0xf1   : > { %v2061_v0 = vpop.f32.mrf.mxu0 }
  0xf2   : > { %v2125_v1 = vpop.f32.mrf.mxu1 }
  0xf3   : > { %v2062_v2 = vpop.f32.mrf.mxu0 }
  0xf4   : > { %v2063_v3 = vadd.f32 %v2062_v2, %v2061_v0  ;;  %v2126_v4 = vpop.f32.mrf.mxu1 }
  0xf5   : > { %v2127_v5 = vadd.f32 %v2126_v4, %v2125_v1  ;;  %v2596_v6 = vpop.f32.mrf.mxu0 }
  0xf6   : > { %v2598_v7 = vpop.f32.mrf.mxu1 }
  0xf7   : > { %v2600_v8 = vadd.f32 %v2127_v5, %v2063_v3  ;;  %v2602_v9 = vpop.f32.mrf.mxu0 }
  0xf8   : > { %v2604_v10 = vpop.f32.mrf.mxu1 }
  0xf9   : > { %v2067_v11 = vpop.f32.mrf.mxu0 }
  0xfa   : > { %v2131_v12 = vpop.f32.mrf.mxu1 }
  0xfb   : > { %v2068_v13 = vpop.f32.mrf.mxu0 }
  0xfc   : > { %v2069_v14 = vadd.f32 %v2068_v13, %v2067_v11  ;;  %v2132_v15 = vpop.f32.mrf.mxu1 }
  0xfd   : > { %v2133_v16 = vadd.f32 %v2132_v15, %v2131_v12  ;;  %v2606_v17 = vpop.f32.mrf.mxu0 }
  0xfe   : > { %v2608_v18 = vpop.f32.mrf.mxu1 }
  0xff   : > { %v2610_v19 = vadd.f32 %v2133_v16, %v2069_v14  ;;  %v2612_v20 = vpop.f32.mrf.mxu0 }
 0x100   : > { %v2614_v21 = vpop.f32.mrf.mxu1 }
 0x101   : > { %v2073_v22 = vpop.f32.mrf.mxu0 }
 0x102   : > { %v2137_v23 = vpop.f32.mrf.mxu1 }
 0x103   : > { %v2074_v24 = vpop.f32.mrf.mxu0 }
 0x104   : > { %v2075_v25 = vadd.f32 %v2074_v24, %v2073_v22  ;;  %v2138_v26 = vpop.f32.mrf.mxu1 }
 0x105   : > { %v2139_v27 = vadd.f32 %v2138_v26, %v2137_v23  ;;  %v2616_v28 = vpop.f32.mrf.mxu0 }
 0x106   : > { %v2618_v29 = vpop.f32.mrf.mxu1 }
 0x107   : > { %v2620_v30 = vadd.f32 %v2139_v27, %v2075_v25  ;;  %v2622_v31 = vpop.f32.mrf.mxu0 }
 0x108   : > { %v2624_v32 = vpop.f32.mrf.mxu1 }
 0x109   : > { %v2079_v33 = vpop.f32.mrf.mxu0 }
 0x10a   : > { %v2143_v34 = vpop.f32.mrf.mxu1 }
 0x10b   : > { %v2080_v35 = vpop.f32.mrf.mxu0 }
 0x10c   : > { %v2081_v36 = vadd.f32 %v2080_v35, %v2079_v33  ;;  %v2144_v37 = vpop.f32.mrf.mxu1 }
 0x10d   : > { %v2145_v38 = vadd.f32 %v2144_v37, %v2143_v34  ;;  %v2626_v39 = vpop.f32.mrf.mxu0 }
 0x10e   : > { %v2628_v40 = vpop.f32.mrf.mxu1 }
 0x10f   : > { %v2630_v41 = vadd.f32 %v2145_v38, %v2081_v36  ;;  %v2632_v42 = vpop.f32.mrf.mxu0 }
 0x110   : > { %v2634_v43 = vpop.f32.mrf.mxu1 }
 0x111   : > { %v2085_v44 = vpop.f32.mrf.mxu0 }
 0x112   : > { %v2149_v45 = vpop.f32.mrf.mxu1 }
 0x113   : > { %v2086_v46 = vpop.f32.mrf.mxu0 }
 0x114   : > { %v2087_v47 = vadd.f32 %v2086_v46, %v2085_v44  ;;  %v2150_v48 = vpop.f32.mrf.mxu1 }
 0x115   : > { %v2151_v49 = vadd.f32 %v2150_v48, %v2149_v45  ;;  %v2636_v50 = vpop.f32.mrf.mxu0  ;;  %v2130_v48 = vadd.f32 %v2604_v10, %v2598_v7  ;;  %v2072_v7 = vadd.f32 %v2612_v20, %v2606_v17  ;;  %v2136_v10 = vadd.f32 %v2614_v21, %v2608_v18 }
 0x116   : > { %v2638_v51 = vpop.f32.mrf.mxu1 }
 0x117   : > { %v2640_v52 = vadd.f32 %v2151_v49, %v2087_v47  ;;  %v2642_v53 = vpop.f32.mrf.mxu0  ;;  %v2066_v47 = vadd.f32 %v2602_v9, %v2596_v6  ;;  %v1292_v18 = vadd.f32 %v2136_v10, %v2072_v7 }
 0x118   : > { %v2644_v54 = vpop.f32.mrf.mxu1 }
 0x119   : > { %v2091_v55 = vpop.f32.mrf.mxu0 }
 0x11a   : > { %v2155_v56 = vpop.f32.mrf.mxu1 }
 0x11b   : > { %v2092_v57 = vpop.f32.mrf.mxu0 }
 0x11c   : > { %v2093_v58 = vadd.f32 %v2092_v57, %v2091_v55  ;;  %v2156_v59 = vpop.f32.mrf.mxu1 }
 0x11d   : > { %v2157_v60 = vadd.f32 %v2156_v59, %v2155_v56  ;;  %v2646_v61 = vpop.f32.mrf.mxu0 }
 0x11e   : > { %v2648_v62 = vpop.f32.mrf.mxu1 }
 0x11f   : > { %v2650_v63 = vadd.f32 %v2157_v60, %v2093_v58  ;;  %v2652_v0 = vpop.f32.mrf.mxu0 }
 0x120   : > { %v2654_v1 = vpop.f32.mrf.mxu1 }
 0x121   : > { %v2097_v2 = vpop.f32.mrf.mxu0 }
 0x122   : > { %v2161_v3 = vpop.f32.mrf.mxu1 }
 0x123   : > { %v2098_v4 = vpop.f32.mrf.mxu0 }
 0x124   : > { %v2099_v5 = vadd.f32 %v2098_v4, %v2097_v2  ;;  %v2162_v11 = vpop.f32.mrf.mxu1  ;;  %v1284_v2 = vadd.f32 %v2130_v48, %v2066_v47 }
 0x125   : > { %v2163_v12 = vadd.f32 %v2162_v11, %v2161_v3  ;;  %v2656_v13 = vpop.f32.mrf.mxu0 }
 0x126   : > { %v2658_v14 = vpop.f32.mrf.mxu1 }
 0x127   : > { %v2660_v15 = vadd.f32 %v2163_v12, %v2099_v5  ;;  %v2662_v16 = vpop.f32.mrf.mxu0 }
 0x128   : > { %v2664_v22 = vpop.f32.mrf.mxu1 }
 0x129   : > { %v2103_v23 = vpop.f32.mrf.mxu0 }
 0x12a   : > { %v2167_v24 = vpop.f32.mrf.mxu1 }
 0x12b   : > { %v2104_v25 = vpop.f32.mrf.mxu0 }
 0x12c   : > { %v2105_v26 = vadd.f32 %v2104_v25, %v2103_v23  ;;  %v2168_v27 = vpop.f32.mrf.mxu1 }
 0x12d   : > { %v2169_v33 = vadd.f32 %v2168_v27, %v2167_v24  ;;  %v2666_v34 = vpop.f32.mrf.mxu0 }
 0x12e   : > { %v2668_v35 = vpop.f32.mrf.mxu1 }
 0x12f   : > { %v2670_v36 = vadd.f32 %v2169_v33, %v2105_v26  ;;  %v2672_v37 = vpop.f32.mrf.mxu0 }
 0x130   : > { %v2674_v38 = vpop.f32.mrf.mxu1 }
 0x131   : > { %v2189_v44 = vpop.f32.mrf.mxu0 }
 0x132   : > { %v2253_v45 = vpop.f32.mrf.mxu1 }
 0x133   : > { %v2190_v46 = vpop.f32.mrf.mxu0 }
 0x134   : > { %v2191_v49 = vadd.f32 %v2190_v46, %v2189_v44  ;;  %v2254_v55 = vpop.f32.mrf.mxu1 }
 0x135   : > { %v2192_v56 = vpop.f32.mrf.mxu0  ;;  %v2255_v59 = vadd.f32 %v2254_v55, %v2253_v45 }
 0x136   : > { %v1378_v57 = vadd.f32 %v2191_v49, %v2600_v8  ;;  %v2256_v58 = vpop.f32.mrf.mxu1 }
 0x137   : > { %v2193_v60 = vpop.f32.mrf.mxu0 }
 0x138   : > { %v2194_v3 = vadd.f32 %v2193_v60, %v2192_v56  ;;  %v2257_v4 = vpop.f32.mrf.mxu1  ;;  %v1475_v5 = vadd.f32 %v2255_v59, %v1378_v57 }
 0x139   : > { %v2195_v11 = vpop.f32.mrf.mxu0  ;;  %v2258_v23 = vadd.f32 %v2257_v4, %v2256_v58 }
 0x13a   : > { %v1381_v12 = vadd.f32 %v2194_v3, %v1284_v2  ;;  %v2259_v6 = vpop.f32.mrf.mxu1  ;;  %v1638_v26 = vmul.f32 %v1475_v5, %v1475_v5  ;;  %v2078_v3 = vadd.f32 %v2622_v31, %v2616_v28 }
 0x13b   : > { %v2196_v9 = vpop.f32.mrf.mxu0 }
 0x13c   : > { %v1478_v8 = vadd.f32 %v2258_v23, %v1381_v12  ;;  %v2197_v24 = vadd.f32 %v2196_v9, %v2195_v11  ;;  %v2260_v25 = vpop.f32.mrf.mxu1 }
 0x13d   : > { %v2261_v27 = vadd.f32 %v2260_v25, %v2259_v6  ;;  %v2198_v33 = vpop.f32.mrf.mxu0 }
 0x13e   : > { %v2001_v44 = vpack.c.bf16 %v1478_v8, %v1475_v5  ;;  %v1617_v45 = vadd.f32 %v1478_v8, %v1475_v5  ;;  %v1639_v46 = vmul.f32 %v1478_v8, %v1478_v8  ;;  %v1386_v17 = vadd.f32 %v2197_v24, %v2610_v19  ;;  %v2262_v20 = vpop.f32.mrf.mxu1 }
 0x13f   : > { %v2199_v47 = vpop.f32.mrf.mxu0  ;;  %v2142_v19 = vadd.f32 %v2624_v32, %v2618_v29 }
 0x140   : > { %2002 = vst [vmem:[%s2689_s26] sm:$0xff] %v2001_v44   ;;  %v1654_v21 = vadd.f32 %v1639_v46, %v1638_v26  ;;  %v1483_v48 = vadd.f32 %v2261_v27, %v1386_v17  ;;  %v2200_v49 = vadd.f32 %v2199_v47, %v2198_v33  ;;  %v2263_v55 = vpop.f32.mrf.mxu1  ;;  %v2084_v47 = vadd.f32 %v2632_v42, %v2626_v39 }
 0x141   : > { %v2201_v56 = vpop.f32.mrf.mxu0  ;;  %v2264_v60 = vadd.f32 %v2263_v55, %v2262_v20  ;;  %v1300_v27 = vadd.f32 %v2142_v19, %v2078_v3 }
 0x142   : > { %v1618_v57 = vadd.f32 %v1617_v45, %v1483_v48  ;;  %v1640_v58 = vmul.f32 %v1483_v48, %v1483_v48  ;;  %v1389_v59 = vadd.f32 %v2200_v49, %v1292_v18  ;;  %v2265_v2 = vpop.f32.mrf.mxu1 }
 0x143   : > { %v2202_v4 = vpop.f32.mrf.mxu0 }
 0x144   : > { %v1655_v5 = vadd.f32 %v1654_v21, %v1640_v58  ;;  %v1486_v11 = vadd.f32 %v2264_v60, %v1389_v59  ;;  %v2203_v12 = vadd.f32 %v2202_v4, %v2201_v56  ;;  %v2266_v23 = vpop.f32.mrf.mxu1 }
 0x145   : > { %v2267_v6 = vadd.f32 %v2266_v23, %v2265_v2  ;;  %v2204_v9 = vpop.f32.mrf.mxu0 }
 0x146   : > { %v2006_v7 = vpack.c.bf16 %v1486_v11, %v1483_v48  ;;  %v1619_v10 = vadd.f32 %v1618_v57, %v1486_v11  ;;  %v1641_v8 = vmul.f32 %v1486_v11, %v1486_v11  ;;  %v1394_v24 = vadd.f32 %v2203_v12, %v2620_v30  ;;  %v2268_v25 = vpop.f32.mrf.mxu1 }
 0x147   : > { %v2205_v26 = vpop.f32.mrf.mxu0  ;;  %v2148_v30 = vadd.f32 %v2634_v43, %v2628_v40 }
 0x148   : > { %2038 = vst [vmem:[%s2689_s26 + $0x8] sm:$0xff] %v2006_v7   ;;  %v1656_v28 = vadd.f32 %v1655_v5, %v1641_v8  ;;  %v1491_v31 = vadd.f32 %v2267_v6, %v1394_v24  ;;  %v2206_v33 = vadd.f32 %v2205_v26, %v2204_v9  ;;  %v2269_v44 = vpop.f32.mrf.mxu1  ;;  %v2090_v7 = vadd.f32 %v2642_v53, %v2636_v50 }
 0x149   : > { %v2207_v29 = vpop.f32.mrf.mxu0  ;;  %v2270_v17 = vadd.f32 %v2269_v44, %v2268_v25  ;;  %v1308_v19 = vadd.f32 %v2148_v30, %v2084_v47 }
 0x14a   : > { %v1620_v32 = vadd.f32 %v1619_v10, %v1491_v31  ;;  %v1642_v45 = vmul.f32 %v1491_v31, %v1491_v31  ;;  %v1397_v46 = vadd.f32 %v2206_v33, %v1300_v27  ;;  %v2271_v20 = vpop.f32.mrf.mxu1 }
 0x14b   : > { %v2208_v18 = vpop.f32.mrf.mxu0 }
 0x14c   : > { %v1657_v21 = vadd.f32 %v1656_v28, %v1642_v45  ;;  %v1494_v48 = vadd.f32 %v2270_v17, %v1397_v46  ;;  %v2209_v49 = vadd.f32 %v2208_v18, %v2207_v29  ;;  %v2272_v55 = vpop.f32.mrf.mxu1 }
 0x14d   : > { %v2273_v56 = vadd.f32 %v2272_v55, %v2271_v20  ;;  %v2210_v57 = vpop.f32.mrf.mxu0 }
 0x14e   : > { %v2011_v58 = vpack.c.bf16 %v1494_v48, %v1491_v31  ;;  %v1621_v59 = vadd.f32 %v1620_v32, %v1494_v48  ;;  %v1643_v60 = vmul.f32 %v1494_v48, %v1494_v48  ;;  %v1402_v2 = vadd.f32 %v2209_v49, %v2630_v41  ;;  %v2274_v3 = vpop.f32.mrf.mxu1 }
 0x14f   : > { %v2211_v4 = vpop.f32.mrf.mxu0  ;;  %v2154_v41 = vadd.f32 %v2644_v54, %v2638_v51  ;;  %v2096_v48 = vadd.f32 %v2652_v0, %v2646_v61 }
 0x150   : > { %2039 = vst [vmem:[%s2689_s26 + $0x10] sm:$0xff] %v2011_v58   ;;  %v1658_v39 = vadd.f32 %v1657_v21, %v1643_v60  ;;  %v1499_v42 = vadd.f32 %v2273_v56, %v1402_v2  ;;  %v2212_v5 = vadd.f32 %v2211_v4, %v2210_v57  ;;  %v2275_v11 = vpop.f32.mrf.mxu1 }
 0x151   : > { %v2213_v40 = vpop.f32.mrf.mxu0  ;;  %v2276_v6 = vadd.f32 %v2275_v11, %v2274_v3  ;;  %v1316_v46 = vadd.f32 %v2154_v41, %v2090_v7 }
 0x152   : > { %v1622_v43 = vadd.f32 %v1621_v59, %v1499_v42  ;;  %v1644_v12 = vmul.f32 %v1499_v42, %v1499_v42  ;;  %v1405_v23 = vadd.f32 %v2212_v5, %v1308_v19  ;;  %v2277_v9 = vpop.f32.mrf.mxu1 }
 0x153   : > { %v2214_v10 = vpop.f32.mrf.mxu0 }
 0x154   : > { %v1659_v8 = vadd.f32 %v1658_v39, %v1644_v12  ;;  %v1502_v24 = vadd.f32 %v2276_v6, %v1405_v23  ;;  %v2215_v25 = vadd.f32 %v2214_v10, %v2213_v40  ;;  %v2278_v26 = vpop.f32.mrf.mxu1 }
 0x155   : > { %v2279_v27 = vadd.f32 %v2278_v26, %v2277_v9  ;;  %v2216_v28 = vpop.f32.mrf.mxu0  ;;  %v2102_v9 = vadd.f32 %v2662_v16, %v2656_v13 }
 0x156   : > { %v2016_v31 = vpack.c.bf16 %v1502_v24, %v1499_v42  ;;  %v1623_v33 = vadd.f32 %v1622_v43, %v1502_v24  ;;  %v1645_v44 = vmul.f32 %v1502_v24, %v1502_v24  ;;  %v1410_v29 = vadd.f32 %v2215_v25, %v2640_v52  ;;  %v2280_v32 = vpop.f32.mrf.mxu1 }
 0x157   : > { %v2217_v45 = vpop.f32.mrf.mxu0  ;;  %v2160_v52 = vadd.f32 %v2654_v1, %v2648_v62 }
 0x158   : > { %2040 = vst [vmem:[%s2689_s26 + $0x18] sm:$0xff] %v2016_v31   ;;  %v1660_v50 = vadd.f32 %v1659_v8, %v1645_v44  ;;  %v1507_v53 = vadd.f32 %v2279_v27, %v1410_v29  ;;  %v2218_v17 = vadd.f32 %v2217_v45, %v2216_v28  ;;  %v2281_v20 = vpop.f32.mrf.mxu1 }
 0x159   : > { %v2219_v51 = vpop.f32.mrf.mxu0  ;;  %v2282_v30 = vadd.f32 %v2281_v20, %v2280_v32  ;;  %v1324_v5 = vadd.f32 %v2160_v52, %v2096_v48 }
 0x15a   : > { %v1624_v54 = vadd.f32 %v1623_v33, %v1507_v53  ;;  %v1646_v47 = vmul.f32 %v1507_v53, %v1507_v53  ;;  %v1413_v18 = vadd.f32 %v2218_v17, %v1316_v46  ;;  %v2283_v21 = vpop.f32.mrf.mxu1 }
 0x15b   : > { %v2220_v49 = vpop.f32.mrf.mxu0 }
 0x15c   : > { %v1661_v55 = vadd.f32 %v1660_v50, %v1646_v47  ;;  %v1510_v56 = vadd.f32 %v2282_v30, %v1413_v18  ;;  %v2221_v57 = vadd.f32 %v2220_v49, %v2219_v51  ;;  %v2284_v58 = vpop.f32.mrf.mxu1  ;;  %v2108_v51 = vadd.f32 %v2672_v37, %v2666_v34 }
 0x15d   : > { %v2285_v59 = vadd.f32 %v2284_v58, %v2283_v21  ;;  %v2222_v60 = vpop.f32.mrf.mxu0 }
 0x15e   : > { %v2021_v2 = vpack.c.bf16 %v1510_v56, %v1507_v53  ;;  %v1625_v3 = vadd.f32 %v1624_v54, %v1510_v56  ;;  %v1647_v4 = vmul.f32 %v1510_v56, %v1510_v56  ;;  %v1418_v19 = vadd.f32 %v2221_v57, %v2650_v63  ;;  %v2286_v39 = vpop.f32.mrf.mxu1 }
 0x15f   : > { %v2223_v42 = vpop.f32.mrf.mxu0  ;;  %v2166_v63 = vadd.f32 %v2664_v22, %v2658_v14 }
 0x160   : > { %2041 = vst [vmem:[%s2689_s26 + $0x20] sm:$0xff] %v2021_v2   ;;  %v1662_v61 = vadd.f32 %v1661_v55, %v1647_v4  ;;  %v1515_v0 = vadd.f32 %v2285_v59, %v1418_v19  ;;  %v2224_v11 = vadd.f32 %v2223_v42, %v2222_v60  ;;  %v2287_v40 = vpop.f32.mrf.mxu1 }
 0x161   : > { %v2225_v62 = vpop.f32.mrf.mxu0  ;;  %v2288_v23 = vadd.f32 %v2287_v40, %v2286_v39  ;;  %v1332_v32 = vadd.f32 %v2166_v63, %v2102_v9 }
 0x162   : > { %v1626_v1 = vadd.f32 %v1625_v3, %v1515_v0  ;;  %v1648_v43 = vmul.f32 %v1515_v0, %v1515_v0  ;;  %v1421_v12 = vadd.f32 %v2224_v11, %v1324_v5  ;;  %v2289_v6 = vpop.f32.mrf.mxu1 }
 0x163   : > { %v2226_v7 = vpop.f32.mrf.mxu0 }
 0x164   : > { %v1663_v10 = vadd.f32 %v1662_v61, %v1648_v43  ;;  %v1518_v41 = vadd.f32 %v2288_v23, %v1421_v12  ;;  %v2227_v8 = vadd.f32 %v2226_v7, %v2225_v62  ;;  %v2290_v24 = vpop.f32.mrf.mxu1 }
 0x165   : > { %v2291_v25 = vadd.f32 %v2290_v24, %v2289_v6  ;;  %v2228_v26 = vpop.f32.mrf.mxu0 }
 0x166   : > { %v2026_v27 = vpack.c.bf16 %v1518_v41, %v1515_v0  ;;  %v1627_v28 = vadd.f32 %v1626_v1, %v1518_v41  ;;  %v1649_v31 = vmul.f32 %v1518_v41, %v1518_v41  ;;  %v1426_v33 = vadd.f32 %v2227_v8, %v2660_v15  ;;  %v2292_v44 = vpop.f32.mrf.mxu1 }
 0x167   : > { %v2229_v29 = vpop.f32.mrf.mxu0  ;;  %v2172_v15 = vadd.f32 %v2674_v38, %v2668_v35 }
 0x168   : > { %2042 = vst [vmem:[%s2689_s26 + $0x28] sm:$0xff] %v2026_v27   ;;  %v1664_v13 = vadd.f32 %v1663_v10, %v1649_v31  ;;  %v1523_v16 = vadd.f32 %v2291_v25, %v1426_v33  ;;  %v2230_v45 = vadd.f32 %v2229_v29, %v2228_v26  ;;  %v2293_v46 = vpop.f32.mrf.mxu1 }
 0x169   : > { %v2231_v14 = vpop.f32.mrf.mxu0  ;;  %v2294_v17 = vadd.f32 %v2293_v46, %v2292_v44  ;;  %v1340_v34 = vadd.f32 %v2172_v15, %v2108_v51 }
 0x16a   : > { %v1628_v22 = vadd.f32 %v1627_v28, %v1523_v16  ;;  %v1650_v50 = vmul.f32 %v1523_v16, %v1523_v16  ;;  %v1429_v53 = vadd.f32 %v2230_v45, %v1332_v32  ;;  %v2295_v20 = vpop.f32.mrf.mxu1 }
 0x16b   : > { %v2232_v54 = vpop.f32.mrf.mxu0 }
 0x16c   : > { %v1665_v47 = vadd.f32 %v1664_v13, %v1650_v50  ;;  %v1526_v18 = vadd.f32 %v2294_v17, %v1429_v53  ;;  %v2233_v30 = vadd.f32 %v2232_v54, %v2231_v14  ;;  %v2296_v21 = vpop.f32.mrf.mxu1 }
 0x16d   : > { %v2297_v48 = vadd.f32 %v2296_v21, %v2295_v20  ;;  %v2234_v49 = vpop.f32.mrf.mxu0 }
 0x16e   : > { %v2031_v52 = vpack.c.bf16 %v1526_v18, %v1523_v16  ;;  %v1629_v55 = vadd.f32 %v1628_v22, %v1526_v18  ;;  %v1651_v56 = vmul.f32 %v1526_v18, %v1526_v18  ;;  %v1434_v57 = vadd.f32 %v2233_v30, %v2670_v36  ;;  %v2298_v58 = vpop.f32.mrf.mxu1 }
 0x16f   : > { %v2235_v59 = vpop.f32.mrf.mxu0 }
 0x170   : > { %2043 = vst [vmem:[%s2689_s26 + $0x30] sm:$0xff] %v2031_v52   ;;  %v1666_v37 = vadd.f32 %v1665_v47, %v1651_v56  ;;  %v1531_v60 = vadd.f32 %v2297_v48, %v1434_v57  ;;  %v2236_v2 = vadd.f32 %v2235_v59, %v2234_v49  ;;  %v2299_v35 = vpop.f32.mrf.mxu1 }
 0x171   : > { %v2300_v19 = vadd.f32 %v2299_v35, %v2298_v58 }
 0x172   : > { %v1630_v38 = vadd.f32 %v1629_v55, %v1531_v60  ;;  %v1652_v3 = vmul.f32 %v1531_v60, %v1531_v60  ;;  %v1437_v4 = vadd.f32 %v2236_v2, %v1340_v34 }
 0x174   : > { %v1667_v39 = vadd.f32 %v1666_v37, %v1652_v3  ;;  %v1534_v42 = vadd.f32 %v2300_v19, %v1437_v4 }
 0x176   : > { %v2036_v5 = vpack.c.bf16 %v1534_v42, %v1531_v60  ;;  %v1631_v61 = vadd.f32 %v1630_v38, %v1534_v42  ;;  %v1653_v0 = vmul.f32 %v1534_v42, %v1534_v42 }
 0x178   : > { %2044 = vst [vmem:[%s2689_s26 + $0x38] sm:$0xff] %v2036_v5   ;;  %v1632_v36 = vrot.slane %v1631_v61, 4  ;;  %v1668_v11 = vadd.f32 %v1667_v39, %v1653_v0 }
 0x17a   : > { %v1633_v40 = vadd.f32 %v1632_v36, %v1631_v61  ;;  %v1669_v62 = vrot.slane %v1668_v11, 4 }
 0x17c   : > { %v1634_v1 = vrot.slane %v1633_v40, 2  ;;  %v1670_v43 = vadd.f32 %v1669_v62, %v1668_v11 }
 0x17e   : > { %v1635_v12 = vadd.f32 %v1634_v1, %v1633_v40  ;;  %v1671_v23 = vrot.slane %v1670_v43, 2 }
 0x180   : > { %v1636_v6 = vrot.slane %v1635_v12, 1  ;;  %v1672_v9 = vadd.f32 %v1671_v23, %v1670_v43 }
 0x182   : > { %v1673_v7 = vrot.slane %v1672_v9, 1  ;;  %v1637_v63 = vadd.f32 %v1636_v6, %v1635_v12 }
 0x184   : > { %v1674_v10 = vadd.f32 %v1673_v7, %v1672_v9 }
 0x186   : > { %v1676_v41 = vsel %vm1675_vm0, %v1637_v63, %v1674_v10 }
 0x187   : > { %1677 = vst [vmem:[%s251_s30] sm:$0x3] %v1676_v41 }
 0x188 PF: > { %s14_s14 = sadd.s32 1, %s2411_s14   ;;  %s2747_s12 = smov %s2407_s13 }
 0x189   : > { %p11_p5 = scmp.ge.s32.totalorder %s14_s14, 6   ;;  %s2748_s13 = smov %s2750_s15 }
 0x18b   :  { %13 = sbr.rel (!%p11_p5) target bundleno = 2 (0x2), region = 73 }

// kernel: generator_forward.8
= control target key start
LH: loop header
LB: loop body
LE: loop exit
PB: predicated region body
PF: predicated region fallthrough
CT: control target
= control target key end

     0   :  { %s2364_s12 = smov 0   ;;  %s2366_s13 = smov 0   ;;  %s2689_s0 = inlined_call_operand.vmem [shape: bf16[4,512,512], index: 0, kind: input, shape index: {}]   ;;  %s2690_s1 = inlined_call_operand.vmem [shape: bf16[4,512,128], index: 1, kind: input, shape index: {}]   ;;  %s2691_s2 = inlined_call_operand.vmem [shape: bf16[4,512,128], index: 2, kind: output, shape index: {0}]   ;;  %s2692_s3 = inlined_call_operand.vmem [shape: f32[4,2,2,128], index: 3, kind: output, shape index: {1}]  }
   0x1   :  { %s2368_s14 = smov 0   ;;  %s2370_s15 = smov 0  }
   0x2   :  { %s2372_s16 = smov 0  }
   0x3 LB: > { %s23_s17 = sadd.s32 1, %s2334_s14  ;;  %s26_s18 = sadd.s32 1, %s2338_s15  ;;  %s2342_s16 = sphi %s2372_s16, %s14_s16   ;;  %s2338_s15 = sphi %s2370_s15, %s2696_s15   ;;  %s2334_s14 = sphi %s2368_s14, %s2695_s14   ;;  %s2330_s13 = sphi %s2366_s13, %s2694_s13   ;;  %s2326_s12 = sphi %s2364_s12, %s2693_s12  }
   0x4   : > { %p24_p0 = scmp.ge.s32.totalorder %s23_s17, 2  ;;  %p1642_p1 = scmp.ge.s32.totalorder %s2342_s16, 1 }
   0x5   : > { %p174_p2 = scmp.lt.s32.totalorder %s2342_s16, 9 }
   0x6   : > { %s2698_s17 = smov (%p24_p0, %s23_s17), 0  ;;  %s2700_s18 = smov (!%p24_p0, %s26_s18), %s2338_s15 }
   0x7   : > { %p175_p3 = pnand %p1642_p1, %p174_p2  ;;  %p28_p4 = scmp.ge.s32.totalorder %s2700_s18, 4 }
   0x8   : > { %p221_p5 = scmp.lt.s32.totalorder (!%p175_p3), %s2330_s13, 3  ;;  %s1643_s23 = sshll.u32 (!%p175_p3), %s2326_s12, 5 }
   0x9   : > { %s2702_s18 = smov (%p28_p4, %s2700_s18), 0  ;;  %178 = sbr.rel (%p175_p3) target bundleno = 393 (0x189), region = 28 }
   0xa   : > { %p223_p6 = scmp.lt.s32.totalorder (!%p175_p3), %s1643_s23, 63  ;;  %p248_p7 = scmp.lt.s32.totalorder (!%p175_p3), %s2326_s12, 1 }
   0xe   : > { %s2704_s13 = smov (!%p221_p5, %s2330_s13), 3  ;;  %s2706_s23 = smov (!%p223_p6, %s1643_s23), 63  ;;  %vm1483_vm0 = vcmask 1040384  }
   0xf   : > { %s1645_s19 = sshll.u32 %s2704_s13, 8  ;;  %s1644_s24 = sshll.u32 %s2706_s23, 2 }
  0x10   : > { %s2404_s22 = scalar_lea.vmem %s2690_s1, %s1645_s19  ;;  %s227_s25 = sadd.s32 %s1645_s19, %s1644_s24 }
  0x11   : > { %v2176_v0 = vld [vmem:[%s2404_s22 + $0x78] sm:$0xff]   ;;  %v2180_v4 = vld [vmem:[%s2404_s22 + $0x70] sm:$0xff]   ;;  %v2184_v8 = vld [vmem:[%s2404_s22 + $0x68] sm:$0xff]   ;;  %s1646_s26 = sshll.u32 %s227_s25, 2  ;;  %s1650_s30 = sshll.u32 %s2704_s13, 6 }
  0x12   : > { %v2177_v1 = vld [vmem:[%s2404_s22 + $0xf8] sm:$0xff]   ;;  %1912 = vmatprep.subr.bf16.mxu0 %v2176_v0  ;;  %v2181_v5 = vld [vmem:[%s2404_s22 + $0xf0] sm:$0xff]   ;;  %v2185_v9 = vld [vmem:[%s2404_s22 + $0xe8] sm:$0xff]   ;;  %s2445_s29 = scalar_lea.vmem %s2689_s0, %s1646_s26  ;;  %s242_s4 = sadd.s32 %s1650_s30, %s2706_s23 }
  0x13   : > { %v2178_v2 = vld [vmem:[%s2404_s22 + $0x38] sm:$0xff]   ;;  %2024 = vmatprep.subr.bf16.mxu1 %v2177_v1  ;;  %v2182_v6 = vld [vmem:[%s2404_s22 + $0x30] sm:$0xff]   ;;  %v2186_v10 = vld [vmem:[%s2404_s22 + $0x28] sm:$0xff]   ;;  %s1651_s5 = sshll.u32 %s242_s4, 2  ;;  %s2708_s12 = smov (!%p248_p7, %s2326_s12), 1 }
  0x14   : > { %v2179_v3 = vld [vmem:[%s2404_s22 + $0xb8] sm:$0xff]   ;;  %1913 = vmatpush3.bf16.msra.mxu0 %v2178_v2  ;;  %v2183_v7 = vld [vmem:[%s2404_s22 + $0xb0] sm:$0xff]   ;;  %v2187_v11 = vld [vmem:[%s2404_s22 + $0xa8] sm:$0xff]   ;;  %s2522_s8 = scalar_lea.vmem %s2691_s2, %s1651_s5  ;;  %s1652_s9 = sshll.u32 %s2704_s13, 1 }
  0x15   : > { %2025 = vmatpush3.bf16.msra.mxu1 %v2179_v3  ;;  %1914 = vmatprep.subr.bf16.mxu0 %v2180_v4  ;;  %v2188_v12 = vld [vmem:[%s2404_s22 + $0x60] sm:$0xff]   ;;  %v2192_v16 = vld [vmem:[%s2404_s22 + $0x58] sm:$0xff]   ;;  %v2196_v20 = vld [vmem:[%s2404_s22 + $0x50] sm:$0xff]   ;;  %s251_s10 = sadd.s32 %s1652_s9, %s2708_s12 }
  0x16   : > { %2026 = vmatprep.subr.bf16.mxu1 %v2181_v5  ;;  %v2189_v13 = vld [vmem:[%s2404_s22 + $0xe0] sm:$0xff]   ;;  %v2193_v17 = vld [vmem:[%s2404_s22 + $0xd8] sm:$0xff]   ;;  %v2197_v21 = vld [vmem:[%s2404_s22 + $0xd0] sm:$0xff]   ;;  %s1653_s11 = sshll.u32 %s251_s10, 1 }
  0x17   : > { %v2190_v14 = vld [vmem:[%s2404_s22 + $0x20] sm:$0xff]   ;;  %v2194_v18 = vld [vmem:[%s2404_s22 + $0x18] sm:$0xff]   ;;  %v2198_v22 = vld [vmem:[%s2404_s22 + $0x10] sm:$0xff]   ;;  %s253_s21 = scalar_lea.vmem %s2692_s3, %s1653_s11 }
  0x18   : > { %1915 = vmatpush3.bf16.msra.mxu0 %v2182_v6  ;;  %v2191_v15 = vld [vmem:[%s2404_s22 + $0xa0] sm:$0xff]   ;;  %v2195_v19 = vld [vmem:[%s2404_s22 + $0x98] sm:$0xff]   ;;  %v2199_v23 = vld [vmem:[%s2404_s22 + $0x90] sm:$0xff]  }
  0x19   : > { %2027 = vmatpush3.bf16.msra.mxu1 %v2183_v7  ;;  %1916 = vmatprep.subr.bf16.mxu0 %v2184_v8  ;;  %v2200_v24 = vld [vmem:[%s2404_s22 + $0x48] sm:$0xff]   ;;  %v2204_v28 = vld [vmem:[%s2404_s22 + $0x40] sm:$0xff]  }
  0x1a   : > { %2028 = vmatprep.subr.bf16.mxu1 %v2185_v9  ;;  %v2201_v25 = vld [vmem:[%s2404_s22 + $0xc8] sm:$0xff]   ;;  %v2205_v29 = vld [vmem:[%s2404_s22 + $0xc0] sm:$0xff]  }
  0x1b   : > { %v2202_v26 = vld [vmem:[%s2404_s22 + $0x8] sm:$0xff]   ;;  %v2206_v30 = vld [vmem:[%s2404_s22] sm:$0xff]  }
  0x1c   : > { %1917 = vmatpush3.bf16.msra.mxu0 %v2186_v10  ;;  %v2203_v27 = vld [vmem:[%s2404_s22 + $0x88] sm:$0xff]   ;;  %v2207_v31 = vld [vmem:[%s2404_s22 + $0x80] sm:$0xff]  }
  0x1d   : > { %2029 = vmatpush3.bf16.msra.mxu1 %v2187_v11  ;;  %1918 = vmatprep.subr.bf16.mxu0 %v2188_v12  ;;  %v2208_v32 = vld [vmem:[%s2445_s29] ss:$16 sps:$4 sm:$0xff]   ;;  %v2210_v33 = vld [vmem:[%s2445_s29 + $0x4] ss:$16 sps:$4 sm:$0xff]   ;;  %v2211_v34 = vld [vmem:[%s2445_s29 + $0x8] ss:$16 sps:$4 sm:$0xff]  }
  0x1e   : > { %2030 = vmatprep.subr.bf16.mxu1 %v2189_v13  ;;  %v2213_v35 = vld [vmem:[%s2445_s29 + $0xc] ss:$16 sps:$4 sm:$0xff]   ;;  %927 = vmatprep.mubr.bf16.mxu0 %v2210_v33  ;;  %v2214_v36 = vld [vmem:[%s2445_s29 + $0x24] ss:$16 sps:$4 sm:$0xff]   ;;  %v2218_v38 = vld [vmem:[%s2445_s29 + $0x20] ss:$16 sps:$4 sm:$0xff]  }
  0x1f   : > { %1088 = vmatprep.mubr.bf16.mxu1 %v2213_v35  ;;  %v2216_v37 = vld [vmem:[%s2445_s29 + $0x2c] ss:$16 sps:$4 sm:$0xff]   ;;  %v2219_v39 = vld [vmem:[%s2445_s29 + $0x28] ss:$16 sps:$4 sm:$0xff]   ;;  %v2220_v40 = vld [vmem:[%s2445_s29 + $0x44] ss:$16 sps:$4 sm:$0xff]  }
  0x20   : > { %1919 = vmatpush3.bf16.msra.mxu0 %v2190_v14  ;;  %v2222_v41 = vld [vmem:[%s2445_s29 + $0x4c] ss:$16 sps:$4 sm:$0xff]   ;;  %v2224_v42 = vld [vmem:[%s2445_s29 + $0x40] ss:$16 sps:$4 sm:$0xff]   ;;  %v2225_v43 = vld [vmem:[%s2445_s29 + $0x48] ss:$16 sps:$4 sm:$0xff]  }
  0x21   : > { %2031 = vmatpush3.bf16.msra.mxu1 %v2191_v15  ;;  %1920 = vmatprep.subr.bf16.mxu0 %v2192_v16  ;;  %v2226_v44 = vld [vmem:[%s2445_s29 + $0x64] ss:$16 sps:$4 sm:$0xff]   ;;  %v2228_v45 = vld [vmem:[%s2445_s29 + $0x6c] ss:$16 sps:$4 sm:$0xff]   ;;  %v2230_v46 = vld [vmem:[%s2445_s29 + $0x60] ss:$16 sps:$4 sm:$0xff]  }
  0x22   : > { %2032 = vmatprep.subr.bf16.mxu1 %v2193_v17  ;;  %v2231_v47 = vld [vmem:[%s2445_s29 + $0x68] ss:$16 sps:$4 sm:$0xff]   ;;  %v2232_v48 = vld [vmem:[%s2445_s29 + $0x84] ss:$16 sps:$4 sm:$0xff]   ;;  %v2234_v49 = vld [vmem:[%s2445_s29 + $0x8c] ss:$16 sps:$4 sm:$0xff]  }
  0x23   : > { %v2236_v50 = vld [vmem:[%s2445_s29 + $0x80] ss:$16 sps:$4 sm:$0xff]   ;;  %v2237_v51 = vld [vmem:[%s2445_s29 + $0x88] ss:$16 sps:$4 sm:$0xff]   ;;  %v2238_v52 = vld [vmem:[%s2445_s29 + $0xa4] ss:$16 sps:$4 sm:$0xff]  }
  0x24   : > { %1921 = vmatpush3.bf16.msra.mxu0 %v2194_v18  ;;  %v2240_v53 = vld [vmem:[%s2445_s29 + $0xac] ss:$16 sps:$4 sm:$0xff]   ;;  %v2242_v54 = vld [vmem:[%s2445_s29 + $0xa0] ss:$16 sps:$4 sm:$0xff]   ;;  %v2243_v55 = vld [vmem:[%s2445_s29 + $0xa8] ss:$16 sps:$4 sm:$0xff]  }
  0x25   : > { %2033 = vmatpush3.bf16.msra.mxu1 %v2195_v19  ;;  %1922 = vmatprep.subr.bf16.mxu0 %v2196_v20  ;;  %v2244_v56 = vld [vmem:[%s2445_s29 + $0xc4] ss:$16 sps:$4 sm:$0xff]   ;;  %v2246_v57 = vld [vmem:[%s2445_s29 + $0xcc] ss:$16 sps:$4 sm:$0xff]   ;;  %v2248_v58 = vld [vmem:[%s2445_s29 + $0xc0] ss:$16 sps:$4 sm:$0xff]  }
  0x26   : > { %2034 = vmatprep.subr.bf16.mxu1 %v2197_v21  ;;  %v2249_v59 = vld [vmem:[%s2445_s29 + $0xc8] ss:$16 sps:$4 sm:$0xff]   ;;  %v2250_v60 = vld [vmem:[%s2445_s29 + $0xe4] ss:$16 sps:$4 sm:$0xff]   ;;  %v2252_v61 = vld [vmem:[%s2445_s29 + $0xec] ss:$16 sps:$4 sm:$0xff]  }
  0x27   : > { %v2254_v62 = vld [vmem:[%s2445_s29 + $0xe0] ss:$16 sps:$4 sm:$0xff]   ;;  %v2255_v63 = vld [vmem:[%s2445_s29 + $0xe8] ss:$16 sps:$4 sm:$0xff]   ;;  %v2256_v0 = vld [vmem:[%s2445_s29 + $0x104] ss:$16 sps:$4 sm:$0xff]  }
  0x28   : > { %1923 = vmatpush3.bf16.msra.mxu0 %v2198_v22  ;;  %v2258_v1 = vld [vmem:[%s2445_s29 + $0x10c] ss:$16 sps:$4 sm:$0xff]   ;;  %v2260_v2 = vld [vmem:[%s2445_s29 + $0x100] ss:$16 sps:$4 sm:$0xff]   ;;  %v2261_v3 = vld [vmem:[%s2445_s29 + $0x108] ss:$16 sps:$4 sm:$0xff]  }
  0x29   : > { %2035 = vmatpush3.bf16.msra.mxu1 %v2199_v23  ;;  %1924 = vmatprep.subr.bf16.mxu0 %v2200_v24  ;;  %v2262_v4 = vld [vmem:[%s2445_s29 + $0x124] ss:$16 sps:$4 sm:$0xff]   ;;  %v2264_v5 = vld [vmem:[%s2445_s29 + $0x12c] ss:$16 sps:$4 sm:$0xff]   ;;  %v2266_v6 = vld [vmem:[%s2445_s29 + $0x120] ss:$16 sps:$4 sm:$0xff]  }
  0x2a   : > { %2036 = vmatprep.subr.bf16.mxu1 %v2201_v25  ;;  %v2267_v7 = vld [vmem:[%s2445_s29 + $0x128] ss:$16 sps:$4 sm:$0xff]   ;;  %v2268_v8 = vld [vmem:[%s2445_s29 + $0x144] ss:$16 sps:$4 sm:$0xff]   ;;  %v2270_v9 = vld [vmem:[%s2445_s29 + $0x14c] ss:$16 sps:$4 sm:$0xff]  }
  0x2b   : > { %v2272_v10 = vld [vmem:[%s2445_s29 + $0x140] ss:$16 sps:$4 sm:$0xff]   ;;  %v2273_v11 = vld [vmem:[%s2445_s29 + $0x148] ss:$16 sps:$4 sm:$0xff]   ;;  %v2274_v12 = vld [vmem:[%s2445_s29 + $0x164] ss:$16 sps:$4 sm:$0xff]  }
  0x2c   : > { %1925 = vmatpush3.bf16.msra.mxu0 %v2202_v26  ;;  %v2276_v13 = vld [vmem:[%s2445_s29 + $0x16c] ss:$16 sps:$4 sm:$0xff]   ;;  %v2278_v14 = vld [vmem:[%s2445_s29 + $0x160] ss:$16 sps:$4 sm:$0xff]   ;;  %v2279_v15 = vld [vmem:[%s2445_s29 + $0x168] ss:$16 sps:$4 sm:$0xff]  }
  0x2d   : > { %2037 = vmatpush3.bf16.msra.mxu1 %v2203_v27  ;;  %1926 = vmatprep.subr.bf16.mxu0 %v2204_v28  ;;  %v2280_v16 = vld [vmem:[%s2445_s29 + $0x184] ss:$16 sps:$4 sm:$0xff]   ;;  %v2282_v17 = vld [vmem:[%s2445_s29 + $0x18c] ss:$16 sps:$4 sm:$0xff]   ;;  %v2284_v18 = vld [vmem:[%s2445_s29 + $0x180] ss:$16 sps:$4 sm:$0xff]  }
  0x2e   : > { %2038 = vmatprep.subr.bf16.mxu1 %v2205_v29  ;;  %v2285_v19 = vld [vmem:[%s2445_s29 + $0x188] ss:$16 sps:$4 sm:$0xff]   ;;  %v2286_v20 = vld [vmem:[%s2445_s29 + $0x1a4] ss:$16 sps:$4 sm:$0xff]   ;;  %v2288_v21 = vld [vmem:[%s2445_s29 + $0x1ac] ss:$16 sps:$4 sm:$0xff]  }
  0x2f   : > { %v2290_v22 = vld [vmem:[%s2445_s29 + $0x1a0] ss:$16 sps:$4 sm:$0xff]   ;;  %v2291_v23 = vld [vmem:[%s2445_s29 + $0x1a8] ss:$16 sps:$4 sm:$0xff]   ;;  %v2292_v24 = vld [vmem:[%s2445_s29 + $0x1c4] ss:$16 sps:$4 sm:$0xff]  }
  0x30   : > { %1927 = vmatpush3.bf16.msra.mxu0 %v2206_v30  ;;  %v2294_v25 = vld [vmem:[%s2445_s29 + $0x1cc] ss:$16 sps:$4 sm:$0xff]   ;;  %v2296_v26 = vld [vmem:[%s2445_s29 + $0x1c0] ss:$16 sps:$4 sm:$0xff]   ;;  %v2297_v27 = vld [vmem:[%s2445_s29 + $0x1c8] ss:$16 sps:$4 sm:$0xff]  }
  0x31   : > { %2039 = vmatpush3.bf16.msra.mxu1 %v2207_v31  ;;  %v2298_v28 = vld [vmem:[%s2445_s29 + $0x1e4] ss:$16 sps:$4 sm:$0xff]   ;;  %v2300_v29 = vld [vmem:[%s2445_s29 + $0x1ec] ss:$16 sps:$4 sm:$0xff]   ;;  %v2302_v30 = vld [vmem:[%s2445_s29 + $0x1e0] ss:$16 sps:$4 sm:$0xff]  }
  0x32   : > { %v2303_v31 = vld [vmem:[%s2445_s29 + $0x1e8] ss:$16 sps:$4 sm:$0xff]  }
  0x33   : > { %928 = vmatmul.mubr.bf16.vlgmr.msra.gmra.mxu0 %v2208_v32 }
  0x34   : > { %1089 = vmatmul.mubr.bf16.vlgmr.msra.gmra.mxu1 %v2211_v34  ;;  %935 = vmatprep.mubr.bf16.mxu0 %v2214_v36 }
  0x35   : > { %1096 = vmatprep.mubr.bf16.mxu1 %v2216_v37 }
  0x3b   : > { %936 = vmatmul.mubr.bf16.gmra.mxu0 %v2218_v38 }
  0x3c   : > { %1097 = vmatmul.mubr.bf16.gmra.mxu1 %v2219_v39  ;;  %943 = vmatprep.mubr.bf16.mxu0 %v2220_v40 }
  0x3d   : > { %1104 = vmatprep.mubr.bf16.mxu1 %v2222_v41 }
  0x43   : > { %944 = vmatmul.mubr.bf16.gmra.mxu0 %v2224_v42 }
  0x44   : > { %1105 = vmatmul.mubr.bf16.gmra.mxu1 %v2225_v43  ;;  %951 = vmatprep.mubr.bf16.mxu0 %v2226_v44 }
  0x45   : > { %1112 = vmatprep.mubr.bf16.mxu1 %v2228_v45 }
  0x4b   : > { %952 = vmatmul.mubr.bf16.gmra.mxu0 %v2230_v46 }
  0x4c   : > { %1113 = vmatmul.mubr.bf16.gmra.mxu1 %v2231_v47  ;;  %959 = vmatprep.mubr.bf16.mxu0 %v2232_v48 }
  0x4d   : > { %1120 = vmatprep.mubr.bf16.mxu1 %v2234_v49 }
  0x53   : > { %960 = vmatmul.mubr.bf16.gmra.mxu0 %v2236_v50 }
  0x54   : > { %1121 = vmatmul.mubr.bf16.gmra.mxu1 %v2237_v51  ;;  %967 = vmatprep.mubr.bf16.mxu0 %v2238_v52 }
  0x55   : > { %1128 = vmatprep.mubr.bf16.mxu1 %v2240_v53 }
  0x5b   : > { %968 = vmatmul.mubr.bf16.gmra.mxu0 %v2242_v54 }
  0x5c   : > { %1129 = vmatmul.mubr.bf16.gmra.mxu1 %v2243_v55  ;;  %975 = vmatprep.mubr.bf16.mxu0 %v2244_v56 }
  0x5d   : > { %1136 = vmatprep.mubr.bf16.mxu1 %v2246_v57 }
  0x63   : > { %976 = vmatmul.mubr.bf16.gmra.mxu0 %v2248_v58 }
  0x64   : > { %1137 = vmatmul.mubr.bf16.gmra.mxu1 %v2249_v59  ;;  %983 = vmatprep.mubr.bf16.mxu0 %v2250_v60 }
  0x65   : > { %1144 = vmatprep.mubr.bf16.mxu1 %v2252_v61 }
  0x6b   : > { %984 = vmatmul.mubr.bf16.gmra.mxu0 %v2254_v62 }
  0x6c   : > { %1145 = vmatmul.mubr.bf16.gmra.mxu1 %v2255_v63  ;;  %991 = vmatprep.mubr.bf16.mxu0 %v2256_v0 }
  0x6d   : > { %1152 = vmatprep.mubr.bf16.mxu1 %v2258_v1 }
  0x73   : > { %992 = vmatmul.mubr.bf16.gmra.mxu0 %v2260_v2 }
  0x74   : > { %1153 = vmatmul.mubr.bf16.gmra.mxu1 %v2261_v3  ;;  %999 = vmatprep.mubr.bf16.mxu0 %v2262_v4 }
  0x75   : > { %1160 = vmatprep.mubr.bf16.mxu1 %v2264_v5 }
  0x7b   : > { %1000 = vmatmul.mubr.bf16.gmra.mxu0 %v2266_v6 }
  0x7c   : > { %1161 = vmatmul.mubr.bf16.gmra.mxu1 %v2267_v7  ;;  %1007 = vmatprep.mubr.bf16.mxu0 %v2268_v8 }
  0x7d   : > { %1168 = vmatprep.mubr.bf16.mxu1 %v2270_v9 }
  0x83   : > { %1008 = vmatmul.mubr.bf16.gmra.mxu0 %v2272_v10 }
  0x84   : > { %1169 = vmatmul.mubr.bf16.gmra.mxu1 %v2273_v11  ;;  %1015 = vmatprep.mubr.bf16.mxu0 %v2274_v12 }
  0x85   : > { %1176 = vmatprep.mubr.bf16.mxu1 %v2276_v13 }
  0x8b   : > { %1016 = vmatmul.mubr.bf16.gmra.mxu0 %v2278_v14 }
  0x8c   : > { %1177 = vmatmul.mubr.bf16.gmra.mxu1 %v2279_v15  ;;  %1023 = vmatprep.mubr.bf16.mxu0 %v2280_v16 }
  0x8d   : > { %1184 = vmatprep.mubr.bf16.mxu1 %v2282_v17 }
  0x93   : > { %1024 = vmatmul.mubr.bf16.gmra.mxu0 %v2284_v18 }
  0x94   : > { %1185 = vmatmul.mubr.bf16.gmra.mxu1 %v2285_v19  ;;  %1031 = vmatprep.mubr.bf16.mxu0 %v2286_v20 }
  0x95   : > { %1192 = vmatprep.mubr.bf16.mxu1 %v2288_v21 }
  0x9b   : > { %1032 = vmatmul.mubr.bf16.gmra.mxu0 %v2290_v22 }
  0x9c   : > { %1193 = vmatmul.mubr.bf16.gmra.mxu1 %v2291_v23  ;;  %1039 = vmatprep.mubr.bf16.mxu0 %v2292_v24 }
  0x9d   : > { %1200 = vmatprep.mubr.bf16.mxu1 %v2294_v25 }
  0xa3   : > { %1040 = vmatmul.mubr.bf16.gmra.mxu0 %v2296_v26 }
  0xa4   : > { %1201 = vmatmul.mubr.bf16.gmra.mxu1 %v2297_v27  ;;  %1047 = vmatprep.mubr.bf16.mxu0 %v2298_v28 }
  0xa5   : > { %1208 = vmatprep.mubr.bf16.mxu1 %v2300_v29 }
  0xab   : > { %1048 = vmatmul.mubr.bf16.gmra.mxu0 %v2302_v30 }
  0xac   : > { %1209 = vmatmul.mubr.bf16.gmra.mxu1 %v2303_v31 }
  0xf3   : > { %v1928_v32 = vpop.f32.mrf.mxu0 }
  0xf4   : > { %v2040_v33 = vpop.f32.mrf.mxu1 }
  0xf5   : > { %v1929_v34 = vpop.f32.mrf.mxu0 }
  0xf6   : > { %v2041_v35 = vpop.f32.mrf.mxu1  ;;  %v1930_v38 = vadd.f32 %v1929_v34, %v1928_v32 }
  0xf7   : > { %v1931_v36 = vpop.f32.mrf.mxu0  ;;  %v2042_v39 = vadd.f32 %v2041_v35, %v2040_v33 }
  0xf8   : > { %v2043_v37 = vpop.f32.mrf.mxu1 }
  0xf9   : > { %v1932_v40 = vpop.f32.mrf.mxu0  ;;  %v2515_v46 = vadd.f32 %v2042_v39, %v1930_v38 }
  0xfa   : > { %v1933_v41 = vadd.f32 %v1932_v40, %v1931_v36  ;;  %v2044_v42 = vpop.f32.mrf.mxu1 }
  0xfb   : > { %v2045_v43 = vadd.f32 %v2044_v42, %v2043_v37  ;;  %v1934_v44 = vpop.f32.mrf.mxu0 }
  0xfc   : > { %v2046_v45 = vpop.f32.mrf.mxu1 }
  0xfd   : > { %v2517_v47 = vadd.f32 %v2045_v43, %v1933_v41  ;;  %v1935_v48 = vpop.f32.mrf.mxu0 }
  0xfe   : > { %v2047_v49 = vpop.f32.mrf.mxu1  ;;  %v1936_v53 = vadd.f32 %v1935_v48, %v1934_v44 }
  0xff   : > { %v1820_v50 = vpack.c.bf16 %v2517_v47, %v2515_v46  ;;  %v1937_v51 = vpop.f32.mrf.mxu0  ;;  %v2048_v54 = vadd.f32 %v2047_v49, %v2046_v45 }
 0x100   : > { %v2049_v52 = vpop.f32.mrf.mxu1 }
 0x101   : > { %1821 = vst [vmem:[%s2522_s8] sm:$0xff] %v1820_v50   ;;  %v1938_v55 = vpop.f32.mrf.mxu0  ;;  %v2527_v61 = vadd.f32 %v2048_v54, %v1936_v53 }
 0x102   : > { %v1939_v56 = vadd.f32 %v1938_v55, %v1937_v51  ;;  %v2050_v57 = vpop.f32.mrf.mxu1 }
 0x103   : > { %v2051_v58 = vadd.f32 %v2050_v57, %v2049_v52  ;;  %v1940_v59 = vpop.f32.mrf.mxu0 }
 0x104   : > { %v2052_v60 = vpop.f32.mrf.mxu1 }
 0x105   : > { %v2529_v62 = vadd.f32 %v2051_v58, %v1939_v56  ;;  %v1941_v63 = vpop.f32.mrf.mxu0 }
 0x106   : > { %v2053_v0 = vpop.f32.mrf.mxu1  ;;  %v1942_v4 = vadd.f32 %v1941_v63, %v1940_v59 }
 0x107   : > { %v1825_v1 = vpack.c.bf16 %v2529_v62, %v2527_v61  ;;  %v1943_v2 = vpop.f32.mrf.mxu0  ;;  %v2054_v5 = vadd.f32 %v2053_v0, %v2052_v60 }
 0x108   : > { %v2055_v3 = vpop.f32.mrf.mxu1 }
 0x109   : > { %1897 = vst [vmem:[%s2522_s8 + $0x8] sm:$0xff] %v1825_v1   ;;  %v1944_v6 = vpop.f32.mrf.mxu0  ;;  %v2534_v12 = vadd.f32 %v2054_v5, %v1942_v4 }
 0x10a   : > { %v1945_v7 = vadd.f32 %v1944_v6, %v1943_v2  ;;  %v2056_v8 = vpop.f32.mrf.mxu1 }
 0x10b   : > { %v2057_v9 = vadd.f32 %v2056_v8, %v2055_v3  ;;  %v1946_v10 = vpop.f32.mrf.mxu0 }
 0x10c   : > { %v2058_v11 = vpop.f32.mrf.mxu1 }
 0x10d   : > { %v2536_v13 = vadd.f32 %v2057_v9, %v1945_v7  ;;  %v1947_v14 = vpop.f32.mrf.mxu0 }
 0x10e   : > { %v2059_v15 = vpop.f32.mrf.mxu1  ;;  %v1948_v19 = vadd.f32 %v1947_v14, %v1946_v10 }
 0x10f   : > { %v1830_v16 = vpack.c.bf16 %v2536_v13, %v2534_v12  ;;  %v1949_v17 = vpop.f32.mrf.mxu0  ;;  %v2060_v20 = vadd.f32 %v2059_v15, %v2058_v11 }
 0x110   : > { %v2061_v18 = vpop.f32.mrf.mxu1 }
 0x111   : > { %1898 = vst [vmem:[%s2522_s8 + $0x10] sm:$0xff] %v1830_v16   ;;  %v1950_v21 = vpop.f32.mrf.mxu0  ;;  %v2541_v27 = vadd.f32 %v2060_v20, %v1948_v19 }
 0x112   : > { %v1951_v22 = vadd.f32 %v1950_v21, %v1949_v17  ;;  %v2062_v23 = vpop.f32.mrf.mxu1 }
 0x113   : > { %v2063_v24 = vadd.f32 %v2062_v23, %v2061_v18  ;;  %v1952_v25 = vpop.f32.mrf.mxu0 }
 0x114   : > { %v2064_v26 = vpop.f32.mrf.mxu1 }
 0x115   : > { %v2543_v28 = vadd.f32 %v2063_v24, %v1951_v22  ;;  %v1953_v29 = vpop.f32.mrf.mxu0 }
 0x116   : > { %v2065_v30 = vpop.f32.mrf.mxu1  ;;  %v1954_v34 = vadd.f32 %v1953_v29, %v1952_v25 }
 0x117   : > { %v1835_v31 = vpack.c.bf16 %v2543_v28, %v2541_v27  ;;  %v1955_v32 = vpop.f32.mrf.mxu0  ;;  %v2066_v35 = vadd.f32 %v2065_v30, %v2064_v26 }
 0x118   : > { %v2067_v33 = vpop.f32.mrf.mxu1 }
 0x119   : > { %1899 = vst [vmem:[%s2522_s8 + $0x18] sm:$0xff] %v1835_v31   ;;  %v1956_v36 = vpop.f32.mrf.mxu0  ;;  %v2548_v42 = vadd.f32 %v2066_v35, %v1954_v34 }
 0x11a   : > { %v1957_v37 = vadd.f32 %v1956_v36, %v1955_v32  ;;  %v2068_v38 = vpop.f32.mrf.mxu1 }
 0x11b   : > { %v2069_v39 = vadd.f32 %v2068_v38, %v2067_v33  ;;  %v1958_v40 = vpop.f32.mrf.mxu0 }
 0x11c   : > { %v2070_v41 = vpop.f32.mrf.mxu1 }
 0x11d   : > { %v2550_v43 = vadd.f32 %v2069_v39, %v1957_v37  ;;  %v1959_v44 = vpop.f32.mrf.mxu0  ;;  %v1415_v37 = vmul.f32 %v2517_v47, %v2517_v47 }
 0x11e   : > { %v2071_v45 = vpop.f32.mrf.mxu1  ;;  %v1960_v51 = vadd.f32 %v1959_v44, %v1958_v40  ;;  %v1414_v44 = vmul.f32 %v2515_v46, %v2515_v46 }
 0x11f   : > { %v1840_v48 = vpack.c.bf16 %v2550_v43, %v2548_v42  ;;  %v1961_v49 = vpop.f32.mrf.mxu0  ;;  %v2072_v52 = vadd.f32 %v2071_v45, %v2070_v41  ;;  %v1416_v45 = vmul.f32 %v2527_v61, %v2527_v61 }
 0x120   : > { %v2073_v50 = vpop.f32.mrf.mxu1 }
 0x121   : > { %1900 = vst [vmem:[%s2522_s8 + $0x20] sm:$0xff] %v1840_v48   ;;  %v1962_v53 = vpop.f32.mrf.mxu0  ;;  %v2555_v59 = vadd.f32 %v2072_v52, %v1960_v51 }
 0x122   : > { %v1963_v54 = vadd.f32 %v1962_v53, %v1961_v49  ;;  %v2074_v55 = vpop.f32.mrf.mxu1  ;;  %v1446_v53 = vadd.f32 %v1415_v37, %v1414_v44 }
 0x123   : > { %v2075_v56 = vadd.f32 %v2074_v55, %v2073_v50  ;;  %v1964_v57 = vpop.f32.mrf.mxu0  ;;  %v1377_v50 = vadd.f32 %v2517_v47, %v2515_v46  ;;  %v1424_v44 = vmul.f32 %v2555_v59, %v2555_v59 }
 0x124   : > { %v2076_v58 = vpop.f32.mrf.mxu1 }
 0x125   : > { %v2557_v60 = vadd.f32 %v2075_v56, %v1963_v54  ;;  %v1965_v63 = vpop.f32.mrf.mxu0  ;;  %v1417_v54 = vmul.f32 %v2529_v62, %v2529_v62  ;;  %v1378_v56 = vadd.f32 %v1377_v50, %v2527_v61  ;;  %v1419_v61 = vmul.f32 %v2536_v13, %v2536_v13 }
 0x126   : > { %v2077_v0 = vpop.f32.mrf.mxu1  ;;  %v1966_v4 = vadd.f32 %v1965_v63, %v1964_v57 }
 0x127   : > { %v1845_v1 = vpack.c.bf16 %v2557_v60, %v2555_v59  ;;  %v1967_v2 = vpop.f32.mrf.mxu0  ;;  %v2078_v5 = vadd.f32 %v2077_v0, %v2076_v58  ;;  %v1447_v0 = vadd.f32 %v1446_v53, %v1416_v45  ;;  %v1379_v47 = vadd.f32 %v1378_v56, %v2529_v62 }
 0x128   : > { %v2079_v3 = vpop.f32.mrf.mxu1 }
 0x129   : > { %1901 = vst [vmem:[%s2522_s8 + $0x28] sm:$0xff] %v1845_v1   ;;  %v1968_v6 = vpop.f32.mrf.mxu0  ;;  %v2562_v14 = vadd.f32 %v2078_v5, %v1966_v4  ;;  %v1418_v1 = vmul.f32 %v2534_v12, %v2534_v12  ;;  %v1448_v4 = vadd.f32 %v1447_v0, %v1417_v54 }
 0x12a   : > { %v1969_v7 = vadd.f32 %v1968_v6, %v1967_v2  ;;  %v2080_v8 = vpop.f32.mrf.mxu1  ;;  %v1380_v6 = vadd.f32 %v1379_v47, %v2534_v12 }
 0x12b   : > { %v2081_v9 = vadd.f32 %v2080_v8, %v2079_v3  ;;  %v1970_v10 = vpop.f32.mrf.mxu0  ;;  %v1426_v0 = vmul.f32 %v2562_v14, %v2562_v14 }
 0x12c   : > { %v2082_v11 = vpop.f32.mrf.mxu1 }
 0x12d   : > { %v2564_v15 = vadd.f32 %v2081_v9, %v1969_v7  ;;  %v1971_v16 = vpop.f32.mrf.mxu0 }
 0x12e   : > { %v2083_v17 = vpop.f32.mrf.mxu1  ;;  %v1972_v21 = vadd.f32 %v1971_v16, %v1970_v10  ;;  %v1449_v10 = vadd.f32 %v1448_v4, %v1418_v1 }
 0x12f   : > { %v1850_v18 = vpack.c.bf16 %v2564_v15, %v2562_v14  ;;  %v1973_v19 = vpop.f32.mrf.mxu0  ;;  %v2084_v22 = vadd.f32 %v2083_v17, %v2082_v11  ;;  %v1420_v11 = vmul.f32 %v2541_v27, %v2541_v27  ;;  %v1381_v17 = vadd.f32 %v1380_v6, %v2536_v13 }
 0x130   : > { %v2085_v20 = vpop.f32.mrf.mxu1 }
 0x131   : > { %1902 = vst [vmem:[%s2522_s8 + $0x30] sm:$0xff] %v1850_v18   ;;  %v1974_v23 = vpop.f32.mrf.mxu0  ;;  %v2569_v31 = vadd.f32 %v2084_v22, %v1972_v21  ;;  %v1421_v21 = vmul.f32 %v2543_v28, %v2543_v28  ;;  %v1382_v22 = vadd.f32 %v1381_v17, %v2541_v27  ;;  %v1423_v27 = vmul.f32 %v2550_v43, %v2550_v43 }
 0x132   : > { %v1975_v24 = vadd.f32 %v1974_v23, %v1973_v19  ;;  %v2086_v25 = vpop.f32.mrf.mxu1 }
 0x133   : > { %v2087_v26 = vadd.f32 %v2086_v25, %v2085_v20  ;;  %v1976_v29 = vpop.f32.mrf.mxu0  ;;  %v1450_v20 = vadd.f32 %v1449_v10, %v1419_v61 }
 0x134   : > { %v2088_v30 = vpop.f32.mrf.mxu1 }
 0x135   : > { %v2571_v32 = vadd.f32 %v2087_v26, %v1975_v24  ;;  %v1977_v33 = vpop.f32.mrf.mxu0  ;;  %v1451_v26 = vadd.f32 %v1450_v20, %v1420_v11 }
 0x136   : > { %v2089_v34 = vpop.f32.mrf.mxu1  ;;  %v1978_v39 = vadd.f32 %v1977_v33, %v1976_v29  ;;  %v1422_v29 = vmul.f32 %v2548_v42, %v2548_v42 }
 0x137   : > { %v1855_v35 = vpack.c.bf16 %v2571_v32, %v2569_v31  ;;  %v1979_v36 = vpop.f32.mrf.mxu0  ;;  %v2090_v40 = vadd.f32 %v2089_v34, %v2088_v30  ;;  %v1383_v30 = vadd.f32 %v1382_v22, %v2543_v28  ;;  %v1429_v17 = vmul.f32 %v2571_v32, %v2571_v32 }
 0x138   : > { %v2091_v38 = vpop.f32.mrf.mxu1 }
 0x139   : > { %1903 = vst [vmem:[%s2522_s8 + $0x38] sm:$0xff] %v1855_v35   ;;  %v1980_v41 = vpop.f32.mrf.mxu0  ;;  %v2587_v57 = vadd.f32 %v2090_v40, %v1978_v39  ;;  %v1452_v35 = vadd.f32 %v1451_v26, %v1421_v21  ;;  %v1384_v37 = vadd.f32 %v1383_v30, %v2548_v42 }
 0x13a   : > { %v1981_v48 = vadd.f32 %v1980_v41, %v1979_v36  ;;  %v2092_v49 = vpop.f32.mrf.mxu1 }
 0x13b   : > { %v2093_v51 = vadd.f32 %v2092_v49, %v2091_v38  ;;  %v1982_v52 = vpop.f32.mrf.mxu0  ;;  %v1453_v41 = vadd.f32 %v1452_v35, %v1422_v29  ;;  %v1430_v22 = vmul.f32 %v2587_v57, %v2587_v57 }
 0x13c   : > { %v2094_v55 = vpop.f32.mrf.mxu1 }
 0x13d   : > { %v2589_v58 = vadd.f32 %v2093_v51, %v1981_v48  ;;  %v1983_v63 = vpop.f32.mrf.mxu0  ;;  %v1385_v48 = vadd.f32 %v1384_v37, %v2550_v43  ;;  %v1454_v51 = vadd.f32 %v1453_v41, %v1423_v27 }
 0x13e   : > { %v2095_v46 = vpop.f32.mrf.mxu1  ;;  %v1984_v7 = vadd.f32 %v1983_v63, %v1982_v52  ;;  %v1425_v52 = vmul.f32 %v2557_v60, %v2557_v60 }
 0x13f   : > { %v1860_v2 = vpack.c.bf16 %v2589_v58, %v2587_v57  ;;  %v1985_v3 = vpop.f32.mrf.mxu0  ;;  %v2096_v8 = vadd.f32 %v2095_v46, %v2094_v55  ;;  %v1386_v53 = vadd.f32 %v1385_v48, %v2555_v59  ;;  %v1455_v63 = vadd.f32 %v1454_v51, %v1424_v44 }
 0x140   : > { %v2097_v5 = vpop.f32.mrf.mxu1  ;;  %v1427_v59 = vmul.f32 %v2564_v15, %v2564_v15  ;;  %v1431_v30 = vmul.f32 %v2589_v58, %v2589_v58 }
 0x141   : > { %1904 = vst [vmem:[%s2522_s8 + $0x40] sm:$0xff] %v1860_v2   ;;  %v1986_v9 = vpop.f32.mrf.mxu0  ;;  %v2606_v23 = vadd.f32 %v2096_v8, %v1984_v7  ;;  %v1387_v1 = vadd.f32 %v1386_v53, %v2557_v60  ;;  %v1456_v2 = vadd.f32 %v1455_v63, %v1425_v52  ;;  %v1428_v8 = vmul.f32 %v2569_v31, %v2569_v31 }
 0x142   : > { %v1987_v62 = vadd.f32 %v1986_v9, %v1985_v3  ;;  %v2098_v16 = vpop.f32.mrf.mxu1 }
 0x143   : > { %v2099_v18 = vadd.f32 %v2098_v16, %v2097_v5  ;;  %v1988_v19 = vpop.f32.mrf.mxu0  ;;  %v1388_v4 = vadd.f32 %v1387_v1, %v2562_v14  ;;  %v1457_v7 = vadd.f32 %v1456_v2, %v1426_v0  ;;  %v1432_v37 = vmul.f32 %v2606_v23, %v2606_v23 }
 0x144   : > { %v2100_v12 = vpop.f32.mrf.mxu1 }
 0x145   : > { %v2608_v24 = vadd.f32 %v2099_v18, %v1987_v62  ;;  %v1989_v25 = vpop.f32.mrf.mxu0  ;;  %v1389_v10 = vadd.f32 %v1388_v4, %v2564_v15  ;;  %v1458_v16 = vadd.f32 %v1457_v7, %v1427_v59 }
 0x146   : > { %v2101_v13 = vpop.f32.mrf.mxu1  ;;  %v1990_v38 = vadd.f32 %v1989_v25, %v1988_v19 }
 0x147   : > { %v1865_v33 = vpack.c.bf16 %v2608_v24, %v2606_v23  ;;  %v1991_v34 = vpop.f32.mrf.mxu0  ;;  %v2102_v39 = vadd.f32 %v2101_v13, %v2100_v12  ;;  %v1390_v18 = vadd.f32 %v1389_v10, %v2569_v31  ;;  %v1459_v12 = vadd.f32 %v1458_v16, %v1428_v8 }
 0x148   : > { %v2103_v36 = vpop.f32.mrf.mxu1 }
 0x149   : > { %1905 = vst [vmem:[%s2522_s8 + $0x48] sm:$0xff] %v1865_v33   ;;  %v1992_v40 = vpop.f32.mrf.mxu0  ;;  %v2625_v54 = vadd.f32 %v2102_v39, %v1990_v38  ;;  %v1391_v15 = vadd.f32 %v1390_v18, %v2571_v32  ;;  %v1460_v13 = vadd.f32 %v1459_v12, %v1429_v17 }
 0x14a   : > { %v1993_v28 = vadd.f32 %v1992_v40, %v1991_v34  ;;  %v2104_v45 = vpop.f32.mrf.mxu1 }
 0x14b   : > { %v2105_v49 = vadd.f32 %v2104_v45, %v2103_v36  ;;  %v1994_v50 = vpop.f32.mrf.mxu0  ;;  %v1392_v34 = vadd.f32 %v1391_v15, %v2587_v57  ;;  %v1461_v36 = vadd.f32 %v1460_v13, %v1430_v22  ;;  %v1434_v52 = vmul.f32 %v2625_v54, %v2625_v54 }
 0x14c   : > { %v2106_v42 = vpop.f32.mrf.mxu1 }
 0x14d   : > { %v2627_v55 = vadd.f32 %v2105_v49, %v1993_v28  ;;  %v1995_v56 = vpop.f32.mrf.mxu0  ;;  %v1393_v32 = vadd.f32 %v1392_v34, %v2589_v58  ;;  %v1462_v44 = vadd.f32 %v1461_v36, %v1431_v30  ;;  %v1433_v28 = vmul.f32 %v2608_v24, %v2608_v24 }
 0x14e   : > { %v2107_v43 = vpop.f32.mrf.mxu1  ;;  %v1996_v61 = vadd.f32 %v1995_v56, %v1994_v50 }
 0x14f   : > { %v1870_v46 = vpack.c.bf16 %v2627_v55, %v2625_v54  ;;  %v1997_v47 = vpop.f32.mrf.mxu0  ;;  %v2108_v5 = vadd.f32 %v2107_v43, %v2106_v42  ;;  %v1394_v45 = vadd.f32 %v1393_v32, %v2606_v23  ;;  %v1463_v51 = vadd.f32 %v1462_v44, %v1432_v37 }
 0x150   : > { %v2109_v3 = vpop.f32.mrf.mxu1  ;;  %v1435_v0 = vmul.f32 %v2627_v55, %v2627_v55 }
 0x151   : > { %1906 = vst [vmem:[%s2522_s8 + $0x50] sm:$0xff] %v1870_v46   ;;  %v1998_v6 = vpop.f32.mrf.mxu0  ;;  %v1179_v19 = vadd.f32 %v2108_v5, %v1996_v61  ;;  %v1395_v58 = vadd.f32 %v1394_v45, %v2608_v24  ;;  %v1464_v63 = vadd.f32 %v1463_v51, %v1433_v28 }
 0x152   : > { %v1999_v60 = vadd.f32 %v1998_v6, %v1997_v47  ;;  %v2110_v9 = vpop.f32.mrf.mxu1 }
 0x153   : > { %v2111_v11 = vadd.f32 %v2110_v9, %v2109_v3  ;;  %v2000_v62 = vpop.f32.mrf.mxu0  ;;  %v1396_v1 = vadd.f32 %v1395_v58, %v2625_v54  ;;  %v1465_v2 = vadd.f32 %v1464_v63, %v1434_v52  ;;  %v1436_v59 = vmul.f32 %v1179_v19, %v1179_v19 }
 0x154   : > { %v2112_v14 = vpop.f32.mrf.mxu1 }
 0x155   : > { %v1182_v20 = vadd.f32 %v2111_v11, %v1999_v60  ;;  %v2001_v21 = vpop.f32.mrf.mxu0  ;;  %v1397_v61 = vadd.f32 %v1396_v1, %v2627_v55  ;;  %v1466_v6 = vadd.f32 %v1465_v2, %v1435_v0 }
 0x156   : > { %v2113_v25 = vpop.f32.mrf.mxu1  ;;  %v2002_v31 = vadd.f32 %v2001_v21, %v2000_v62 }
 0x157   : > { %v1875_v26 = vpack.c.bf16 %v1182_v20, %v1179_v19  ;;  %v2003_v29 = vpop.f32.mrf.mxu0  ;;  %v2114_v35 = vadd.f32 %v2113_v25, %v2112_v14  ;;  %v1437_v7 = vmul.f32 %v1182_v20, %v1182_v20  ;;  %v1398_v60 = vadd.f32 %v1397_v61, %v1179_v19 }
 0x158   : > { %v2115_v33 = vpop.f32.mrf.mxu1  ;;  %v1467_v11 = vadd.f32 %v1466_v6, %v1436_v59 }
 0x159   : > { %1907 = vst [vmem:[%s2522_s8 + $0x58] sm:$0xff] %v1875_v26   ;;  %v2004_v27 = vpop.f32.mrf.mxu0  ;;  %v1187_v48 = vadd.f32 %v2114_v35, %v2002_v31  ;;  %v1399_v17 = vadd.f32 %v1398_v60, %v1182_v20 }
 0x15a   : > { %v2005_v38 = vadd.f32 %v2004_v27, %v2003_v29  ;;  %v2116_v39 = vpop.f32.mrf.mxu1  ;;  %v1468_v22 = vadd.f32 %v1467_v11, %v1437_v7 }
 0x15b   : > { %v2117_v40 = vadd.f32 %v2116_v39, %v2115_v33  ;;  %v2006_v41 = vpop.f32.mrf.mxu0  ;;  %v1438_v62 = vmul.f32 %v1187_v48, %v1187_v48  ;;  %v1400_v15 = vadd.f32 %v1399_v17, %v1187_v48 }
 0x15c   : > { %v2118_v57 = vpop.f32.mrf.mxu1 }
 0x15d   : > { %v1190_v49 = vadd.f32 %v2117_v40, %v2005_v38  ;;  %v2007_v50 = vpop.f32.mrf.mxu0  ;;  %v1469_v29 = vadd.f32 %v1468_v22, %v1438_v62 }
 0x15e   : > { %v2119_v42 = vpop.f32.mrf.mxu1  ;;  %v2008_v23 = vadd.f32 %v2007_v50, %v2006_v41 }
 0x15f   : > { %v1880_v53 = vpack.c.bf16 %v1190_v49, %v1187_v48  ;;  %v2009_v56 = vpop.f32.mrf.mxu0  ;;  %v2120_v46 = vadd.f32 %v2119_v42, %v2118_v57  ;;  %v1439_v55 = vmul.f32 %v1190_v49, %v1190_v49  ;;  %v1401_v33 = vadd.f32 %v1400_v15, %v1190_v49 }
 0x160   : > { %v2121_v43 = vpop.f32.mrf.mxu1 }
 0x161   : > { %1908 = vst [vmem:[%s2522_s8 + $0x60] sm:$0xff] %v1880_v53   ;;  %v2010_v47 = vpop.f32.mrf.mxu0  ;;  %v1195_v9 = vadd.f32 %v2120_v46, %v2008_v23  ;;  %v1470_v27 = vadd.f32 %v1469_v29, %v1439_v55 }
 0x162   : > { %v2011_v3 = vadd.f32 %v2010_v47, %v2009_v56  ;;  %v2122_v4 = vpop.f32.mrf.mxu1 }
 0x163   : > { %v2123_v24 = vadd.f32 %v2122_v4, %v2121_v43  ;;  %v2012_v5 = vpop.f32.mrf.mxu0  ;;  %v1440_v19 = vmul.f32 %v1195_v9, %v1195_v9  ;;  %v1402_v36 = vadd.f32 %v1401_v33, %v1195_v9 }
 0x164   : > { %v2124_v8 = vpop.f32.mrf.mxu1 }
 0x165   : > { %v1198_v10 = vadd.f32 %v2123_v24, %v2011_v3  ;;  %v2013_v54 = vpop.f32.mrf.mxu0  ;;  %v1471_v32 = vadd.f32 %v1470_v27, %v1440_v19 }
 0x166   : > { %v2125_v16 = vpop.f32.mrf.mxu1  ;;  %v2014_v18 = vadd.f32 %v2013_v54, %v2012_v5 }
 0x167   : > { %v1885_v14 = vpack.c.bf16 %v1198_v10, %v1195_v9  ;;  %v2126_v21 = vadd.f32 %v2125_v16, %v2124_v8  ;;  %v2015_v12 = vpop.f32.mrf.mxu0  ;;  %v1441_v37 = vmul.f32 %v1198_v10, %v1198_v10  ;;  %v1403_v44 = vadd.f32 %v1402_v36, %v1198_v10 }
 0x168   : > { %v2127_v25 = vpop.f32.mrf.mxu1 }
 0x169   : > { %1909 = vst [vmem:[%s2522_s8 + $0x68] sm:$0xff] %v1885_v14   ;;  %v2016_v26 = vpop.f32.mrf.mxu0  ;;  %v1203_v34 = vadd.f32 %v2126_v21, %v2014_v18  ;;  %v1472_v49 = vadd.f32 %v1471_v32, %v1441_v37 }
 0x16a   : > { %v2017_v13 = vadd.f32 %v2016_v26, %v2015_v12  ;;  %v2128_v30 = vpop.f32.mrf.mxu1 }
 0x16b   : > { %v2129_v31 = vadd.f32 %v2128_v30, %v2127_v25  ;;  %v2018_v35 = vpop.f32.mrf.mxu0  ;;  %v1442_v28 = vmul.f32 %v1203_v34, %v1203_v34  ;;  %v1404_v51 = vadd.f32 %v1403_v44, %v1203_v34 }
 0x16c   : > { %v2130_v20 = vpop.f32.mrf.mxu1 }
 0x16d   : > { %v1206_v38 = vadd.f32 %v2129_v31, %v2017_v13  ;;  %v2019_v39 = vpop.f32.mrf.mxu0  ;;  %v1473_v63 = vadd.f32 %v1472_v49, %v1442_v28 }
 0x16e   : > { %v2020_v40 = vadd.f32 %v2019_v39, %v2018_v35  ;;  %v2131_v41 = vpop.f32.mrf.mxu1 }
 0x16f   : > { %v1890_v57 = vpack.c.bf16 %v1206_v38, %v1203_v34  ;;  %v2132_v45 = vadd.f32 %v2131_v41, %v2130_v20  ;;  %v2021_v48 = vpop.f32.mrf.mxu0  ;;  %v1443_v52 = vmul.f32 %v1206_v38, %v1206_v38  ;;  %v1405_v0 = vadd.f32 %v1404_v51, %v1206_v38 }
 0x170   : > { %v2133_v50 = vpop.f32.mrf.mxu1 }
 0x171   : > { %1910 = vst [vmem:[%s2522_s8 + $0x70] sm:$0xff] %v1890_v57   ;;  %v1211_v42 = vadd.f32 %v2132_v45, %v2020_v40  ;;  %v2022_v58 = vpop.f32.mrf.mxu0  ;;  %v1474_v23 = vadd.f32 %v1473_v63, %v1443_v52 }
 0x172   : > { %v2023_v53 = vadd.f32 %v2022_v58, %v2021_v48  ;;  %v2134_v56 = vpop.f32.mrf.mxu1 }
 0x173   : > { %v1444_v43 = vmul.f32 %v1211_v42, %v1211_v42  ;;  %v2135_v1 = vadd.f32 %v2134_v56, %v2133_v50  ;;  %v1406_v46 = vadd.f32 %v1405_v0, %v1211_v42 }
 0x175   : > { %v1214_v47 = vadd.f32 %v2135_v1, %v2023_v53  ;;  %v1475_v2 = vadd.f32 %v1474_v23, %v1444_v43 }
 0x177   : > { %v1895_v59 = vpack.c.bf16 %v1214_v47, %v1211_v42  ;;  %v1407_v3 = vadd.f32 %v1406_v46, %v1214_v47  ;;  %v1445_v4 = vmul.f32 %v1214_v47, %v1214_v47 }
 0x179   : > { %1911 = vst [vmem:[%s2522_s8 + $0x78] sm:$0xff] %v1895_v59   ;;  %v1408_v61 = vrot.slane %v1407_v3, 4  ;;  %v1476_v24 = vadd.f32 %v1475_v2, %v1445_v4 }
 0x17b   : > { %v1409_v5 = vadd.f32 %v1408_v61, %v1407_v3  ;;  %v1477_v6 = vrot.slane %v1476_v24, 4 }
 0x17d   : > { %v1410_v7 = vrot.slane %v1409_v5, 2  ;;  %v1478_v8 = vadd.f32 %v1477_v6, %v1476_v24 }
 0x17f   : > { %v1411_v60 = vadd.f32 %v1410_v7, %v1409_v5  ;;  %v1479_v9 = vrot.slane %v1478_v8, 2 }
 0x181   : > { %v1412_v10 = vrot.slane %v1411_v60, 1  ;;  %v1480_v54 = vadd.f32 %v1479_v9, %v1478_v8 }
 0x183   : > { %v1481_v11 = vrot.slane %v1480_v54, 1  ;;  %v1413_v62 = vadd.f32 %v1412_v10, %v1411_v60 }
 0x185   : > { %v1482_v16 = vadd.f32 %v1481_v11, %v1480_v54 }
 0x187   : > { %v1484_v17 = vsel %vm1483_vm0, %v1413_v62, %v1482_v16 }
 0x188   : > { %1485 = vst [vmem:[%s253_s21] sm:$0x3] %v1484_v17 }
 0x189 PF: > { %s14_s16 = sadd.s32 1, %s2342_s16   ;;  %s2693_s12 = smov %s2334_s14 }
 0x18a   : > { %p11_p8 = scmp.ge.s32.totalorder %s14_s16, 10   ;;  %s2694_s13 = smov %s2338_s15 }
 0x18b   : > { %s2695_s14 = smov %s2698_s17  ;;  %s2696_s15 = smov %s2702_s18 }
 0x18c   :  { %13 = sbr.rel (!%p11_p8) target bundleno = 3 (0x3), region = 73 }

// kernel: generator_forward.9
= control target key start
LH: loop header
LB: loop body
LE: loop exit
PB: predicated region body
PF: predicated region fallthrough
CT: control target
= control target key end

     0   :  { %s2702_s9 = smov 0   ;;  %s2704_s10 = smov 0   ;;  %s3175_s0 = inlined_call_operand.vmem [shape: bf16[1,2048,640], index: 0, kind: input, shape index: {}]   ;;  %s3176_s1 = inlined_call_operand.vmem [shape: bf16[1,640,128], index: 1, kind: input, shape index: {}]   ;;  %s3177_s2 = inlined_call_operand.vmem [shape: bf16[1,2048,128], index: 2, kind: output, shape index: {}]  }
   0x1   :  { %s2706_s11 = smov 0  }
   0x2 LB: > { %s21_s12 = sadd.s32 1, %s2681_s10  ;;  %p1824_p0 = scmp.ge.s32.totalorder %s2685_s11, 1  ;;  %s2685_s11 = sphi %s2706_s11, %s12_s11   ;;  %s2681_s10 = sphi %s2704_s10, %s3217_s10   ;;  %s2677_s9 = sphi %s2702_s9, %s3216_s9  }
   0x3   : > { %p22_p1 = scmp.ge.s32.totalorder %s21_s12, 8  ;;  %p144_p2 = scmp.lt.s32.totalorder %s2685_s11, 9 }
   0x5   : > { %s3219_s12 = smov (%p22_p1, %s21_s12), 0  ;;  %p145_p3 = pnand %p1824_p0, %p144_p2 }
   0x7   : > { %148 = sbr.rel (%p145_p3) target bundleno = 419 (0x1a3), region = 28 }
   0xc   : > { %v2447_v0 = vld [vmem:[%s3176_s1 + $0x78] sm:$0xff]   ;;  %s1825_s15 = sshll.u32 %s2677_s9, 5  ;;  %v2449_v2 = vld [vmem:[%s3176_s1 + $0x70] sm:$0xff]   ;;  %v2451_v4 = vld [vmem:[%s3176_s1 + $0x68] sm:$0xff]  }
   0xd   : > { %v2448_v1 = vld [vmem:[%s3176_s1 + $0x38] sm:$0xff]   ;;  %2110 = vmatprep.subr.bf16.mxu0 %v2447_v0  ;;  %2406 = vmatprep.subr.bf16.mxu1 %v2447_v0  ;;  %p183_p4 = scmp.lt.s32.totalorder %s1825_s15, 255  ;;  %v2450_v3 = vld [vmem:[%s3176_s1 + $0x30] sm:$0xff]   ;;  %v2452_v5 = vld [vmem:[%s3176_s1 + $0x28] sm:$0xff]  }
   0xe   : > { %2111 = vmatpush3.bf16.msra.mxu0 %v2448_v1  ;;  %2414 = vmatpush3.bf16.msra.mxu1 %v2448_v1  ;;  %v2453_v6 = vld [vmem:[%s3176_s1 + $0x60] sm:$0xff]   ;;  %v2455_v8 = vld [vmem:[%s3176_s1 + $0x58] sm:$0xff]   ;;  %v2457_v10 = vld [vmem:[%s3176_s1 + $0x50] sm:$0xff]  }
   0xf   : > { %2112 = vmatprep.subr.bf16.mxu0 %v2449_v2  ;;  %2407 = vmatprep.subr.bf16.mxu1 %v2449_v2  ;;  %s3221_s15 = smov (!%p183_p4, %s1825_s15), 255  ;;  %v2454_v7 = vld [vmem:[%s3176_s1 + $0x20] sm:$0xff]   ;;  %v2456_v9 = vld [vmem:[%s3176_s1 + $0x18] sm:$0xff]   ;;  %v2458_v13 = vld [vmem:[%s3176_s1 + $0x10] sm:$0xff]  }
  0x10   : > { %s2422_s28 = smul.u32 20, %s3221_s15  ;;  %v2459_v14 = vld [vmem:[%s3176_s1 + $0x48] sm:$0xff]   ;;  %v2461_v16 = vld [vmem:[%s3176_s1 + $0x40] sm:$0xff]   ;;  %v2469_v18 = vld [vmem:[%s3176_s1 + $0xf8] sm:$0xff]  }
  0x11   : > { %v2460_v15 = vld [vmem:[%s3176_s1 + $0x8] sm:$0xff]   ;;  %v2462_v17 = vld [vmem:[%s3176_s1] sm:$0xff]   ;;  %v2472_v19 = vld [vmem:[%s3176_s1 + $0x138] sm:$0xff]  }
  0x12   : > { %2113 = vmatpush3.bf16.msra.mxu0 %v2450_v3  ;;  %2415 = vmatpush3.bf16.msra.mxu1 %v2450_v3  ;;  %s2753_s7 = scalar_lea.vmem %s3175_s0, %s2422_s28  ;;  %v2470_v22 = vld [vmem:[%s3176_s1 + $0xb8] sm:$0xff]   ;;  %v2471_v23 = vld [vmem:[%s3176_s1 + $0xf0] sm:$0xff]   ;;  %v2480_v29 = vld [vmem:[%s3176_s1 + $0xe8] sm:$0xff]  }
  0x13   : > { %2114 = vmatprep.subr.bf16.mxu0 %v2451_v4  ;;  %2408 = vmatprep.subr.bf16.mxu1 %v2451_v4  ;;  %v2465_v11 = vld [vmem:[%s2753_s7 + $0x4] ss:$20 sps:$4 sm:$0xff]   ;;  %v2463_v20 = vld [vmem:[%s2753_s7] ss:$20 sps:$4 sm:$0xff]   ;;  %v2478_v28 = vld [vmem:[%s2753_s7 + $0x28] ss:$20 sps:$4 sm:$0xff]  }
  0x14   : > { %v2468_v12 = vld [vmem:[%s2753_s7 + $0x1e4] ss:$20 sps:$4 sm:$0xff]   ;;  %1071 = vmatprep.mubr.bf16.mxu0 %v2465_v11  ;;  %v2466_v21 = vld [vmem:[%s2753_s7 + $0x1e0] ss:$20 sps:$4 sm:$0xff]   ;;  %v2479_v30 = vld [vmem:[%s2753_s7 + $0x208] ss:$20 sps:$4 sm:$0xff]  }
  0x15   : > { %1167 = vmatprep.mubr.bf16.mxu1 %v2468_v12  ;;  %v2474_v24 = vld [vmem:[%s2753_s7 + $0x2c] ss:$20 sps:$4 sm:$0xff]   ;;  %v2491_v26 = vld [vmem:[%s3176_s1 + $0x130] sm:$0xff]   ;;  %v2490_v36 = vld [vmem:[%s3176_s1 + $0xd8] sm:$0xff]  }
  0x16   : > { %2115 = vmatpush3.bf16.msra.mxu0 %v2452_v5  ;;  %2416 = vmatpush3.bf16.msra.mxu1 %v2452_v5  ;;  %v2476_v25 = vld [vmem:[%s2753_s7 + $0x20c] ss:$20 sps:$4 sm:$0xff]   ;;  %v2473_v27 = vld [vmem:[%s3176_s1 + $0xb0] sm:$0xff]   ;;  %v2492_v40 = vld [vmem:[%s3176_s1 + $0x98] sm:$0xff]  }
  0x17   : > { %2116 = vmatprep.subr.bf16.mxu0 %v2453_v6  ;;  %2409 = vmatprep.subr.bf16.mxu1 %v2453_v6  ;;  %v2481_v31 = vld [vmem:[%s3176_s1 + $0xa8] sm:$0xff]   ;;  %v2482_v33 = vld [vmem:[%s3176_s1 + $0xe0] sm:$0xff]   ;;  %v2493_v41 = vld [vmem:[%s3176_s1 + $0xd0] sm:$0xff]  }
  0x18   : > { %v2484_v32 = vld [vmem:[%s2753_s7 + $0x54] ss:$20 sps:$4 sm:$0xff]   ;;  %v2483_v35 = vld [vmem:[%s3176_s1 + $0xa0] sm:$0xff]   ;;  %v2495_v42 = vld [vmem:[%s2753_s7 + $0x7c] ss:$20 sps:$4 sm:$0xff]  }
  0x19   : > { %v2486_v34 = vld [vmem:[%s2753_s7 + $0x234] ss:$20 sps:$4 sm:$0xff]   ;;  %v2488_v37 = vld [vmem:[%s2753_s7 + $0x50] ss:$20 sps:$4 sm:$0xff]   ;;  %v2499_v46 = vld [vmem:[%s2753_s7 + $0x78] ss:$20 sps:$4 sm:$0xff]  }
  0x1a   : > { %2117 = vmatpush3.bf16.msra.mxu0 %v2454_v7  ;;  %2417 = vmatpush3.bf16.msra.mxu1 %v2454_v7  ;;  %v2504_v38 = vld [vmem:[%s3176_s1 + $0x128] sm:$0xff]   ;;  %v2489_v39 = vld [vmem:[%s2753_s7 + $0x230] ss:$20 sps:$4 sm:$0xff]   ;;  %v2525_v52 = vld [vmem:[%s3176_s1 + $0x118] sm:$0xff]  }
  0x1b   : > { %2118 = vmatprep.subr.bf16.mxu0 %v2455_v8  ;;  %2410 = vmatprep.subr.bf16.mxu1 %v2455_v8  ;;  %v2497_v43 = vld [vmem:[%s2753_s7 + $0x25c] ss:$20 sps:$4 sm:$0xff]   ;;  %v2518_v45 = vld [vmem:[%s3176_s1 + $0x120] sm:$0xff]   ;;  %v2500_v47 = vld [vmem:[%s2753_s7 + $0x258] ss:$20 sps:$4 sm:$0xff]  }
  0x1c   : > { %v2494_v44 = vld [vmem:[%s3176_s1 + $0x90] sm:$0xff]   ;;  %v2501_v48 = vld [vmem:[%s3176_s1 + $0xc8] sm:$0xff]   ;;  %v2503_v50 = vld [vmem:[%s3176_s1 + $0xc0] sm:$0xff]  }
  0x1d   : > { %v2502_v49 = vld [vmem:[%s3176_s1 + $0x88] sm:$0xff]   ;;  %v2506_v51 = vld [vmem:[%s2753_s7 + $0xa4] ss:$20 sps:$4 sm:$0xff]   ;;  %v2511_v56 = vld [vmem:[%s2753_s7 + $0xa0] ss:$20 sps:$4 sm:$0xff]  }
  0x1e   : > { %2119 = vmatpush3.bf16.msra.mxu0 %v2456_v9  ;;  %2418 = vmatpush3.bf16.msra.mxu1 %v2456_v9  ;;  %v2510_v53 = vld [vmem:[%s2753_s7 + $0xc] ss:$20 sps:$4 sm:$0xff]   ;;  %v2508_v55 = vld [vmem:[%s2753_s7 + $0x8] ss:$20 sps:$4 sm:$0xff]   ;;  %v2538_v57 = vld [vmem:[%s3176_s1 + $0x110] sm:$0xff]  }
  0x1f   : > { %2120 = vmatprep.subr.bf16.mxu0 %v2457_v10  ;;  %2411 = vmatprep.subr.bf16.mxu1 %v2457_v10  ;;  %v2505_v54 = vld [vmem:[%s3176_s1 + $0x80] sm:$0xff]   ;;  %v2514_v59 = vld [vmem:[%s2753_s7 + $0x34] ss:$20 sps:$4 sm:$0xff]   ;;  %v2521_v0 = vld [vmem:[%s2753_s7 + $0x5c] ss:$20 sps:$4 sm:$0xff]  }
  0x20   : > { %v2512_v58 = vld [vmem:[%s2753_s7 + $0xcc] ss:$20 sps:$4 sm:$0xff]   ;;  %v2516_v61 = vld [vmem:[%s2753_s7 + $0xc8] ss:$20 sps:$4 sm:$0xff]   ;;  %v2517_v62 = vld [vmem:[%s2753_s7 + $0x30] ss:$20 sps:$4 sm:$0xff]  }
  0x21   : > { %v2545_v60 = vld [vmem:[%s3176_s1 + $0x108] sm:$0xff]   ;;  %v2558_v1 = vld [vmem:[%s3176_s1 + $0x100] sm:$0xff]   ;;  %v2526_v4 = vld [vmem:[%s2753_s7 + $0x11c] ss:$20 sps:$4 sm:$0xff]  }
  0x22   : > { %2121 = vmatpush3.bf16.msra.mxu0 %v2458_v13  ;;  %2419 = vmatpush3.bf16.msra.mxu1 %v2458_v13  ;;  %v2519_v63 = vld [vmem:[%s2753_s7 + $0xf4] ss:$20 sps:$4 sm:$0xff]   ;;  %v2523_v2 = vld [vmem:[%s2753_s7 + $0xf0] ss:$20 sps:$4 sm:$0xff]   ;;  %v2524_v3 = vld [vmem:[%s2753_s7 + $0x58] ss:$20 sps:$4 sm:$0xff]  }
  0x23   : > { %2122 = vmatprep.subr.bf16.mxu0 %v2459_v14  ;;  %2412 = vmatprep.subr.bf16.mxu1 %v2459_v14  ;;  %v2528_v5 = vld [vmem:[%s2753_s7 + $0x84] ss:$20 sps:$4 sm:$0xff]   ;;  %v2531_v7 = vld [vmem:[%s2753_s7 + $0x80] ss:$20 sps:$4 sm:$0xff]   ;;  %v2537_v11 = vld [vmem:[%s2753_s7 + $0xa8] ss:$20 sps:$4 sm:$0xff]  }
  0x24   : > { %v2530_v6 = vld [vmem:[%s2753_s7 + $0x118] ss:$20 sps:$4 sm:$0xff]   ;;  %v2536_v10 = vld [vmem:[%s2753_s7 + $0x140] ss:$20 sps:$4 sm:$0xff]   ;;  %v2543_v14 = vld [vmem:[%s2753_s7 + $0x168] ss:$20 sps:$4 sm:$0xff]  }
  0x25   : > { %v2532_v8 = vld [vmem:[%s2753_s7 + $0x144] ss:$20 sps:$4 sm:$0xff]   ;;  %v2534_v9 = vld [vmem:[%s2753_s7 + $0xac] ss:$20 sps:$4 sm:$0xff]   ;;  %v2541_v13 = vld [vmem:[%s2753_s7 + $0xd4] ss:$20 sps:$4 sm:$0xff]  }
  0x26   : > { %2123 = vmatpush3.bf16.msra.mxu0 %v2460_v15  ;;  %2420 = vmatpush3.bf16.msra.mxu1 %v2460_v15  ;;  %v2539_v12 = vld [vmem:[%s2753_s7 + $0x16c] ss:$20 sps:$4 sm:$0xff]   ;;  %v2544_v15 = vld [vmem:[%s2753_s7 + $0xd0] ss:$20 sps:$4 sm:$0xff]  }
  0x27   : > { %2124 = vmatprep.subr.bf16.mxu0 %v2461_v16  ;;  %2413 = vmatprep.subr.bf16.mxu1 %v2461_v16  ;;  %v2546_v16 = vld [vmem:[%s2753_s7 + $0x194] ss:$20 sps:$4 sm:$0xff]  }
  0x2a   : > { %2125 = vmatpush3.bf16.msra.mxu0 %v2462_v17  ;;  %2421 = vmatpush3.bf16.msra.mxu1 %v2462_v17  ;;  %v2548_v17 = vld [vmem:[%s2753_s7 + $0xfc] ss:$20 sps:$4 sm:$0xff]  }
  0x2b   : > { %2222 = vmatprep.subr.bf16.mxu1 %v2469_v18  ;;  %2358 = vmatprep.subr.bf16.mxu0 %v2472_v19  ;;  %v2550_v18 = vld [vmem:[%s2753_s7 + $0x190] ss:$20 sps:$4 sm:$0xff]  }
  0x2d   : > { %1072 = vmatmul.mubr.bf16.vlgmr.msra.gmra.mxu0 %v2463_v20  ;;  %1168 = vmatmul.mubr.bf16.vlgmr.msra.gmra.mxu1 %v2466_v21  ;;  %v2552_v20 = vld [vmem:[%s2753_s7 + $0x1bc] ss:$20 sps:$4 sm:$0xff]   ;;  %v2554_v21 = vld [vmem:[%s2753_s7 + $0x124] ss:$20 sps:$4 sm:$0xff]  }
  0x2e   : > { %2223 = vmatpush3.bf16.msra.mxu1 %v2470_v22  ;;  %2359 = vmatpush3.bf16.msra.mxu0 %v2472_v19  ;;  %v2551_v19 = vld [vmem:[%s2753_s7 + $0xf8] ss:$20 sps:$4 sm:$0xff]  }
  0x2f   : > { %2224 = vmatprep.subr.bf16.mxu1 %v2471_v23  ;;  %1079 = vmatprep.mubr.bf16.mxu0 %v2474_v24  ;;  %v2556_v22 = vld [vmem:[%s2753_s7 + $0x1b8] ss:$20 sps:$4 sm:$0xff]   ;;  %v2557_v23 = vld [vmem:[%s2753_s7 + $0x120] ss:$20 sps:$4 sm:$0xff]  }
  0x30   : > { %1175 = vmatprep.mubr.bf16.mxu1 %v2476_v25  ;;  %2360 = vmatprep.subr.bf16.mxu0 %v2491_v26  ;;  %v2559_v24 = vld [vmem:[%s2753_s7 + $0x14c] ss:$20 sps:$4 sm:$0xff]   ;;  %v2561_v25 = vld [vmem:[%s2753_s7 + $0x10] ss:$20 sps:$4 sm:$0xff]  }
  0x32   : > { %2225 = vmatpush3.bf16.msra.mxu1 %v2473_v27  ;;  %2361 = vmatpush3.bf16.msra.mxu0 %v2491_v26  ;;  %v2562_v26 = vld [vmem:[%s2753_s7 + $0x148] ss:$20 sps:$4 sm:$0xff]   ;;  %v2563_v27 = vld [vmem:[%s2753_s7 + $0x38] ss:$20 sps:$4 sm:$0xff]  }
  0x33   : > { %2226 = vmatprep.subr.bf16.mxu1 %v2480_v29  ;;  %2362 = vmatprep.subr.bf16.mxu0 %v2504_v38  ;;  %v2566_v29 = vld [vmem:[%s2753_s7 + $0x60] ss:$20 sps:$4 sm:$0xff]  }
  0x35   : > { %1080 = vmatmul.mubr.bf16.gmra.mxu0 %v2478_v28  ;;  %1176 = vmatmul.mubr.bf16.gmra.mxu1 %v2479_v30  ;;  %v2564_v28 = vld [vmem:[%s2753_s7 + $0x174] ss:$20 sps:$4 sm:$0xff]   ;;  %v2567_v30 = vld [vmem:[%s2753_s7 + $0x170] ss:$20 sps:$4 sm:$0xff]  }
  0x36   : > { %2227 = vmatpush3.bf16.msra.mxu1 %v2481_v31  ;;  %1087 = vmatprep.mubr.bf16.mxu0 %v2484_v32  ;;  %v2568_v31 = vld [vmem:[%s2753_s7 + $0x88] ss:$20 sps:$4 sm:$0xff]  }
  0x37   : > { %2228 = vmatprep.subr.bf16.mxu1 %v2482_v33  ;;  %1183 = vmatprep.mubr.bf16.mxu1 %v2486_v34  ;;  %v2569_v32 = vld [vmem:[%s2753_s7 + $0x19c] ss:$20 sps:$4 sm:$0xff]   ;;  %v2572_v34 = vld [vmem:[%s2753_s7 + $0x198] ss:$20 sps:$4 sm:$0xff]  }
  0x38   : > { %2363 = vmatpush3.bf16.msra.mxu0 %v2504_v38  ;;  %v2571_v33 = vld [vmem:[%s2753_s7 + $0xb0] ss:$20 sps:$4 sm:$0xff]   ;;  %v2577_v38 = vld [vmem:[%s2753_s7 + $0x1c0] ss:$20 sps:$4 sm:$0xff]  }
  0x39   : > { %2364 = vmatprep.subr.bf16.mxu0 %v2518_v45 }
  0x3a   : > { %2229 = vmatpush3.bf16.msra.mxu1 %v2483_v35  ;;  %v2573_v35 = vld [vmem:[%s2753_s7 + $0xd8] ss:$20 sps:$4 sm:$0xff]  }
  0x3b   : > { %2230 = vmatprep.subr.bf16.mxu1 %v2490_v36  ;;  %v2574_v36 = vld [vmem:[%s2753_s7 + $0x1c4] ss:$20 sps:$4 sm:$0xff]  }
  0x3c   : > { %2365 = vmatpush3.bf16.msra.mxu0 %v2518_v45  ;;  %v2586_v45 = vld [vmem:[%s2753_s7 + $0x1a0] ss:$20 sps:$4 sm:$0xff]  }
  0x3d   : > { %1088 = vmatmul.mubr.bf16.gmra.mxu0 %v2488_v37  ;;  %1184 = vmatmul.mubr.bf16.gmra.mxu1 %v2489_v39  ;;  %v2576_v37 = vld [vmem:[%s2753_s7 + $0x100] ss:$20 sps:$4 sm:$0xff]   ;;  %v2578_v39 = vld [vmem:[%s2753_s7 + $0x128] ss:$20 sps:$4 sm:$0xff]  }
  0x3e   : > { %2231 = vmatpush3.bf16.msra.mxu1 %v2492_v40  ;;  %1095 = vmatprep.mubr.bf16.mxu0 %v2495_v42  ;;  %v2579_v40 = vld [vmem:[%s2753_s7 + $0x1ec] ss:$20 sps:$4 sm:$0xff]   ;;  %v2582_v42 = vld [vmem:[%s2753_s7 + $0x1e8] ss:$20 sps:$4 sm:$0xff]  }
  0x3f   : > { %2232 = vmatprep.subr.bf16.mxu1 %v2493_v41  ;;  %1191 = vmatprep.mubr.bf16.mxu1 %v2497_v43  ;;  %v2581_v41 = vld [vmem:[%s2753_s7 + $0x150] ss:$20 sps:$4 sm:$0xff]   ;;  %v2583_v43 = vld [vmem:[%s2753_s7 + $0x178] ss:$20 sps:$4 sm:$0xff]  }
  0x40   : > { %2366 = vmatprep.subr.bf16.mxu0 %v2525_v52 }
  0x41   : > { %2367 = vmatpush3.bf16.msra.mxu0 %v2525_v52  ;;  %v2594_v52 = vld [vmem:[%s2753_s7 + $0x264] ss:$20 sps:$4 sm:$0xff]  }
  0x42   : > { %2233 = vmatpush3.bf16.msra.mxu1 %v2494_v44  ;;  %2368 = vmatprep.subr.bf16.mxu0 %v2538_v57  ;;  %v2584_v44 = vld [vmem:[%s2753_s7 + $0x214] ss:$20 sps:$4 sm:$0xff]  }
  0x43   : > { %2234 = vmatprep.subr.bf16.mxu1 %v2501_v48  ;;  %v2589_v48 = vld [vmem:[%s2753_s7 + $0x23c] ss:$20 sps:$4 sm:$0xff]  }
  0x45   : > { %1096 = vmatmul.mubr.bf16.gmra.mxu0 %v2499_v46  ;;  %1192 = vmatmul.mubr.bf16.gmra.mxu1 %v2500_v47  ;;  %v2587_v46 = vld [vmem:[%s2753_s7 + $0x210] ss:$20 sps:$4 sm:$0xff]   ;;  %v2588_v47 = vld [vmem:[%s2753_s7 + $0x1c8] ss:$20 sps:$4 sm:$0xff]  }
  0x46   : > { %2235 = vmatpush3.bf16.msra.mxu1 %v2502_v49  ;;  %1103 = vmatprep.mubr.bf16.mxu0 %v2506_v51  ;;  %v2591_v49 = vld [vmem:[%s2753_s7 + $0x1f0] ss:$20 sps:$4 sm:$0xff]   ;;  %v2593_v51 = vld [vmem:[%s2753_s7 + $0x218] ss:$20 sps:$4 sm:$0xff]  }
  0x47   : > { %2236 = vmatprep.subr.bf16.mxu1 %v2503_v50  ;;  %1232 = vmatprep.mubr.bf16.mxu1 %v2510_v53  ;;  %v2592_v50 = vld [vmem:[%s2753_s7 + $0x238] ss:$20 sps:$4 sm:$0xff]   ;;  %v2596_v53 = vld [vmem:[%s2753_s7 + $0x240] ss:$20 sps:$4 sm:$0xff]  }
  0x48   : > { %2369 = vmatpush3.bf16.msra.mxu0 %v2538_v57 }
  0x49   : > { %2370 = vmatprep.subr.bf16.mxu0 %v2545_v60 }
  0x4a   : > { %2237 = vmatpush3.bf16.msra.mxu1 %v2505_v54  ;;  %v2597_v54 = vld [vmem:[%s2753_s7 + $0x260] ss:$20 sps:$4 sm:$0xff]  }
  0x4c   : > { %2371 = vmatpush3.bf16.msra.mxu0 %v2545_v60 }
  0x4d   : > { %1104 = vmatmul.mubr.bf16.gmra.mxu0 %v2511_v56  ;;  %1233 = vmatmul.mubr.bf16.vlgmr.msra.gmra.mxu1 %v2508_v55  ;;  %v2598_v55 = vld [vmem:[%s2753_s7 + $0x268] ss:$20 sps:$4 sm:$0xff]   ;;  %s1828_s7 = sshll.u32 %s3221_s15, 2 }
  0x4e   : > { %1111 = vmatprep.mubr.bf16.mxu0 %v2512_v58  ;;  %1240 = vmatprep.mubr.bf16.mxu1 %v2514_v59  ;;  %s3096_s30 = scalar_lea.vmem %s3177_s2, %s1828_s7 }
  0x4f   : > { %2372 = vmatprep.subr.bf16.mxu0 %v2558_v1 }
  0x50   : > { %2373 = vmatpush3.bf16.msra.mxu0 %v2558_v1 }
  0x55   : > { %1112 = vmatmul.mubr.bf16.gmra.mxu0 %v2516_v61  ;;  %1241 = vmatmul.mubr.bf16.gmra.mxu1 %v2517_v62 }
  0x56   : > { %1119 = vmatprep.mubr.bf16.mxu0 %v2519_v63  ;;  %1248 = vmatprep.mubr.bf16.mxu1 %v2521_v0 }
  0x5d   : > { %1120 = vmatmul.mubr.bf16.gmra.mxu0 %v2523_v2  ;;  %1249 = vmatmul.mubr.bf16.gmra.mxu1 %v2524_v3 }
  0x5e   : > { %1127 = vmatprep.mubr.bf16.mxu0 %v2526_v4  ;;  %1256 = vmatprep.mubr.bf16.mxu1 %v2528_v5 }
  0x65   : > { %1128 = vmatmul.mubr.bf16.gmra.mxu0 %v2530_v6  ;;  %1257 = vmatmul.mubr.bf16.gmra.mxu1 %v2531_v7 }
  0x66   : > { %1135 = vmatprep.mubr.bf16.mxu0 %v2532_v8  ;;  %1264 = vmatprep.mubr.bf16.mxu1 %v2534_v9 }
  0x6d   : > { %1136 = vmatmul.mubr.bf16.gmra.mxu0 %v2536_v10  ;;  %1265 = vmatmul.mubr.bf16.gmra.mxu1 %v2537_v11 }
  0x6e   : > { %1143 = vmatprep.mubr.bf16.mxu0 %v2539_v12  ;;  %1272 = vmatprep.mubr.bf16.mxu1 %v2541_v13 }
  0x75   : > { %1144 = vmatmul.mubr.bf16.gmra.mxu0 %v2543_v14  ;;  %1273 = vmatmul.mubr.bf16.gmra.mxu1 %v2544_v15 }
  0x76   : > { %1151 = vmatprep.mubr.bf16.mxu0 %v2546_v16  ;;  %1280 = vmatprep.mubr.bf16.mxu1 %v2548_v17 }
  0x7d   : > { %1152 = vmatmul.mubr.bf16.gmra.mxu0 %v2550_v18  ;;  %1281 = vmatmul.mubr.bf16.gmra.mxu1 %v2551_v19 }
  0x7e   : > { %1159 = vmatprep.mubr.bf16.mxu0 %v2552_v20  ;;  %1288 = vmatprep.mubr.bf16.mxu1 %v2554_v21 }
  0x85   : > { %1160 = vmatmul.mubr.bf16.gmra.mxu0 %v2556_v22  ;;  %1289 = vmatmul.mubr.bf16.gmra.mxu1 %v2557_v23 }
  0x86   : > { %1296 = vmatprep.mubr.bf16.mxu1 %v2559_v24  ;;  %2374 = vmatprep.mubr.bf16.mxu0 %v2561_v25 }
  0x8d   : > { %1297 = vmatmul.mubr.bf16.gmra.mxu1 %v2562_v26  ;;  %2375 = vmatmul.mubr.bf16.vlgmr.msra.gmra.mxu0 %v2563_v27 }
  0x8e   : > { %1304 = vmatprep.mubr.bf16.mxu1 %v2564_v28  ;;  %2378 = vmatprep.mubr.bf16.mxu0 %v2566_v29 }
  0x95   : > { %1305 = vmatmul.mubr.bf16.gmra.mxu1 %v2567_v30  ;;  %2379 = vmatmul.mubr.bf16.gmra.mxu0 %v2568_v31 }
  0x96   : > { %1312 = vmatprep.mubr.bf16.mxu1 %v2569_v32  ;;  %2382 = vmatprep.mubr.bf16.mxu0 %v2571_v33 }
  0x9d   : > { %1313 = vmatmul.mubr.bf16.gmra.mxu1 %v2572_v34  ;;  %2383 = vmatmul.mubr.bf16.gmra.mxu0 %v2573_v35 }
  0x9e   : > { %1320 = vmatprep.mubr.bf16.mxu1 %v2574_v36  ;;  %2386 = vmatprep.mubr.bf16.mxu0 %v2576_v37 }
  0xa5   : > { %1321 = vmatmul.mubr.bf16.gmra.mxu1 %v2577_v38  ;;  %2387 = vmatmul.mubr.bf16.gmra.mxu0 %v2578_v39 }
  0xa6   : > { %1328 = vmatprep.mubr.bf16.mxu1 %v2579_v40  ;;  %2390 = vmatprep.mubr.bf16.mxu0 %v2581_v41 }
  0xad   : > { %1329 = vmatmul.mubr.bf16.gmra.mxu1 %v2582_v42  ;;  %2391 = vmatmul.mubr.bf16.gmra.mxu0 %v2583_v43 }
  0xae   : > { %1336 = vmatprep.mubr.bf16.mxu1 %v2584_v44  ;;  %2394 = vmatprep.mubr.bf16.mxu0 %v2586_v45 }
  0xb5   : > { %1337 = vmatmul.mubr.bf16.gmra.mxu1 %v2587_v46  ;;  %2395 = vmatmul.mubr.bf16.gmra.mxu0 %v2588_v47 }
  0xb6   : > { %1344 = vmatprep.mubr.bf16.mxu1 %v2589_v48  ;;  %2398 = vmatprep.mubr.bf16.mxu0 %v2591_v49 }
  0xbd   : > { %1345 = vmatmul.mubr.bf16.gmra.mxu1 %v2592_v50  ;;  %2399 = vmatmul.mubr.bf16.gmra.mxu0 %v2593_v51 }
  0xbe   : > { %1352 = vmatprep.mubr.bf16.mxu1 %v2594_v52  ;;  %2402 = vmatprep.mubr.bf16.mxu0 %v2596_v53 }
  0xc5   : > { %1353 = vmatmul.mubr.bf16.gmra.mxu1 %v2597_v54  ;;  %2403 = vmatmul.mubr.bf16.gmra.mxu0 %v2598_v55 }
  0xed   : > { %v2126_v56 = vpop.f32.mrf.mxu0  ;;  %v2198_v57 = vpop.f32.mrf.mxu1 }
  0xef   : > { %v2127_v58 = vpop.f32.mrf.mxu0  ;;  %v2199_v59 = vpop.f32.mrf.mxu1 }
  0xf0   : > { %v2128_v60 = vadd.f32 %v2127_v58, %v2126_v56  ;;  %v2928_v61 = vadd.f32 %v2199_v59, %v2198_v57 }
  0xf1   : > { %v2129_v62 = vpop.f32.mrf.mxu0  ;;  %v2201_v63 = vpop.f32.mrf.mxu1 }
  0xf2   : > { %3178 = vst [vmem:[#allocation2_spill] sm:$0xff] %v2928_v61 }
  0xf3   : > { %v2130_v0 = vpop.f32.mrf.mxu0  ;;  %v2202_v1 = vpop.f32.mrf.mxu1 }
  0xf4   : > { %v2930_v2 = vadd.f32 %v2130_v0, %v2129_v62  ;;  %v2932_v3 = vadd.f32 %v2202_v1, %v2201_v63 }
  0xf5   : > { %v2132_v4 = vpop.f32.mrf.mxu0  ;;  %v2204_v5 = vpop.f32.mrf.mxu1 }
  0xf6   : > { %3179 = vst [vmem:[#allocation3_spill] sm:$0xff] %v2932_v3 }
  0xf7   : > { %v2133_v6 = vpop.f32.mrf.mxu0  ;;  %v2205_v7 = vpop.f32.mrf.mxu1 }
  0xf8   : > { %v2934_v8 = vadd.f32 %v2133_v6, %v2132_v4  ;;  %v2936_v9 = vadd.f32 %v2205_v7, %v2204_v5 }
  0xf9   : > { %v2135_v10 = vpop.f32.mrf.mxu0  ;;  %v2207_v11 = vpop.f32.mrf.mxu1 }
  0xfa   : > { %3180 = vst [vmem:[#allocation4_spill] sm:$0xff] %v2936_v9 }
  0xfb   : > { %v2136_v12 = vpop.f32.mrf.mxu0  ;;  %v2208_v13 = vpop.f32.mrf.mxu1 }
  0xfc   : > { %v2938_v14 = vadd.f32 %v2136_v12, %v2135_v10  ;;  %v2940_v15 = vadd.f32 %v2208_v13, %v2207_v11 }
  0xfd   : > { %v2138_v16 = vpop.f32.mrf.mxu0  ;;  %v2210_v17 = vpop.f32.mrf.mxu1 }
  0xfe   : > { %3181 = vst [vmem:[#allocation5_spill] sm:$0xff] %v2940_v15 }
  0xff   : > { %v2139_v18 = vpop.f32.mrf.mxu0  ;;  %v2211_v19 = vpop.f32.mrf.mxu1 }
 0x100   : > { %v2942_v20 = vadd.f32 %v2139_v18, %v2138_v16  ;;  %v2944_v21 = vadd.f32 %v2211_v19, %v2210_v17 }
 0x101   : > { %v2141_v22 = vpop.f32.mrf.mxu0  ;;  %v2213_v23 = vpop.f32.mrf.mxu1 }
 0x102   : > { %3182 = vst [vmem:[#allocation6_spill] sm:$0xff] %v2944_v21 }
 0x103   : > { %v2142_v24 = vpop.f32.mrf.mxu0  ;;  %v2214_v25 = vpop.f32.mrf.mxu1 }
 0x104   : > { %v2946_v26 = vadd.f32 %v2142_v24, %v2141_v22  ;;  %v2948_v27 = vadd.f32 %v2214_v25, %v2213_v23 }
 0x105   : > { %v2144_v28 = vpop.f32.mrf.mxu0  ;;  %v2216_v29 = vpop.f32.mrf.mxu1 }
 0x106   : > { %3183 = vst [vmem:[#allocation7_spill] sm:$0xff] %v2948_v27 }
 0x107   : > { %v2145_v30 = vpop.f32.mrf.mxu0  ;;  %v2217_v31 = vpop.f32.mrf.mxu1 }
 0x108   : > { %v2950_v32 = vadd.f32 %v2145_v30, %v2144_v28  ;;  %v2952_v33 = vadd.f32 %v2217_v31, %v2216_v29 }
 0x109   : > { %v2147_v34 = vpop.f32.mrf.mxu0  ;;  %v2219_v35 = vpop.f32.mrf.mxu1 }
 0x10a   : > { %3184 = vst [vmem:[#allocation8_spill] sm:$0xff] %v2952_v33 }
 0x10b   : > { %v2148_v36 = vpop.f32.mrf.mxu0  ;;  %v2220_v37 = vpop.f32.mrf.mxu1 }
 0x10c   : > { %v2954_v38 = vadd.f32 %v2148_v36, %v2147_v34  ;;  %v2956_v39 = vadd.f32 %v2220_v37, %v2219_v35 }
 0x10d   : > { %v2150_v40 = vpop.f32.mrf.mxu0  ;;  %v2238_v41 = vpop.f32.mrf.mxu1 }
 0x10e   : > { %3185 = vst [vmem:[#allocation9_spill] sm:$0xff] %v2956_v39 }
 0x10f   : > { %v2151_v42 = vpop.f32.mrf.mxu0  ;;  %v2239_v43 = vpop.f32.mrf.mxu1 }
 0x110   : > { %v2958_v44 = vadd.f32 %v2151_v42, %v2150_v40  ;;  %v2240_v45 = vadd.f32 %v2239_v43, %v2238_v41 }
 0x111   : > { %v2153_v46 = vpop.f32.mrf.mxu0  ;;  %v2960_v47 = vpop.f32.mrf.mxu1 }
 0x112   : > { %v2962_v48 = vadd.f32 %v2240_v45, %v2128_v60 }
 0x113   : > { %v2154_v49 = vpop.f32.mrf.mxu0  ;;  %v2964_v50 = vpop.f32.mrf.mxu1 }
 0x114   : > { %v2966_v51 = vadd.f32 %v2154_v49, %v2153_v46 }
 0x115   : > { %v2156_v52 = vpop.f32.mrf.mxu0  ;;  %v2244_v53 = vpop.f32.mrf.mxu1 }
 0x117   : > { %v2157_v54 = vpop.f32.mrf.mxu0  ;;  %v2245_v55 = vpop.f32.mrf.mxu1 }
 0x118   : > { %v2968_v56 = vadd.f32 %v2157_v54, %v2156_v52  ;;  %v2246_v21 = vadd.f32 %v2245_v55, %v2244_v53 }
 0x119   : > { %v2159_v57 = vpop.f32.mrf.mxu0  ;;  %v2247_v58 = vpop.f32.mrf.mxu1 }
 0x11b   : > { %v2160_v59 = vpop.f32.mrf.mxu0  ;;  %v2248_v62 = vpop.f32.mrf.mxu1 }
 0x11c   : > { %v2970_v63 = vadd.f32 %v2160_v59, %v2159_v57 }
 0x11d   : > { %v2162_v0 = vpop.f32.mrf.mxu0  ;;  %v2972_v60 = vpop.f32.mrf.mxu1 }
 0x11f   : > { %v2163_v1 = vpop.f32.mrf.mxu0  ;;  %v2974_v4 = vpop.f32.mrf.mxu1 }
 0x120   : > { %v2976_v5 = vadd.f32 %v2163_v1, %v2162_v0 }
 0x121   : > { %v2165_v6 = vpop.f32.mrf.mxu0  ;;  %v2978_v7 = vpop.f32.mrf.mxu1 }
 0x123   : > { %v2166_v10 = vpop.f32.mrf.mxu0  ;;  %v2980_v11 = vpop.f32.mrf.mxu1 }
 0x124   : > { %v2982_v12 = vadd.f32 %v2166_v10, %v2165_v6 }
 0x125   : > { %v2984_v13 = vpop.f32.mrf.mxu0  ;;  %v2256_v16 = vpop.f32.mrf.mxu1 }
 0x127   : > { %v2986_v17 = vpop.f32.mrf.mxu0  ;;  %v2257_v18 = vpop.f32.mrf.mxu1 }
 0x129   : > { %v2988_v19 = vpop.f32.mrf.mxu0  ;;  %v2259_v22 = vpop.f32.mrf.mxu1 }
 0x12b   : > { %v2990_v23 = vpop.f32.mrf.mxu0  ;;  %v2260_v24 = vpop.f32.mrf.mxu1 }
 0x12d   : > { %v2174_v25 = vpop.f32.mrf.mxu0  ;;  %v2992_v28 = vpop.f32.mrf.mxu1 }
 0x12f   : > { %v2175_v29 = vpop.f32.mrf.mxu0  ;;  %v2994_v30 = vpop.f32.mrf.mxu1 }
 0x130   : > { %v2996_v31 = vadd.f32 %v2175_v29, %v2174_v25 }
 0x131   : > { %v2998_v34 = vpop.f32.mrf.mxu0  ;;  %v3000_v35 = vpop.f32.mrf.mxu1 }
 0x132   : > { %3186 = vst [vmem:[#allocation10_spill] sm:$0xff] %v2996_v31  ;;  %3187 = vst [vmem:[#allocation11_spill] sm:$0xff] %v2998_v34 }
 0x133   : > { %v3002_v36 = vpop.f32.mrf.mxu0  ;;  %v3004_v37 = vpop.f32.mrf.mxu1 }
 0x134   : > { %3188 = vst [vmem:[#allocation12_spill] sm:$0xff] %v3002_v36 }
 0x135   : > { %v3006_v40 = vpop.f32.mrf.mxu0  ;;  %v2268_v41 = vpop.f32.mrf.mxu1 }
 0x137   : > { %v3008_v42 = vpop.f32.mrf.mxu0  ;;  %v2269_v43 = vpop.f32.mrf.mxu1 }
 0x139   : > { %v3010_v45 = vpop.f32.mrf.mxu0  ;;  %v3012_v46 = vpop.f32.mrf.mxu1 }
 0x13b   : > { %v3014_v49 = vpop.f32.mrf.mxu0  ;;  %v2272_v52 = vpop.f32.mrf.mxu1 }
 0x13d   : > { %v3016_v54 = vpop.f32.mrf.mxu0  ;;  %v3018_v57 = vpop.f32.mrf.mxu1 }
 0x13e   : > { %3189 = vst [vmem:[#allocation13_spill] sm:$0xff] %v3016_v54 }
 0x13f   : > { %v3020_v59 = vpop.f32.mrf.mxu0  ;;  %v3022_v0 = vpop.f32.mrf.mxu1 }
 0x140   : > { %3190 = vst [vmem:[#allocation14_spill] sm:$0xff] %v3020_v59  ;;  %v1243_v59 = vadd.f32 %v2246_v21, %v2934_v8  ;;  %v2252_v8 = vadd.f32 %v2974_v4, %v2972_v60 }
 0x141   : > { %v3024_v1 = vpop.f32.mrf.mxu0  ;;  %v3026_v6 = vpop.f32.mrf.mxu1 }
 0x142   : > { %3191 = vst [vmem:[#allocation15_spill] sm:$0xff] %v3024_v1  ;;  %v1251_v60 = vadd.f32 %v2252_v8, %v2942_v20  ;;  %v2273_v20 = vadd.f32 %v2272_v52, %v3012_v46 }
 0x143   : > { %v3028_v10 = vpop.f32.mrf.mxu0  ;;  %v3030_v25 = vpop.f32.mrf.mxu1 }
 0x144   : > { %3192 = vst [vmem:[#allocation16_spill] sm:$0xff] %v3028_v10  ;;  %v2249_v10 = vadd.f32 %v2248_v62, %v2247_v58  ;;  %v1278_v52 = vadd.f32 %v2273_v20, %v2970_v63 }
 0x145   : > { %v3032_v29 = vpop.f32.mrf.mxu0  ;;  %v3034_v39 = vpop.f32.mrf.mxu1 }
 0x146   : > { %3193 = vst [vmem:[#allocation17_spill] sm:$0xff] %v3032_v29  ;;  %v1246_v55 = vadd.f32 %v2249_v10, %v2938_v14 }
 0x147   : > { %v3036_v27 = vpop.f32.mrf.mxu0  ;;  %v3038_v33 = vpop.f32.mrf.mxu1 }
 0x148   : > { %3194 = vst [vmem:[#allocation18_spill] sm:$0xff] %v3036_v27  ;;  %v2243_v27 = vadd.f32 %v2964_v50, %v2960_v47  ;;  %v2261_v50 = vadd.f32 %v2260_v24, %v2259_v22  ;;  %v2270_v24 = vadd.f32 %v2269_v43, %v2268_v41 }
 0x149   : > { %v3040_v3 = vpop.f32.mrf.mxu0  ;;  %v3042_v15 = vpop.f32.mrf.mxu1 }
 0x14a   : > { %3195 = vst [vmem:[#allocation19_spill] sm:$0xff] %v3040_v3  ;;  %v2258_v3 = vadd.f32 %v2257_v18, %v2256_v16  ;;  %v1238_v31 = vadd.f32 %v2243_v27, %v2930_v2  ;;  %v2255_v18 = vadd.f32 %v2980_v11, %v2978_v7  ;;  %v1262_v22 = vadd.f32 %v2261_v50, %v2954_v38 }
 0x14b   : > { %v3044_v61 = vpop.f32.mrf.mxu0  ;;  %v3046_v9 = vpop.f32.mrf.mxu1  ;;  %v2264_v7 = vadd.f32 %v2994_v30, %v2992_v28  ;;  %v1275_v43 = vadd.f32 %v2270_v24, %v2968_v56 }
 0x14c   : > { %3196 = vst [vmem:[#allocation20_spill] sm:$0xff] %v3044_v61 }
 0x14d   : > { %v3048_v1 = vpop.f32.mrf.mxu1  ;;  %v2376_v54 = vpop.f32.mrf.mxu0 }
 0x14e   : > { %v1404_v29 = vadd.f32 %v2376_v54, %v1243_v59 }
 0x14f   : > { %v3053_v36 = vpop.f32.mrf.mxu1  ;;  %v1395_v53 = vpop.f32.mrf.mxu0 }
 0x150   : > { %v1396_v61 = vadd.f32 %v1395_v53, %v2962_v48  ;;  %2599 = vtanh.f32 %v1404_v29  ;;  %v1259_v48 = vadd.f32 %v2258_v3, %v2950_v32  ;;  %v1254_v32 = vadd.f32 %v2255_v18, %v2946_v26 }
 0x151   : > { %v3057_v34 = vpop.f32.mrf.mxu1  ;;  %v2377_v58 = vpop.f32.mrf.mxu0  ;;  %v2267_v26 = vadd.f32 %v3004_v37, %v3000_v35  ;;  %v1267_v53 = vadd.f32 %v2264_v7, %v2958_v44  ;;  %v2288_v20 = vadd.f32 %v3053_v36, %v3048_v1 }
 0x152   : > { %v1407_v62 = vadd.f32 %v2377_v58, %v1246_v55 }
 0x153   : > { %v3062_v21 = vpop.f32.mrf.mxu1  ;;  %v1398_v47 = vpop.f32.mrf.mxu0  ;;  %v1270_v50 = vadd.f32 %v2267_v26, %v2966_v51 }
 0x154   : > { %2601 = vtanh.f32 %v1407_v62  ;;  %v1399_v54 = vadd.f32 %v1398_v47, %v1238_v31  ;;  %v2282_v62 = vadd.f32 %v3038_v33, %v3034_v39  ;;  %v2276_v33 = vadd.f32 %v3022_v0, %v3018_v57 }
 0x155   : > { %2603 = vtanh.f32 %v1396_v61  ;;  %v3064_v14 = vpop.f32.mrf.mxu1  ;;  %v2380_v16 = vpop.f32.mrf.mxu0  ;;  %v2291_v36 = vadd.f32 %v3062_v21, %v3057_v34 }
 0x156   : > { %2605 = vtanh.f32 %v1399_v54  ;;  %v1420_v2 = vadd.f32 %v2380_v16, %v1259_v48  ;;  %v2170_v54 = vadd.f32 %v2986_v17, %v2984_v13  ;;  %v2285_v16 = vadd.f32 %v3046_v9, %v3042_v15 }
 0x157   : > { %v3069_v27 = vpop.f32.mrf.mxu1  ;;  %v1411_v4 = vpop.f32.mrf.mxu0  ;;  %v2173_v13 = vadd.f32 %v2990_v23, %v2988_v19  ;;  %v2279_v17 = vadd.f32 %v3030_v25, %v3026_v6  ;;  %v1283_v9 = vadd.f32 %v2276_v33, %v2976_v5  ;;  %v2182_v5 = vadd.f32 %v3008_v42, %v3006_v40 }
 0x158   : > { %v1412_v31 = vadd.f32 %v1411_v4, %v1251_v60  ;;  %2607 = vtanh.f32 %v1420_v2  ;;  %v1291_v60 = vadd.f32 %v2282_v62, %v2170_v54  ;;  %v2185_v40 = vadd.f32 %v3014_v49, %v3010_v45  ;;  %v3201_v54 = vld [vmem:[#allocation18_spill] sm:$0xff] }
 0x159   : > { %v3073_v61 = vpop.f32.mrf.mxu1  ;;  %v2381_v59 = vpop.f32.mrf.mxu0  ;;  %v1294_v24 = vadd.f32 %v2285_v16, %v2173_v13  ;;  %v1286_v25 = vadd.f32 %v2279_v17, %v2982_v12  ;;  %v3203_v13 = vld [vmem:[#allocation14_spill] sm:$0xff] }
 0x15a   : > { %v1423_v3 = vadd.f32 %v2381_v59, %v1262_v22  ;;  %v2294_v59 = vadd.f32 %v3069_v27, %v3064_v14 }
 0x15b   : > { %v3078_v11 = vpop.f32.mrf.mxu1  ;;  %v1414_v10 = vpop.f32.mrf.mxu0 }
 0x15c   : > { %2609 = vtanh.f32 %v1423_v3  ;;  %v1415_v38 = vadd.f32 %v1414_v10, %v1254_v32  ;;  %v2297_v14 = vadd.f32 %v3078_v11, %v3073_v61  ;;  %v1307_v26 = vadd.f32 %v2294_v59, %v2182_v5 }
 0x15d   : > { %2611 = vtanh.f32 %v1412_v31  ;;  %v3081_v41 = vpop.f32.mrf.mxu1  ;;  %v2384_v29 = vpop.f32.mrf.mxu0 }
 0x15e   : > { %2613 = vtanh.f32 %v1415_v38  ;;  %v1436_v28 = vadd.f32 %v2384_v29, %v1275_v43  ;;  %v2600_v46 = vpop.eup %2599  ;;  %v1310_v62 = vadd.f32 %v2297_v14, %v2185_v40 }
 0x15f   : > { %v3087_v30 = vpop.f32.mrf.mxu1  ;;  %v1427_v55 = vpop.f32.mrf.mxu0 }
 0x160   : > { %v1428_v56 = vadd.f32 %v1427_v55, %v1267_v53  ;;  %2615 = vtanh.f32 %v1436_v28  ;;  %v3197_v53 = vld [vmem:[#allocation10_spill] sm:$0xff] }
 0x161   : > { %v2602_v58 = vpop.eup %2601  ;;  %v3098_v35 = vpop.f32.mrf.mxu1  ;;  %v1299_v55 = vadd.f32 %v2288_v20, %v3197_v53 }
 0x162   : > { %v2385_v37 = vpop.f32.mrf.mxu0  ;;  %v2604_v8 = vpop.eup %2603  ;;  %v2023_v44 = vpack.c.bf16 %v2602_v58, %v2600_v46  ;;  %v3198_v46 = vld [vmem:[#allocation11_spill] sm:$0xff] }
 0x163   : > { %v1439_v47 = vadd.f32 %v2385_v37, %v1278_v52  ;;  %v2606_v63 = vpop.eup %2605  ;;  %v3105_v39 = vpop.f32.mrf.mxu1  ;;  %v3199_v52 = vld [vmem:[#allocation12_spill] sm:$0xff] }
 0x164   : > { %v1430_v48 = vpop.f32.mrf.mxu0  ;;  %2095 = vst [vmem:[%s3096_s30 + $0x8] sm:$0xff] %v2023_v44   ;;  %v2018_v18 = vpack.c.bf16 %v2606_v63, %v2604_v8  ;;  %v2179_v58 = vadd.f32 %v3199_v52, %v3198_v46  ;;  %v3200_v63 = vld [vmem:[#allocation17_spill] sm:$0xff] }
 0x165   : > { %2617 = vtanh.f32 %v1439_v47  ;;  %v1431_v2 = vadd.f32 %v1430_v48, %v1270_v50  ;;  %v2304_v51 = vpop.f32.mrf.mxu1  ;;  %v2608_v22 = vpop.eup %2607  ;;  %v2194_v33 = vadd.f32 %v3201_v54, %v3200_v63  ;;  %v2300_v48 = vadd.f32 %v3087_v30, %v3081_v41  ;;  %v3211_v54 = vld [vmem:[#allocation3_spill] sm:$0xff] }
 0x166   : > { %2619 = vtanh.f32 %v1428_v56  ;;  %v2388_v4 = vpop.f32.mrf.mxu0  ;;  %2019 = vst [vmem:[%s3096_s30] sm:$0xff] %v2018_v18   ;;  %v1302_v47 = vadd.f32 %v2291_v36, %v2179_v58  ;;  %v2303_v41 = vadd.f32 %v3105_v39, %v3098_v35 }
 0x167   : > { %2621 = vtanh.f32 %v1431_v2  ;;  %v1452_v57 = vadd.f32 %v2388_v4, %v1291_v60  ;;  %v2305_v0 = vpop.f32.mrf.mxu1  ;;  %v3202_v4 = vld [vmem:[#allocation13_spill] sm:$0xff] }
 0x168   : > { %v1443_v15 = vpop.f32.mrf.mxu0  ;;  %v2306_v37 = vadd.f32 %v2305_v0, %v2304_v51  ;;  %v2188_v17 = vadd.f32 %v3203_v13, %v3202_v4 }
 0x169   : > { %v2610_v31 = vpop.eup %2609  ;;  %v1444_v3 = vadd.f32 %v1443_v15, %v1283_v9  ;;  %v2307_v32 = vpop.f32.mrf.mxu1  ;;  %2623 = vtanh.f32 %v1452_v57  ;;  %v3204_v15 = vld [vmem:[#allocation19_spill] sm:$0xff] }
 0x16a   : > { %v2389_v19 = vpop.f32.mrf.mxu0  ;;  %v2612_v23 = vpop.eup %2611  ;;  %v2033_v7 = vpack.c.bf16 %v2610_v31, %v2608_v22  ;;  %v1323_v0 = vadd.f32 %v2306_v37, %v2194_v33  ;;  %v3205_v22 = vld [vmem:[#allocation20_spill] sm:$0xff]  ;;  %v1315_v59 = vadd.f32 %v2300_v48, %v2188_v17  ;;  %v3210_v37 = vld [vmem:[#allocation5_spill] sm:$0xff] }
 0x16b   : > { %v1455_v6 = vadd.f32 %v2389_v19, %v1294_v24  ;;  %v2614_v10 = vpop.eup %2613  ;;  %v2308_v38 = vpop.f32.mrf.mxu1  ;;  %v2197_v24 = vadd.f32 %v3205_v22, %v3204_v15  ;;  %v3206_v19 = vld [vmem:[#allocation15_spill] sm:$0xff]  ;;  %v3212_v15 = vld [vmem:[#allocation6_spill] sm:$0xff] }
 0x16c   : > { %v1446_v43 = vpop.f32.mrf.mxu0  ;;  %2097 = vst [vmem:[%s3096_s30 + $0x18] sm:$0xff] %v2033_v7   ;;  %v2028_v27 = vpack.c.bf16 %v2614_v10, %v2612_v23  ;;  %v2309_v51 = vadd.f32 %v2308_v38, %v2307_v32  ;;  %v3207_v23 = vld [vmem:[#allocation16_spill] sm:$0xff] }
 0x16d   : > { %2625 = vtanh.f32 %v1455_v6  ;;  %v1447_v29 = vadd.f32 %v1446_v43, %v1286_v25  ;;  %v2310_v12 = vpop.f32.mrf.mxu1  ;;  %v2616_v11 = vpop.eup %2615  ;;  %v2191_v7 = vadd.f32 %v3207_v23, %v3206_v19  ;;  %v3214_v23 = vld [vmem:[#allocation7_spill] sm:$0xff] }
 0x16e   : > { %2627 = vtanh.f32 %v1444_v3  ;;  %v2392_v28 = vpop.f32.mrf.mxu0  ;;  %2096 = vst [vmem:[%s3096_s30 + $0x10] sm:$0xff] %v2028_v27   ;;  %v1326_v6 = vadd.f32 %v2309_v51, %v2197_v24 }
 0x16f   : > { %2629 = vtanh.f32 %v1447_v29  ;;  %v1468_v42 = vadd.f32 %v2392_v28, %v1307_v26  ;;  %v2311_v1 = vpop.f32.mrf.mxu1  ;;  %v1318_v39 = vadd.f32 %v2303_v41, %v2191_v7 }
 0x170   : > { %v1459_v61 = vpop.f32.mrf.mxu0  ;;  %v2312_v29 = vadd.f32 %v2311_v1, %v2310_v12 }
 0x171   : > { %v1460_v8 = vadd.f32 %v1459_v61, %v1299_v55  ;;  %v2313_v45 = vpop.f32.mrf.mxu1  ;;  %2631 = vtanh.f32 %v1468_v42  ;;  %v3208_v55 = vld [vmem:[#allocation4_spill] sm:$0xff] }
 0x172   : > { %v2618_v56 = vpop.eup %2617  ;;  %v2393_v49 = vpop.f32.mrf.mxu0 }
 0x173   : > { %v2620_v44 = vpop.eup %2619  ;;  %v2043_v34 = vpack.c.bf16 %v2618_v56, %v2616_v11  ;;  %v1471_v21 = vadd.f32 %v2393_v49, %v1310_v62  ;;  %v2314_v16 = vpop.f32.mrf.mxu1  ;;  %v3209_v62 = vld [vmem:[#allocation2_spill] sm:$0xff] }
 0x174   : > { %v2622_v50 = vpop.eup %2621  ;;  %v1462_v18 = vpop.f32.mrf.mxu0  ;;  %v2315_v46 = vadd.f32 %v2314_v16, %v2313_v45  ;;  %v1331_v12 = vadd.f32 %v2312_v29, %v3209_v62 }
 0x175   : > { %2099 = vst [vmem:[%s3096_s30 + $0x28] sm:$0xff] %v2043_v34   ;;  %v2038_v2 = vpack.c.bf16 %v2622_v50, %v2620_v44  ;;  %2633 = vtanh.f32 %v1471_v21  ;;  %v1463_v60 = vadd.f32 %v1462_v18, %v1302_v47  ;;  %v2316_v57 = vpop.f32.mrf.mxu1 }
 0x176   : > { %2635 = vtanh.f32 %v1460_v8  ;;  %v2396_v9 = vpop.f32.mrf.mxu0  ;;  %v2624_v32 = vpop.eup %2623  ;;  %v1334_v45 = vadd.f32 %v2315_v46, %v3211_v54 }
 0x177   : > { %2098 = vst [vmem:[%s3096_s30 + $0x20] sm:$0xff] %v2038_v2   ;;  %2637 = vtanh.f32 %v1463_v60  ;;  %v1484_v30 = vadd.f32 %v2396_v9, %v1323_v0  ;;  %v2317_v31 = vpop.f32.mrf.mxu1 }
 0x178   : > { %v1475_v3 = vpop.f32.mrf.mxu0  ;;  %v2318_v10 = vadd.f32 %v2317_v31, %v2316_v57 }
 0x179   : > { %v1476_v5 = vadd.f32 %v1475_v3, %v1315_v59  ;;  %v2319_v20 = vpop.f32.mrf.mxu1  ;;  %2639 = vtanh.f32 %v1484_v30  ;;  %v3213_v3 = vld [vmem:[#allocation8_spill] sm:$0xff] }
 0x17a   : > { %v2626_v25 = vpop.eup %2625  ;;  %v2397_v38 = vpop.f32.mrf.mxu0  ;;  %v1339_v61 = vadd.f32 %v2318_v10, %v3208_v55 }
 0x17b   : > { %v2628_v43 = vpop.eup %2627  ;;  %v2053_v14 = vpack.c.bf16 %v2626_v25, %v2624_v32  ;;  %v1487_v35 = vadd.f32 %v2397_v38, %v1326_v6  ;;  %v2320_v26 = vpop.f32.mrf.mxu1 }
 0x17c   : > { %v2630_v27 = vpop.eup %2629  ;;  %v1478_v28 = vpop.f32.mrf.mxu0  ;;  %v2321_v36 = vadd.f32 %v2320_v26, %v2319_v20 }
 0x17d   : > { %2101 = vst [vmem:[%s3096_s30 + $0x38] sm:$0xff] %v2053_v14   ;;  %v2048_v40 = vpack.c.bf16 %v2630_v27, %v2628_v43  ;;  %2641 = vtanh.f32 %v1487_v35  ;;  %v1479_v42 = vadd.f32 %v1478_v28, %v1318_v39  ;;  %v2322_v53 = vpop.f32.mrf.mxu1  ;;  %v3215_v14 = vld [vmem:[#allocation9_spill] sm:$0xff] }
 0x17e   : > { %2643 = vtanh.f32 %v1476_v5  ;;  %v2400_v11 = vpop.f32.mrf.mxu0  ;;  %v2632_v56 = vpop.eup %2631  ;;  %v1342_v8 = vadd.f32 %v2321_v36, %v3210_v37 }
 0x17f   : > { %2100 = vst [vmem:[%s3096_s30 + $0x30] sm:$0xff] %v2048_v40   ;;  %2645 = vtanh.f32 %v1479_v42  ;;  %v1500_v52 = vadd.f32 %v2400_v11, %v1339_v61  ;;  %v2323_v58 = vpop.f32.mrf.mxu1 }
 0x180   : > { %v1491_v1 = vpop.f32.mrf.mxu0  ;;  %v2324_v2 = vadd.f32 %v2323_v58, %v2322_v53 }
 0x181   : > { %v1492_v44 = vadd.f32 %v1491_v1, %v1331_v12  ;;  %v2325_v34 = vpop.f32.mrf.mxu1  ;;  %2647 = vtanh.f32 %v1500_v52 }
 0x182   : > { %v2634_v49 = vpop.eup %2633  ;;  %v2401_v21 = vpop.f32.mrf.mxu0  ;;  %v1347_v22 = vadd.f32 %v2324_v2, %v3212_v15 }
 0x183   : > { %v2636_v47 = vpop.eup %2635  ;;  %v2063_v50 = vpack.c.bf16 %v2634_v49, %v2632_v56  ;;  %v1503_v63 = vadd.f32 %v2401_v21, %v1342_v8  ;;  %v2326_v48 = vpop.f32.mrf.mxu1 }
 0x184   : > { %v2638_v33 = vpop.eup %2637  ;;  %v1494_v16 = vpop.f32.mrf.mxu0  ;;  %v2327_v13 = vadd.f32 %v2326_v48, %v2325_v34 }
 0x185   : > { %2103 = vst [vmem:[%s3096_s30 + $0x48] sm:$0xff] %v2063_v50   ;;  %v2058_v18 = vpack.c.bf16 %v2638_v33, %v2636_v47  ;;  %2649 = vtanh.f32 %v1503_v63  ;;  %v1495_v51 = vadd.f32 %v1494_v16, %v1334_v45  ;;  %v2328_v60 = vpop.f32.mrf.mxu1 }
 0x186   : > { %2651 = vtanh.f32 %v1492_v44  ;;  %v2404_v4 = vpop.f32.mrf.mxu0  ;;  %v2640_v0 = vpop.eup %2639  ;;  %v1350_v7 = vadd.f32 %v2327_v13, %v3214_v23 }
 0x187   : > { %2102 = vst [vmem:[%s3096_s30 + $0x40] sm:$0xff] %v2058_v18   ;;  %2653 = vtanh.f32 %v1495_v51  ;;  %v2329_v17 = vpop.f32.mrf.mxu1 }
 0x188   : > { %v1507_v57 = vpop.f32.mrf.mxu0  ;;  %v2330_v9 = vadd.f32 %v2329_v17, %v2328_v60 }
 0x189   : > { %v2331_v41 = vpop.f32.mrf.mxu1  ;;  %v1508_v19 = vadd.f32 %v1507_v57, %v1347_v22 }
 0x18a   : > { %v2642_v24 = vpop.eup %2641  ;;  %v2405_v30 = vpop.f32.mrf.mxu0  ;;  %v1355_v32 = vadd.f32 %v2330_v9, %v3213_v3 }
 0x18b   : > { %v2644_v31 = vpop.eup %2643  ;;  %v2073_v59 = vpack.c.bf16 %v2642_v24, %v2640_v0  ;;  %v2332_v25 = vpop.f32.mrf.mxu1  ;;  %2655 = vtanh.f32 %v1508_v19 }
 0x18c   : > { %v2646_v6 = vpop.eup %2645  ;;  %v1510_v10 = vpop.f32.mrf.mxu0  ;;  %v2333_v20 = vadd.f32 %v2332_v25, %v2331_v41  ;;  %v1516_v43 = vadd.f32 %v2404_v4, %v1355_v32 }
 0x18d   : > { %2105 = vst [vmem:[%s3096_s30 + $0x58] sm:$0xff] %v2073_v59   ;;  %v2068_v5 = vpack.c.bf16 %v2646_v6, %v2644_v31  ;;  %v1511_v38 = vadd.f32 %v1510_v10, %v1350_v7 }
 0x18e   : > { %v1358_v35 = vadd.f32 %v2333_v20, %v3215_v14  ;;  %v2648_v39 = vpop.eup %2647 }
 0x18f   : > { %2104 = vst [vmem:[%s3096_s30 + $0x50] sm:$0xff] %v2068_v5   ;;  %2657 = vtanh.f32 %v1511_v38 }
 0x190   : > { %v1519_v27 = vadd.f32 %v2405_v30, %v1358_v35  ;;  %2659 = vtanh.f32 %v1516_v43 }
 0x192   : > { %v2650_v29 = vpop.eup %2649  ;;  %2661 = vtanh.f32 %v1519_v27 }
 0x193   : > { %v2652_v26 = vpop.eup %2651  ;;  %v2083_v28 = vpack.c.bf16 %v2650_v29, %v2648_v39 }
 0x194   : > { %v2654_v40 = vpop.eup %2653 }
 0x195   : > { %2107 = vst [vmem:[%s3096_s30 + $0x68] sm:$0xff] %v2083_v28   ;;  %v2078_v36 = vpack.c.bf16 %v2654_v40, %v2652_v26 }
 0x197   : > { %2106 = vst [vmem:[%s3096_s30 + $0x60] sm:$0xff] %v2078_v36  }
 0x198   : > { %v2656_v42 = vpop.eup %2655 }
 0x19c   : > { %v2658_v53 = vpop.eup %2657 }
 0x19d   : > { %v2088_v55 = vpack.c.bf16 %v2658_v53, %v2656_v42  ;;  %v2660_v61 = vpop.eup %2659 }
 0x19f   : > { %v2662_v11 = vpop.eup %2661  ;;  %2108 = vst [vmem:[%s3096_s30 + $0x70] sm:$0xff] %v2088_v55  }
 0x1a0   : > { %v2093_v46 = vpack.c.bf16 %v2662_v11, %v2660_v61 }
 0x1a2   : > { %2109 = vst [vmem:[%s3096_s30 + $0x78] sm:$0xff] %v2093_v46  }
 0x1a3 PF: > { %s12_s11 = sadd.s32 1, %s2685_s11   ;;  %s3216_s9 = smov %s2681_s10 }
 0x1a4   : > { %p9_p5 = scmp.ge.s32.totalorder %s12_s11, 10   ;;  %s3217_s10 = smov %s3219_s12 }
 0x1a6   :  { %11 = sbr.rel (!%p9_p5) target bundleno = 2 (0x2), region = 61 }

</bundles_post_ra>
